<compile_context>
chip_gen: v6e
topology: v6e:2x2x1
jax: 0.10.0
libtpu: 0.0.40
codegen_flags: <defaults>
</compile_context>

<pallas_src>
import functools

import jax
import jax.numpy as jnp
from jax.experimental import pallas as pl
from jax.experimental.pallas import tpu as pltpu


# ----------------------------- Pallas kernels -----------------------------

def _conv_lrelu_kernel(p_ref, w_ref, b_ref, o_ref):
    # Conv-as-matmul + bias + LeakyReLU(0.2).  bf16 inputs, f32 accumulation.
    acc = jnp.dot(p_ref[...], w_ref[...], preferred_element_type=jnp.float32)
    acc = acc + b_ref[...]
    acc = jnp.where(acc > 0, acc, 0.2 * acc)
    o_ref[...] = acc.astype(o_ref.dtype)


def _conv_bn_lrelu_kernel(p_ref, w_ref, o_ref):
    # Conv-as-matmul + BatchNorm (train-mode batch stats, gamma=1, beta=0,
    # eps=1e-5, biased variance like PyTorch) + LeakyReLU(0.2), all fused.
    # The conv bias is intentionally omitted: BN's mean subtraction cancels
    # any per-channel bias exactly.
    acc = jnp.dot(p_ref[...], w_ref[...], preferred_element_type=jnp.float32)
    mean = jnp.mean(acc, axis=0, keepdims=True)
    var = jnp.mean((acc - mean) ** 2, axis=0, keepdims=True)
    y = (acc - mean) * jax.lax.rsqrt(var + 1e-5)
    y = jnp.where(y > 0, y, 0.2 * y)
    o_ref[...] = y.astype(o_ref.dtype)


def _final_conv_sigmoid_kernel(p_ref, w_ref, b_ref, o_ref):
    # Cout == 1: an MXU matmul would use 1/128 lanes, so compute the
    # per-row dot product with a VPU multiply + cross-lane reduce (XLU).
    # p: (M, K) bf16, w: (1, K) f32, b: SMEM (1,) f32, out: (M, 1) f32.
    p = p_ref[...].astype(jnp.float32)
    acc = jnp.sum(p * w_ref[...], axis=-1, keepdims=True) + b_ref[0]
    o_ref[...] = jax.nn.sigmoid(acc)


# ----------------------------- kernel wrappers ------------------------------

def conv_lrelu(patches, w_mat, bias):
    """Layer 1: conv + LeakyReLU (no BN). Gridded over M (parallel)."""
    M, K = patches.shape
    _, N = w_mat.shape
    bm = 256 if (M % 256 == 0) else M
    return pl.pallas_call(
        _conv_lrelu_kernel,
        out_shape=jax.ShapeDtypeStruct((M, N), jnp.bfloat16),
        grid=(M // bm,),
        in_specs=[
            pl.BlockSpec((bm, K), lambda i: (i, 0)),
            pl.BlockSpec((K, N), lambda i: (0, 0)),
            pl.BlockSpec((1, N), lambda i: (0, 0)),
        ],
        out_specs=pl.BlockSpec((bm, N), lambda i: (i, 0)),
        compiler_params=pltpu.CompilerParams(
            dimension_semantics=("parallel",)),
    )(patches, w_mat, bias.reshape(1, N))


def conv_bn_lrelu(patches, w_mat):
    """Layers 2-4: conv + BatchNorm(batch stats) + LeakyReLU, fully fused."""
    M, K = patches.shape
    _, N = w_mat.shape
    return pl.pallas_call(
        _conv_bn_lrelu_kernel,
        out_shape=jax.ShapeDtypeStruct((M, N), jnp.bfloat16),
    )(patches, w_mat)


def final_conv_sigmoid(patches, w_row, bias):
    """Layer 5: conv (Cout=1) + sigmoid via VPU/XLU reduction."""
    M, K = patches.shape
    return pl.pallas_call(
        _final_conv_sigmoid_kernel,
        out_shape=jax.ShapeDtypeStruct((M, 1), jnp.float32),
        in_specs=[
            pl.BlockSpec(memory_space=pltpu.MemorySpace.VMEM),
            pl.BlockSpec(memory_space=pltpu.MemorySpace.VMEM),
            pl.BlockSpec(memory_space=pltpu.MemorySpace.SMEM),
        ],
        out_specs=pl.BlockSpec(memory_space=pltpu.MemorySpace.VMEM),
    )(patches, w_row, bias)


# ------------------------------ JAX glue -----------------------------------

def im2col(x_nhwc, k, stride, pad):
    x = jnp.pad(x_nhwc, ((0, 0), (pad, pad), (pad, pad), (0, 0)))
    B, Hp, Wp, C = x.shape
    Ho = (Hp - k) // stride + 1
    Wo = (Wp - k) // stride + 1
    cols = []
    for di in range(k):
        for dj in range(k):
            cols.append(x[:, di:di + stride * Ho:stride,
                          dj:dj + stride * Wo:stride, :])
    # concat order = (kh, kw, Cin)  ->  matches weight permute (2, 3, 1, 0)
    pat = jnp.concatenate(cols, axis=-1)
    return pat.reshape(B * Ho * Wo, k * k * C), (B, Ho, Wo)


def weight_matrix(w_oihw):
    Cout, Cin, kh, kw = w_oihw.shape
    return jnp.transpose(w_oihw, (2, 3, 1, 0)).reshape(kh * kw * Cin, Cout)


def discriminator_forward(x_nchw, params):
    # NCHW -> NHWC, bf16 activations (MXU-native; f32 accumulation in-kernel)
    x = jnp.transpose(x_nchw, (0, 2, 3, 1)).astype(jnp.bfloat16)

    # block 1: conv(s=2) + LeakyReLU (no BN)
    p, (B, Ho, Wo) = im2col(x, 4, 2, 1)
    w = weight_matrix(params["w1"]).astype(jnp.bfloat16)
    x = conv_lrelu(p, w, params["b1"].astype(jnp.float32)).reshape(B, Ho, Wo, -1)

    # blocks 2-4: conv(s=2) + BatchNorm + LeakyReLU, one fused kernel each.
    # Conv bias is dropped (exactly cancelled by BN mean subtraction).
    # TODO(synk): BN uses train-mode batch statistics of a fresh module
    # (gamma=1, beta=0, no running stats), matching the reference at init.
    for i in (2, 3, 4):
        p, (B, Ho, Wo) = im2col(x, 4, 2, 1)
        w = weight_matrix(params[f"w{i}"]).astype(jnp.bfloat16)
        x = conv_bn_lrelu(p, w).reshape(B, Ho, Wo, -1)

    # final conv(s=1), Cout=1, + sigmoid
    p, (B, Ho, Wo) = im2col(x, 4, 1, 1)
    w_row = jnp.transpose(params["w5"], (2, 3, 1, 0)).reshape(1, -1).astype(jnp.float32)
    out = final_conv_sigmoid(p, w_row, params["b5"].astype(jnp.float32))
    out = out.reshape(B, Ho, Wo, 1)
    return jnp.transpose(out, (0, 3, 1, 2))   # back to NCHW


def init_params(key, in_channels):
    shapes = [
        (64, in_channels, 4, 4),
        (128, 64, 4, 4),
        (256, 128, 4, 4),
        (512, 256, 4, 4),
        (1, 512, 4, 4),
    ]
    params = {}
    for i, s in enumerate(shapes, start=1):
        key, kw_key, kb_key = jax.random.split(key, 3)
        fan_in = s[1] * s[2] * s[3]
        bound = 1.0 / float(fan_in) ** 0.5          # PyTorch default conv init range
        params[f"w{i}"] = jax.random.uniform(kw_key, s, jnp.float32, -bound, bound)
        params[f"b{i}"] = jax.random.uniform(kb_key, (s[0],), jnp.float32, -bound, bound)
    return params


# ------------------------------- main ---------------------------------------

if __name__ == "__main__":
    key = jax.random.PRNGKey(0)
    kx, kp = jax.random.split(key)

    in_channels = 4
    # H=W=32 so the four stride-2 convs and the final stride-1 conv are all valid:
    # 32 -> 16 -> 8 -> 4 -> 2 -> 1
    x = jax.random.normal(kx, (2, in_channels, 32, 32), jnp.float32)
    params = init_params(kp, in_channels)

    fwd = jax.jit(discriminator_forward)
    out = fwd(x, params)
    jax.block_until_ready(out)

    assert out.shape == (2, 1, 1, 1), out.shape
    assert bool(jnp.all(jnp.isfinite(out)))
    assert bool(jnp.all((out >= 0.0) & (out <= 1.0)))
    print("KERNEL_OK")
</pallas_src>

<mosaic_0001>
module attributes {stable_mosaic.version = 11 : i64} {
  func.func @_conv_lrelu_kernel(%arg0: i32, %arg1: memref<256x64xbf16, #tpu.memory_space<vmem>>, %arg2: memref<64x64xbf16, #tpu.memory_space<vmem>>, %arg3: memref<1x64xf32, #tpu.memory_space<vmem>>, %arg4: memref<256x64xbf16, #tpu.memory_space<vmem>>) attributes {dimension_semantics = [#tpu.dimension_semantics<parallel>], iteration_bounds = array<i64: 2>, scalar_prefetch = 0 : i64, scratch_operands = 0 : i64, tpu.core_type = #tpu.core_type<tc>, window_params = [{transform_indices = @transform_0, window_bounds = array<i64: 256, 64>}, {pipeline_mode = #tpu.pipeline_mode<synchronous>, transform_indices = @transform_1, window_bounds = array<i64: 64, 64>}, {pipeline_mode = #tpu.pipeline_mode<synchronous>, transform_indices = @transform_2, window_bounds = array<i64: 1, 64>}, {transform_indices = @transform_3, window_bounds = array<i64: 256, 64>}]} {
    %c0 = arith.constant 0 : index
    %c0_0 = arith.constant 0 : index
    %0 = vector.load %arg1[%c0, %c0_0] : memref<256x64xbf16, #tpu.memory_space<vmem>>, vector<256x64xbf16>
    %c0_1 = arith.constant 0 : index
    %c0_2 = arith.constant 0 : index
    %1 = vector.load %arg2[%c0_1, %c0_2] : memref<64x64xbf16, #tpu.memory_space<vmem>>, vector<64x64xbf16>
    %cst = arith.constant dense<0.000000e+00> : vector<256x64xf32>
    %2 = tpu.matmul %0, %1, %cst {dimension_numbers = #tpu.dot_dimension_numbers<[1], [0], [0], [1], [0, 0, 1, 1], [], []>} : vector<256x64xbf16>, vector<64x64xbf16>, vector<256x64xf32> -> vector<256x64xf32>
    %c0_3 = arith.constant 0 : index
    %c0_4 = arith.constant 0 : index
    %3 = vector.load %arg3[%c0_3, %c0_4] : memref<1x64xf32, #tpu.memory_space<vmem>>, vector<1x64xf32>
    %4 = vector.broadcast %3 : vector<1x64xf32> to vector<256x64xf32>
    %5 = arith.addf %2, %4 : vector<256x64xf32>
    %cst_5 = arith.constant 0.000000e+00 : f32
    %6 = vector.broadcast %cst_5 : f32 to vector<256x64xf32>
    %7 = arith.cmpf ogt, %5, %6 : vector<256x64xf32>
    %cst_6 = arith.constant 2.000000e-01 : f32
    %8 = vector.broadcast %cst_6 : f32 to vector<256x64xf32>
    %9 = arith.mulf %8, %5 : vector<256x64xf32>
    %10 = arith.select %7, %5, %9 : vector<256x64xi1>, vector<256x64xf32>
    %11 = arith.truncf %10 : vector<256x64xf32> to vector<256x64xbf16>
    %c0_7 = arith.constant 0 : index
    %c0_8 = arith.constant 0 : index
    %12 = vector.load %arg4[%c0_7, %c0_8] : memref<256x64xbf16, #tpu.memory_space<vmem>>, vector<256x64xbf16>
    tpu.vector_store %arg4[%c0_7, %c0_8], %11 {strides = array<i32>} : memref<256x64xbf16, #tpu.memory_space<vmem>>, vector<256x64xbf16>,
    return
  }
  func.func @transform_0(%arg0: i32) -> (i32, i32) {
    %c0_i32 = arith.constant 0 : i32
    %c0_i32_0 = arith.constant 0 : i32
    return %arg0, %c0_i32 : i32, i32
  }
  func.func @transform_1(%arg0: i32) -> (i32, i32) {
    %c0_i32 = arith.constant 0 : i32
    %c0_i32_0 = arith.constant 0 : i32
    %c0_i32_1 = arith.constant 0 : i32
    return %c0_i32, %c0_i32_0 : i32, i32
  }
  func.func @transform_2(%arg0: i32) -> (i32, i32) {
    %c0_i32 = arith.constant 0 : i32
    %c0_i32_0 = arith.constant 0 : i32
    %c0_i32_1 = arith.constant 0 : i32
    return %c0_i32, %c0_i32_0 : i32, i32
  }
  func.func @transform_3(%arg0: i32) -> (i32, i32) {
    %c0_i32 = arith.constant 0 : i32
    %c0_i32_0 = arith.constant 0 : i32
    return %arg0, %c0_i32 : i32, i32
  }
}

module attributes {stable_mosaic.version = 11 : i64} {
  func.func @_conv_bn_lrelu_kernel(%arg0: memref<128x1024xbf16, #tpu.memory_space<vmem>>, %arg1: memref<1024x128xbf16, #tpu.memory_space<vmem>>, %arg2: memref<128x128xbf16, #tpu.memory_space<vmem>>) attributes {dimension_semantics = [], scalar_prefetch = 0 : i64, scratch_operands = 0 : i64, tpu.core_type = #tpu.core_type<tc>} {
    %c0 = arith.constant 0 : index
    %c0_0 = arith.constant 0 : index
    %0 = vector.load %arg0[%c0, %c0_0] : memref<128x1024xbf16, #tpu.memory_space<vmem>>, vector<128x1024xbf16>
    %c0_1 = arith.constant 0 : index
    %c0_2 = arith.constant 0 : index
    %1 = vector.load %arg1[%c0_1, %c0_2] : memref<1024x128xbf16, #tpu.memory_space<vmem>>, vector<1024x128xbf16>
    %cst = arith.constant dense<0.000000e+00> : vector<128x128xf32>
    %2 = tpu.matmul %0, %1, %cst {dimension_numbers = #tpu.dot_dimension_numbers<[1], [0], [0], [1], [0, 0, 1, 1], [], []>} : vector<128x1024xbf16>, vector<1024x128xbf16>, vector<128x128xf32> -> vector<128x128xf32>
    %cst_3 = arith.constant dense<0.000000e+00> : vector<128xf32>
    %3 = vector.multi_reduction <add>, %2, %cst_3 [0] : vector<128x128xf32> to vector<128xf32>
    %4 = vector.shape_cast %3 : vector<128xf32> to vector<1x128xf32>
    %cst_4 = arith.constant 1.280000e+02 : f32
    %5 = vector.broadcast %cst_4 : f32 to vector<1x128xf32>
    %6 = arith.divf %4, %5 : vector<1x128xf32>
    %7 = vector.broadcast %6 : vector<1x128xf32> to vector<128x128xf32>
    %8 = arith.subf %2, %7 : vector<128x128xf32>
    %9 = arith.mulf %8, %8 : vector<128x128xf32>
    %cst_5 = arith.constant dense<0.000000e+00> : vector<128xf32>
    %10 = vector.multi_reduction <add>, %9, %cst_5 [0] : vector<128x128xf32> to vector<128xf32>
    %11 = vector.shape_cast %10 : vector<128xf32> to vector<1x128xf32>
    %cst_6 = arith.constant 1.280000e+02 : f32
    %12 = vector.broadcast %cst_6 : f32 to vector<1x128xf32>
    %13 = arith.divf %11, %12 : vector<1x128xf32>
    %14 = vector.broadcast %6 : vector<1x128xf32> to vector<128x128xf32>
    %15 = arith.subf %2, %14 : vector<128x128xf32>
    %cst_7 = arith.constant 9.99999974E-6 : f32
    %16 = vector.broadcast %cst_7 : f32 to vector<1x128xf32>
    %17 = arith.addf %13, %16 : vector<1x128xf32>
    %18 = math.rsqrt %17 : vector<1x128xf32>
    %19 = vector.broadcast %18 : vector<1x128xf32> to vector<128x128xf32>
    %20 = arith.mulf %15, %19 : vector<128x128xf32>
    %cst_8 = arith.constant 0.000000e+00 : f32
    %21 = vector.broadcast %cst_8 : f32 to vector<128x128xf32>
    %22 = arith.cmpf ogt, %20, %21 : vector<128x128xf32>
    %cst_9 = arith.constant 2.000000e-01 : f32
    %23 = vector.broadcast %cst_9 : f32 to vector<128x128xf32>
    %24 = arith.mulf %23, %20 : vector<128x128xf32>
    %25 = arith.select %22, %20, %24 : vector<128x128xi1>, vector<128x128xf32>
    %26 = arith.truncf %25 : vector<128x128xf32> to vector<128x128xbf16>
    %c0_10 = arith.constant 0 : index
    %c0_11 = arith.constant 0 : index
    %27 = vector.load %arg2[%c0_10, %c0_11] : memref<128x128xbf16, #tpu.memory_space<vmem>>, vector<128x128xbf16>
    tpu.vector_store %arg2[%c0_10, %c0_11], %26 {strides = array<i32>} : memref<128x128xbf16, #tpu.memory_space<vmem>>, vector<128x128xbf16>,
    return
  }
}

module attributes {stable_mosaic.version = 11 : i64} {
  func.func @_conv_bn_lrelu_kernel(%arg0: memref<32x2048xbf16, #tpu.memory_space<vmem>>, %arg1: memref<2048x256xbf16, #tpu.memory_space<vmem>>, %arg2: memref<32x256xbf16, #tpu.memory_space<vmem>>) attributes {dimension_semantics = [], scalar_prefetch = 0 : i64, scratch_operands = 0 : i64, tpu.core_type = #tpu.core_type<tc>} {
    %c0 = arith.constant 0 : index
    %c0_0 = arith.constant 0 : index
    %0 = vector.load %arg0[%c0, %c0_0] : memref<32x2048xbf16, #tpu.memory_space<vmem>>, vector<32x2048xbf16>
    %c0_1 = arith.constant 0 : index
    %c0_2 = arith.constant 0 : index
    %1 = vector.load %arg1[%c0_1, %c0_2] : memref<2048x256xbf16, #tpu.memory_space<vmem>>, vector<2048x256xbf16>
    %cst = arith.constant dense<0.000000e+00> : vector<32x256xf32>
    %2 = tpu.matmul %0, %1, %cst {dimension_numbers = #tpu.dot_dimension_numbers<[1], [0], [0], [1], [0, 0, 1, 1], [], []>} : vector<32x2048xbf16>, vector<2048x256xbf16>, vector<32x256xf32> -> vector<32x256xf32>
    %cst_3 = arith.constant dense<0.000000e+00> : vector<256xf32>
    %3 = vector.multi_reduction <add>, %2, %cst_3 [0] : vector<32x256xf32> to vector<256xf32>
    %4 = vector.shape_cast %3 : vector<256xf32> to vector<1x256xf32>
    %cst_4 = arith.constant 3.200000e+01 : f32
    %5 = vector.broadcast %cst_4 : f32 to vector<1x256xf32>
    %6 = arith.divf %4, %5 : vector<1x256xf32>
    %7 = vector.broadcast %6 : vector<1x256xf32> to vector<32x256xf32>
    %8 = arith.subf %2, %7 : vector<32x256xf32>
    %9 = arith.mulf %8, %8 : vector<32x256xf32>
    %cst_5 = arith.constant dense<0.000000e+00> : vector<256xf32>
    %10 = vector.multi_reduction <add>, %9, %cst_5 [0] : vector<32x256xf32> to vector<256xf32>
    %11 = vector.shape_cast %10 : vector<256xf32> to vector<1x256xf32>
    %cst_6 = arith.constant 3.200000e+01 : f32
    %12 = vector.broadcast %cst_6 : f32 to vector<1x256xf32>
    %13 = arith.divf %11, %12 : vector<1x256xf32>
    %14 = vector.broadcast %6 : vector<1x256xf32> to vector<32x256xf32>
    %15 = arith.subf %2, %14 : vector<32x256xf32>
    %cst_7 = arith.constant 9.99999974E-6 : f32
    %16 = vector.broadcast %cst_7 : f32 to vector<1x256xf32>
    %17 = arith.addf %13, %16 : vector<1x256xf32>
    %18 = math.rsqrt %17 : vector<1x256xf32>
    %19 = vector.broadcast %18 : vector<1x256xf32> to vector<32x256xf32>
    %20 = arith.mulf %15, %19 : vector<32x256xf32>
    %cst_8 = arith.constant 0.000000e+00 : f32
    %21 = vector.broadcast %cst_8 : f32 to vector<32x256xf32>
    %22 = arith.cmpf ogt, %20, %21 : vector<32x256xf32>
    %cst_9 = arith.constant 2.000000e-01 : f32
    %23 = vector.broadcast %cst_9 : f32 to vector<32x256xf32>
    %24 = arith.mulf %23, %20 : vector<32x256xf32>
    %25 = arith.select %22, %20, %24 : vector<32x256xi1>, vector<32x256xf32>
    %26 = arith.truncf %25 : vector<32x256xf32> to vector<32x256xbf16>
    %c0_10 = arith.constant 0 : index
    %c0_11 = arith.constant 0 : index
    %27 = vector.load %arg2[%c0_10, %c0_11] : memref<32x256xbf16, #tpu.memory_space<vmem>>, vector<32x256xbf16>
    tpu.vector_store %arg2[%c0_10, %c0_11], %26 {strides = array<i32>} : memref<32x256xbf16, #tpu.memory_space<vmem>>, vector<32x256xbf16>,
    return
  }
}

module attributes {stable_mosaic.version = 11 : i64} {
  func.func @_conv_bn_lrelu_kernel(%arg0: memref<8x4096xbf16, #tpu.memory_space<vmem>>, %arg1: memref<4096x512xbf16, #tpu.memory_space<vmem>>, %arg2: memref<8x512xbf16, #tpu.memory_space<vmem>>) attributes {dimension_semantics = [], scalar_prefetch = 0 : i64, scratch_operands = 0 : i64, tpu.core_type = #tpu.core_type<tc>} {
    %c0 = arith.constant 0 : index
    %c0_0 = arith.constant 0 : index
    %0 = vector.load %arg0[%c0, %c0_0] : memref<8x4096xbf16, #tpu.memory_space<vmem>>, vector<8x4096xbf16>
    %c0_1 = arith.constant 0 : index
    %c0_2 = arith.constant 0 : index
    %1 = vector.load %arg1[%c0_1, %c0_2] : memref<4096x512xbf16, #tpu.memory_space<vmem>>, vector<4096x512xbf16>
    %cst = arith.constant dense<0.000000e+00> : vector<8x512xf32>
    %2 = tpu.matmul %0, %1, %cst {dimension_numbers = #tpu.dot_dimension_numbers<[1], [0], [0], [1], [0, 0, 1, 1], [], []>} : vector<8x4096xbf16>, vector<4096x512xbf16>, vector<8x512xf32> -> vector<8x512xf32>
    %cst_3 = arith.constant dense<0.000000e+00> : vector<512xf32>
    %3 = vector.multi_reduction <add>, %2, %cst_3 [0] : vector<8x512xf32> to vector<512xf32>
    %4 = vector.shape_cast %3 : vector<512xf32> to vector<1x512xf32>
    %cst_4 = arith.constant 8.000000e+00 : f32
    %5 = vector.broadcast %cst_4 : f32 to vector<1x512xf32>
    %6 = arith.divf %4, %5 : vector<1x512xf32>
    %7 = vector.broadcast %6 : vector<1x512xf32> to vector<8x512xf32>
    %8 = arith.subf %2, %7 : vector<8x512xf32>
    %9 = arith.mulf %8, %8 : vector<8x512xf32>
    %cst_5 = arith.constant dense<0.000000e+00> : vector<512xf32>
    %10 = vector.multi_reduction <add>, %9, %cst_5 [0] : vector<8x512xf32> to vector<512xf32>
    %11 = vector.shape_cast %10 : vector<512xf32> to vector<1x512xf32>
    %cst_6 = arith.constant 8.000000e+00 : f32
    %12 = vector.broadcast %cst_6 : f32 to vector<1x512xf32>
    %13 = arith.divf %11, %12 : vector<1x512xf32>
    %14 = vector.broadcast %6 : vector<1x512xf32> to vector<8x512xf32>
    %15 = arith.subf %2, %14 : vector<8x512xf32>
    %cst_7 = arith.constant 9.99999974E-6 : f32
    %16 = vector.broadcast %cst_7 : f32 to vector<1x512xf32>
    %17 = arith.addf %13, %16 : vector<1x512xf32>
    %18 = math.rsqrt %17 : vector<1x512xf32>
    %19 = vector.broadcast %18 : vector<1x512xf32> to vector<8x512xf32>
    %20 = arith.mulf %15, %19 : vector<8x512xf32>
    %cst_8 = arith.constant 0.000000e+00 : f32
    %21 = vector.broadcast %cst_8 : f32 to vector<8x512xf32>
    %22 = arith.cmpf ogt, %20, %21 : vector<8x512xf32>
    %cst_9 = arith.constant 2.000000e-01 : f32
    %23 = vector.broadcast %cst_9 : f32 to vector<8x512xf32>
    %24 = arith.mulf %23, %20 : vector<8x512xf32>
    %25 = arith.select %22, %20, %24 : vector<8x512xi1>, vector<8x512xf32>
    %26 = arith.truncf %25 : vector<8x512xf32> to vector<8x512xbf16>
    %c0_10 = arith.constant 0 : index
    %c0_11 = arith.constant 0 : index
    %27 = vector.load %arg2[%c0_10, %c0_11] : memref<8x512xbf16, #tpu.memory_space<vmem>>, vector<8x512xbf16>
    tpu.vector_store %arg2[%c0_10, %c0_11], %26 {strides = array<i32>} : memref<8x512xbf16, #tpu.memory_space<vmem>>, vector<8x512xbf16>,
    return
  }
}

module attributes {stable_mosaic.version = 11 : i64} {
  func.func @_final_conv_sigmoid_kernel(%arg0: memref<2x8192xbf16, #tpu.memory_space<vmem>>, %arg1: memref<1x8192xf32, #tpu.memory_space<vmem>>, %arg2: memref<1xf32, #tpu.memory_space<smem>>, %arg3: memref<2x1xf32, #tpu.memory_space<vmem>>) attributes {dimension_semantics = [], scalar_prefetch = 0 : i64, scratch_operands = 0 : i64, tpu.core_type = #tpu.core_type<tc>} {
    %c0 = arith.constant 0 : index
    %c0_0 = arith.constant 0 : index
    %0 = vector.load %arg0[%c0, %c0_0] : memref<2x8192xbf16, #tpu.memory_space<vmem>>, vector<2x8192xbf16>
    %1 = arith.extf %0 : vector<2x8192xbf16> to vector<2x8192xf32>
    %c0_1 = arith.constant 0 : index
    %c0_2 = arith.constant 0 : index
    %2 = vector.load %arg1[%c0_1, %c0_2] : memref<1x8192xf32, #tpu.memory_space<vmem>>, vector<1x8192xf32>
    %3 = vector.broadcast %2 : vector<1x8192xf32> to vector<2x8192xf32>
    %4 = arith.mulf %1, %3 : vector<2x8192xf32>
    %cst = arith.constant dense<0.000000e+00> : vector<2xf32>
    %5 = vector.multi_reduction <add>, %4, %cst [1] : vector<2x8192xf32> to vector<2xf32>
    %6 = vector.shape_cast %5 : vector<2xf32> to vector<2x1xf32>
    %c0_3 = arith.constant 0 : index
    %7 = memref.load %arg2[%c0_3] : memref<1xf32, #tpu.memory_space<smem>>
    %8 = vector.broadcast %7 : f32 to vector<2x1xf32>
    %9 = arith.addf %6, %8 : vector<2x1xf32>
    %10 = arith.negf %9 : vector<2x1xf32>
    %11 = math.exp %10 : vector<2x1xf32>
    %cst_4 = arith.constant 1.000000e+00 : f32
    %12 = vector.broadcast %cst_4 : f32 to vector<2x1xf32>
    %13 = arith.addf %12, %11 : vector<2x1xf32>
    %14 = arith.divf %12, %13 : vector<2x1xf32>
    %c0_5 = arith.constant 0 : index
    %c0_6 = arith.constant 0 : index
    %15 = vector.load %arg3[%c0_5, %c0_6] : memref<2x1xf32, #tpu.memory_space<vmem>>, vector<2x1xf32>
    tpu.vector_store %arg3[%c0_5, %c0_6], %14 {strides = array<i32>} : memref<2x1xf32, #tpu.memory_space<vmem>>, vector<2x1xf32>,
    return
  }
}

</mosaic_0001>

<bundles_post_ra>
// kernel: discriminator_forward.5
= control target key start
LH: loop header
LB: loop body
LE: loop exit
PB: predicated region body
PF: predicated region fallthrough
CT: control target
= control target key end

     0   :  { %s1085_s12 = smov 0   ;;  %s1260_s0 = inlined_call_operand.vmem [shape: bf16[512,64], index: 0, kind: input, shape index: {}]   ;;  %s1261_s1 = inlined_call_operand.vmem [shape: bf16[64,64], index: 1, kind: input, shape index: {}]   ;;  %s1262_s2 = inlined_call_operand.vmem [shape: f32[1,64], index: 2, kind: input, shape index: {}]   ;;  %s1263_s3 = inlined_call_operand.vmem [shape: bf16[512,64], index: 3, kind: output, shape index: {}]  }
   0x1 LB: > { %s849_s13 = sadd.s32 4294967295, %s1063_s12   ;;  %p853_p0 = scmp.ge.s32.totalorder %s1063_s12, 1  ;;  %s1063_s12 = sphi %s1085_s12, %s13_s12  }
   0x2   : > { %p138_p1 = scmp.lt.s32.totalorder %s1063_s12, 3 }
   0x4   : > { %p139_p2 = pnand %p853_p0, %p138_p1 }
   0x5   : > { %s854_s16 = sshll.u32 (!%p139_p2), %s849_s13, 5 }
   0x6   : > { %142 = sbr.rel (%p139_p2) target bundleno = 268 (0x10c), region = 32  ;;  %p163_p3 = scmp.lt.s32.totalorder (!%p139_p2), %s854_s16, 63 }
   0xb   : > { %v1037_v0 = vld [vmem:[%s1261_s1 + $0x18] sm:$0xff]   ;;  %v1038_v1 = vld [vmem:[%s1261_s1 + $0x10] sm:$0xff]   ;;  %s1265_s16 = smov (!%p163_p3, %s854_s16), 63  ;;  %v1039_v2 = vld [vmem:[%s1261_s1 + $0x8] sm:$0xff]   ;;  %vm326_vm0 = vcmask 523264   ;;  %vm760_vm3 = vcmask 519168  }
   0xc   : > { %981 = vmatprep.subr.bf16.mxu0 %v1037_v0  ;;  %1021 = vmatprep.subr.bf16.mxu1 %v1037_v0  ;;  %s855_s21 = sshll.u32 %s1265_s16, 2  ;;  %v1040_v3 = vld [vmem:[%s1261_s1] sm:$0xff]  }
   0xd   : > { %982 = vmatpush3.bf16.msra.mxu0 %v1037_v0  ;;  %1025 = vmatpush3.bf16.msra.mxu1 %v1037_v0  ;;  %s1113_s26 = scalar_lea.vmem %s1260_s0, %s855_s21  ;;  %v1150_v20 = vld [vmem:[%s1262_s2] ss:$0 sm:$0xff]  ;;  %s1161_s4 = scalar_lea.vmem %s1263_s3, %s855_s21 }
   0xe   : > { %983 = vmatprep.subr.bf16.mxu0 %v1038_v1  ;;  %1022 = vmatprep.subr.bf16.mxu1 %v1038_v1  ;;  %v1041_v4 = vld [vmem:[%s1113_s26] sm:$0xff]   ;;  %v1043_v6 = vld [vmem:[%s1113_s26 + $0x8] sm:$0xff]   ;;  %v1045_v8 = vld [vmem:[%s1113_s26 + $0x10] sm:$0xff]  }
   0xf   : > { %v1042_v5 = vld [vmem:[%s1113_s26 + $0x40] sm:$0xff]   ;;  %989 = vmatprep.mubr.msk.bf16.mxu0 %vm326_vm0, %v1041_v4  ;;  %v1044_v7 = vld [vmem:[%s1113_s26 + $0x48] sm:$0xff]   ;;  %v1046_v9 = vld [vmem:[%s1113_s26 + $0x50] sm:$0xff]  }
  0x10   : > { %1005 = vmatprep.mubr.msk.bf16.mxu1 %vm326_vm0, %v1042_v5  ;;  %v1047_v10 = vld [vmem:[%s1113_s26 + $0x18] sm:$0xff]   ;;  %v1049_v12 = vld [vmem:[%s1113_s26 + $0x20] sm:$0xff]   ;;  %v1051_v14 = vld [vmem:[%s1113_s26 + $0x28] sm:$0xff]  }
  0x11   : > { %984 = vmatpush3.bf16.msra.mxu0 %v1038_v1  ;;  %1026 = vmatpush3.bf16.msra.mxu1 %v1038_v1  ;;  %v1048_v11 = vld [vmem:[%s1113_s26 + $0x58] sm:$0xff]   ;;  %v1050_v13 = vld [vmem:[%s1113_s26 + $0x60] sm:$0xff]   ;;  %v1052_v15 = vld [vmem:[%s1113_s26 + $0x68] sm:$0xff]  }
  0x12   : > { %985 = vmatprep.subr.bf16.mxu0 %v1039_v2  ;;  %1023 = vmatprep.subr.bf16.mxu1 %v1039_v2  ;;  %v1053_v16 = vld [vmem:[%s1113_s26 + $0x30] sm:$0xff]   ;;  %v1055_v18 = vld [vmem:[%s1113_s26 + $0x38] sm:$0xff]  }
  0x13   : > { %v1054_v17 = vld [vmem:[%s1113_s26 + $0x70] sm:$0xff]   ;;  %v1056_v19 = vld [vmem:[%s1113_s26 + $0x78] sm:$0xff]  }
  0x15   : > { %986 = vmatpush3.bf16.msra.mxu0 %v1039_v2  ;;  %1027 = vmatpush3.bf16.msra.mxu1 %v1039_v2 }
  0x16   : > { %987 = vmatprep.subr.bf16.mxu0 %v1040_v3  ;;  %1024 = vmatprep.subr.bf16.mxu1 %v1040_v3 }
  0x19   : > { %988 = vmatpush3.bf16.msra.mxu0 %v1040_v3  ;;  %1028 = vmatpush3.bf16.msra.mxu1 %v1040_v3 }
  0x1c   : > { %990 = vmatmul.mubr.msk.bf16.vlgmr.msra.gmra.mxu0 %vm326_vm0, %v1043_v6  ;;  %1006 = vmatmul.mubr.msk.bf16.vlgmr.msra.gmra.mxu1 %vm326_vm0, %v1044_v7 }
  0x1d   : > { %993 = vmatprep.mubr.msk.bf16.mxu0 %vm326_vm0, %v1045_v8  ;;  %1009 = vmatprep.mubr.msk.bf16.mxu1 %vm326_vm0, %v1046_v9 }
  0x24   : > { %994 = vmatmul.mubr.msk.bf16.gmra.mxu0 %vm326_vm0, %v1047_v10  ;;  %1010 = vmatmul.mubr.msk.bf16.gmra.mxu1 %vm326_vm0, %v1048_v11 }
  0x25   : > { %997 = vmatprep.mubr.msk.bf16.mxu0 %vm326_vm0, %v1049_v12  ;;  %1013 = vmatprep.mubr.msk.bf16.mxu1 %vm326_vm0, %v1050_v13 }
  0x2c   : > { %998 = vmatmul.mubr.msk.bf16.gmra.mxu0 %vm326_vm0, %v1051_v14  ;;  %1014 = vmatmul.mubr.msk.bf16.gmra.mxu1 %vm326_vm0, %v1052_v15 }
  0x2d   : > { %1001 = vmatprep.mubr.msk.bf16.mxu0 %vm326_vm0, %v1053_v16  ;;  %1017 = vmatprep.mubr.msk.bf16.mxu1 %vm326_vm0, %v1054_v17 }
  0x34   : > { %1002 = vmatmul.mubr.msk.bf16.gmra.mxu0 %vm326_vm0, %v1055_v18  ;;  %1018 = vmatmul.mubr.msk.bf16.gmra.mxu1 %vm326_vm0, %v1056_v19 }
  0xdc   : > { %v991_v21 = vpop.f32.mrf.mxu0  ;;  %v1007_v22 = vpop.f32.mrf.mxu1 }
  0xdd   : > { %v418_v23 = vadd.f32 %v991_v21, %v1150_v20  ;;  %v482_v24 = vadd.f32 %v1007_v22, %v1150_v20 }
  0xde   : > { %v409_v25 = vpop.f32.mrf.mxu0  ;;  %v473_v26 = vpop.f32.mrf.mxu1 }
  0xdf   : > { %vm538_vm1 = vcmp.gt.f32.partialorder %v418_v23, 0.0  ;;  %v570_v27 = vmul.f32 0.2, %v418_v23  ;;  %vm554_vm2 = vcmp.gt.f32.partialorder %v482_v24, 0.0  ;;  %v586_v28 = vmul.f32 0.2, %v482_v24 }
  0xe0   : > { %v410_v29 = vadd.f32 %v1150_v20, %v409_v25  ;;  %v474_v30 = vadd.f32 %v1150_v20, %v473_v26  ;;  %v992_v31 = vpop.f32.mrf.mxu0  ;;  %v1008_v32 = vpop.f32.mrf.mxu1 }
  0xe1   : > { %v602_v33 = vsel %vm538_vm1, %v418_v23, %v570_v27  ;;  %v618_v34 = vsel %vm554_vm2, %v482_v24, %v586_v28  ;;  %v421_v35 = vadd.f32 %v992_v31, %v1150_v20  ;;  %v485_v36 = vadd.f32 %v1008_v32, %v1150_v20 }
  0xe2   : > { %v931_v37 = vpack.c.bf16 %v602_v33, %v602_v33  ;;  %v947_v38 = vpack.c.bf16 %v618_v34, %v618_v34  ;;  %vm536_vm4 = vcmp.gt.f32.partialorder %v410_v29, 0.0  ;;  %v568_v39 = vmul.f32 0.2, %v410_v29  ;;  %v412_v40 = vpop.f32.mrf.mxu0  ;;  %v476_v41 = vpop.f32.mrf.mxu1 }
  0xe3   : > { %vm552_vm5 = vcmp.gt.f32.partialorder %v474_v30, 0.0  ;;  %v584_v42 = vmul.f32 0.2, %v474_v30  ;;  %vm539_vm6 = vcmp.gt.f32.partialorder %v421_v35, 0.0  ;;  %v571_v43 = vmul.f32 0.2, %v421_v35 }
  0xe4   : > { %763 = vst.msk [vmem:[%s1161_s4 + $0x8] sm:$0xf] %vm760_vm3, %v931_v37  ;;  %779 = vst.msk [vmem:[%s1161_s4 + $0x48] sm:$0xf] %vm760_vm3, %v947_v38  ;;  %v600_v44 = vsel %vm536_vm4, %v410_v29, %v568_v39  ;;  %vm555_vm7 = vcmp.gt.f32.partialorder %v485_v36, 0.0  ;;  %v413_v46 = vadd.f32 %v1150_v20, %v412_v40  ;;  %v995_v47 = vpop.f32.mrf.mxu0  ;;  %v1011_v48 = vpop.f32.mrf.mxu1  ;;  %v477_v52 = vadd.f32 %v1150_v20, %v476_v41 }
  0xe5   : > { %v587_v45 = vmul.f32 0.2, %v485_v36  ;;  %v929_v49 = vpack.c.bf16 %v600_v44, %v600_v44  ;;  %v616_v50 = vsel %vm552_vm5, %v474_v30, %v584_v42  ;;  %v603_v51 = vsel %vm539_vm6, %v421_v35, %v571_v43 }
  0xe6   : > { %v945_v53 = vpack.c.bf16 %v616_v50, %v616_v50  ;;  %v932_v54 = vpack.c.bf16 %v603_v51, %v603_v51  ;;  %vm537_vm8 = vcmp.gt.f32.partialorder %v413_v46, 0.0  ;;  %v425_v56 = vpop.f32.mrf.mxu0  ;;  %v489_v57 = vpop.f32.mrf.mxu1  ;;  %v569_v59 = vmul.f32 0.2, %v413_v46 }
  0xe7   : > { %v619_v55 = vsel %vm555_vm7, %v485_v36, %v587_v45  ;;  %761 = vst.msk [vmem:[%s1161_s4] sm:$0xf] %vm760_vm3, %v929_v49  ;;  %vm553_vm9 = vcmp.gt.f32.partialorder %v477_v52, 0.0  ;;  %v585_v60 = vmul.f32 0.2, %v477_v52  ;;  %v434_v61 = vadd.f32 %v995_v47, %v1150_v20 }
  0xe8   : > { %v948_v58 = vpack.c.bf16 %v619_v55, %v619_v55  ;;  %777 = vst.msk [vmem:[%s1161_s4 + $0x40] sm:$0xf] %vm760_vm3, %v945_v53  ;;  %764 = vst.msk [vmem:[%s1161_s4 + $0xc] sm:$0xf] %vm760_vm3, %v932_v54  ;;  %v498_v62 = vadd.f32 %v1011_v48, %v1150_v20  ;;  %v426_v63 = vadd.f32 %v1150_v20, %v425_v56  ;;  %v996_v1 = vpop.f32.mrf.mxu0  ;;  %v1012_v2 = vpop.f32.mrf.mxu1 }
  0xe9   : > { %v490_v0 = vadd.f32 %v1150_v20, %v489_v57  ;;  %v601_v3 = vsel %vm537_vm8, %v413_v46, %v569_v59  ;;  %v617_v4 = vsel %vm553_vm9, %v477_v52, %v585_v60  ;;  %v437_v5 = vadd.f32 %v996_v1, %v1150_v20 }
  0xea   : > { %780 = vst.msk [vmem:[%s1161_s4 + $0x4c] sm:$0xf] %vm760_vm3, %v948_v58  ;;  %v501_v6 = vadd.f32 %v1012_v2, %v1150_v20  ;;  %v930_v7 = vpack.c.bf16 %v601_v3, %v601_v3  ;;  %v946_v8 = vpack.c.bf16 %v617_v4, %v617_v4  ;;  %vm542_vm10 = vcmp.gt.f32.partialorder %v434_v61, 0.0  ;;  %v428_v10 = vpop.f32.mrf.mxu0  ;;  %v492_v11 = vpop.f32.mrf.mxu1 }
  0xeb   : > { %v574_v9 = vmul.f32 0.2, %v434_v61  ;;  %vm558_vm11 = vcmp.gt.f32.partialorder %v498_v62, 0.0  ;;  %v590_v12 = vmul.f32 0.2, %v498_v62  ;;  %vm540_vm12 = vcmp.gt.f32.partialorder %v426_v63, 0.0 }
  0xec   : > { %v572_v13 = vmul.f32 0.2, %v426_v63  ;;  %762 = vst.msk [vmem:[%s1161_s4 + $0x4] sm:$0xf] %vm760_vm3, %v930_v7  ;;  %778 = vst.msk [vmem:[%s1161_s4 + $0x44] sm:$0xf] %vm760_vm3, %v946_v8  ;;  %v999_v16 = vpop.f32.mrf.mxu0  ;;  %v1015_v17 = vpop.f32.mrf.mxu1  ;;  %v429_v31 = vadd.f32 %v1150_v20, %v428_v10  ;;  %v493_v33 = vadd.f32 %v1150_v20, %v492_v11 }
  0xed   : > { %v606_v14 = vsel %vm542_vm10, %v434_v61, %v574_v9  ;;  %vm556_vm13 = vcmp.gt.f32.partialorder %v490_v0, 0.0  ;;  %v588_v15 = vmul.f32 0.2, %v490_v0  ;;  %vm543_vm14 = vcmp.gt.f32.partialorder %v437_v5, 0.0 }
  0xee   : > { %v935_v18 = vpack.c.bf16 %v606_v14, %v606_v14  ;;  %v622_v19 = vsel %vm558_vm11, %v498_v62, %v590_v12  ;;  %v604_v21 = vsel %vm540_vm12, %v426_v63, %v572_v13  ;;  %v575_v22 = vmul.f32 0.2, %v437_v5  ;;  %v441_v26 = vpop.f32.mrf.mxu0  ;;  %v505_v27 = vpop.f32.mrf.mxu1 }
  0xef   : > { %v951_v23 = vpack.c.bf16 %v622_v19, %v622_v19  ;;  %v933_v24 = vpack.c.bf16 %v604_v21, %v604_v21  ;;  %v620_v25 = vsel %vm556_vm13, %v490_v0, %v588_v15  ;;  %vm559_vm15 = vcmp.gt.f32.partialorder %v501_v6, 0.0 }
  0xf0   : > { %767 = vst.msk [vmem:[%s1161_s4 + $0x18] sm:$0xf] %vm760_vm3, %v935_v18  ;;  %v949_v28 = vpack.c.bf16 %v620_v25, %v620_v25  ;;  %v607_v29 = vsel %vm543_vm14, %v437_v5, %v575_v22  ;;  %v591_v30 = vmul.f32 0.2, %v501_v6  ;;  %v450_v34 = vadd.f32 %v999_v16, %v1150_v20  ;;  %v1000_v36 = vpop.f32.mrf.mxu0  ;;  %v1016_v37 = vpop.f32.mrf.mxu1 }
  0xf1   : > { %783 = vst.msk [vmem:[%s1161_s4 + $0x58] sm:$0xf] %vm760_vm3, %v951_v23  ;;  %765 = vst.msk [vmem:[%s1161_s4 + $0x10] sm:$0xf] %vm760_vm3, %v933_v24  ;;  %v936_v32 = vpack.c.bf16 %v607_v29, %v607_v29  ;;  %v514_v35 = vadd.f32 %v1015_v17, %v1150_v20  ;;  %vm541_vm0 = vcmp.gt.f32.partialorder %v429_v31, 0.0  ;;  %v442_v40 = vadd.f32 %v1150_v20, %v441_v26 }
  0xf2   : > { %781 = vst.msk [vmem:[%s1161_s4 + $0x50] sm:$0xf] %vm760_vm3, %v949_v28  ;;  %v623_v38 = vsel %vm559_vm15, %v501_v6, %v591_v30  ;;  %v573_v39 = vmul.f32 0.2, %v429_v31  ;;  %vm557_vm1 = vcmp.gt.f32.partialorder %v493_v33, 0.0  ;;  %vm546_vm2 = vcmp.gt.f32.partialorder %v450_v34, 0.0  ;;  %v444_v43 = vpop.f32.mrf.mxu0  ;;  %v508_v44 = vpop.f32.mrf.mxu1 }
  0xf3   : > { %768 = vst.msk [vmem:[%s1161_s4 + $0x1c] sm:$0xf] %vm760_vm3, %v936_v32  ;;  %v952_v41 = vpack.c.bf16 %v623_v38, %v623_v38  ;;  %v589_v42 = vmul.f32 0.2, %v493_v33  ;;  %v578_v46 = vmul.f32 0.2, %v450_v34  ;;  %v506_v56 = vadd.f32 %v1150_v20, %v505_v27 }
  0xf4   : > { %v605_v45 = vsel %vm541_vm0, %v429_v31, %v573_v39  ;;  %vm562_vm4 = vcmp.gt.f32.partialorder %v514_v35, 0.0  ;;  %v594_v47 = vmul.f32 0.2, %v514_v35  ;;  %vm544_vm5 = vcmp.gt.f32.partialorder %v442_v40, 0.0  ;;  %v1003_v51 = vpop.f32.mrf.mxu0  ;;  %v1019_v52 = vpop.f32.mrf.mxu1 }
  0xf5   : > { %784 = vst.msk [vmem:[%s1161_s4 + $0x5c] sm:$0xf] %vm760_vm3, %v952_v41  ;;  %v934_v48 = vpack.c.bf16 %v605_v45, %v605_v45  ;;  %v621_v49 = vsel %vm557_vm1, %v493_v33, %v589_v42  ;;  %v576_v50 = vmul.f32 0.2, %v442_v40  ;;  %v610_v54 = vsel %vm546_vm2, %v450_v34, %v578_v46 }
  0xf6   : > { %v950_v53 = vpack.c.bf16 %v621_v49, %v621_v49  ;;  %v626_v55 = vsel %vm562_vm4, %v514_v35, %v594_v47  ;;  %v939_v57 = vpack.c.bf16 %v610_v54, %v610_v54  ;;  %v453_v60 = vadd.f32 %v1000_v36, %v1150_v20  ;;  %v457_v61 = vpop.f32.mrf.mxu0  ;;  %v521_v1 = vpop.f32.mrf.mxu1 }
  0xf7   : > { %766 = vst.msk [vmem:[%s1161_s4 + $0x14] sm:$0xf] %vm760_vm3, %v934_v48  ;;  %v955_v58 = vpack.c.bf16 %v626_v55, %v626_v55  ;;  %v608_v59 = vsel %vm544_vm5, %v442_v40, %v576_v50  ;;  %vm560_vm6 = vcmp.gt.f32.partialorder %v506_v56, 0.0  ;;  %v592_v63 = vmul.f32 0.2, %v506_v56 }
  0xf8   : > { %782 = vst.msk [vmem:[%s1161_s4 + $0x54] sm:$0xf] %vm760_vm3, %v950_v53  ;;  %v937_v62 = vpack.c.bf16 %v608_v59, %v608_v59  ;;  %v517_v0 = vadd.f32 %v1016_v37, %v1150_v20  ;;  %771 = vst.msk [vmem:[%s1161_s4 + $0x28] sm:$0xf] %vm760_vm3, %v939_v57  ;;  %vm547_vm7 = vcmp.gt.f32.partialorder %v453_v60, 0.0  ;;  %v445_v3 = vadd.f32 %v1150_v20, %v444_v43  ;;  %v1004_v11 = vpop.f32.mrf.mxu0  ;;  %v1020_v15 = vpop.f32.mrf.mxu1 }
  0xf9   : > { %787 = vst.msk [vmem:[%s1161_s4 + $0x68] sm:$0xf] %vm760_vm3, %v955_v58  ;;  %v579_v2 = vmul.f32 0.2, %v453_v60  ;;  %v509_v4 = vadd.f32 %v1150_v20, %v508_v44  ;;  %v624_v5 = vsel %vm560_vm6, %v506_v56, %v592_v63  ;;  %v466_v7 = vadd.f32 %v1003_v51, %v1150_v20 }
  0xfa   : > { %769 = vst.msk [vmem:[%s1161_s4 + $0x20] sm:$0xf] %vm760_vm3, %v937_v62  ;;  %vm563_vm8 = vcmp.gt.f32.partialorder %v517_v0, 0.0  ;;  %v595_v6 = vmul.f32 0.2, %v517_v0  ;;  %v953_v8 = vpack.c.bf16 %v624_v5, %v624_v5  ;;  %vm545_vm9 = vcmp.gt.f32.partialorder %v445_v3, 0.0  ;;  %v460_v28 = vpop.f32.mrf.mxu0  ;;  %v524_v31 = vpop.f32.mrf.mxu1 }
  0xfb   : > { %v611_v9 = vsel %vm547_vm7, %v453_v60, %v579_v2  ;;  %v577_v10 = vmul.f32 0.2, %v445_v3  ;;  %vm561_vm10 = vcmp.gt.f32.partialorder %v509_v4, 0.0  ;;  %v593_v14 = vmul.f32 0.2, %v509_v4 }
  0xfc   : > { %v940_v12 = vpack.c.bf16 %v611_v9, %v611_v9  ;;  %v627_v13 = vsel %vm563_vm8, %v517_v0, %v595_v6  ;;  %785 = vst.msk [vmem:[%s1161_s4 + $0x60] sm:$0xf] %vm760_vm3, %v953_v8  ;;  %vm550_vm11 = vcmp.gt.f32.partialorder %v466_v7, 0.0  ;;  %v582_v18 = vmul.f32 0.2, %v466_v7 }
  0xfd   : > { %v956_v16 = vpack.c.bf16 %v627_v13, %v627_v13  ;;  %v609_v17 = vsel %vm545_vm9, %v445_v3, %v577_v10  ;;  %v625_v21 = vsel %vm561_vm10, %v509_v4, %v593_v14  ;;  %v530_v22 = vadd.f32 %v1019_v52, %v1150_v20 }
  0xfe   : > { %772 = vst.msk [vmem:[%s1161_s4 + $0x2c] sm:$0xf] %vm760_vm3, %v940_v12  ;;  %v938_v19 = vpack.c.bf16 %v609_v17, %v609_v17  ;;  %v458_v23 = vadd.f32 %v1150_v20, %v457_v61  ;;  %v954_v24 = vpack.c.bf16 %v625_v21, %v625_v21  ;;  %v614_v25 = vsel %vm550_vm11, %v466_v7, %v582_v18 }
  0xff   : > { %788 = vst.msk [vmem:[%s1161_s4 + $0x6c] sm:$0xf] %vm760_vm3, %v956_v16  ;;  %v522_v26 = vadd.f32 %v1150_v20, %v521_v1  ;;  %v469_v27 = vadd.f32 %v1004_v11, %v1150_v20  ;;  %v943_v29 = vpack.c.bf16 %v614_v25, %v614_v25  ;;  %vm566_vm12 = vcmp.gt.f32.partialorder %v530_v22, 0.0 }
 0x100   : > { %770 = vst.msk [vmem:[%s1161_s4 + $0x24] sm:$0xf] %vm760_vm3, %v938_v19  ;;  %v598_v30 = vmul.f32 0.2, %v530_v22  ;;  %vm548_vm13 = vcmp.gt.f32.partialorder %v458_v23, 0.0  ;;  %v533_v36 = vadd.f32 %v1020_v15, %v1150_v20  ;;  %v461_v37 = vadd.f32 %v1150_v20, %v460_v28 }
 0x101   : > { %786 = vst.msk [vmem:[%s1161_s4 + $0x64] sm:$0xf] %vm760_vm3, %v954_v24  ;;  %v580_v32 = vmul.f32 0.2, %v458_v23  ;;  %vm564_vm14 = vcmp.gt.f32.partialorder %v522_v26, 0.0  ;;  %vm551_vm15 = vcmp.gt.f32.partialorder %v469_v27, 0.0  ;;  %v525_v41 = vadd.f32 %v1150_v20, %v524_v31 }
 0x102   : > { %v596_v33 = vmul.f32 0.2, %v522_v26  ;;  %775 = vst.msk [vmem:[%s1161_s4 + $0x38] sm:$0xf] %vm760_vm3, %v943_v29  ;;  %v630_v34 = vsel %vm566_vm12, %v530_v22, %v598_v30  ;;  %v583_v35 = vmul.f32 0.2, %v469_v27 }
 0x103   : > { %v959_v38 = vpack.c.bf16 %v630_v34, %v630_v34  ;;  %v612_v39 = vsel %vm548_vm13, %v458_v23, %v580_v32  ;;  %vm567_vm0 = vcmp.gt.f32.partialorder %v533_v36, 0.0  ;;  %v599_v46 = vmul.f32 0.2, %v533_v36 }
 0x104   : > { %v628_v40 = vsel %vm564_vm14, %v522_v26, %v596_v33  ;;  %v941_v42 = vpack.c.bf16 %v612_v39, %v612_v39  ;;  %v615_v44 = vsel %vm551_vm15, %v469_v27, %v583_v35  ;;  %vm549_vm1 = vcmp.gt.f32.partialorder %v461_v37, 0.0 }
 0x105   : > { %v957_v43 = vpack.c.bf16 %v628_v40, %v628_v40  ;;  %791 = vst.msk [vmem:[%s1161_s4 + $0x78] sm:$0xf] %vm760_vm3, %v959_v38  ;;  %v944_v45 = vpack.c.bf16 %v615_v44, %v615_v44  ;;  %v581_v47 = vmul.f32 0.2, %v461_v37  ;;  %vm565_vm2 = vcmp.gt.f32.partialorder %v525_v41, 0.0 }
 0x106   : > { %773 = vst.msk [vmem:[%s1161_s4 + $0x30] sm:$0xf] %vm760_vm3, %v941_v42  ;;  %v597_v48 = vmul.f32 0.2, %v525_v41  ;;  %v631_v20 = vsel %vm567_vm0, %v533_v36, %v599_v46 }
 0x107   : > { %789 = vst.msk [vmem:[%s1161_s4 + $0x70] sm:$0xf] %vm760_vm3, %v957_v43  ;;  %776 = vst.msk [vmem:[%s1161_s4 + $0x3c] sm:$0xf] %vm760_vm3, %v944_v45  ;;  %v613_v49 = vsel %vm549_vm1, %v461_v37, %v581_v47  ;;  %v960_v50 = vpack.c.bf16 %v631_v20, %v631_v20 }
 0x108   : > { %v942_v51 = vpack.c.bf16 %v613_v49, %v613_v49  ;;  %v629_v52 = vsel %vm565_vm2, %v525_v41, %v597_v48 }
 0x109   : > { %v958_v53 = vpack.c.bf16 %v629_v52, %v629_v52  ;;  %792 = vst.msk [vmem:[%s1161_s4 + $0x7c] sm:$0xf] %vm760_vm3, %v960_v50 }
 0x10a   : > { %774 = vst.msk [vmem:[%s1161_s4 + $0x34] sm:$0xf] %vm760_vm3, %v942_v51 }
 0x10b   : > { %790 = vst.msk [vmem:[%s1161_s4 + $0x74] sm:$0xf] %vm760_vm3, %v958_v53 }
 0x10c PF: > { %s13_s12 = sadd.s32 1, %s1063_s12  }
 0x10d   : > { %p10_p4 = scmp.ge.s32.totalorder %s13_s12, 4  }
 0x10f   :  { %12 = sbr.rel (!%p10_p4) target bundleno = 1 (0x1), region = 62 }

// kernel: discriminator_forward.6
= control target key start
LH: loop header
LB: loop body
LE: loop exit
PB: predicated region body
PF: predicated region fallthrough
CT: control target
= control target key end

     0   :  { %s2592_s1 = inlined_call_operand.vmem [shape: bf16[1024,128], index: 1, kind: input, shape index: {}]   ;;  %s2593_s0 = inlined_call_operand.vmem [shape: bf16[128,1024], index: 0, kind: input, shape index: {}]   ;;  %s2594_s2 = inlined_call_operand.vmem [shape: bf16[128,128], index: 2, kind: output, shape index: {}]  }
   0x1   :  { %v1986_v0 = vld [vmem:[%s2592_s1 + $0x78] sm:$0xff]   ;;  %v1990_v4 = vld [vmem:[%s2592_s1 + $0x70] sm:$0xff]   ;;  %v1994_v8 = vld [vmem:[%s2592_s1 + $0x68] sm:$0xff]  }
   0x2   :  { %v1987_v1 = vld [vmem:[%s2592_s1 + $0xf8] sm:$0xff]   ;;  %1730 = vmatprep.subr.bf16.mxu0 %v1986_v0  ;;  %v1991_v5 = vld [vmem:[%s2592_s1 + $0xf0] sm:$0xff]   ;;  %v1995_v9 = vld [vmem:[%s2592_s1 + $0xe8] sm:$0xff]  }
   0x3   :  { %v1988_v2 = vld [vmem:[%s2592_s1 + $0x38] sm:$0xff]   ;;  %1794 = vmatprep.subr.bf16.mxu1 %v1987_v1  ;;  %v1992_v6 = vld [vmem:[%s2592_s1 + $0x30] sm:$0xff]   ;;  %v1996_v10 = vld [vmem:[%s2592_s1 + $0x28] sm:$0xff]  }
   0x4   :  { %v1989_v3 = vld [vmem:[%s2592_s1 + $0xb8] sm:$0xff]   ;;  %1731 = vmatpush3.bf16.msra.mxu0 %v1988_v2  ;;  %v1993_v7 = vld [vmem:[%s2592_s1 + $0xb0] sm:$0xff]   ;;  %v1997_v11 = vld [vmem:[%s2592_s1 + $0xa8] sm:$0xff]  }
   0x5   :  { %1795 = vmatpush3.bf16.msra.mxu1 %v1989_v3  ;;  %1732 = vmatprep.subr.bf16.mxu0 %v1990_v4  ;;  %v1998_v12 = vld [vmem:[%s2592_s1 + $0x60] sm:$0xff]   ;;  %v2002_v16 = vld [vmem:[%s2592_s1 + $0x58] sm:$0xff]   ;;  %v2006_v20 = vld [vmem:[%s2592_s1 + $0x50] sm:$0xff]  }
   0x6   :  { %1796 = vmatprep.subr.bf16.mxu1 %v1991_v5  ;;  %v1999_v13 = vld [vmem:[%s2592_s1 + $0xe0] sm:$0xff]   ;;  %v2003_v17 = vld [vmem:[%s2592_s1 + $0xd8] sm:$0xff]   ;;  %v2007_v21 = vld [vmem:[%s2592_s1 + $0xd0] sm:$0xff]  }
   0x7   :  { %v2000_v14 = vld [vmem:[%s2592_s1 + $0x20] sm:$0xff]   ;;  %v2004_v18 = vld [vmem:[%s2592_s1 + $0x18] sm:$0xff]   ;;  %v2008_v22 = vld [vmem:[%s2592_s1 + $0x10] sm:$0xff]  }
   0x8   :  { %1733 = vmatpush3.bf16.msra.mxu0 %v1992_v6  ;;  %v2001_v15 = vld [vmem:[%s2592_s1 + $0xa0] sm:$0xff]   ;;  %v2005_v19 = vld [vmem:[%s2592_s1 + $0x98] sm:$0xff]   ;;  %v2009_v23 = vld [vmem:[%s2592_s1 + $0x90] sm:$0xff]  }
   0x9   :  { %1797 = vmatpush3.bf16.msra.mxu1 %v1993_v7  ;;  %1734 = vmatprep.subr.bf16.mxu0 %v1994_v8  ;;  %v2010_v24 = vld [vmem:[%s2592_s1 + $0x48] sm:$0xff]   ;;  %v2014_v28 = vld [vmem:[%s2592_s1 + $0x40] sm:$0xff]   ;;  %v2018_v40 = vld [vmem:[%s2592_s1 + $0x178] sm:$0xff]  }
   0xa   :  { %1798 = vmatprep.subr.bf16.mxu1 %v1995_v9  ;;  %v2011_v25 = vld [vmem:[%s2592_s1 + $0xc8] sm:$0xff]   ;;  %v2015_v29 = vld [vmem:[%s2592_s1 + $0xc0] sm:$0xff]   ;;  %v2019_v41 = vld [vmem:[%s2592_s1 + $0x138] sm:$0xff]  }
   0xb   :  { %v2012_v26 = vld [vmem:[%s2592_s1 + $0x8] sm:$0xff]   ;;  %v2016_v30 = vld [vmem:[%s2592_s1] sm:$0xff]   ;;  %v2020_v42 = vld [vmem:[%s2592_s1 + $0x1f8] sm:$0xff]  }
   0xc   :  { %1735 = vmatpush3.bf16.msra.mxu0 %v1996_v10  ;;  %v2013_v27 = vld [vmem:[%s2592_s1 + $0x88] sm:$0xff]   ;;  %v2017_v31 = vld [vmem:[%s2592_s1 + $0x80] sm:$0xff]   ;;  %v2021_v43 = vld [vmem:[%s2592_s1 + $0x1b8] sm:$0xff]  }
   0xd   :  { %1799 = vmatpush3.bf16.msra.mxu1 %v1997_v11  ;;  %1736 = vmatprep.subr.bf16.mxu0 %v1998_v12  ;;  %v12_v32 = vld [vmem:[%s2593_s0] sm:$0xff]  ;;  %v13_v34 = vld [vmem:[%s2593_s0 + $0x8] sm:$0xff]  ;;  %v2022_v50 = vld [vmem:[%s2592_s1 + $0x170] sm:$0xff]  }
   0xe   :  { %1800 = vmatprep.subr.bf16.mxu1 %v1999_v13  ;;  %v16_v33 = vld [vmem:[%s2593_s0 + $0x20] sm:$0xff]  ;;  %v17_v37 = vld [vmem:[%s2593_s0 + $0x28] sm:$0xff]  ;;  %v2023_v52 = vld [vmem:[%s2592_s1 + $0x130] sm:$0xff]  }
   0xf   :  { %v1523_v35 = vcombine.low %v12_v32, %v16_v33  ;;  %v1524_v36 = vcombine.high %v12_v32, %v16_v33  ;;  %v1525_v38 = vcombine.low %v13_v34, %v17_v37  ;;  %v1526_v39 = vcombine.high %v13_v34, %v17_v37  ;;  %v20_v44 = vld [vmem:[%s2593_s0 + $0x40] sm:$0xff]  ;;  %v21_v47 = vld [vmem:[%s2593_s0 + $0x48] sm:$0xff]  ;;  %v2024_v54 = vld [vmem:[%s2592_s1 + $0x1f0] sm:$0xff]  }
  0x10   :  { %1737 = vmatpush3.bf16.msra.mxu0 %v2000_v14  ;;  %v24_v45 = vld [vmem:[%s2593_s0 + $0x60] sm:$0xff]  ;;  %v25_v48 = vld [vmem:[%s2593_s0 + $0x68] sm:$0xff]  ;;  %v2025_v55 = vld [vmem:[%s2592_s1 + $0x1b0] sm:$0xff]  }
  0x11   :  { %1801 = vmatpush3.bf16.msra.mxu1 %v2001_v15  ;;  %1738 = vmatprep.subr.bf16.mxu0 %v2002_v16  ;;  %v1532_v46 = vcombine.high %v20_v44, %v24_v45  ;;  %v1534_v49 = vcombine.high %v21_v47, %v25_v48  ;;  %v1531_v51 = vcombine.low %v20_v44, %v24_v45  ;;  %v28_v56 = vld [vmem:[%s2593_s0 + $0x80] sm:$0xff]  ;;  %v29_v58 = vld [vmem:[%s2593_s0 + $0x88] sm:$0xff]  ;;  %v2040_v32 = vld [vmem:[%s2592_s1 + $0x1d0] sm:$0xff]  }
  0x12   :  { %1802 = vmatprep.subr.bf16.mxu1 %v2003_v17  ;;  %940 = vmatprep.mubr.bf16.mxu0 %v1524_v36  ;;  %v1533_v53 = vcombine.low %v21_v47, %v25_v48  ;;  %v32_v57 = vld [vmem:[%s2593_s0 + $0xa0] sm:$0xff]  ;;  %v33_v59 = vld [vmem:[%s2593_s0 + $0xa8] sm:$0xff]  ;;  %v2041_v33 = vld [vmem:[%s2592_s1 + $0x190] sm:$0xff]  }
  0x13   :  { %1037 = vmatprep.mubr.bf16.mxu1 %v1526_v39  ;;  %v1540_v60 = vcombine.high %v28_v56, %v32_v57  ;;  %v1542_v61 = vcombine.high %v29_v58, %v33_v59  ;;  %v2026_v62 = vld [vmem:[%s2592_s1 + $0x168] sm:$0xff]   ;;  %v1539_v2 = vcombine.low %v28_v56, %v32_v57  ;;  %v36_v3 = vld [vmem:[%s2593_s0 + $0xc0] sm:$0xff]  ;;  %v1541_v6 = vcombine.low %v29_v58, %v33_v59 }
  0x14   :  { %1739 = vmatpush3.bf16.msra.mxu0 %v2004_v18  ;;  %v2027_v63 = vld [vmem:[%s2592_s1 + $0x128] sm:$0xff]   ;;  %v40_v4 = vld [vmem:[%s2593_s0 + $0xe0] sm:$0xff]  ;;  %v2034_v18 = vld [vmem:[%s2592_s1 + $0x158] sm:$0xff]  }
  0x15   :  { %1803 = vmatpush3.bf16.msra.mxu1 %v2005_v19  ;;  %1740 = vmatprep.subr.bf16.mxu0 %v2006_v20  ;;  %v2028_v0 = vld [vmem:[%s2592_s1 + $0x1e8] sm:$0xff]   ;;  %v1548_v7 = vcombine.high %v36_v3, %v40_v4  ;;  %v2030_v10 = vld [vmem:[%s2592_s1 + $0x160] sm:$0xff]   ;;  %v1547_v19 = vcombine.low %v36_v3, %v40_v4  ;;  %v2035_v20 = vld [vmem:[%s2592_s1 + $0x118] sm:$0xff]  }
  0x16   :  { %1804 = vmatprep.subr.bf16.mxu1 %v2007_v21  ;;  %v2029_v1 = vld [vmem:[%s2592_s1 + $0x1a8] sm:$0xff]   ;;  %v2031_v11 = vld [vmem:[%s2592_s1 + $0x120] sm:$0xff]  }
  0x17   :  { %v37_v5 = vld [vmem:[%s2593_s0 + $0xc8] sm:$0xff]  ;;  %v2032_v12 = vld [vmem:[%s2592_s1 + $0x1e0] sm:$0xff]  }
  0x18   :  { %1741 = vmatpush3.bf16.msra.mxu0 %v2008_v22  ;;  %v41_v8 = vld [vmem:[%s2593_s0 + $0xe8] sm:$0xff]  ;;  %v2033_v13 = vld [vmem:[%s2592_s1 + $0x1a0] sm:$0xff]  }
  0x19   :  { %1805 = vmatpush3.bf16.msra.mxu1 %v2009_v23  ;;  %1742 = vmatprep.subr.bf16.mxu0 %v2010_v24  ;;  %v1550_v9 = vcombine.high %v37_v5, %v41_v8  ;;  %v44_v14 = vld [vmem:[%s2593_s0 + $0x100] sm:$0xff]  ;;  %v45_v16 = vld [vmem:[%s2593_s0 + $0x108] sm:$0xff]  ;;  %v1549_v21 = vcombine.low %v37_v5, %v41_v8  ;;  %v2036_v23 = vld [vmem:[%s2592_s1 + $0x1d8] sm:$0xff]  }
  0x1a   :  { %1806 = vmatprep.subr.bf16.mxu1 %v2011_v25  ;;  %v48_v15 = vld [vmem:[%s2593_s0 + $0x120] sm:$0xff]  ;;  %v49_v17 = vld [vmem:[%s2593_s0 + $0x128] sm:$0xff]  ;;  %v2037_v25 = vld [vmem:[%s2592_s1 + $0x198] sm:$0xff]  }
  0x1b   :  { %v1556_v22 = vcombine.high %v44_v14, %v48_v15  ;;  %v1558_v24 = vcombine.high %v45_v16, %v49_v17  ;;  %v1555_v34 = vcombine.low %v44_v14, %v48_v15  ;;  %v2043_v39 = vld [vmem:[%s2592_s1 + $0x108] sm:$0xff]   ;;  %v2047_v48 = vld [vmem:[%s2592_s1 + $0x100] sm:$0xff]   ;;  %v23_v8 = vld [vmem:[%s2593_s0 + $0x58] sm:$0xff] }
  0x1c   :  { %1743 = vmatpush3.bf16.msra.mxu0 %v2012_v26  ;;  %v52_v26 = vld [vmem:[%s2593_s0 + $0x140] sm:$0xff]  ;;  %v61_v44 = vld [vmem:[%s2593_s0 + $0x188] sm:$0xff]  ;;  %v30_v14 = vld [vmem:[%s2593_s0 + $0x90] sm:$0xff] }
  0x1d   :  { %1807 = vmatpush3.bf16.msra.mxu1 %v2013_v27  ;;  %1744 = vmatprep.subr.bf16.mxu0 %v2014_v28  ;;  %v56_v27 = vld [vmem:[%s2593_s0 + $0x160] sm:$0xff]  ;;  %v2038_v28 = vld [vmem:[%s2592_s1 + $0x150] sm:$0xff]   ;;  %v65_v45 = vld [vmem:[%s2593_s0 + $0x1a8] sm:$0xff] }
  0x1e   :  { %1808 = vmatprep.subr.bf16.mxu1 %v2015_v29  ;;  %v53_v29 = vld [vmem:[%s2593_s0 + $0x148] sm:$0xff]  ;;  %v1564_v36 = vcombine.high %v52_v26, %v56_v27  ;;  %v1563_v47 = vcombine.low %v52_v26, %v56_v27  ;;  %v1573_v59 = vcombine.low %v61_v44, %v65_v45  ;;  %v34_v15 = vld [vmem:[%s2593_s0 + $0xb0] sm:$0xff] }
  0x1f   :  { %v69_v56 = vld [vmem:[%s2593_s0 + $0x1c8] sm:$0xff]  ;;  %v1543_v26 = vcombine.low %v30_v14, %v34_v15 }
  0x20   :  { %1745 = vmatpush3.bf16.msra.mxu0 %v2016_v30  ;;  %v57_v30 = vld [vmem:[%s2593_s0 + $0x168] sm:$0xff] }
  0x21   :  { %1809 = vmatpush3.bf16.msra.mxu1 %v2017_v31  ;;  %1858 = vmatprep.subr.bf16.mxu0 %v2018_v40  ;;  %v2039_v31 = vld [vmem:[%s2592_s1 + $0x110] sm:$0xff]   ;;  %v1566_v37 = vcombine.high %v53_v29, %v57_v30  ;;  %v2044_v40 = vld [vmem:[%s2592_s1 + $0x1c8] sm:$0xff]  }
  0x22   :  { %1922 = vmatprep.subr.bf16.mxu1 %v2020_v42  ;;  %v64_v42 = vld [vmem:[%s2593_s0 + $0x1a0] sm:$0xff]  ;;  %v73_v57 = vld [vmem:[%s2593_s0 + $0x1e8] sm:$0xff] }
  0x23   :  { %941 = vmatmul.mubr.bf16.vlgmr.msra.gmra.mxu0 %v1523_v35  ;;  %v1557_v35 = vcombine.low %v45_v16, %v49_v17  ;;  %v1581_v3 = vcombine.low %v69_v56, %v73_v57  ;;  %v31_v16 = vld [vmem:[%s2593_s0 + $0x98] sm:$0xff] }
  0x24   :  { %1038 = vmatmul.mubr.bf16.vlgmr.msra.gmra.mxu1 %v1525_v38  ;;  %1859 = vmatpush3.bf16.msra.mxu0 %v2019_v41  ;;  %v2042_v38 = vld [vmem:[%s2592_s1 + $0x148] sm:$0xff]   ;;  %v60_v41 = vld [vmem:[%s2593_s0 + $0x180] sm:$0xff]  ;;  %v35_v17 = vld [vmem:[%s2593_s0 + $0xb8] sm:$0xff] }
  0x25   :  { %1923 = vmatpush3.bf16.msra.mxu1 %v2021_v43  ;;  %948 = vmatprep.mubr.bf16.mxu0 %v1532_v46  ;;  %v2045_v43 = vld [vmem:[%s2592_s1 + $0x188] sm:$0xff]   ;;  %v2046_v46 = vld [vmem:[%s2592_s1 + $0x140] sm:$0xff]   ;;  %v1571_v58 = vcombine.low %v60_v41, %v64_v42  ;;  %v1545_v27 = vcombine.low %v31_v16, %v35_v17 }
  0x26   :  { %1045 = vmatprep.mubr.bf16.mxu1 %v1534_v49  ;;  %1860 = vmatprep.subr.bf16.mxu0 %v2022_v50  ;;  %v1565_v49 = vcombine.low %v53_v29, %v57_v30  ;;  %v1572_v50 = vcombine.high %v60_v41, %v64_v42  ;;  %v46_v30 = vld [vmem:[%s2593_s0 + $0x110] sm:$0xff]  ;;  %v59_v41 = vld [vmem:[%s2593_s0 + $0x178] sm:$0xff] }
  0x27   :  { %1924 = vmatprep.subr.bf16.mxu1 %v2024_v54  ;;  %v68_v54 = vld [vmem:[%s2593_s0 + $0x1c0] sm:$0xff] }
  0x28   :  { %1861 = vmatpush3.bf16.msra.mxu0 %v2023_v52  ;;  %v1574_v52 = vcombine.high %v61_v44, %v65_v45 }
  0x29   :  { %1925 = vmatpush3.bf16.msra.mxu1 %v2025_v55  ;;  %1862 = vmatprep.subr.bf16.mxu0 %v2026_v62  ;;  %v72_v55 = vld [vmem:[%s2593_s0 + $0x1e0] sm:$0xff]  ;;  %v14_v62 = vld [vmem:[%s2593_s0 + $0x10] sm:$0xff] }
  0x2a   :  { %1926 = vmatprep.subr.bf16.mxu1 %v2028_v0  ;;  %v15_v0 = vld [vmem:[%s2593_s0 + $0x18] sm:$0xff] }
  0x2b   :  { %949 = vmatmul.mubr.bf16.gmra.mxu0 %v1531_v51  ;;  %v2048_v51 = vld [vmem:[%s2592_s1 + $0x1c0] sm:$0xff]  }
  0x2c   :  { %1046 = vmatmul.mubr.bf16.gmra.mxu1 %v1533_v53  ;;  %956 = vmatprep.mubr.bf16.mxu0 %v1540_v60  ;;  %v2049_v53 = vld [vmem:[%s2592_s1 + $0x180] sm:$0xff]   ;;  %v1580_v60 = vcombine.high %v68_v54, %v72_v55 }
  0x2d   :  { %1053 = vmatprep.mubr.bf16.mxu1 %v1542_v61  ;;  %1863 = vmatpush3.bf16.msra.mxu0 %v2027_v63  ;;  %v1582_v61 = vcombine.high %v69_v56, %v73_v57  ;;  %v18_v63 = vld [vmem:[%s2593_s0 + $0x30] sm:$0xff]  ;;  %v71_v56 = vld [vmem:[%s2593_s0 + $0x1d8] sm:$0xff] }
  0x2e   :  { %1927 = vmatpush3.bf16.msra.mxu1 %v2029_v1  ;;  %1864 = vmatprep.subr.bf16.mxu0 %v2030_v10  ;;  %v19_v1 = vld [vmem:[%s2593_s0 + $0x38] sm:$0xff]  ;;  %v1528_v4 = vcombine.high %v14_v62, %v18_v63  ;;  %v1527_v10 = vcombine.low %v14_v62, %v18_v63 }
  0x2f   :  { %1928 = vmatprep.subr.bf16.mxu1 %v2032_v12  ;;  %v1530_v5 = vcombine.high %v15_v0, %v19_v1  ;;  %v75_v57 = vld [vmem:[%s2593_s0 + $0x1f8] sm:$0xff] }
  0x30   :  { %v1585_v63 = vcombine.low %v71_v56, %v75_v57 }
  0x31   :  { %1865 = vmatpush3.bf16.msra.mxu0 %v2031_v11  ;;  %v1529_v11 = vcombine.low %v15_v0, %v19_v1 }
  0x32   :  { %1929 = vmatpush3.bf16.msra.mxu1 %v2033_v13  ;;  %1866 = vmatprep.subr.bf16.mxu0 %v2034_v18 }
  0x33   :  { %957 = vmatmul.mubr.bf16.gmra.mxu0 %v1539_v2  ;;  %1930 = vmatprep.subr.bf16.mxu1 %v2036_v23  ;;  %v1579_v2 = vcombine.low %v68_v54, %v72_v55  ;;  %v42_v23 = vld [vmem:[%s2593_s0 + $0xf0] sm:$0xff] }
  0x34   :  { %1054 = vmatmul.mubr.bf16.gmra.mxu1 %v1541_v6  ;;  %964 = vmatprep.mubr.bf16.mxu0 %v1548_v7  ;;  %v22_v6 = vld [vmem:[%s2593_s0 + $0x50] sm:$0xff] }
  0x35   :  { %1061 = vmatprep.mubr.bf16.mxu1 %v1550_v9  ;;  %1867 = vmatpush3.bf16.msra.mxu0 %v2035_v20  ;;  %v26_v7 = vld [vmem:[%s2593_s0 + $0x70] sm:$0xff]  ;;  %v27_v9 = vld [vmem:[%s2593_s0 + $0x78] sm:$0xff]  ;;  %v1544_v20 = vcombine.high %v30_v14, %v34_v15 }
  0x36   :  { %1931 = vmatpush3.bf16.msra.mxu1 %v2037_v25  ;;  %1868 = vmatprep.subr.bf16.mxu0 %v2038_v28  ;;  %v1536_v12 = vcombine.high %v22_v6, %v26_v7  ;;  %v1538_v13 = vcombine.high %v23_v8, %v27_v9  ;;  %v1535_v18 = vcombine.low %v22_v6, %v26_v7  ;;  %v43_v25 = vld [vmem:[%s2593_s0 + $0xf8] sm:$0xff]  ;;  %v70_v54 = vld [vmem:[%s2593_s0 + $0x1d0] sm:$0xff] }
  0x37   :  { %1932 = vmatprep.subr.bf16.mxu1 %v2040_v32  ;;  %v47_v32 = vld [vmem:[%s2593_s0 + $0x118] sm:$0xff]  ;;  %v74_v55 = vld [vmem:[%s2593_s0 + $0x1f0] sm:$0xff] }
  0x38   :  { %v1583_v62 = vcombine.low %v70_v54, %v74_v55 }
  0x39   :  { %1869 = vmatpush3.bf16.msra.mxu0 %v2039_v31  ;;  %v50_v31 = vld [vmem:[%s2593_s0 + $0x130] sm:$0xff] }
  0x3a   :  { %1933 = vmatpush3.bf16.msra.mxu1 %v2041_v33  ;;  %1870 = vmatprep.subr.bf16.mxu0 %v2042_v38  ;;  %v51_v33 = vld [vmem:[%s2593_s0 + $0x138] sm:$0xff]  ;;  %v54_v38 = vld [vmem:[%s2593_s0 + $0x150] sm:$0xff]  ;;  %v1559_v42 = vcombine.low %v46_v30, %v50_v31 }
  0x3b   :  { %965 = vmatmul.mubr.bf16.gmra.mxu0 %v1547_v19  ;;  %1934 = vmatprep.subr.bf16.mxu1 %v2044_v40  ;;  %v1537_v19 = vcombine.low %v23_v8, %v27_v9  ;;  %v55_v40 = vld [vmem:[%s2593_s0 + $0x158] sm:$0xff] }
  0x3c   :  { %1062 = vmatmul.mubr.bf16.gmra.mxu1 %v1549_v21  ;;  %972 = vmatprep.mubr.bf16.mxu0 %v1556_v22  ;;  %v1546_v21 = vcombine.high %v31_v16, %v35_v17  ;;  %v38_v22 = vld [vmem:[%s2593_s0 + $0xd0] sm:$0xff]  ;;  %v1570_v45 = vcombine.high %v55_v40, %v59_v41 }
  0x3d   :  { %1069 = vmatprep.mubr.bf16.mxu1 %v1558_v24  ;;  %1871 = vmatpush3.bf16.msra.mxu0 %v2043_v39  ;;  %v39_v24 = vld [vmem:[%s2593_s0 + $0xd8] sm:$0xff]  ;;  %v1552_v28 = vcombine.high %v38_v22, %v42_v23  ;;  %v58_v39 = vld [vmem:[%s2593_s0 + $0x170] sm:$0xff] }
  0x3e   :  { %1935 = vmatpush3.bf16.msra.mxu1 %v2045_v43  ;;  %1872 = vmatprep.subr.bf16.mxu0 %v2046_v46  ;;  %v1554_v29 = vcombine.high %v39_v24, %v43_v25  ;;  %v1561_v43 = vcombine.low %v47_v32, %v51_v33  ;;  %v1568_v44 = vcombine.high %v54_v38, %v58_v39  ;;  %v62_v46 = vld [vmem:[%s2593_s0 + $0x190] sm:$0xff] }
  0x3f   :  { %1936 = vmatprep.subr.bf16.mxu1 %v2048_v51  ;;  %v1569_v51 = vcombine.low %v55_v40, %v59_v41 }
  0x41   :  { %1873 = vmatpush3.bf16.msra.mxu0 %v2047_v48  ;;  %v63_v48 = vld [vmem:[%s2593_s0 + $0x198] sm:$0xff] }
  0x42   :  { %1937 = vmatpush3.bf16.msra.mxu1 %v2049_v53 }
  0x43   :  { %973 = vmatmul.mubr.bf16.gmra.mxu0 %v1555_v34  ;;  %v1551_v34 = vcombine.low %v38_v22, %v42_v23 }
  0x44   :  { %1070 = vmatmul.mubr.bf16.gmra.mxu1 %v1557_v35  ;;  %980 = vmatprep.mubr.bf16.mxu0 %v1564_v36  ;;  %v1553_v35 = vcombine.low %v39_v24, %v43_v25  ;;  %v1560_v36 = vcombine.high %v46_v30, %v50_v31 }
  0x45   :  { %1077 = vmatprep.mubr.bf16.mxu1 %v1566_v37  ;;  %v1562_v37 = vcombine.high %v47_v32, %v51_v33 }
  0x4b   :  { %981 = vmatmul.mubr.bf16.gmra.mxu0 %v1563_v47  ;;  %v66_v47 = vld [vmem:[%s2593_s0 + $0x1b0] sm:$0xff] }
  0x4c   :  { %1078 = vmatmul.mubr.bf16.gmra.mxu1 %v1565_v49  ;;  %988 = vmatprep.mubr.bf16.mxu0 %v1572_v50  ;;  %v67_v49 = vld [vmem:[%s2593_s0 + $0x1b8] sm:$0xff]  ;;  %v1567_v50 = vcombine.low %v54_v38, %v58_v39 }
  0x4d   :  { %1085 = vmatprep.mubr.bf16.mxu1 %v1574_v52  ;;  %v1576_v52 = vcombine.high %v62_v46, %v66_v47  ;;  %v1578_v53 = vcombine.high %v63_v48, %v67_v49 }
  0x53   :  { %989 = vmatmul.mubr.bf16.gmra.mxu0 %v1571_v58  ;;  %v1575_v58 = vcombine.low %v62_v46, %v66_v47 }
  0x54   :  { %1086 = vmatmul.mubr.bf16.gmra.mxu1 %v1573_v59  ;;  %996 = vmatprep.mubr.bf16.mxu0 %v1580_v60  ;;  %v1577_v59 = vcombine.low %v63_v48, %v67_v49  ;;  %v1584_v60 = vcombine.high %v70_v54, %v74_v55 }
  0x55   :  { %1093 = vmatprep.mubr.bf16.mxu1 %v1582_v61  ;;  %v1586_v61 = vcombine.high %v71_v56, %v75_v57 }
  0x5b   :  { %997 = vmatmul.mubr.bf16.gmra.mxu0 %v1579_v2 }
  0x5c   :  { %1094 = vmatmul.mubr.bf16.gmra.mxu1 %v1581_v3  ;;  %1134 = vmatprep.mubr.bf16.mxu0 %v1528_v4 }
  0x5d   :  { %1231 = vmatprep.mubr.bf16.mxu1 %v1530_v5 }
  0x63   :  { %1135 = vmatmul.mubr.bf16.vlgmr.msra.gmra.mxu0 %v1527_v10 }
  0x64   :  { %1232 = vmatmul.mubr.bf16.vlgmr.msra.gmra.mxu1 %v1529_v11  ;;  %1142 = vmatprep.mubr.bf16.mxu0 %v1536_v12 }
  0x65   :  { %1239 = vmatprep.mubr.bf16.mxu1 %v1538_v13 }
  0x6b   :  { %1143 = vmatmul.mubr.bf16.gmra.mxu0 %v1535_v18 }
  0x6c   :  { %1240 = vmatmul.mubr.bf16.gmra.mxu1 %v1537_v19  ;;  %1150 = vmatprep.mubr.bf16.mxu0 %v1544_v20 }
  0x6d   :  { %1247 = vmatprep.mubr.bf16.mxu1 %v1546_v21 }
  0x73   :  { %1151 = vmatmul.mubr.bf16.gmra.mxu0 %v1543_v26 }
  0x74   :  { %1248 = vmatmul.mubr.bf16.gmra.mxu1 %v1545_v27  ;;  %1158 = vmatprep.mubr.bf16.mxu0 %v1552_v28 }
  0x75   :  { %1255 = vmatprep.mubr.bf16.mxu1 %v1554_v29 }
  0x7b   :  { %1159 = vmatmul.mubr.bf16.gmra.mxu0 %v1551_v34 }
  0x7c   :  { %1256 = vmatmul.mubr.bf16.gmra.mxu1 %v1553_v35  ;;  %1166 = vmatprep.mubr.bf16.mxu0 %v1560_v36 }
  0x7d   :  { %1263 = vmatprep.mubr.bf16.mxu1 %v1562_v37 }
  0x83   :  { %1167 = vmatmul.mubr.bf16.gmra.mxu0 %v1559_v42 }
  0x84   :  { %1264 = vmatmul.mubr.bf16.gmra.mxu1 %v1561_v43  ;;  %1174 = vmatprep.mubr.bf16.mxu0 %v1568_v44 }
  0x85   :  { %1271 = vmatprep.mubr.bf16.mxu1 %v1570_v45 }
  0x8b   :  { %1175 = vmatmul.mubr.bf16.gmra.mxu0 %v1567_v50 }
  0x8c   :  { %1272 = vmatmul.mubr.bf16.gmra.mxu1 %v1569_v51  ;;  %1182 = vmatprep.mubr.bf16.mxu0 %v1576_v52 }
  0x8d   :  { %1279 = vmatprep.mubr.bf16.mxu1 %v1578_v53 }
  0x93   :  { %1183 = vmatmul.mubr.bf16.gmra.mxu0 %v1575_v58 }
  0x94   :  { %1280 = vmatmul.mubr.bf16.gmra.mxu1 %v1577_v59  ;;  %1190 = vmatprep.mubr.bf16.mxu0 %v1584_v60 }
  0x95   :  { %1287 = vmatprep.mubr.bf16.mxu1 %v1586_v61 }
  0x9b   :  { %1191 = vmatmul.mubr.bf16.gmra.mxu0 %v1583_v62 }
  0x9c   :  { %1288 = vmatmul.mubr.bf16.gmra.mxu1 %v1585_v63 }
  0xe3   :  { %v1746_v0 = vpop.f32.mrf.mxu0 }
  0xe4   :  { %v1810_v1 = vpop.f32.mrf.mxu1 }
  0xe5   :  { %v1747_v2 = vpop.f32.mrf.mxu0 }
  0xe6   :  { %v1748_v3 = vadd.f32 %v1747_v2, %v1746_v0  ;;  %v1811_v4 = vpop.f32.mrf.mxu1 }
  0xe7   :  { %v1812_v5 = vadd.f32 %v1811_v4, %v1810_v1  ;;  %v1749_v6 = vpop.f32.mrf.mxu0 }
  0xe8   :  { %v1813_v7 = vpop.f32.mrf.mxu1 }
  0xe9   :  { %v2451_v8 = vadd.f32 %v1812_v5, %v1748_v3  ;;  %v1750_v9 = vpop.f32.mrf.mxu0 }
  0xea   :  { %v1751_v10 = vadd.f32 %v1750_v9, %v1749_v6  ;;  %v1814_v11 = vpop.f32.mrf.mxu1 }
  0xeb   :  { %v1815_v12 = vadd.f32 %v1814_v11, %v1813_v7  ;;  %v1752_v13 = vpop.f32.mrf.mxu0 }
  0xec   :  { %v1816_v14 = vpop.f32.mrf.mxu1 }
  0xed   :  { %v2453_v15 = vadd.f32 %v1815_v12, %v1751_v10  ;;  %v1753_v16 = vpop.f32.mrf.mxu0 }
  0xee   :  { %v1754_v17 = vadd.f32 %v1753_v16, %v1752_v13  ;;  %v1817_v18 = vpop.f32.mrf.mxu1 }
  0xef   :  { %v1818_v19 = vadd.f32 %v1817_v18, %v1816_v14  ;;  %v1755_v20 = vpop.f32.mrf.mxu0 }
  0xf0   :  { %v1819_v21 = vpop.f32.mrf.mxu1 }
  0xf1   :  { %v2455_v22 = vadd.f32 %v1818_v19, %v1754_v17  ;;  %v1756_v23 = vpop.f32.mrf.mxu0 }
  0xf2   :  { %v1757_v24 = vadd.f32 %v1756_v23, %v1755_v20  ;;  %v1820_v25 = vpop.f32.mrf.mxu1 }
  0xf3   :  { %v1821_v26 = vadd.f32 %v1820_v25, %v1819_v21  ;;  %v1758_v27 = vpop.f32.mrf.mxu0 }
  0xf4   :  { %v1822_v28 = vpop.f32.mrf.mxu1 }
  0xf5   :  { %v2457_v29 = vadd.f32 %v1821_v26, %v1757_v24  ;;  %v1759_v30 = vpop.f32.mrf.mxu0 }
  0xf6   :  { %v1760_v31 = vadd.f32 %v1759_v30, %v1758_v27  ;;  %v1823_v32 = vpop.f32.mrf.mxu1 }
  0xf7   :  { %v1824_v33 = vadd.f32 %v1823_v32, %v1822_v28  ;;  %v1761_v34 = vpop.f32.mrf.mxu0 }
  0xf8   :  { %v1825_v35 = vpop.f32.mrf.mxu1 }
  0xf9   :  { %v2459_v36 = vadd.f32 %v1824_v33, %v1760_v31  ;;  %v1762_v37 = vpop.f32.mrf.mxu0 }
  0xfa   :  { %v1763_v38 = vadd.f32 %v1762_v37, %v1761_v34  ;;  %v1826_v39 = vpop.f32.mrf.mxu1 }
  0xfb   :  { %v1827_v40 = vadd.f32 %v1826_v39, %v1825_v35  ;;  %v1764_v41 = vpop.f32.mrf.mxu0 }
  0xfc   :  { %v1828_v42 = vpop.f32.mrf.mxu1 }
  0xfd   :  { %v2461_v43 = vadd.f32 %v1827_v40, %v1763_v38  ;;  %v1765_v44 = vpop.f32.mrf.mxu0 }
  0xfe   :  { %v1766_v45 = vadd.f32 %v1765_v44, %v1764_v41  ;;  %v1829_v46 = vpop.f32.mrf.mxu1 }
  0xff   :  { %v1830_v47 = vadd.f32 %v1829_v46, %v1828_v42  ;;  %v1767_v48 = vpop.f32.mrf.mxu0 }
 0x100   :  { %v1831_v49 = vpop.f32.mrf.mxu1 }
 0x101   :  { %v2463_v50 = vadd.f32 %v1830_v47, %v1766_v45  ;;  %v1768_v51 = vpop.f32.mrf.mxu0 }
 0x102   :  { %v1769_v52 = vadd.f32 %v1768_v51, %v1767_v48  ;;  %v1832_v53 = vpop.f32.mrf.mxu1 }
 0x103   :  { %v1833_v54 = vadd.f32 %v1832_v53, %v1831_v49  ;;  %v1770_v55 = vpop.f32.mrf.mxu0 }
 0x104   :  { %v1834_v56 = vpop.f32.mrf.mxu1 }
 0x105   :  { %v2465_v57 = vadd.f32 %v1833_v54, %v1769_v52  ;;  %v1771_v58 = vpop.f32.mrf.mxu0 }
 0x106   :  { %v1772_v59 = vadd.f32 %v1771_v58, %v1770_v55  ;;  %v1835_v60 = vpop.f32.mrf.mxu1 }
 0x107   :  { %v1836_v61 = vadd.f32 %v1835_v60, %v1834_v56  ;;  %v1773_v62 = vpop.f32.mrf.mxu0 }
 0x108   :  { %v1837_v63 = vpop.f32.mrf.mxu1 }
 0x109   :  { %v2467_v0 = vadd.f32 %v1836_v61, %v1772_v59  ;;  %v1774_v1 = vpop.f32.mrf.mxu0 }
 0x10a   :  { %v1775_v2 = vadd.f32 %v1774_v1, %v1773_v62  ;;  %v1838_v3 = vpop.f32.mrf.mxu1 }
 0x10b   :  { %v1839_v4 = vadd.f32 %v1838_v3, %v1837_v63  ;;  %v1776_v5 = vpop.f32.mrf.mxu0 }
 0x10c   :  { %v1840_v6 = vpop.f32.mrf.mxu1 }
 0x10d   :  { %v2469_v7 = vadd.f32 %v1839_v4, %v1775_v2  ;;  %v1777_v9 = vpop.f32.mrf.mxu0 }
 0x10e   :  { %v1778_v10 = vadd.f32 %v1777_v9, %v1776_v5  ;;  %v1841_v11 = vpop.f32.mrf.mxu1 }
 0x10f   :  { %v1842_v12 = vadd.f32 %v1841_v11, %v1840_v6  ;;  %v1779_v13 = vpop.f32.mrf.mxu0 }
 0x110   :  { %v1843_v14 = vpop.f32.mrf.mxu1 }
 0x111   :  { %v2471_v16 = vadd.f32 %v1842_v12, %v1778_v10  ;;  %v1780_v17 = vpop.f32.mrf.mxu0 }
 0x112   :  { %v1781_v18 = vadd.f32 %v1780_v17, %v1779_v13  ;;  %v1844_v19 = vpop.f32.mrf.mxu1 }
 0x113   :  { %v1845_v20 = vadd.f32 %v1844_v19, %v1843_v14  ;;  %v1782_v21 = vpop.f32.mrf.mxu0 }
 0x114   :  { %v1846_v23 = vpop.f32.mrf.mxu1 }
 0x115   :  { %v2473_v24 = vadd.f32 %v1845_v20, %v1781_v18  ;;  %v1783_v25 = vpop.f32.mrf.mxu0 }
 0x116   :  { %v1784_v26 = vadd.f32 %v1783_v25, %v1782_v21  ;;  %v1847_v27 = vpop.f32.mrf.mxu1 }
 0x117   :  { %v1848_v28 = vadd.f32 %v1847_v27, %v1846_v23  ;;  %v1785_v30 = vpop.f32.mrf.mxu0 }
 0x118   :  { %v1849_v31 = vpop.f32.mrf.mxu1 }
 0x119   :  { %v2475_v32 = vadd.f32 %v1848_v28, %v1784_v26  ;;  %v1786_v33 = vpop.f32.mrf.mxu0 }
 0x11a   :  { %v1787_v34 = vadd.f32 %v1786_v33, %v1785_v30  ;;  %v1850_v35 = vpop.f32.mrf.mxu1 }
 0x11b   :  { %v1851_v37 = vadd.f32 %v1850_v35, %v1849_v31  ;;  %v1788_v38 = vpop.f32.mrf.mxu0 }
 0x11c   :  { %v1852_v39 = vpop.f32.mrf.mxu1 }
 0x11d   :  { %v2477_v40 = vadd.f32 %v1851_v37, %v1787_v34  ;;  %v1789_v41 = vpop.f32.mrf.mxu0 }
 0x11e   :  { %v1790_v42 = vadd.f32 %v1789_v41, %v1788_v38  ;;  %v1853_v44 = vpop.f32.mrf.mxu1 }
 0x11f   :  { %v1854_v45 = vadd.f32 %v1853_v44, %v1852_v39  ;;  %v2479_v46 = vpop.f32.mrf.mxu0 }
 0x120   :  { %v2481_v47 = vpop.f32.mrf.mxu1 }
 0x121   :  { %v2483_v48 = vadd.f32 %v1854_v45, %v1790_v42  ;;  %v2485_v49 = vpop.f32.mrf.mxu0 }
 0x122   :  { %v2487_v51 = vpop.f32.mrf.mxu1 }
 0x123   :  { %v1874_v52 = vpop.f32.mrf.mxu0 }
 0x124   :  { %v1938_v53 = vpop.f32.mrf.mxu1 }
 0x125   :  { %v1875_v54 = vpop.f32.mrf.mxu0 }
 0x126   :  { %v1876_v55 = vadd.f32 %v1875_v54, %v1874_v52  ;;  %v1939_v56 = vpop.f32.mrf.mxu1 }
 0x127   :  { %v1877_v58 = vpop.f32.mrf.mxu0  ;;  %v1940_v2 = vadd.f32 %v1939_v56, %v1938_v53 }
 0x128   :  { %v1941_v59 = vpop.f32.mrf.mxu1  ;;  %v1137_v61 = vadd.f32 %v1876_v55, %v2451_v8 }
 0x129   :  { %v1878_v60 = vpop.f32.mrf.mxu0 }
 0x12a   :  { %v1879_v62 = vadd.f32 %v1878_v60, %v1877_v58  ;;  %v1942_v63 = vpop.f32.mrf.mxu1  ;;  %v2491_v9 = vadd.f32 %v1940_v2, %v1137_v61 }
 0x12b   :  { %v1880_v1 = vpop.f32.mrf.mxu0  ;;  %v1943_v4 = vadd.f32 %v1942_v63, %v1941_v59 }
 0x12c   :  { %v1140_v3 = vadd.f32 %v1879_v62, %v2453_v15  ;;  %v1944_v5 = vpop.f32.mrf.mxu1 }
 0x12d   :  { %v1881_v6 = vpop.f32.mrf.mxu0 }
 0x12e   :  { %v2493_v10 = vadd.f32 %v1943_v4, %v1140_v3  ;;  %v1882_v11 = vadd.f32 %v1881_v6, %v1880_v1  ;;  %v1945_v12 = vpop.f32.mrf.mxu1 }
 0x12f   :  { %v1883_v13 = vpop.f32.mrf.mxu0  ;;  %v1946_v17 = vadd.f32 %v1945_v12, %v1944_v5 }
 0x130   :  { %v1296_v14 = vadd.f32 %v2493_v10, %v2491_v9  ;;  %v1145_v8 = vadd.f32 %v1882_v11, %v2455_v22  ;;  %v1947_v18 = vpop.f32.mrf.mxu1 }
 0x131   :  { %v1884_v19 = vpop.f32.mrf.mxu0 }
 0x132   :  { %v2498_v20 = vadd.f32 %v1946_v17, %v1145_v8  ;;  %v1885_v15 = vadd.f32 %v1884_v19, %v1883_v13  ;;  %v1948_v21 = vpop.f32.mrf.mxu1 }
 0x133   :  { %v1886_v23 = vpop.f32.mrf.mxu0  ;;  %v1949_v27 = vadd.f32 %v1948_v21, %v1947_v18 }
 0x134   :  { %v1297_v25 = vadd.f32 %v1296_v14, %v2498_v20  ;;  %v1148_v26 = vadd.f32 %v1885_v15, %v2457_v29  ;;  %v1950_v28 = vpop.f32.mrf.mxu1 }
 0x135   :  { %v1887_v30 = vpop.f32.mrf.mxu0 }
 0x136   :  { %v2502_v31 = vadd.f32 %v1949_v27, %v1148_v26  ;;  %v1888_v33 = vadd.f32 %v1887_v30, %v1886_v23  ;;  %v1951_v34 = vpop.f32.mrf.mxu1 }
 0x137   :  { %v1889_v22 = vpop.f32.mrf.mxu0  ;;  %v1952_v38 = vadd.f32 %v1951_v34, %v1950_v28 }
 0x138   :  { %v1298_v35 = vadd.f32 %v1297_v25, %v2502_v31  ;;  %v1153_v37 = vadd.f32 %v1888_v33, %v2459_v36  ;;  %v1953_v39 = vpop.f32.mrf.mxu1 }
 0x139   :  { %v1890_v41 = vpop.f32.mrf.mxu0 }
 0x13a   :  { %v2506_v42 = vadd.f32 %v1952_v38, %v1153_v37  ;;  %v1891_v44 = vadd.f32 %v1890_v41, %v1889_v22  ;;  %v1954_v45 = vpop.f32.mrf.mxu1 }
 0x13b   :  { %v1892_v29 = vpop.f32.mrf.mxu0  ;;  %v1955_v54 = vadd.f32 %v1954_v45, %v1953_v39 }
 0x13c   :  { %v1299_v52 = vadd.f32 %v1298_v35, %v2506_v42  ;;  %v1156_v53 = vadd.f32 %v1891_v44, %v2461_v43  ;;  %v1956_v55 = vpop.f32.mrf.mxu1 }
 0x13d   :  { %v1893_v56 = vpop.f32.mrf.mxu0 }
 0x13e   :  { %v2510_v58 = vadd.f32 %v1955_v54, %v1156_v53  ;;  %v1894_v59 = vadd.f32 %v1893_v56, %v1892_v29  ;;  %v1957_v60 = vpop.f32.mrf.mxu1 }
 0x13f   :  { %v1895_v36 = vpop.f32.mrf.mxu0  ;;  %v1958_v63 = vadd.f32 %v1957_v60, %v1956_v55 }
 0x140   :  { %v1300_v61 = vadd.f32 %v1299_v52, %v2510_v58  ;;  %v1161_v62 = vadd.f32 %v1894_v59, %v2463_v50  ;;  %v1959_v1 = vpop.f32.mrf.mxu1 }
 0x141   :  { %v1896_v2 = vpop.f32.mrf.mxu0 }
 0x142   :  { %v2514_v3 = vadd.f32 %v1958_v63, %v1161_v62  ;;  %v1897_v4 = vadd.f32 %v1896_v2, %v1895_v36  ;;  %v1960_v5 = vpop.f32.mrf.mxu1 }
 0x143   :  { %v1898_v43 = vpop.f32.mrf.mxu0  ;;  %v1961_v12 = vadd.f32 %v1960_v5, %v1959_v1 }
 0x144   :  { %v1301_v6 = vadd.f32 %v1300_v61, %v2514_v3  ;;  %v1164_v11 = vadd.f32 %v1897_v4, %v2465_v57  ;;  %v1962_v13 = vpop.f32.mrf.mxu1 }
 0x145   :  { %v1899_v14 = vpop.f32.mrf.mxu0 }
 0x146   :  { %v2518_v8 = vadd.f32 %v1961_v12, %v1164_v11  ;;  %v1900_v17 = vadd.f32 %v1899_v14, %v1898_v43  ;;  %v1963_v18 = vpop.f32.mrf.mxu1 }
 0x147   :  { %v1901_v50 = vpop.f32.mrf.mxu0  ;;  %v1964_v21 = vadd.f32 %v1963_v18, %v1962_v13 }
 0x148   :  { %v1302_v19 = vadd.f32 %v1301_v6, %v2518_v8  ;;  %v1169_v15 = vadd.f32 %v1900_v17, %v2467_v0  ;;  %v1965_v23 = vpop.f32.mrf.mxu1 }
 0x149   :  { %v1902_v25 = vpop.f32.mrf.mxu0 }
 0x14a   :  { %v2522_v26 = vadd.f32 %v1964_v21, %v1169_v15  ;;  %v1903_v27 = vadd.f32 %v1902_v25, %v1901_v50  ;;  %v1966_v28 = vpop.f32.mrf.mxu1  ;;  %v1793_v15 = vadd.f32 %v2485_v49, %v2479_v46  ;;  %v1857_v21 = vadd.f32 %v2487_v51, %v2481_v47 }
 0x14b   :  { %v1904_v57 = vpop.f32.mrf.mxu0  ;;  %v1967_v34 = vadd.f32 %v1966_v28, %v1965_v23 }
 0x14c   :  { %v1303_v30 = vadd.f32 %v1302_v19, %v2522_v26  ;;  %v1172_v33 = vadd.f32 %v1903_v27, %v2469_v7  ;;  %v1968_v22 = vpop.f32.mrf.mxu1 }
 0x14d   :  { %v1905_v35 = vpop.f32.mrf.mxu0 }
 0x14e   :  { %v2526_v37 = vadd.f32 %v1967_v34, %v1172_v33  ;;  %v1906_v38 = vadd.f32 %v1905_v35, %v1904_v57  ;;  %v1969_v39 = vpop.f32.mrf.mxu1 }
 0x14f   :  { %v1907_v0 = vpop.f32.mrf.mxu0  ;;  %v1970_v45 = vadd.f32 %v1969_v39, %v1968_v22 }
 0x150   :  { %v1304_v41 = vadd.f32 %v1303_v30, %v2526_v37  ;;  %v1177_v44 = vadd.f32 %v1906_v38, %v2471_v16  ;;  %v1971_v29 = vpop.f32.mrf.mxu1 }
 0x151   :  { %v1908_v52 = vpop.f32.mrf.mxu0 }
 0x152   :  { %v2530_v53 = vadd.f32 %v1970_v45, %v1177_v44  ;;  %v1909_v54 = vadd.f32 %v1908_v52, %v1907_v0  ;;  %v1972_v55 = vpop.f32.mrf.mxu1 }
 0x153   :  { %v1910_v7 = vpop.f32.mrf.mxu0  ;;  %v1973_v60 = vadd.f32 %v1972_v55, %v1971_v29 }
 0x154   :  { %v1305_v56 = vadd.f32 %v1304_v41, %v2530_v53  ;;  %v1180_v59 = vadd.f32 %v1909_v54, %v2473_v24  ;;  %v1974_v36 = vpop.f32.mrf.mxu1 }
 0x155   :  { %v1911_v61 = vpop.f32.mrf.mxu0 }
 0x156   :  { %v1277_v62 = vadd.f32 %v1973_v60, %v1180_v59  ;;  %v1912_v63 = vadd.f32 %v1911_v61, %v1910_v7  ;;  %v1975_v1 = vpop.f32.mrf.mxu1 }
 0x157   :  { %v1913_v2 = vpop.f32.mrf.mxu0  ;;  %v1976_v5 = vadd.f32 %v1975_v1, %v1974_v36 }
 0x158   :  { %v1306_v16 = vadd.f32 %v1305_v56, %v1277_v62  ;;  %v1185_v4 = vadd.f32 %v1912_v63, %v2475_v32  ;;  %v1977_v43 = vpop.f32.mrf.mxu1 }
 0x159   :  { %v1914_v6 = vpop.f32.mrf.mxu0 }
 0x15a   :  { %v1282_v11 = vadd.f32 %v1976_v5, %v1185_v4  ;;  %v1915_v12 = vadd.f32 %v1914_v6, %v1913_v2  ;;  %v1978_v13 = vpop.f32.mrf.mxu1 }
 0x15b   :  { %v1916_v14 = vpop.f32.mrf.mxu0  ;;  %v1979_v18 = vadd.f32 %v1978_v13, %v1977_v43 }
 0x15c   :  { %v1307_v17 = vadd.f32 %v1306_v16, %v1282_v11  ;;  %v1188_v24 = vadd.f32 %v1915_v12, %v2477_v40  ;;  %v1980_v50 = vpop.f32.mrf.mxu1  ;;  %v1099_v40 = vadd.f32 %v1857_v21, %v1793_v15 }
 0x15d   :  { %v1917_v19 = vpop.f32.mrf.mxu0 }
 0x15e   :  { %v1285_v32 = vadd.f32 %v1979_v18, %v1188_v24  ;;  %v1918_v23 = vadd.f32 %v1917_v19, %v1916_v14  ;;  %v1981_v25 = vpop.f32.mrf.mxu1 }
 0x15f   :  { %v1919_v27 = vpop.f32.mrf.mxu0  ;;  %v1982_v30 = vadd.f32 %v1981_v25, %v1980_v50 }
 0x160   :  { %v1308_v28 = vadd.f32 %v1307_v17, %v1285_v32  ;;  %v1193_v57 = vadd.f32 %v1918_v23, %v2483_v48  ;;  %v1983_v33 = vpop.f32.mrf.mxu1 }
 0x161   :  { %v1920_v34 = vpop.f32.mrf.mxu0 }
 0x162   :  { %v1290_v22 = vadd.f32 %v1982_v30, %v1193_v57  ;;  %v1921_v35 = vadd.f32 %v1920_v34, %v1919_v27  ;;  %v1984_v38 = vpop.f32.mrf.mxu1 }
 0x163   :  { %v1985_v46 = vadd.f32 %v1984_v38, %v1983_v33 }
 0x164   :  { %v1309_v39 = vadd.f32 %v1308_v28, %v1290_v22  ;;  %v1196_v0 = vadd.f32 %v1921_v35, %v1099_v40 }
 0x166   :  { %v1293_v49 = vadd.f32 %v1985_v46, %v1196_v0 }
 0x168   :  { %v1310_v41 = vadd.f32 %v1309_v39, %v1293_v49 }
 0x16a   :  { %v1311_v47 = vrot.slane %v1310_v41, 4 }
 0x16c   :  { %v1312_v51 = vadd.f32 %v1311_v47, %v1310_v41 }
 0x16e   :  { %v1313_v44 = vrot.slane %v1312_v51, 2 }
 0x170   :  { %v1314_v45 = vadd.f32 %v1313_v44, %v1312_v51 }
 0x172   :  { %v1315_v29 = vrot.slane %v1314_v45, 1 }
 0x174   :  { %v1316_v52 = vadd.f32 %v1315_v29, %v1314_v45 }
 0x176   :  { %v1318_v54 = vmul.f32 0.0078125, %v1316_v52 }
 0x178   :  { %v1319_v48 = vsub.f32 %v2491_v9, %v1318_v54  ;;  %v1320_v55 = vsub.f32 %v2493_v10, %v1318_v54  ;;  %v1321_v7 = vsub.f32 %v2498_v20, %v1318_v54  ;;  %v1322_v56 = vsub.f32 %v2502_v31, %v1318_v54 }
 0x179   :  { %v1323_v59 = vsub.f32 %v2506_v42, %v1318_v54  ;;  %v1324_v60 = vsub.f32 %v2510_v58, %v1318_v54  ;;  %v1325_v36 = vsub.f32 %v2514_v3, %v1318_v54  ;;  %v1326_v61 = vsub.f32 %v2518_v8, %v1318_v54 }
 0x17a   :  { %v1327_v63 = vsub.f32 %v2522_v26, %v1318_v54  ;;  %v1328_v1 = vsub.f32 %v2526_v37, %v1318_v54  ;;  %v1329_v9 = vsub.f32 %v2530_v53, %v1318_v54  ;;  %v1330_v2 = vsub.f32 %v1277_v62, %v1318_v54 }
 0x17b   :  { %v1331_v10 = vsub.f32 %v1282_v11, %v1318_v54  ;;  %v1332_v16 = vsub.f32 %v1285_v32, %v1318_v54  ;;  %v1333_v20 = vsub.f32 %v1290_v22, %v1318_v54  ;;  %v1334_v4 = vsub.f32 %v1293_v49, %v1318_v54 }
 0x17c   :  { %v1335_v31 = vmul.f32 %v1319_v48, %v1319_v48  ;;  %v1336_v5 = vmul.f32 %v1320_v55, %v1320_v55  ;;  %v1337_v42 = vmul.f32 %v1321_v7, %v1321_v7  ;;  %v1338_v58 = vmul.f32 %v1322_v56, %v1322_v56 }
 0x17d   :  { %v1339_v3 = vmul.f32 %v1323_v59, %v1323_v59  ;;  %v1340_v8 = vmul.f32 %v1324_v60, %v1324_v60  ;;  %v1341_v26 = vmul.f32 %v1325_v36, %v1325_v36  ;;  %v1342_v37 = vmul.f32 %v1326_v61, %v1326_v61 }
 0x17e   :  { %v1351_v43 = vadd.f32 %v1336_v5, %v1335_v31  ;;  %v1343_v53 = vmul.f32 %v1327_v63, %v1327_v63  ;;  %v1344_v11 = vmul.f32 %v1328_v1, %v1328_v1  ;;  %v1345_v18 = vmul.f32 %v1329_v9, %v1329_v9 }
 0x17f   :  { %v1346_v19 = vmul.f32 %v1330_v2, %v1330_v2  ;;  %v1347_v21 = vmul.f32 %v1331_v10, %v1331_v10  ;;  %v1348_v23 = vmul.f32 %v1332_v16, %v1332_v16  ;;  %v1349_v27 = vmul.f32 %v1333_v20, %v1333_v20 }
 0x180   :  { %v1352_v6 = vadd.f32 %v1351_v43, %v1337_v42  ;;  %v1350_v57 = vmul.f32 %v1334_v4, %v1334_v4 }
 0x182   :  { %v1353_v12 = vadd.f32 %v1352_v6, %v1338_v58 }
 0x184   :  { %v1354_v13 = vadd.f32 %v1353_v12, %v1339_v3 }
 0x186   :  { %v1355_v14 = vadd.f32 %v1354_v13, %v1340_v8 }
 0x188   :  { %v1356_v17 = vadd.f32 %v1355_v14, %v1341_v26 }
 0x18a   :  { %v1357_v62 = vadd.f32 %v1356_v17, %v1342_v37 }
 0x18c   :  { %v1358_v24 = vadd.f32 %v1357_v62, %v1343_v53 }
 0x18e   :  { %v1359_v50 = vadd.f32 %v1358_v24, %v1344_v11 }
 0x190   :  { %v1360_v15 = vadd.f32 %v1359_v50, %v1345_v18 }
 0x192   :  { %v1361_v32 = vadd.f32 %v1360_v15, %v1346_v19 }
 0x194   :  { %v1362_v25 = vadd.f32 %v1361_v32, %v1347_v21 }
 0x196   :  { %v1363_v28 = vadd.f32 %v1362_v25, %v1348_v23 }
 0x198   :  { %v1364_v30 = vadd.f32 %v1363_v28, %v1349_v27 }
 0x19a   :  { %v1365_v33 = vadd.f32 %v1364_v30, %v1350_v57 }
 0x19c   :  { %v1366_v34 = vrot.slane %v1365_v33, 4 }
 0x19e   :  { %v1367_v40 = vadd.f32 %v1366_v34, %v1365_v33 }
 0x1a0   :  { %v1368_v22 = vrot.slane %v1367_v40, 2 }
 0x1a2   :  { %v1369_v35 = vadd.f32 %v1368_v22, %v1367_v40 }
 0x1a4   :  { %v1370_v38 = vrot.slane %v1369_v35, 1 }
 0x1a6   :  { %v1371_v39 = vadd.f32 %v1370_v38, %v1369_v35 }
 0x1a8   :  { %v1372_v0 = vmul.f32 0.0078125, %v1371_v39 }
 0x1aa   :  { %v1373_v46 = vadd.f32 1e-05, %v1372_v0 }
 0x1ac   :  { %2050 = vrsqrt.f32 %v1373_v46 }
 0x1b9   :  { %v2051_v49 = vpop.eup %2050 }
 0x1ba   :  { %v1375_v41 = vmul.f32 %v2051_v49, %v1319_v48  ;;  %v1376_v47 = vmul.f32 %v2051_v49, %v1320_v55  ;;  %v1377_v51 = vmul.f32 %v2051_v49, %v1321_v7  ;;  %v1378_v44 = vmul.f32 %v2051_v49, %v1322_v56 }
 0x1bb   :  { %v1379_v45 = vmul.f32 %v2051_v49, %v1323_v59  ;;  %v1380_v29 = vmul.f32 %v2051_v49, %v1324_v60  ;;  %v1381_v52 = vmul.f32 %v2051_v49, %v1325_v36  ;;  %v1382_v54 = vmul.f32 %v2051_v49, %v1326_v61 }
 0x1bc   :  { %v1383_v31 = vmul.f32 %v2051_v49, %v1327_v63  ;;  %v1384_v5 = vmul.f32 %v2051_v49, %v1328_v1  ;;  %v1385_v42 = vmul.f32 %v2051_v49, %v1329_v9  ;;  %v1386_v43 = vmul.f32 %v2051_v49, %v1330_v2 }
 0x1bd   :  { %v1387_v58 = vmul.f32 %v2051_v49, %v1331_v10  ;;  %v1388_v6 = vmul.f32 %v2051_v49, %v1332_v16  ;;  %v1389_v3 = vmul.f32 %v2051_v49, %v1333_v20  ;;  %v1390_v12 = vmul.f32 %v2051_v49, %v1334_v4 }
 0x1be   :  { %vm1391_vm0 = vcmp.gt.f32.partialorder %v1375_v41, 0.0  ;;  %vm1392_vm1 = vcmp.gt.f32.partialorder %v1376_v47, 0.0  ;;  %vm1393_vm2 = vcmp.gt.f32.partialorder %v1377_v51, 0.0  ;;  %vm1394_vm3 = vcmp.gt.f32.partialorder %v1378_v44, 0.0 }
 0x1bf   :  { %vm1395_vm4 = vcmp.gt.f32.partialorder %v1379_v45, 0.0  ;;  %vm1396_vm5 = vcmp.gt.f32.partialorder %v1380_v29, 0.0  ;;  %vm1397_vm6 = vcmp.gt.f32.partialorder %v1381_v52, 0.0  ;;  %vm1398_vm7 = vcmp.gt.f32.partialorder %v1382_v54, 0.0 }
 0x1c0   :  { %vm1399_vm8 = vcmp.gt.f32.partialorder %v1383_v31, 0.0  ;;  %vm1400_vm9 = vcmp.gt.f32.partialorder %v1384_v5, 0.0  ;;  %vm1401_vm10 = vcmp.gt.f32.partialorder %v1385_v42, 0.0  ;;  %vm1402_vm11 = vcmp.gt.f32.partialorder %v1386_v43, 0.0 }
 0x1c1   :  { %vm1403_vm12 = vcmp.gt.f32.partialorder %v1387_v58, 0.0  ;;  %vm1404_vm13 = vcmp.gt.f32.partialorder %v1388_v6, 0.0  ;;  %vm1405_vm14 = vcmp.gt.f32.partialorder %v1389_v3, 0.0  ;;  %vm1406_vm15 = vcmp.gt.f32.partialorder %v1390_v12, 0.0 }
 0x1c2   :  { %v1407_v48 = vmul.f32 0.2, %v1375_v41  ;;  %v1408_v55 = vmul.f32 0.2, %v1376_v47  ;;  %v1409_v7 = vmul.f32 0.2, %v1377_v51 }
 0x1c3   :  { %v1410_v56 = vmul.f32 0.2, %v1378_v44  ;;  %v1411_v59 = vmul.f32 0.2, %v1379_v45  ;;  %v1412_v60 = vmul.f32 0.2, %v1380_v29 }
 0x1c4   :  { %v1413_v36 = vmul.f32 0.2, %v1381_v52  ;;  %v1414_v61 = vmul.f32 0.2, %v1382_v54  ;;  %v1415_v63 = vmul.f32 0.2, %v1383_v31  ;;  %v1423_v1 = vsel %vm1391_vm0, %v1375_v41, %v1407_v48 }
 0x1c5   :  { %v1416_v9 = vmul.f32 0.2, %v1384_v5  ;;  %v1417_v2 = vmul.f32 0.2, %v1385_v42  ;;  %v1418_v10 = vmul.f32 0.2, %v1386_v43  ;;  %v1424_v16 = vsel %vm1392_vm1, %v1376_v47, %v1408_v55 }
 0x1c6   :  { %v1419_v20 = vmul.f32 0.2, %v1387_v58  ;;  %v1420_v4 = vmul.f32 0.2, %v1388_v6  ;;  %v1421_v8 = vmul.f32 0.2, %v1389_v3  ;;  %v1425_v13 = vsel %vm1393_vm2, %v1377_v51, %v1409_v7 }
 0x1c7   :  { %v1422_v26 = vmul.f32 0.2, %v1390_v12  ;;  %v1426_v14 = vsel %vm1394_vm3, %v1378_v44, %v1410_v56  ;;  %v1427_v37 = vsel %vm1395_vm4, %v1379_v45, %v1411_v59  ;;  %v1428_v17 = vsel %vm1396_vm5, %v1380_v29, %v1412_v60 }
 0x1c8   :  { %v1429_v53 = vsel %vm1397_vm6, %v1381_v52, %v1413_v36  ;;  %v1430_v62 = vsel %vm1398_vm7, %v1382_v54, %v1414_v61  ;;  %v1431_v11 = vsel %vm1399_vm8, %v1383_v31, %v1415_v63  ;;  %v1432_v24 = vsel %vm1400_vm9, %v1384_v5, %v1416_v9 }
 0x1c9   :  { %v1433_v18 = vsel %vm1401_vm10, %v1385_v42, %v1417_v2  ;;  %v1434_v50 = vsel %vm1402_vm11, %v1386_v43, %v1418_v10  ;;  %v1435_v19 = vsel %vm1403_vm12, %v1387_v58, %v1419_v20  ;;  %v1436_v15 = vsel %vm1404_vm13, %v1388_v6, %v1420_v4 }
 0x1ca   :  { %v1437_v21 = vsel %vm1405_vm14, %v1389_v3, %v1421_v8  ;;  %v1438_v32 = vsel %vm1406_vm15, %v1390_v12, %v1422_v26  ;;  %v1686_v23 = vpack.c.bf16 %v1424_v16, %v1423_v1  ;;  %v1691_v25 = vpack.c.bf16 %v1426_v14, %v1425_v13 }
 0x1cb   :  { %v1696_v27 = vpack.c.bf16 %v1428_v17, %v1427_v37  ;;  %v1701_v28 = vpack.c.bf16 %v1430_v62, %v1429_v53  ;;  %v1706_v57 = vpack.c.bf16 %v1432_v24, %v1431_v11  ;;  %v1711_v30 = vpack.c.bf16 %v1434_v50, %v1433_v18 }
 0x1cc   :  { %1687 = vst [vmem:[%s2594_s2] sm:$0xff] %v1686_v23   ;;  %1723 = vst [vmem:[%s2594_s2 + $0x8] sm:$0xff] %v1691_v25   ;;  %v1716_v33 = vpack.c.bf16 %v1436_v15, %v1435_v19  ;;  %v1721_v34 = vpack.c.bf16 %v1438_v32, %v1437_v21 }
 0x1cd   :  { %1724 = vst [vmem:[%s2594_s2 + $0x10] sm:$0xff] %v1696_v27   ;;  %1725 = vst [vmem:[%s2594_s2 + $0x18] sm:$0xff] %v1701_v28  }
 0x1ce   :  { %1726 = vst [vmem:[%s2594_s2 + $0x20] sm:$0xff] %v1706_v57   ;;  %1727 = vst [vmem:[%s2594_s2 + $0x28] sm:$0xff] %v1711_v30  }
 0x1cf   :  { %1728 = vst [vmem:[%s2594_s2 + $0x30] sm:$0xff] %v1716_v33   ;;  %1729 = vst [vmem:[%s2594_s2 + $0x38] sm:$0xff] %v1721_v34  }

// kernel: discriminator_forward.7
= control target key start
LH: loop header
LB: loop body
LE: loop exit
PB: predicated region body
PF: predicated region fallthrough
CT: control target
= control target key end

     0   :  { %s3912_s1 = inlined_call_operand.vmem [shape: bf16[2048,256], index: 1, kind: input, shape index: {}]   ;;  %s3913_s0 = inlined_call_operand.vmem [shape: bf16[32,2048], index: 0, kind: input, shape index: {}]   ;;  %s3914_s2 = inlined_call_operand.vmem [shape: bf16[32,256], index: 2, kind: output, shape index: {}]  }
   0x1   :  { %v2584_v0 = vld [vmem:[%s3912_s1 + $0x74] ss:$8 sps:$4 sm:$0xff]   ;;  %v2588_v2 = vld [vmem:[%s3912_s1 + $0x70] ss:$8 sps:$4 sm:$0xff]   ;;  %v2590_v4 = vld [vmem:[%s3912_s1 + $0x64] ss:$8 sps:$4 sm:$0xff]  }
   0x2   :  { %v2586_v1 = vld [vmem:[%s3912_s1 + $0x174] ss:$8 sps:$4 sm:$0xff]   ;;  %1739 = vmatprep.subr.bf16.mxu0 %v2584_v0  ;;  %v2589_v3 = vld [vmem:[%s3912_s1 + $0x170] ss:$8 sps:$4 sm:$0xff]   ;;  %v2592_v5 = vld [vmem:[%s3912_s1 + $0x164] ss:$8 sps:$4 sm:$0xff]  }
   0x3   :  { %1792 = vmatprep.subr.bf16.mxu1 %v2586_v1  ;;  %1740 = vmatpush1.bf16.msra.mxu0 %v2588_v2  ;;  %v2594_v6 = vld [vmem:[%s3912_s1 + $0x60] ss:$8 sps:$4 sm:$0xff]   ;;  %v2596_v8 = vld [vmem:[%s3912_s1 + $0x54] ss:$8 sps:$4 sm:$0xff]   ;;  %v2600_v10 = vld [vmem:[%s3912_s1 + $0x50] ss:$8 sps:$4 sm:$0xff]  }
   0x4   :  { %1793 = vmatpush1.bf16.msra.mxu1 %v2589_v3  ;;  %1741 = vmatprep.subr.bf16.mxu0 %v2590_v4  ;;  %v2595_v7 = vld [vmem:[%s3912_s1 + $0x160] ss:$8 sps:$4 sm:$0xff]   ;;  %v2598_v9 = vld [vmem:[%s3912_s1 + $0x154] ss:$8 sps:$4 sm:$0xff]   ;;  %v2601_v11 = vld [vmem:[%s3912_s1 + $0x150] ss:$8 sps:$4 sm:$0xff]  }
   0x5   :  { %1794 = vmatprep.subr.bf16.mxu1 %v2592_v5  ;;  %v2602_v12 = vld [vmem:[%s3912_s1 + $0x44] ss:$8 sps:$4 sm:$0xff]   ;;  %v2606_v14 = vld [vmem:[%s3912_s1 + $0x40] ss:$8 sps:$4 sm:$0xff]   ;;  %v2608_v16 = vld [vmem:[%s3912_s1 + $0x34] ss:$8 sps:$4 sm:$0xff]  }
   0x6   :  { %v2604_v13 = vld [vmem:[%s3912_s1 + $0x144] ss:$8 sps:$4 sm:$0xff]   ;;  %v2607_v15 = vld [vmem:[%s3912_s1 + $0x140] ss:$8 sps:$4 sm:$0xff]   ;;  %v2610_v17 = vld [vmem:[%s3912_s1 + $0x134] ss:$8 sps:$4 sm:$0xff]  }
   0x7   :  { %1742 = vmatpush1.bf16.msra.mxu0 %v2594_v6  ;;  %v2612_v18 = vld [vmem:[%s3912_s1 + $0x30] ss:$8 sps:$4 sm:$0xff]   ;;  %v2614_v20 = vld [vmem:[%s3912_s1 + $0x24] ss:$8 sps:$4 sm:$0xff]   ;;  %v2618_v22 = vld [vmem:[%s3912_s1 + $0x20] ss:$8 sps:$4 sm:$0xff]  }
   0x8   :  { %1795 = vmatpush1.bf16.msra.mxu1 %v2595_v7  ;;  %1743 = vmatprep.subr.bf16.mxu0 %v2596_v8  ;;  %v2613_v19 = vld [vmem:[%s3912_s1 + $0x130] ss:$8 sps:$4 sm:$0xff]   ;;  %v2616_v21 = vld [vmem:[%s3912_s1 + $0x124] ss:$8 sps:$4 sm:$0xff]   ;;  %v2619_v23 = vld [vmem:[%s3912_s1 + $0x120] ss:$8 sps:$4 sm:$0xff]  }
   0x9   :  { %1796 = vmatprep.subr.bf16.mxu1 %v2598_v9  ;;  %v2620_v24 = vld [vmem:[%s3912_s1 + $0x14] ss:$8 sps:$4 sm:$0xff]   ;;  %v2624_v26 = vld [vmem:[%s3912_s1 + $0x10] ss:$8 sps:$4 sm:$0xff]   ;;  %v2626_v28 = vld [vmem:[%s3912_s1 + $0x4] ss:$8 sps:$4 sm:$0xff]  }
   0xa   :  { %v2622_v25 = vld [vmem:[%s3912_s1 + $0x114] ss:$8 sps:$4 sm:$0xff]   ;;  %v2625_v27 = vld [vmem:[%s3912_s1 + $0x110] ss:$8 sps:$4 sm:$0xff]   ;;  %v2628_v29 = vld [vmem:[%s3912_s1 + $0x104] ss:$8 sps:$4 sm:$0xff]  }
   0xb   :  { %1744 = vmatpush1.bf16.msra.mxu0 %v2600_v10  ;;  %v2630_v30 = vld [vmem:[%s3912_s1] ss:$8 sps:$4 sm:$0xff]   ;;  %v2632_v32 = vld [vmem:[%s3912_s1 + $0xf4] ss:$8 sps:$4 sm:$0xff]   ;;  %v2636_v34 = vld [vmem:[%s3912_s1 + $0xf0] ss:$8 sps:$4 sm:$0xff]  }
   0xc   :  { %1797 = vmatpush1.bf16.msra.mxu1 %v2601_v11  ;;  %1745 = vmatprep.subr.bf16.mxu0 %v2602_v12  ;;  %v2631_v31 = vld [vmem:[%s3912_s1 + $0x100] ss:$8 sps:$4 sm:$0xff]   ;;  %v2634_v33 = vld [vmem:[%s3912_s1 + $0x1f4] ss:$8 sps:$4 sm:$0xff]   ;;  %v2637_v35 = vld [vmem:[%s3912_s1 + $0x1f0] ss:$8 sps:$4 sm:$0xff]  }
   0xd   :  { %1798 = vmatprep.subr.bf16.mxu1 %v2604_v13  ;;  %v2638_v36 = vld [vmem:[%s3912_s1 + $0xe4] ss:$8 sps:$4 sm:$0xff]   ;;  %v2642_v38 = vld [vmem:[%s3912_s1 + $0xe0] ss:$8 sps:$4 sm:$0xff]   ;;  %v2644_v40 = vld [vmem:[%s3912_s1 + $0xd4] ss:$8 sps:$4 sm:$0xff]  }
   0xe   :  { %v2640_v37 = vld [vmem:[%s3912_s1 + $0x1e4] ss:$8 sps:$4 sm:$0xff]   ;;  %v2643_v39 = vld [vmem:[%s3912_s1 + $0x1e0] ss:$8 sps:$4 sm:$0xff]   ;;  %v2646_v41 = vld [vmem:[%s3912_s1 + $0x1d4] ss:$8 sps:$4 sm:$0xff]  }
   0xf   :  { %1746 = vmatpush1.bf16.msra.mxu0 %v2606_v14  ;;  %v2648_v42 = vld [vmem:[%s3912_s1 + $0xd0] ss:$8 sps:$4 sm:$0xff]   ;;  %v2650_v44 = vld [vmem:[%s3912_s1 + $0xc4] ss:$8 sps:$4 sm:$0xff]   ;;  %v2654_v46 = vld [vmem:[%s3912_s1 + $0xc0] ss:$8 sps:$4 sm:$0xff]  }
  0x10   :  { %1799 = vmatpush1.bf16.msra.mxu1 %v2607_v15  ;;  %1747 = vmatprep.subr.bf16.mxu0 %v2608_v16  ;;  %v2649_v43 = vld [vmem:[%s3912_s1 + $0x1d0] ss:$8 sps:$4 sm:$0xff]   ;;  %v2652_v45 = vld [vmem:[%s3912_s1 + $0x1c4] ss:$8 sps:$4 sm:$0xff]   ;;  %v2655_v47 = vld [vmem:[%s3912_s1 + $0x1c0] ss:$8 sps:$4 sm:$0xff]  }
  0x11   :  { %1800 = vmatprep.subr.bf16.mxu1 %v2610_v17  ;;  %v11_v48 = vld [vmem:[%s3913_s0] sm:$0xff]  ;;  %v12_v50 = vld [vmem:[%s3913_s0 + $0x8] sm:$0xff]  ;;  %v2656_v52 = vld [vmem:[%s3912_s1 + $0xb4] ss:$8 sps:$4 sm:$0xff]  }
  0x12   :  { %v19_v49 = vld [vmem:[%s3913_s0 + $0x40] sm:$0xff]  ;;  %v20_v51 = vld [vmem:[%s3913_s0 + $0x48] sm:$0xff]  ;;  %v2658_v54 = vld [vmem:[%s3912_s1 + $0x1b4] ss:$8 sps:$4 sm:$0xff]  }
  0x13   :  { %1748 = vmatpush1.bf16.msra.mxu0 %v2612_v18  ;;  %v2289_v53 = vcombine.high %v11_v48, %v19_v49  ;;  %v2291_v55 = vcombine.high %v12_v50, %v20_v51  ;;  %v2660_v56 = vld [vmem:[%s3912_s1 + $0xb0] ss:$8 sps:$4 sm:$0xff]   ;;  %v2662_v58 = vld [vmem:[%s3912_s1 + $0xa4] ss:$8 sps:$4 sm:$0xff]   ;;  %v2666_v60 = vld [vmem:[%s3912_s1 + $0xa0] ss:$8 sps:$4 sm:$0xff]   ;;  %v2288_v8 = vcombine.low %v11_v48, %v19_v49  ;;  %v2290_v9 = vcombine.low %v12_v50, %v20_v51 }
  0x14   :  { %1801 = vmatpush1.bf16.msra.mxu1 %v2613_v19  ;;  %1749 = vmatprep.subr.bf16.mxu0 %v2614_v20  ;;  %v2661_v57 = vld [vmem:[%s3912_s1 + $0x1b0] ss:$8 sps:$4 sm:$0xff]   ;;  %v2664_v59 = vld [vmem:[%s3912_s1 + $0x1a4] ss:$8 sps:$4 sm:$0xff]   ;;  %v2667_v61 = vld [vmem:[%s3912_s1 + $0x1a0] ss:$8 sps:$4 sm:$0xff]  }
  0x15   :  { %1802 = vmatprep.subr.bf16.mxu1 %v2616_v21  ;;  %1771 = vmatprep.mubr.bf16.mxu0 %v2289_v53  ;;  %v2668_v62 = vld [vmem:[%s3912_s1 + $0x94] ss:$8 sps:$4 sm:$0xff]   ;;  %v2672_v0 = vld [vmem:[%s3912_s1 + $0x90] ss:$8 sps:$4 sm:$0xff]   ;;  %v2674_v2 = vld [vmem:[%s3912_s1 + $0x84] ss:$8 sps:$4 sm:$0xff]  }
  0x16   :  { %1824 = vmatprep.mubr.bf16.mxu1 %v2291_v55  ;;  %v2670_v63 = vld [vmem:[%s3912_s1 + $0x194] ss:$8 sps:$4 sm:$0xff]   ;;  %v2673_v1 = vld [vmem:[%s3912_s1 + $0x190] ss:$8 sps:$4 sm:$0xff]   ;;  %v2676_v3 = vld [vmem:[%s3912_s1 + $0x184] ss:$8 sps:$4 sm:$0xff]  }
  0x17   :  { %1750 = vmatpush1.bf16.msra.mxu0 %v2618_v22  ;;  %v2678_v4 = vld [vmem:[%s3912_s1 + $0x80] ss:$8 sps:$4 sm:$0xff]   ;;  %v2682_v6 = vld [vmem:[%s3912_s1 + $0x274] ss:$8 sps:$4 sm:$0xff]   ;;  %v2680_v10 = vld [vmem:[%s3912_s1 + $0x270] ss:$8 sps:$4 sm:$0xff]  }
  0x18   :  { %1803 = vmatpush1.bf16.msra.mxu1 %v2619_v23  ;;  %1751 = vmatprep.subr.bf16.mxu0 %v2620_v24  ;;  %v2679_v5 = vld [vmem:[%s3912_s1 + $0x180] ss:$8 sps:$4 sm:$0xff]   ;;  %v2685_v7 = vld [vmem:[%s3912_s1 + $0x374] ss:$8 sps:$4 sm:$0xff]   ;;  %v2683_v11 = vld [vmem:[%s3912_s1 + $0x370] ss:$8 sps:$4 sm:$0xff]  }
  0x19   :  { %1804 = vmatprep.subr.bf16.mxu1 %v2622_v25  ;;  %v2688_v12 = vld [vmem:[%s3912_s1 + $0x264] ss:$8 sps:$4 sm:$0xff]   ;;  %v2686_v14 = vld [vmem:[%s3912_s1 + $0x260] ss:$8 sps:$4 sm:$0xff]   ;;  %v2694_v16 = vld [vmem:[%s3912_s1 + $0x254] ss:$8 sps:$4 sm:$0xff]  }
  0x1a   :  { %v2691_v13 = vld [vmem:[%s3912_s1 + $0x364] ss:$8 sps:$4 sm:$0xff]   ;;  %v2689_v15 = vld [vmem:[%s3912_s1 + $0x360] ss:$8 sps:$4 sm:$0xff]   ;;  %v2697_v17 = vld [vmem:[%s3912_s1 + $0x354] ss:$8 sps:$4 sm:$0xff]  }
  0x1b   :  { %1752 = vmatpush1.bf16.msra.mxu0 %v2624_v26  ;;  %v2692_v18 = vld [vmem:[%s3912_s1 + $0x250] ss:$8 sps:$4 sm:$0xff]   ;;  %v2700_v20 = vld [vmem:[%s3912_s1 + $0x244] ss:$8 sps:$4 sm:$0xff]   ;;  %v2698_v22 = vld [vmem:[%s3912_s1 + $0x240] ss:$8 sps:$4 sm:$0xff]  }
  0x1c   :  { %1805 = vmatpush1.bf16.msra.mxu1 %v2625_v27  ;;  %1753 = vmatprep.subr.bf16.mxu0 %v2626_v28  ;;  %v2695_v19 = vld [vmem:[%s3912_s1 + $0x350] ss:$8 sps:$4 sm:$0xff]   ;;  %v2703_v21 = vld [vmem:[%s3912_s1 + $0x344] ss:$8 sps:$4 sm:$0xff]   ;;  %v2701_v23 = vld [vmem:[%s3912_s1 + $0x340] ss:$8 sps:$4 sm:$0xff]  }
  0x1d   :  { %1806 = vmatprep.subr.bf16.mxu1 %v2628_v29  ;;  %v2706_v24 = vld [vmem:[%s3912_s1 + $0x234] ss:$8 sps:$4 sm:$0xff]   ;;  %v2704_v26 = vld [vmem:[%s3912_s1 + $0x230] ss:$8 sps:$4 sm:$0xff]   ;;  %v27_v28 = vld [vmem:[%s3913_s0 + $0x80] sm:$0xff] }
  0x1e   :  { %v2709_v25 = vld [vmem:[%s3912_s1 + $0x334] ss:$8 sps:$4 sm:$0xff]   ;;  %v2707_v27 = vld [vmem:[%s3912_s1 + $0x330] ss:$8 sps:$4 sm:$0xff]   ;;  %v35_v29 = vld [vmem:[%s3913_s0 + $0xc0] sm:$0xff] }
  0x1f   :  { %1754 = vmatpush1.bf16.msra.mxu0 %v2630_v30  ;;  %v28_v30 = vld [vmem:[%s3913_s0 + $0x88] sm:$0xff]  ;;  %v3306_v48 = vld [vmem:[%s3913_s0 + $0x18] sm:$0xff] }
  0x20   :  { %1807 = vmatpush1.bf16.msra.mxu1 %v2631_v31  ;;  %1755 = vmatprep.subr.bf16.mxu0 %v2632_v32  ;;  %v36_v31 = vld [vmem:[%s3913_s0 + $0xc8] sm:$0xff]  ;;  %v3313_v50 = vld [vmem:[%s3913_s0 + $0x58] sm:$0xff] }
  0x21   :  { %1808 = vmatprep.subr.bf16.mxu1 %v2634_v33  ;;  %v2712_v32 = vld [vmem:[%s3912_s1 + $0x224] ss:$8 sps:$4 sm:$0xff]   ;;  %v2305_v33 = vcombine.high %v27_v28, %v35_v29  ;;  %v2295_v51 = vcombine.high %v3306_v48, %v3313_v50  ;;  %v2725_v53 = vld [vmem:[%s3912_s1 + $0x300] ss:$8 sps:$4 sm:$0xff]   ;;  %v2733_v55 = vld [vmem:[%s3912_s1 + $0x3f4] ss:$8 sps:$4 sm:$0xff]  }
  0x23   :  { %1756 = vmatpush2.bf16.msra.mxu0 %v2636_v34  ;;  %v2307_v34 = vcombine.high %v28_v30, %v36_v31 }
  0x24   :  { %1809 = vmatpush2.bf16.msra.mxu1 %v2637_v35  ;;  %1757 = vmatprep.subr.bf16.mxu0 %v2638_v36  ;;  %v2304_v35 = vcombine.low %v27_v28, %v35_v29  ;;  %v2715_v36 = vld [vmem:[%s3912_s1 + $0x324] ss:$8 sps:$4 sm:$0xff]   ;;  %v2294_v29 = vcombine.low %v3306_v48, %v3313_v50 }
  0x25   :  { %1810 = vmatprep.subr.bf16.mxu1 %v2640_v37  ;;  %v2306_v37 = vcombine.low %v28_v30, %v36_v31  ;;  %v30_v30 = vld [vmem:[%s3913_s0 + $0x98] sm:$0xff]  ;;  %v2796_v48 = vld [vmem:[%s3912_s1 + $0x444] ss:$8 sps:$4 sm:$0xff]  }
  0x26   :  { %v38_v31 = vld [vmem:[%s3913_s0 + $0xd8] sm:$0xff] }
  0x27   :  { %1758 = vmatpush2.bf16.msra.mxu0 %v2642_v38  ;;  %v2710_v38 = vld [vmem:[%s3912_s1 + $0x220] ss:$8 sps:$4 sm:$0xff]  }
  0x28   :  { %1811 = vmatpush2.bf16.msra.mxu1 %v2643_v39  ;;  %1759 = vmatprep.subr.bf16.mxu0 %v2644_v40  ;;  %v2713_v39 = vld [vmem:[%s3912_s1 + $0x320] ss:$8 sps:$4 sm:$0xff]   ;;  %v2718_v40 = vld [vmem:[%s3912_s1 + $0x214] ss:$8 sps:$4 sm:$0xff]  }
  0x29   :  { %1812 = vmatprep.subr.bf16.mxu1 %v2646_v41  ;;  %v2721_v41 = vld [vmem:[%s3912_s1 + $0x314] ss:$8 sps:$4 sm:$0xff]  }
  0x2b   :  { %1760 = vmatpush2.bf16.msra.mxu0 %v2648_v42  ;;  %v2716_v42 = vld [vmem:[%s3912_s1 + $0x210] ss:$8 sps:$4 sm:$0xff]  }
  0x2c   :  { %1813 = vmatpush2.bf16.msra.mxu1 %v2649_v43  ;;  %1761 = vmatprep.subr.bf16.mxu0 %v2650_v44  ;;  %v2719_v43 = vld [vmem:[%s3912_s1 + $0x310] ss:$8 sps:$4 sm:$0xff]   ;;  %v2724_v44 = vld [vmem:[%s3912_s1 + $0x204] ss:$8 sps:$4 sm:$0xff]  }
  0x2d   :  { %1814 = vmatprep.subr.bf16.mxu1 %v2652_v45  ;;  %v2727_v45 = vld [vmem:[%s3912_s1 + $0x304] ss:$8 sps:$4 sm:$0xff]  }
  0x2f   :  { %1762 = vmatpush2.bf16.msra.mxu0 %v2654_v46  ;;  %v3296_v46 = vld [vmem:[%s3913_s0 + $0x10] sm:$0xff] }
  0x30   :  { %1815 = vmatpush2.bf16.msra.mxu1 %v2655_v47  ;;  %1763 = vmatprep.subr.bf16.mxu0 %v2656_v52  ;;  %v3301_v47 = vld [vmem:[%s3913_s0 + $0x50] sm:$0xff]  ;;  %v2722_v52 = vld [vmem:[%s3912_s1 + $0x200] ss:$8 sps:$4 sm:$0xff]  }
  0x31   :  { %1816 = vmatprep.subr.bf16.mxu1 %v2658_v54  ;;  %v2293_v49 = vcombine.high %v3296_v46, %v3301_v47  ;;  %v2730_v54 = vld [vmem:[%s3912_s1 + $0x2f4] ss:$8 sps:$4 sm:$0xff]   ;;  %v2292_v28 = vcombine.low %v3296_v46, %v3301_v47  ;;  %v3484_v46 = vld [vmem:[%s3913_s0 + $0x28] sm:$0xff] }
  0x32   :  { %v3489_v47 = vld [vmem:[%s3913_s0 + $0x68] sm:$0xff] }
  0x33   :  { %1764 = vmatpush2.bf16.msra.mxu0 %v2660_v56  ;;  %v2728_v56 = vld [vmem:[%s3912_s1 + $0x2f0] ss:$8 sps:$4 sm:$0xff]  }
  0x34   :  { %1817 = vmatpush2.bf16.msra.mxu1 %v2661_v57  ;;  %1765 = vmatprep.subr.bf16.mxu0 %v2662_v58  ;;  %v2731_v57 = vld [vmem:[%s3912_s1 + $0x3f0] ss:$8 sps:$4 sm:$0xff]   ;;  %v2736_v58 = vld [vmem:[%s3912_s1 + $0x2e4] ss:$8 sps:$4 sm:$0xff]  }
  0x35   :  { %1818 = vmatprep.subr.bf16.mxu1 %v2664_v59  ;;  %v2739_v59 = vld [vmem:[%s3912_s1 + $0x3e4] ss:$8 sps:$4 sm:$0xff]  }
  0x37   :  { %1766 = vmatpush2.bf16.msra.mxu0 %v2666_v60  ;;  %v2734_v60 = vld [vmem:[%s3912_s1 + $0x2e0] ss:$8 sps:$4 sm:$0xff]  }
  0x38   :  { %1819 = vmatpush2.bf16.msra.mxu1 %v2667_v61  ;;  %1767 = vmatprep.subr.bf16.mxu0 %v2668_v62  ;;  %v2737_v61 = vld [vmem:[%s3912_s1 + $0x3e0] ss:$8 sps:$4 sm:$0xff]   ;;  %v2742_v62 = vld [vmem:[%s3912_s1 + $0x2d4] ss:$8 sps:$4 sm:$0xff]  }
  0x39   :  { %1820 = vmatprep.subr.bf16.mxu1 %v2670_v63  ;;  %v2745_v63 = vld [vmem:[%s3912_s1 + $0x3d4] ss:$8 sps:$4 sm:$0xff]  }
  0x3b   :  { %1768 = vmatpush2.bf16.msra.mxu0 %v2672_v0  ;;  %v2740_v0 = vld [vmem:[%s3912_s1 + $0x2d0] ss:$8 sps:$4 sm:$0xff]  }
  0x3c   :  { %1821 = vmatpush2.bf16.msra.mxu1 %v2673_v1  ;;  %1769 = vmatprep.subr.bf16.mxu0 %v2674_v2  ;;  %v2743_v1 = vld [vmem:[%s3912_s1 + $0x3d0] ss:$8 sps:$4 sm:$0xff]   ;;  %v2748_v2 = vld [vmem:[%s3912_s1 + $0x2c4] ss:$8 sps:$4 sm:$0xff]  }
  0x3d   :  { %1822 = vmatprep.subr.bf16.mxu1 %v2676_v3  ;;  %v2751_v3 = vld [vmem:[%s3912_s1 + $0x3c4] ss:$8 sps:$4 sm:$0xff]  }
  0x3f   :  { %1770 = vmatpush2.bf16.msra.mxu0 %v2678_v4  ;;  %v2746_v4 = vld [vmem:[%s3912_s1 + $0x2c0] ss:$8 sps:$4 sm:$0xff]  }
  0x40   :  { %1823 = vmatpush2.bf16.msra.mxu1 %v2679_v5  ;;  %1845 = vmatprep.subr.bf16.mxu0 %v2682_v6  ;;  %v2749_v5 = vld [vmem:[%s3912_s1 + $0x3c0] ss:$8 sps:$4 sm:$0xff]   ;;  %v2754_v6 = vld [vmem:[%s3912_s1 + $0x2b4] ss:$8 sps:$4 sm:$0xff]  }
  0x41   :  { %1898 = vmatprep.subr.bf16.mxu1 %v2685_v7  ;;  %v2757_v7 = vld [vmem:[%s3912_s1 + $0x3b4] ss:$8 sps:$4 sm:$0xff]  }
  0x42   :  { %1772 = vmatmul.mubr.bf16.vlgmr.msra.gmra.mxu0 %v2288_v8  ;;  %v2752_v8 = vld [vmem:[%s3912_s1 + $0x2b0] ss:$8 sps:$4 sm:$0xff]  }
  0x43   :  { %1825 = vmatmul.mubr.bf16.vlgmr.msra.gmra.mxu1 %v2290_v9  ;;  %1846 = vmatpush1.bf16.msra.mxu0 %v2680_v10  ;;  %v2755_v9 = vld [vmem:[%s3912_s1 + $0x3b0] ss:$8 sps:$4 sm:$0xff]   ;;  %v2760_v10 = vld [vmem:[%s3912_s1 + $0x2a4] ss:$8 sps:$4 sm:$0xff]  }
  0x44   :  { %1899 = vmatpush1.bf16.msra.mxu1 %v2683_v11  ;;  %1847 = vmatprep.subr.bf16.mxu0 %v2688_v12  ;;  %v2763_v11 = vld [vmem:[%s3912_s1 + $0x3a4] ss:$8 sps:$4 sm:$0xff]   ;;  %v2758_v12 = vld [vmem:[%s3912_s1 + $0x2a0] ss:$8 sps:$4 sm:$0xff]  }
  0x45   :  { %1900 = vmatprep.subr.bf16.mxu1 %v2691_v13  ;;  %1781 = vmatprep.mubr.bf16.mxu0 %v2305_v33  ;;  %v2761_v13 = vld [vmem:[%s3912_s1 + $0x3a0] ss:$8 sps:$4 sm:$0xff]   ;;  %v2787_v33 = vld [vmem:[%s3912_s1 + $0x564] ss:$8 sps:$4 sm:$0xff]  }
  0x46   :  { %1834 = vmatprep.mubr.bf16.mxu1 %v2307_v34 }
  0x47   :  { %1848 = vmatpush1.bf16.msra.mxu0 %v2686_v14  ;;  %v2766_v14 = vld [vmem:[%s3912_s1 + $0x294] ss:$8 sps:$4 sm:$0xff]  }
  0x48   :  { %1901 = vmatpush1.bf16.msra.mxu1 %v2689_v15  ;;  %1849 = vmatprep.subr.bf16.mxu0 %v2694_v16  ;;  %v2769_v15 = vld [vmem:[%s3912_s1 + $0x394] ss:$8 sps:$4 sm:$0xff]   ;;  %v2764_v16 = vld [vmem:[%s3912_s1 + $0x290] ss:$8 sps:$4 sm:$0xff]  }
  0x49   :  { %1902 = vmatprep.subr.bf16.mxu1 %v2697_v17  ;;  %v2767_v17 = vld [vmem:[%s3912_s1 + $0x390] ss:$8 sps:$4 sm:$0xff]  }
  0x4a   :  { %1782 = vmatmul.mubr.bf16.gmra.mxu0 %v2304_v35  ;;  %v2311_v35 = vcombine.high %v30_v30, %v38_v31 }
  0x4b   :  { %1850 = vmatpush1.bf16.msra.mxu0 %v2692_v18  ;;  %1835 = vmatmul.mubr.bf16.gmra.mxu1 %v2306_v37  ;;  %v2772_v18 = vld [vmem:[%s3912_s1 + $0x284] ss:$8 sps:$4 sm:$0xff]   ;;  %v2785_v37 = vld [vmem:[%s3912_s1 + $0x560] ss:$8 sps:$4 sm:$0xff]  }
  0x4c   :  { %1903 = vmatpush1.bf16.msra.mxu1 %v2695_v19  ;;  %1851 = vmatprep.subr.bf16.mxu0 %v2700_v20  ;;  %v2775_v19 = vld [vmem:[%s3912_s1 + $0x384] ss:$8 sps:$4 sm:$0xff]   ;;  %v2770_v20 = vld [vmem:[%s3912_s1 + $0x280] ss:$8 sps:$4 sm:$0xff]  }
  0x4d   :  { %1904 = vmatprep.subr.bf16.mxu1 %v2703_v21  ;;  %1877 = vmatprep.mubr.bf16.mxu0 %v2293_v49  ;;  %v2773_v21 = vld [vmem:[%s3912_s1 + $0x380] ss:$8 sps:$4 sm:$0xff]   ;;  %v2799_v49 = vld [vmem:[%s3912_s1 + $0x544] ss:$8 sps:$4 sm:$0xff]  }
  0x4e   :  { %1930 = vmatprep.mubr.bf16.mxu1 %v2295_v51  ;;  %v2299_v51 = vcombine.high %v3484_v46, %v3489_v47 }
  0x4f   :  { %1852 = vmatpush1.bf16.msra.mxu0 %v2698_v22  ;;  %v2778_v22 = vld [vmem:[%s3912_s1 + $0x474] ss:$8 sps:$4 sm:$0xff]  }
  0x50   :  { %1905 = vmatpush1.bf16.msra.mxu1 %v2701_v23  ;;  %1853 = vmatprep.subr.bf16.mxu0 %v2706_v24  ;;  %v2781_v23 = vld [vmem:[%s3912_s1 + $0x574] ss:$8 sps:$4 sm:$0xff]   ;;  %v2776_v24 = vld [vmem:[%s3912_s1 + $0x470] ss:$8 sps:$4 sm:$0xff]  }
  0x51   :  { %1906 = vmatprep.subr.bf16.mxu1 %v2709_v25  ;;  %v2779_v25 = vld [vmem:[%s3912_s1 + $0x570] ss:$8 sps:$4 sm:$0xff]  }
  0x53   :  { %1854 = vmatpush1.bf16.msra.mxu0 %v2704_v26  ;;  %v29_v26 = vld [vmem:[%s3913_s0 + $0x90] sm:$0xff] }
  0x54   :  { %1907 = vmatpush1.bf16.msra.mxu1 %v2707_v27  ;;  %1855 = vmatprep.subr.bf16.mxu0 %v2712_v32  ;;  %v37_v27 = vld [vmem:[%s3913_s0 + $0xd0] sm:$0xff]  ;;  %v2784_v32 = vld [vmem:[%s3912_s1 + $0x464] ss:$8 sps:$4 sm:$0xff]  }
  0x55   :  { %1908 = vmatprep.subr.bf16.mxu1 %v2715_v36  ;;  %v2309_v34 = vcombine.high %v29_v26, %v37_v27  ;;  %v2782_v36 = vld [vmem:[%s3912_s1 + $0x460] ss:$8 sps:$4 sm:$0xff]  }
  0x57   :  { %1856 = vmatpush1.bf16.msra.mxu0 %v2710_v38  ;;  %v2790_v38 = vld [vmem:[%s3912_s1 + $0x454] ss:$8 sps:$4 sm:$0xff]  }
  0x58   :  { %1909 = vmatpush1.bf16.msra.mxu1 %v2713_v39  ;;  %1857 = vmatprep.subr.bf16.mxu0 %v2718_v40  ;;  %v2793_v39 = vld [vmem:[%s3912_s1 + $0x554] ss:$8 sps:$4 sm:$0xff]   ;;  %v2788_v40 = vld [vmem:[%s3912_s1 + $0x450] ss:$8 sps:$4 sm:$0xff]  }
  0x59   :  { %1910 = vmatprep.subr.bf16.mxu1 %v2721_v41  ;;  %v2791_v41 = vld [vmem:[%s3912_s1 + $0x550] ss:$8 sps:$4 sm:$0xff]  }
  0x5b   :  { %1858 = vmatpush1.bf16.msra.mxu0 %v2716_v42  ;;  %v3474_v42 = vld [vmem:[%s3913_s0 + $0x20] sm:$0xff] }
  0x5c   :  { %1911 = vmatpush1.bf16.msra.mxu1 %v2719_v43  ;;  %1859 = vmatprep.subr.bf16.mxu0 %v2724_v44  ;;  %v3479_v43 = vld [vmem:[%s3913_s0 + $0x60] sm:$0xff]  ;;  %v2308_v44 = vcombine.low %v29_v26, %v37_v27 }
  0x5d   :  { %1912 = vmatprep.subr.bf16.mxu1 %v2727_v45  ;;  %v2310_v45 = vcombine.low %v30_v30, %v38_v31  ;;  %v2297_v50 = vcombine.high %v3474_v42, %v3479_v43  ;;  %v2856_v26 = vld [vmem:[%s3912_s1 + $0x4a4] ss:$8 sps:$4 sm:$0xff]   ;;  %v2862_v30 = vld [vmem:[%s3912_s1 + $0x494] ss:$8 sps:$4 sm:$0xff]  }
  0x5e   :  { %v2859_v27 = vld [vmem:[%s3912_s1 + $0x5a4] ss:$8 sps:$4 sm:$0xff]   ;;  %v2865_v31 = vld [vmem:[%s3912_s1 + $0x594] ss:$8 sps:$4 sm:$0xff]  }
  0x5f   :  { %1860 = vmatpush1.bf16.msra.mxu0 %v2722_v52  ;;  %v2794_v52 = vld [vmem:[%s3912_s1 + $0x440] ss:$8 sps:$4 sm:$0xff]  }
  0x60   :  { %1913 = vmatpush1.bf16.msra.mxu1 %v2725_v53  ;;  %1861 = vmatprep.subr.bf16.mxu0 %v2730_v54  ;;  %v2797_v53 = vld [vmem:[%s3912_s1 + $0x540] ss:$8 sps:$4 sm:$0xff]   ;;  %v2802_v54 = vld [vmem:[%s3912_s1 + $0x434] ss:$8 sps:$4 sm:$0xff]  }
  0x61   :  { %1914 = vmatprep.subr.bf16.mxu1 %v2733_v55  ;;  %v2805_v55 = vld [vmem:[%s3912_s1 + $0x534] ss:$8 sps:$4 sm:$0xff]  }
  0x63   :  { %1862 = vmatpush2.bf16.msra.mxu0 %v2728_v56  ;;  %v2800_v56 = vld [vmem:[%s3912_s1 + $0x430] ss:$8 sps:$4 sm:$0xff]  }
  0x64   :  { %1915 = vmatpush2.bf16.msra.mxu1 %v2731_v57  ;;  %1863 = vmatprep.subr.bf16.mxu0 %v2736_v58  ;;  %v2803_v57 = vld [vmem:[%s3912_s1 + $0x530] ss:$8 sps:$4 sm:$0xff]   ;;  %v2808_v58 = vld [vmem:[%s3912_s1 + $0x424] ss:$8 sps:$4 sm:$0xff]  }
  0x65   :  { %1916 = vmatprep.subr.bf16.mxu1 %v2739_v59  ;;  %v2811_v59 = vld [vmem:[%s3912_s1 + $0x524] ss:$8 sps:$4 sm:$0xff]  }
  0x67   :  { %1864 = vmatpush2.bf16.msra.mxu0 %v2734_v60  ;;  %v2806_v60 = vld [vmem:[%s3912_s1 + $0x420] ss:$8 sps:$4 sm:$0xff]  }
  0x68   :  { %1917 = vmatpush2.bf16.msra.mxu1 %v2737_v61  ;;  %1865 = vmatprep.subr.bf16.mxu0 %v2742_v62  ;;  %v2809_v61 = vld [vmem:[%s3912_s1 + $0x520] ss:$8 sps:$4 sm:$0xff]   ;;  %v2814_v62 = vld [vmem:[%s3912_s1 + $0x414] ss:$8 sps:$4 sm:$0xff]  }
  0x69   :  { %1918 = vmatprep.subr.bf16.mxu1 %v2745_v63  ;;  %v2817_v63 = vld [vmem:[%s3912_s1 + $0x514] ss:$8 sps:$4 sm:$0xff]  }
  0x6b   :  { %1866 = vmatpush2.bf16.msra.mxu0 %v2740_v0  ;;  %v2812_v0 = vld [vmem:[%s3912_s1 + $0x410] ss:$8 sps:$4 sm:$0xff]  }
  0x6c   :  { %1919 = vmatpush2.bf16.msra.mxu1 %v2743_v1  ;;  %1867 = vmatprep.subr.bf16.mxu0 %v2748_v2  ;;  %v2815_v1 = vld [vmem:[%s3912_s1 + $0x510] ss:$8 sps:$4 sm:$0xff]   ;;  %v2820_v2 = vld [vmem:[%s3912_s1 + $0x404] ss:$8 sps:$4 sm:$0xff]  }
  0x6d   :  { %1920 = vmatprep.subr.bf16.mxu1 %v2751_v3  ;;  %v2823_v3 = vld [vmem:[%s3912_s1 + $0x504] ss:$8 sps:$4 sm:$0xff]  }
  0x6f   :  { %1868 = vmatpush2.bf16.msra.mxu0 %v2746_v4  ;;  %v2818_v4 = vld [vmem:[%s3912_s1 + $0x400] ss:$8 sps:$4 sm:$0xff]  }
  0x70   :  { %1921 = vmatpush2.bf16.msra.mxu1 %v2749_v5  ;;  %1869 = vmatprep.subr.bf16.mxu0 %v2754_v6  ;;  %v2821_v5 = vld [vmem:[%s3912_s1 + $0x500] ss:$8 sps:$4 sm:$0xff]   ;;  %v2826_v6 = vld [vmem:[%s3912_s1 + $0x4f4] ss:$8 sps:$4 sm:$0xff]  }
  0x71   :  { %1922 = vmatprep.subr.bf16.mxu1 %v2757_v7  ;;  %v2829_v7 = vld [vmem:[%s3912_s1 + $0x5f4] ss:$8 sps:$4 sm:$0xff]  }
  0x73   :  { %1870 = vmatpush2.bf16.msra.mxu0 %v2752_v8  ;;  %v2824_v8 = vld [vmem:[%s3912_s1 + $0x4f0] ss:$8 sps:$4 sm:$0xff]  }
  0x74   :  { %1923 = vmatpush2.bf16.msra.mxu1 %v2755_v9  ;;  %1871 = vmatprep.subr.bf16.mxu0 %v2760_v10  ;;  %v2827_v9 = vld [vmem:[%s3912_s1 + $0x5f0] ss:$8 sps:$4 sm:$0xff]   ;;  %v2832_v10 = vld [vmem:[%s3912_s1 + $0x4e4] ss:$8 sps:$4 sm:$0xff]  }
  0x75   :  { %1924 = vmatprep.subr.bf16.mxu1 %v2763_v11  ;;  %v2835_v11 = vld [vmem:[%s3912_s1 + $0x5e4] ss:$8 sps:$4 sm:$0xff]  }
  0x77   :  { %1872 = vmatpush2.bf16.msra.mxu0 %v2758_v12  ;;  %v2830_v12 = vld [vmem:[%s3912_s1 + $0x4e0] ss:$8 sps:$4 sm:$0xff]  }
  0x78   :  { %1925 = vmatpush2.bf16.msra.mxu1 %v2761_v13  ;;  %1873 = vmatprep.subr.bf16.mxu0 %v2766_v14  ;;  %v2833_v13 = vld [vmem:[%s3912_s1 + $0x5e0] ss:$8 sps:$4 sm:$0xff]   ;;  %v2838_v14 = vld [vmem:[%s3912_s1 + $0x4d4] ss:$8 sps:$4 sm:$0xff]  }
  0x79   :  { %1926 = vmatprep.subr.bf16.mxu1 %v2769_v15  ;;  %v2841_v15 = vld [vmem:[%s3912_s1 + $0x5d4] ss:$8 sps:$4 sm:$0xff]  }
  0x7b   :  { %1874 = vmatpush2.bf16.msra.mxu0 %v2764_v16  ;;  %v2836_v16 = vld [vmem:[%s3912_s1 + $0x4d0] ss:$8 sps:$4 sm:$0xff]  }
  0x7c   :  { %1927 = vmatpush2.bf16.msra.mxu1 %v2767_v17  ;;  %1875 = vmatprep.subr.bf16.mxu0 %v2772_v18  ;;  %v2839_v17 = vld [vmem:[%s3912_s1 + $0x5d0] ss:$8 sps:$4 sm:$0xff]   ;;  %v2844_v18 = vld [vmem:[%s3912_s1 + $0x4c4] ss:$8 sps:$4 sm:$0xff]  }
  0x7d   :  { %1928 = vmatprep.subr.bf16.mxu1 %v2775_v19  ;;  %v2847_v19 = vld [vmem:[%s3912_s1 + $0x5c4] ss:$8 sps:$4 sm:$0xff]  }
  0x7f   :  { %1876 = vmatpush2.bf16.msra.mxu0 %v2770_v20  ;;  %v2842_v20 = vld [vmem:[%s3912_s1 + $0x4c0] ss:$8 sps:$4 sm:$0xff]  }
  0x80   :  { %1929 = vmatpush2.bf16.msra.mxu1 %v2773_v21  ;;  %1951 = vmatprep.subr.bf16.mxu0 %v2778_v22  ;;  %v2845_v21 = vld [vmem:[%s3912_s1 + $0x5c0] ss:$8 sps:$4 sm:$0xff]   ;;  %v2850_v22 = vld [vmem:[%s3912_s1 + $0x4b4] ss:$8 sps:$4 sm:$0xff]  }
  0x81   :  { %2004 = vmatprep.subr.bf16.mxu1 %v2781_v23  ;;  %v2853_v23 = vld [vmem:[%s3912_s1 + $0x5b4] ss:$8 sps:$4 sm:$0xff]  }
  0x82   :  { %1878 = vmatmul.mubr.bf16.vlgmr.msra.gmra.mxu0 %v2292_v28  ;;  %v2854_v28 = vld [vmem:[%s3912_s1 + $0x4a0] ss:$8 sps:$4 sm:$0xff]  }
  0x83   :  { %1931 = vmatmul.mubr.bf16.vlgmr.msra.gmra.mxu1 %v2294_v29  ;;  %1952 = vmatpush1.bf16.msra.mxu0 %v2776_v24  ;;  %v2848_v24 = vld [vmem:[%s3912_s1 + $0x4b0] ss:$8 sps:$4 sm:$0xff]   ;;  %v2857_v29 = vld [vmem:[%s3912_s1 + $0x5a0] ss:$8 sps:$4 sm:$0xff]  }
  0x84   :  { %2005 = vmatpush1.bf16.msra.mxu1 %v2779_v25  ;;  %1953 = vmatprep.subr.bf16.mxu0 %v2784_v32  ;;  %v2851_v25 = vld [vmem:[%s3912_s1 + $0x5b0] ss:$8 sps:$4 sm:$0xff]  }
  0x85   :  { %2006 = vmatprep.subr.bf16.mxu1 %v2787_v33  ;;  %1887 = vmatprep.mubr.bf16.mxu0 %v2309_v34  ;;  %v2860_v32 = vld [vmem:[%s3912_s1 + $0x490] ss:$8 sps:$4 sm:$0xff]   ;;  %v2868_v34 = vld [vmem:[%s3912_s1 + $0x484] ss:$8 sps:$4 sm:$0xff]  }
  0x86   :  { %1940 = vmatprep.mubr.bf16.mxu1 %v2311_v35  ;;  %v2863_v33 = vld [vmem:[%s3912_s1 + $0x590] ss:$8 sps:$4 sm:$0xff]   ;;  %v2871_v35 = vld [vmem:[%s3912_s1 + $0x584] ss:$8 sps:$4 sm:$0xff]  }
  0x87   :  { %1954 = vmatpush1.bf16.msra.mxu0 %v2782_v36  ;;  %v2866_v36 = vld [vmem:[%s3912_s1 + $0x480] ss:$8 sps:$4 sm:$0xff]  }
  0x88   :  { %2007 = vmatpush1.bf16.msra.mxu1 %v2785_v37  ;;  %1955 = vmatprep.subr.bf16.mxu0 %v2790_v38  ;;  %v2869_v37 = vld [vmem:[%s3912_s1 + $0x580] ss:$8 sps:$4 sm:$0xff]   ;;  %v2874_v38 = vld [vmem:[%s3912_s1 + $0x674] ss:$8 sps:$4 sm:$0xff]  }
  0x89   :  { %2008 = vmatprep.subr.bf16.mxu1 %v2793_v39  ;;  %v2877_v39 = vld [vmem:[%s3912_s1 + $0x774] ss:$8 sps:$4 sm:$0xff]  }
  0x8a   :  { %1888 = vmatmul.mubr.bf16.gmra.mxu0 %v2308_v44  ;;  %v2298_v44 = vcombine.low %v3484_v46, %v3489_v47  ;;  %v2880_v46 = vld [vmem:[%s3912_s1 + $0x664] ss:$8 sps:$4 sm:$0xff]  }
  0x8b   :  { %1941 = vmatmul.mubr.bf16.gmra.mxu1 %v2310_v45  ;;  %1956 = vmatpush1.bf16.msra.mxu0 %v2788_v40  ;;  %v31_v40 = vld [vmem:[%s3913_s0 + $0xa0] sm:$0xff] }
  0x8c   :  { %2009 = vmatpush1.bf16.msra.mxu1 %v2791_v41  ;;  %1957 = vmatprep.subr.bf16.mxu0 %v2796_v48  ;;  %v2296_v41 = vcombine.low %v3474_v42, %v3479_v43  ;;  %v39_v45 = vld [vmem:[%s3913_s0 + $0xe0] sm:$0xff]  ;;  %v32_v48 = vld [vmem:[%s3913_s0 + $0xa8] sm:$0xff]  ;;  %v2872_v42 = vld [vmem:[%s3912_s1 + $0x670] ss:$8 sps:$4 sm:$0xff]  }
  0x8d   :  { %2010 = vmatprep.subr.bf16.mxu1 %v2799_v49  ;;  %1983 = vmatprep.mubr.bf16.mxu0 %v2297_v50  ;;  %v40_v49 = vld [vmem:[%s3913_s0 + $0xe8] sm:$0xff]  ;;  %v2875_v43 = vld [vmem:[%s3912_s1 + $0x770] ss:$8 sps:$4 sm:$0xff]   ;;  %v2313_v50 = vcombine.high %v31_v40, %v39_v45 }
  0x8e   :  { %2036 = vmatprep.mubr.bf16.mxu1 %v2299_v51  ;;  %v2883_v47 = vld [vmem:[%s3912_s1 + $0x764] ss:$8 sps:$4 sm:$0xff]   ;;  %v2315_v51 = vcombine.high %v32_v48, %v40_v49 }
  0x8f   :  { %1958 = vmatpush1.bf16.msra.mxu0 %v2794_v52  ;;  %v2878_v52 = vld [vmem:[%s3912_s1 + $0x660] ss:$8 sps:$4 sm:$0xff]  }
  0x90   :  { %2011 = vmatpush1.bf16.msra.mxu1 %v2797_v53  ;;  %1959 = vmatprep.subr.bf16.mxu0 %v2802_v54  ;;  %v2881_v53 = vld [vmem:[%s3912_s1 + $0x760] ss:$8 sps:$4 sm:$0xff]   ;;  %v2886_v54 = vld [vmem:[%s3912_s1 + $0x654] ss:$8 sps:$4 sm:$0xff]  }
  0x91   :  { %2012 = vmatprep.subr.bf16.mxu1 %v2805_v55  ;;  %v2889_v55 = vld [vmem:[%s3912_s1 + $0x754] ss:$8 sps:$4 sm:$0xff]  }
  0x93   :  { %1960 = vmatpush1.bf16.msra.mxu0 %v2800_v56  ;;  %v3700_v56 = vld [vmem:[%s3913_s0 + $0x30] sm:$0xff] }
  0x94   :  { %2013 = vmatpush1.bf16.msra.mxu1 %v2803_v57  ;;  %1961 = vmatprep.subr.bf16.mxu0 %v2808_v58  ;;  %v2312_v57 = vcombine.low %v31_v40, %v39_v45  ;;  %v2314_v58 = vcombine.low %v32_v48, %v40_v49  ;;  %v2944_v40 = vld [vmem:[%s3912_s1 + $0x6b0] ss:$8 sps:$4 sm:$0xff]   ;;  %v2955_v45 = vld [vmem:[%s3912_s1 + $0x7a4] ss:$8 sps:$4 sm:$0xff]   ;;  %v2950_v48 = vld [vmem:[%s3912_s1 + $0x6a0] ss:$8 sps:$4 sm:$0xff]  }
  0x95   :  { %2014 = vmatprep.subr.bf16.mxu1 %v2811_v59  ;;  %v3705_v59 = vld [vmem:[%s3913_s0 + $0x70] sm:$0xff]  ;;  %v2953_v49 = vld [vmem:[%s3912_s1 + $0x7a0] ss:$8 sps:$4 sm:$0xff]  }
  0x97   :  { %1962 = vmatpush1.bf16.msra.mxu0 %v2806_v60  ;;  %v3710_v60 = vld [vmem:[%s3913_s0 + $0x38] sm:$0xff] }
  0x98   :  { %2015 = vmatpush1.bf16.msra.mxu1 %v2809_v61  ;;  %1963 = vmatprep.subr.bf16.mxu0 %v2814_v62  ;;  %v3715_v61 = vld [vmem:[%s3913_s0 + $0x78] sm:$0xff] }
  0x99   :  { %2016 = vmatprep.subr.bf16.mxu1 %v2817_v63  ;;  %v2884_v62 = vld [vmem:[%s3912_s1 + $0x650] ss:$8 sps:$4 sm:$0xff]  }
  0x9a   :  { %v2887_v63 = vld [vmem:[%s3912_s1 + $0x750] ss:$8 sps:$4 sm:$0xff]  }
  0x9b   :  { %1964 = vmatpush1.bf16.msra.mxu0 %v2812_v0  ;;  %v2892_v0 = vld [vmem:[%s3912_s1 + $0x644] ss:$8 sps:$4 sm:$0xff]  }
  0x9c   :  { %2017 = vmatpush1.bf16.msra.mxu1 %v2815_v1  ;;  %1965 = vmatprep.subr.bf16.mxu0 %v2820_v2  ;;  %v2895_v1 = vld [vmem:[%s3912_s1 + $0x744] ss:$8 sps:$4 sm:$0xff]   ;;  %v2301_v2 = vcombine.high %v3700_v56, %v3705_v59 }
  0x9d   :  { %2018 = vmatprep.subr.bf16.mxu1 %v2823_v3  ;;  %v2303_v3 = vcombine.high %v3710_v60, %v3715_v61 }
  0x9f   :  { %1966 = vmatpush1.bf16.msra.mxu0 %v2818_v4  ;;  %v2890_v4 = vld [vmem:[%s3912_s1 + $0x640] ss:$8 sps:$4 sm:$0xff]  }
  0xa0   :  { %2019 = vmatpush1.bf16.msra.mxu1 %v2821_v5  ;;  %1967 = vmatprep.subr.bf16.mxu0 %v2826_v6  ;;  %v2893_v5 = vld [vmem:[%s3912_s1 + $0x740] ss:$8 sps:$4 sm:$0xff]   ;;  %v2898_v6 = vld [vmem:[%s3912_s1 + $0x634] ss:$8 sps:$4 sm:$0xff]  }
  0xa1   :  { %2020 = vmatprep.subr.bf16.mxu1 %v2829_v7  ;;  %v2901_v7 = vld [vmem:[%s3912_s1 + $0x734] ss:$8 sps:$4 sm:$0xff]  }
  0xa3   :  { %1968 = vmatpush2.bf16.msra.mxu0 %v2824_v8  ;;  %v2896_v8 = vld [vmem:[%s3912_s1 + $0x630] ss:$8 sps:$4 sm:$0xff]  }
  0xa4   :  { %2021 = vmatpush2.bf16.msra.mxu1 %v2827_v9  ;;  %1969 = vmatprep.subr.bf16.mxu0 %v2832_v10  ;;  %v2899_v9 = vld [vmem:[%s3912_s1 + $0x730] ss:$8 sps:$4 sm:$0xff]   ;;  %v2904_v10 = vld [vmem:[%s3912_s1 + $0x624] ss:$8 sps:$4 sm:$0xff]  }
  0xa5   :  { %2022 = vmatprep.subr.bf16.mxu1 %v2835_v11  ;;  %v2907_v11 = vld [vmem:[%s3912_s1 + $0x724] ss:$8 sps:$4 sm:$0xff]  }
  0xa7   :  { %1970 = vmatpush2.bf16.msra.mxu0 %v2830_v12  ;;  %v2902_v12 = vld [vmem:[%s3912_s1 + $0x620] ss:$8 sps:$4 sm:$0xff]  }
  0xa8   :  { %2023 = vmatpush2.bf16.msra.mxu1 %v2833_v13  ;;  %1971 = vmatprep.subr.bf16.mxu0 %v2838_v14  ;;  %v2905_v13 = vld [vmem:[%s3912_s1 + $0x720] ss:$8 sps:$4 sm:$0xff]   ;;  %v2910_v14 = vld [vmem:[%s3912_s1 + $0x614] ss:$8 sps:$4 sm:$0xff]  }
  0xa9   :  { %2024 = vmatprep.subr.bf16.mxu1 %v2841_v15  ;;  %v2913_v15 = vld [vmem:[%s3912_s1 + $0x714] ss:$8 sps:$4 sm:$0xff]  }
  0xab   :  { %1972 = vmatpush2.bf16.msra.mxu0 %v2836_v16  ;;  %v2908_v16 = vld [vmem:[%s3912_s1 + $0x610] ss:$8 sps:$4 sm:$0xff]  }
  0xac   :  { %2025 = vmatpush2.bf16.msra.mxu1 %v2839_v17  ;;  %1973 = vmatprep.subr.bf16.mxu0 %v2844_v18  ;;  %v2911_v17 = vld [vmem:[%s3912_s1 + $0x710] ss:$8 sps:$4 sm:$0xff]   ;;  %v2916_v18 = vld [vmem:[%s3912_s1 + $0x604] ss:$8 sps:$4 sm:$0xff]  }
  0xad   :  { %2026 = vmatprep.subr.bf16.mxu1 %v2847_v19  ;;  %v2919_v19 = vld [vmem:[%s3912_s1 + $0x704] ss:$8 sps:$4 sm:$0xff]  }
  0xaf   :  { %1974 = vmatpush2.bf16.msra.mxu0 %v2842_v20  ;;  %v2914_v20 = vld [vmem:[%s3912_s1 + $0x600] ss:$8 sps:$4 sm:$0xff]  }
  0xb0   :  { %2027 = vmatpush2.bf16.msra.mxu1 %v2845_v21  ;;  %1975 = vmatprep.subr.bf16.mxu0 %v2850_v22  ;;  %v2917_v21 = vld [vmem:[%s3912_s1 + $0x700] ss:$8 sps:$4 sm:$0xff]   ;;  %v2922_v22 = vld [vmem:[%s3912_s1 + $0x6f4] ss:$8 sps:$4 sm:$0xff]  }
  0xb1   :  { %2028 = vmatprep.subr.bf16.mxu1 %v2853_v23  ;;  %v2925_v23 = vld [vmem:[%s3912_s1 + $0x7f4] ss:$8 sps:$4 sm:$0xff]  }
  0xb3   :  { %1976 = vmatpush2.bf16.msra.mxu0 %v2848_v24  ;;  %v2920_v24 = vld [vmem:[%s3912_s1 + $0x6f0] ss:$8 sps:$4 sm:$0xff]  }
  0xb4   :  { %2029 = vmatpush2.bf16.msra.mxu1 %v2851_v25  ;;  %1977 = vmatprep.subr.bf16.mxu0 %v2856_v26  ;;  %v2923_v25 = vld [vmem:[%s3912_s1 + $0x7f0] ss:$8 sps:$4 sm:$0xff]   ;;  %v2928_v26 = vld [vmem:[%s3912_s1 + $0x6e4] ss:$8 sps:$4 sm:$0xff]  }
  0xb5   :  { %2030 = vmatprep.subr.bf16.mxu1 %v2859_v27  ;;  %v2931_v27 = vld [vmem:[%s3912_s1 + $0x7e4] ss:$8 sps:$4 sm:$0xff]  }
  0xb7   :  { %1978 = vmatpush2.bf16.msra.mxu0 %v2854_v28  ;;  %v2926_v28 = vld [vmem:[%s3912_s1 + $0x6e0] ss:$8 sps:$4 sm:$0xff]  }
  0xb8   :  { %2031 = vmatpush2.bf16.msra.mxu1 %v2857_v29  ;;  %1979 = vmatprep.subr.bf16.mxu0 %v2862_v30  ;;  %v2929_v29 = vld [vmem:[%s3912_s1 + $0x7e0] ss:$8 sps:$4 sm:$0xff]   ;;  %v2934_v30 = vld [vmem:[%s3912_s1 + $0x6d4] ss:$8 sps:$4 sm:$0xff]  }
  0xb9   :  { %2032 = vmatprep.subr.bf16.mxu1 %v2865_v31  ;;  %v2937_v31 = vld [vmem:[%s3912_s1 + $0x7d4] ss:$8 sps:$4 sm:$0xff]  }
  0xbb   :  { %1980 = vmatpush2.bf16.msra.mxu0 %v2860_v32  ;;  %v2932_v32 = vld [vmem:[%s3912_s1 + $0x6d0] ss:$8 sps:$4 sm:$0xff]  }
  0xbc   :  { %2033 = vmatpush2.bf16.msra.mxu1 %v2863_v33  ;;  %1981 = vmatprep.subr.bf16.mxu0 %v2868_v34  ;;  %v2935_v33 = vld [vmem:[%s3912_s1 + $0x7d0] ss:$8 sps:$4 sm:$0xff]   ;;  %v2940_v34 = vld [vmem:[%s3912_s1 + $0x6c4] ss:$8 sps:$4 sm:$0xff]  }
  0xbd   :  { %2034 = vmatprep.subr.bf16.mxu1 %v2871_v35  ;;  %v2943_v35 = vld [vmem:[%s3912_s1 + $0x7c4] ss:$8 sps:$4 sm:$0xff]  }
  0xbf   :  { %1982 = vmatpush2.bf16.msra.mxu0 %v2866_v36  ;;  %v2938_v36 = vld [vmem:[%s3912_s1 + $0x6c0] ss:$8 sps:$4 sm:$0xff]  }
  0xc0   :  { %2035 = vmatpush2.bf16.msra.mxu1 %v2869_v37  ;;  %2057 = vmatprep.subr.bf16.mxu0 %v2874_v38  ;;  %v2941_v37 = vld [vmem:[%s3912_s1 + $0x7c0] ss:$8 sps:$4 sm:$0xff]   ;;  %v2946_v38 = vld [vmem:[%s3912_s1 + $0x6b4] ss:$8 sps:$4 sm:$0xff]  }
  0xc1   :  { %2110 = vmatprep.subr.bf16.mxu1 %v2877_v39  ;;  %v2949_v39 = vld [vmem:[%s3912_s1 + $0x7b4] ss:$8 sps:$4 sm:$0xff]  }
  0xc2   :  { %1984 = vmatmul.mubr.bf16.vlgmr.msra.gmra.mxu0 %v2296_v41  ;;  %v2947_v41 = vld [vmem:[%s3912_s1 + $0x7b0] ss:$8 sps:$4 sm:$0xff]  }
  0xc3   :  { %2037 = vmatmul.mubr.bf16.vlgmr.msra.gmra.mxu1 %v2298_v44  ;;  %2058 = vmatpush1.bf16.msra.mxu0 %v2872_v42  ;;  %v2952_v44 = vld [vmem:[%s3912_s1 + $0x6a4] ss:$8 sps:$4 sm:$0xff]   ;;  %v2958_v42 = vld [vmem:[%s3912_s1 + $0x694] ss:$8 sps:$4 sm:$0xff]  }
  0xc4   :  { %2111 = vmatpush1.bf16.msra.mxu1 %v2875_v43  ;;  %2059 = vmatprep.subr.bf16.mxu0 %v2880_v46  ;;  %v2961_v43 = vld [vmem:[%s3912_s1 + $0x794] ss:$8 sps:$4 sm:$0xff]   ;;  %v2956_v46 = vld [vmem:[%s3912_s1 + $0x690] ss:$8 sps:$4 sm:$0xff]  }
  0xc5   :  { %2112 = vmatprep.subr.bf16.mxu1 %v2883_v47  ;;  %1993 = vmatprep.mubr.bf16.mxu0 %v2313_v50  ;;  %v2959_v47 = vld [vmem:[%s3912_s1 + $0x790] ss:$8 sps:$4 sm:$0xff]   ;;  %v2964_v50 = vld [vmem:[%s3912_s1 + $0x684] ss:$8 sps:$4 sm:$0xff]  }
  0xc6   :  { %2046 = vmatprep.mubr.bf16.mxu1 %v2315_v51  ;;  %v2967_v51 = vld [vmem:[%s3912_s1 + $0x784] ss:$8 sps:$4 sm:$0xff]  }
  0xc7   :  { %2060 = vmatpush1.bf16.msra.mxu0 %v2878_v52  ;;  %v2962_v52 = vld [vmem:[%s3912_s1 + $0x680] ss:$8 sps:$4 sm:$0xff]  }
  0xc8   :  { %2113 = vmatpush1.bf16.msra.mxu1 %v2881_v53  ;;  %2061 = vmatprep.subr.bf16.mxu0 %v2886_v54  ;;  %v2965_v53 = vld [vmem:[%s3912_s1 + $0x780] ss:$8 sps:$4 sm:$0xff]   ;;  %v33_v54 = vld [vmem:[%s3913_s0 + $0xb0] sm:$0xff] }
  0xc9   :  { %2114 = vmatprep.subr.bf16.mxu1 %v2889_v55  ;;  %v41_v55 = vld [vmem:[%s3913_s0 + $0xf0] sm:$0xff] }
  0xca   :  { %1994 = vmatmul.mubr.bf16.gmra.mxu0 %v2312_v57  ;;  %v34_v57 = vld [vmem:[%s3913_s0 + $0xb8] sm:$0xff] }
  0xcb   :  { %2047 = vmatmul.mubr.bf16.gmra.mxu1 %v2314_v58  ;;  %2062 = vmatpush1.bf16.msra.mxu0 %v2884_v62  ;;  %v42_v58 = vld [vmem:[%s3913_s0 + $0xf8] sm:$0xff]  ;;  %v2300_v62 = vcombine.low %v3700_v56, %v3705_v59 }
  0xcc   :  { %2115 = vmatpush1.bf16.msra.mxu1 %v2887_v63  ;;  %2063 = vmatprep.subr.bf16.mxu0 %v2892_v0  ;;  %v2302_v63 = vcombine.low %v3710_v60, %v3715_v61  ;;  %v2317_v0 = vcombine.high %v33_v54, %v41_v55 }
  0xcd   :  { %2116 = vmatprep.subr.bf16.mxu1 %v2895_v1  ;;  %2089 = vmatprep.mubr.bf16.mxu0 %v2301_v2  ;;  %v2319_v1 = vcombine.high %v34_v57, %v42_v58  ;;  %v2316_v2 = vcombine.low %v33_v54, %v41_v55 }
  0xce   :  { %2142 = vmatprep.mubr.bf16.mxu1 %v2303_v3  ;;  %v2318_v3 = vcombine.low %v34_v57, %v42_v58 }
  0xcf   :  { %2064 = vmatpush1.bf16.msra.mxu0 %v2890_v4 }
  0xd0   :  { %2117 = vmatpush1.bf16.msra.mxu1 %v2893_v5  ;;  %2065 = vmatprep.subr.bf16.mxu0 %v2898_v6 }
  0xd1   :  { %2118 = vmatprep.subr.bf16.mxu1 %v2901_v7 }
  0xd3   :  { %2066 = vmatpush1.bf16.msra.mxu0 %v2896_v8 }
  0xd4   :  { %2119 = vmatpush1.bf16.msra.mxu1 %v2899_v9  ;;  %2067 = vmatprep.subr.bf16.mxu0 %v2904_v10 }
  0xd5   :  { %2120 = vmatprep.subr.bf16.mxu1 %v2907_v11 }
  0xd7   :  { %2068 = vmatpush1.bf16.msra.mxu0 %v2902_v12 }
  0xd8   :  { %2121 = vmatpush1.bf16.msra.mxu1 %v2905_v13  ;;  %2069 = vmatprep.subr.bf16.mxu0 %v2910_v14 }
  0xd9   :  { %2122 = vmatprep.subr.bf16.mxu1 %v2913_v15 }
  0xdb   :  { %2070 = vmatpush1.bf16.msra.mxu0 %v2908_v16 }
  0xdc   :  { %2123 = vmatpush1.bf16.msra.mxu1 %v2911_v17  ;;  %2071 = vmatprep.subr.bf16.mxu0 %v2916_v18 }
  0xdd   :  { %2124 = vmatprep.subr.bf16.mxu1 %v2919_v19 }
  0xdf   :  { %2072 = vmatpush1.bf16.msra.mxu0 %v2914_v20 }
  0xe0   :  { %2125 = vmatpush1.bf16.msra.mxu1 %v2917_v21  ;;  %2073 = vmatprep.subr.bf16.mxu0 %v2922_v22 }
  0xe1   :  { %2126 = vmatprep.subr.bf16.mxu1 %v2925_v23 }
  0xe3   :  { %2074 = vmatpush2.bf16.msra.mxu0 %v2920_v24 }
  0xe4   :  { %2127 = vmatpush2.bf16.msra.mxu1 %v2923_v25  ;;  %2075 = vmatprep.subr.bf16.mxu0 %v2928_v26 }
  0xe5   :  { %2128 = vmatprep.subr.bf16.mxu1 %v2931_v27 }
  0xe7   :  { %2076 = vmatpush2.bf16.msra.mxu0 %v2926_v28 }
  0xe8   :  { %2129 = vmatpush2.bf16.msra.mxu1 %v2929_v29  ;;  %2077 = vmatprep.subr.bf16.mxu0 %v2934_v30 }
  0xe9   :  { %2130 = vmatprep.subr.bf16.mxu1 %v2937_v31 }
  0xeb   :  { %2078 = vmatpush2.bf16.msra.mxu0 %v2932_v32 }
  0xec   :  { %2131 = vmatpush2.bf16.msra.mxu1 %v2935_v33  ;;  %2079 = vmatprep.subr.bf16.mxu0 %v2940_v34 }
  0xed   :  { %2132 = vmatprep.subr.bf16.mxu1 %v2943_v35 }
  0xef   :  { %2080 = vmatpush2.bf16.msra.mxu0 %v2938_v36 }
  0xf0   :  { %2133 = vmatpush2.bf16.msra.mxu1 %v2941_v37  ;;  %2081 = vmatprep.subr.bf16.mxu0 %v2946_v38 }
  0xf1   :  { %2134 = vmatprep.subr.bf16.mxu1 %v2949_v39 }
  0xf3   :  { %2082 = vmatpush2.bf16.msra.mxu0 %v2944_v40 }
  0xf4   :  { %2135 = vmatpush2.bf16.msra.mxu1 %v2947_v41  ;;  %2083 = vmatprep.subr.bf16.mxu0 %v2952_v44 }
  0xf5   :  { %2136 = vmatprep.subr.bf16.mxu1 %v2955_v45 }
  0xf7   :  { %2084 = vmatpush2.bf16.msra.mxu0 %v2950_v48 }
  0xf8   :  { %2137 = vmatpush2.bf16.msra.mxu1 %v2953_v49  ;;  %2085 = vmatprep.subr.bf16.mxu0 %v2958_v42 }
  0xf9   :  { %2138 = vmatprep.subr.bf16.mxu1 %v2961_v43 }
  0xfb   :  { %2086 = vmatpush2.bf16.msra.mxu0 %v2956_v46 }
  0xfc   :  { %2139 = vmatpush2.bf16.msra.mxu1 %v2959_v47  ;;  %2087 = vmatprep.subr.bf16.mxu0 %v2964_v50 }
  0xfd   :  { %2140 = vmatprep.subr.bf16.mxu1 %v2967_v51 }
  0xff   :  { %2088 = vmatpush2.bf16.msra.mxu0 %v2962_v52 }
 0x100   :  { %2141 = vmatpush2.bf16.msra.mxu1 %v2965_v53 }
 0x102   :  { %2090 = vmatmul.mubr.bf16.vlgmr.msra.gmra.mxu0 %v2300_v62  ;;  %v1773_v4 = vpop.f32.mrf.mxu0 }
 0x103   :  { %2143 = vmatmul.mubr.bf16.vlgmr.msra.gmra.mxu1 %v2302_v63  ;;  %2099 = vmatprep.mubr.bf16.mxu0 %v2317_v0  ;;  %v1826_v5 = vpop.f32.mrf.mxu1 }
 0x104   :  { %2152 = vmatprep.mubr.bf16.mxu1 %v2319_v1  ;;  %v1775_v6 = vpop.f32.mrf.mxu0  ;;  %v1827_v49 = vadd.f32 %v1826_v5, %v1773_v4 }
 0x105   :  { %v1828_v7 = vpop.f32.mrf.mxu1 }
 0x106   :  { %v1777_v56 = vpop.f32.mrf.mxu0  ;;  %v1829_v50 = vadd.f32 %v1828_v7, %v1775_v6 }
 0x107   :  { %v1830_v59 = vpop.f32.mrf.mxu1 }
 0x108   :  { %v1779_v8 = vpop.f32.mrf.mxu0  ;;  %v1831_v48 = vadd.f32 %v1830_v59, %v1777_v56 }
 0x109   :  { %v1832_v61 = vpop.f32.mrf.mxu1 }
 0x10a   :  { %2100 = vmatmul.mubr.bf16.gmra.mxu0 %v2316_v2  ;;  %v1783_v60 = vpop.f32.mrf.mxu0  ;;  %v1833_v42 = vadd.f32 %v1832_v61, %v1779_v8 }
 0x10b   :  { %2153 = vmatmul.mubr.bf16.gmra.mxu1 %v2318_v3  ;;  %v1836_v9 = vpop.f32.mrf.mxu1 }
 0x10c   :  { %v1785_v10 = vpop.f32.mrf.mxu0  ;;  %v1837_v51 = vadd.f32 %v1836_v9, %v1783_v60 }
 0x10d   :  { %v1838_v11 = vpop.f32.mrf.mxu1 }
 0x10e   :  { %v1787_v12 = vpop.f32.mrf.mxu0  ;;  %v1839_v54 = vadd.f32 %v1838_v11, %v1785_v10 }
 0x10f   :  { %v1840_v13 = vpop.f32.mrf.mxu1 }
 0x110   :  { %v1789_v14 = vpop.f32.mrf.mxu0  ;;  %v1841_v62 = vadd.f32 %v1840_v13, %v1787_v12 }
 0x111   :  { %v1842_v16 = vpop.f32.mrf.mxu1 }
 0x112   :  { %v1843_v4 = vadd.f32 %v1842_v16, %v1789_v14 }
 0x142   :  { %v1879_v15 = vpop.f32.mrf.mxu0 }
 0x143   :  { %v1932_v17 = vpop.f32.mrf.mxu1  ;;  %v1880_v52 = vadd.f32 %v1879_v15, %v1827_v49 }
 0x144   :  { %v1881_v18 = vpop.f32.mrf.mxu0 }
 0x145   :  { %v1934_v19 = vpop.f32.mrf.mxu1  ;;  %v1882_v55 = vadd.f32 %v1881_v18, %v1829_v50  ;;  %v1933_v1 = vadd.f32 %v1932_v17, %v1880_v52 }
 0x146   :  { %v1883_v20 = vpop.f32.mrf.mxu0 }
 0x147   :  { %v1936_v21 = vpop.f32.mrf.mxu1  ;;  %v1884_v43 = vadd.f32 %v1883_v20, %v1831_v48  ;;  %v1935_v61 = vadd.f32 %v1934_v19, %v1882_v55 }
 0x148   :  { %v1885_v22 = vpop.f32.mrf.mxu0 }
 0x149   :  { %v1938_v23 = vpop.f32.mrf.mxu1  ;;  %v1886_v53 = vadd.f32 %v1885_v22, %v1833_v42  ;;  %v1937_v57 = vadd.f32 %v1936_v21, %v1884_v43 }
 0x14a   :  { %v1889_v24 = vpop.f32.mrf.mxu0 }
 0x14b   :  { %v1942_v25 = vpop.f32.mrf.mxu1  ;;  %v1890_v58 = vadd.f32 %v1889_v24, %v1837_v51  ;;  %v1939_v2 = vadd.f32 %v1938_v23, %v1886_v53 }
 0x14c   :  { %v1891_v26 = vpop.f32.mrf.mxu0 }
 0x14d   :  { %v1944_v27 = vpop.f32.mrf.mxu1  ;;  %v1892_v3 = vadd.f32 %v1891_v26, %v1839_v54  ;;  %v1943_v6 = vadd.f32 %v1942_v25, %v1890_v58 }
 0x14e   :  { %v1893_v28 = vpop.f32.mrf.mxu0 }
 0x14f   :  { %v1946_v29 = vpop.f32.mrf.mxu1  ;;  %v1894_v5 = vadd.f32 %v1893_v28, %v1841_v62  ;;  %v1945_v15 = vadd.f32 %v1944_v27, %v1892_v3 }
 0x150   :  { %v1895_v30 = vpop.f32.mrf.mxu0 }
 0x151   :  { %v1948_v31 = vpop.f32.mrf.mxu1  ;;  %v1896_v9 = vadd.f32 %v1895_v30, %v1843_v4  ;;  %v1947_v20 = vadd.f32 %v1946_v29, %v1894_v5 }
 0x153   :  { %v1949_v24 = vadd.f32 %v1948_v31, %v1896_v9 }
 0x182   :  { %v1985_v32 = vpop.f32.mrf.mxu0 }
 0x183   :  { %v2038_v33 = vpop.f32.mrf.mxu1  ;;  %v1986_v7 = vadd.f32 %v1985_v32, %v1933_v1 }
 0x184   :  { %v1987_v34 = vpop.f32.mrf.mxu0 }
 0x185   :  { %v2040_v35 = vpop.f32.mrf.mxu1  ;;  %v1988_v18 = vadd.f32 %v1987_v34, %v1935_v61  ;;  %v2039_v22 = vadd.f32 %v2038_v33, %v1986_v7 }
 0x186   :  { %v1989_v36 = vpop.f32.mrf.mxu0 }
 0x187   :  { %v2042_v37 = vpop.f32.mrf.mxu1  ;;  %v1990_v56 = vadd.f32 %v1989_v36, %v1937_v57  ;;  %v2041_v28 = vadd.f32 %v2040_v35, %v1988_v18 }
 0x188   :  { %v1991_v38 = vpop.f32.mrf.mxu0 }
 0x189   :  { %v2044_v39 = vpop.f32.mrf.mxu1  ;;  %v1992_v60 = vadd.f32 %v1991_v38, %v1939_v2  ;;  %v2043_v12 = vadd.f32 %v2042_v37, %v1990_v56 }
 0x18a   :  { %v1995_v40 = vpop.f32.mrf.mxu0 }
 0x18b   :  { %v2048_v41 = vpop.f32.mrf.mxu1  ;;  %v1996_v13 = vadd.f32 %v1995_v40, %v1943_v6  ;;  %v2045_v23 = vadd.f32 %v2044_v39, %v1992_v60 }
 0x18c   :  { %v1997_v44 = vpop.f32.mrf.mxu0 }
 0x18d   :  { %v2050_v45 = vpop.f32.mrf.mxu1  ;;  %v1998_v14 = vadd.f32 %v1997_v44, %v1945_v15  ;;  %v2049_v32 = vadd.f32 %v2048_v41, %v1996_v13 }
 0x18e   :  { %v1999_v46 = vpop.f32.mrf.mxu0 }
 0x18f   :  { %v2052_v47 = vpop.f32.mrf.mxu1  ;;  %v2000_v26 = vadd.f32 %v1999_v46, %v1947_v20  ;;  %v2051_v37 = vadd.f32 %v2050_v45, %v1998_v14 }
 0x190   :  { %v2001_v63 = vpop.f32.mrf.mxu0 }
 0x191   :  { %v2054_v0 = vpop.f32.mrf.mxu1  ;;  %v2002_v38 = vadd.f32 %v2001_v63, %v1949_v24  ;;  %v2053_v49 = vadd.f32 %v2052_v47, %v2000_v26 }
 0x193   :  { %v2055_v46 = vadd.f32 %v2054_v0, %v2002_v38 }
 0x1c2   :  { %v2091_v59 = vpop.f32.mrf.mxu0 }
 0x1c3   :  { %v2144_v8 = vpop.f32.mrf.mxu1  ;;  %v2092_v30 = vadd.f32 %v2091_v59, %v2039_v22 }
 0x1c4   :  { %v2093_v10 = vpop.f32.mrf.mxu0 }
 0x1c5   :  { %v2146_v11 = vpop.f32.mrf.mxu1  ;;  %v2094_v40 = vadd.f32 %v2093_v10, %v2041_v28  ;;  %v2145_v44 = vadd.f32 %v2144_v8, %v2092_v30 }
 0x1c6   :  { %v2095_v17 = vpop.f32.mrf.mxu0 }
 0x1c7   :  { %v2148_v21 = vpop.f32.mrf.mxu1  ;;  %v2096_v16 = vadd.f32 %v2095_v17, %v2043_v12  ;;  %v2147_v41 = vadd.f32 %v2146_v11, %v2094_v40 }
 0x1c8   :  { %v2097_v19 = vpop.f32.mrf.mxu0 }
 0x1c9   :  { %v2150_v25 = vpop.f32.mrf.mxu1  ;;  %v2098_v36 = vadd.f32 %v2097_v19, %v2045_v23  ;;  %v2149_v29 = vadd.f32 %v2148_v21, %v2096_v16 }
 0x1ca   :  { %v2101_v27 = vpop.f32.mrf.mxu0 }
 0x1cb   :  { %v2154_v34 = vpop.f32.mrf.mxu1  ;;  %v2102_v48 = vadd.f32 %v2101_v27, %v2049_v32  ;;  %v2151_v42 = vadd.f32 %v2150_v25, %v2098_v36  ;;  %v2163_v51 = vadd.f32 %v2149_v29, %v2145_v44 }
 0x1cc   :  { %v2103_v33 = vpop.f32.mrf.mxu0 }
 0x1cd   :  { %v2156_v39 = vpop.f32.mrf.mxu1  ;;  %v2155_v31 = vadd.f32 %v2154_v34, %v2102_v48  ;;  %v2104_v43 = vadd.f32 %v2103_v33, %v2051_v37  ;;  %v2172_v55 = vadd.f32 %v2151_v42, %v2147_v41 }
 0x1ce   :  { %v2105_v50 = vpop.f32.mrf.mxu0 }
 0x1cf   :  { %v2158_v35 = vpop.f32.mrf.mxu1  ;;  %v2157_v52 = vadd.f32 %v2156_v39, %v2104_v43  ;;  %v2106_v53 = vadd.f32 %v2105_v50, %v2053_v49  ;;  %v2164_v45 = vadd.f32 %v2163_v51, %v2155_v31 }
 0x1d0   :  { %v2107_v54 = vpop.f32.mrf.mxu0 }
 0x1d1   :  { %v2159_v57 = vadd.f32 %v2158_v35, %v2106_v53  ;;  %v2108_v58 = vadd.f32 %v2107_v54, %v2055_v46  ;;  %v2160_v62 = vpop.f32.mrf.mxu1  ;;  %v2173_v47 = vadd.f32 %v2172_v55, %v2157_v52 }
 0x1d3   :  { %v2165_v63 = vadd.f32 %v2164_v45, %v2159_v57  ;;  %v2161_v1 = vadd.f32 %v2160_v62, %v2108_v58 }
 0x1d5   :  { %v2166_v2 = vrot.slane %v2165_v63, 4  ;;  %v2174_v3 = vadd.f32 %v2173_v47, %v2161_v1 }
 0x1d7   :  { %v2167_v56 = vadd.f32 %v2166_v2, %v2165_v63  ;;  %v2175_v4 = vrot.slane %v2174_v3, 4 }
 0x1d9   :  { %v2168_v0 = vrot.slane %v2167_v56, 2  ;;  %v2176_v5 = vadd.f32 %v2175_v4, %v2174_v3 }
 0x1db   :  { %v2169_v59 = vadd.f32 %v2168_v0, %v2167_v56  ;;  %v2177_v8 = vrot.slane %v2176_v5, 2 }
 0x1dd   :  { %v2170_v61 = vrot.slane %v2169_v59, 1  ;;  %v2178_v6 = vadd.f32 %v2177_v8, %v2176_v5 }
 0x1df   :  { %v2171_v7 = vadd.f32 %v2170_v61, %v2169_v59  ;;  %v2179_v60 = vrot.slane %v2178_v6, 1 }
 0x1e1   :  { %v2182_v9 = vmul.f32 0.03125, %v2171_v7  ;;  %v2180_v10 = vadd.f32 %v2179_v60, %v2178_v6 }
 0x1e3   :  { %v2184_v11 = vsub.f32 %v2145_v44, %v2182_v9  ;;  %v2186_v15 = vsub.f32 %v2149_v29, %v2182_v9  ;;  %v2188_v18 = vsub.f32 %v2155_v31, %v2182_v9  ;;  %v2183_v12 = vmul.f32 0.03125, %v2180_v10 }
 0x1e4   :  { %v2190_v13 = vsub.f32 %v2159_v57, %v2182_v9 }
 0x1e5   :  { %v2192_v20 = vmul.f32 %v2184_v11, %v2184_v11  ;;  %v2194_v17 = vmul.f32 %v2186_v15, %v2186_v15  ;;  %v2185_v21 = vsub.f32 %v2147_v41, %v2183_v12  ;;  %v2187_v22 = vsub.f32 %v2151_v42, %v2183_v12 }
 0x1e6   :  { %v2189_v23 = vsub.f32 %v2157_v52, %v2183_v12  ;;  %v2196_v14 = vmul.f32 %v2188_v18, %v2188_v18  ;;  %v2191_v24 = vsub.f32 %v2161_v1, %v2183_v12  ;;  %v2198_v25 = vmul.f32 %v2190_v13, %v2190_v13 }
 0x1e7   :  { %v2200_v16 = vadd.f32 %v2194_v17, %v2192_v20  ;;  %v2193_v26 = vmul.f32 %v2185_v21, %v2185_v21  ;;  %v2195_v19 = vmul.f32 %v2187_v22, %v2187_v22 }
 0x1e8   :  { %v2197_v32 = vmul.f32 %v2189_v23, %v2189_v23  ;;  %v2199_v38 = vmul.f32 %v2191_v24, %v2191_v24 }
 0x1e9   :  { %v2201_v28 = vadd.f32 %v2200_v16, %v2196_v14  ;;  %v2209_v30 = vadd.f32 %v2195_v19, %v2193_v26 }
 0x1eb   :  { %v2202_v36 = vadd.f32 %v2201_v28, %v2198_v25  ;;  %v2210_v27 = vadd.f32 %v2209_v30, %v2197_v32 }
 0x1ed   :  { %v2203_v34 = vrot.slane %v2202_v36, 4  ;;  %v2211_v37 = vadd.f32 %v2210_v27, %v2199_v38 }
 0x1ef   :  { %v2204_v40 = vadd.f32 %v2203_v34, %v2202_v36  ;;  %v2212_v29 = vrot.slane %v2211_v37, 4 }
 0x1f1   :  { %v2205_v48 = vrot.slane %v2204_v40, 2  ;;  %v2213_v49 = vadd.f32 %v2212_v29, %v2211_v37 }
 0x1f3   :  { %v2206_v33 = vadd.f32 %v2205_v48, %v2204_v40  ;;  %v2214_v39 = vrot.slane %v2213_v49, 2 }
 0x1f5   :  { %v2207_v44 = vrot.slane %v2206_v33, 1  ;;  %v2215_v42 = vadd.f32 %v2214_v39, %v2213_v49 }
 0x1f7   :  { %v2208_v31 = vadd.f32 %v2207_v44, %v2206_v33  ;;  %v2216_v43 = vrot.slane %v2215_v42, 1 }
 0x1f9   :  { %v2218_v46 = vmul.f32 0.03125, %v2208_v31  ;;  %v2217_v50 = vadd.f32 %v2216_v43, %v2215_v42 }
 0x1fb   :  { %v2220_v35 = vadd.f32 1e-05, %v2218_v46  ;;  %v2219_v41 = vmul.f32 0.03125, %v2217_v50 }
 0x1fd   :  { %2968 = vrsqrt.f32 %v2220_v35  ;;  %v2221_v51 = vadd.f32 1e-05, %v2219_v41 }
 0x1ff   :  { %2970 = vrsqrt.f32 %v2221_v51 }
 0x20a   :  { %v2969_v52 = vpop.eup %2968 }
 0x20b   :  { %v2224_v53 = vmul.f32 %v2969_v52, %v2184_v11  ;;  %v2226_v54 = vmul.f32 %v2969_v52, %v2186_v15  ;;  %v2228_v55 = vmul.f32 %v2969_v52, %v2188_v18  ;;  %v2230_v45 = vmul.f32 %v2969_v52, %v2190_v13 }
 0x20c   :  { %v2971_v57 = vpop.eup %2970 }
 0x20d   :  { %vm2232_vm0 = vcmp.gt.f32.partialorder %v2224_v53, 0.0  ;;  %v2240_v58 = vmul.f32 0.2, %v2224_v53  ;;  %v2242_v62 = vmul.f32 0.2, %v2226_v54  ;;  %v2225_v47 = vmul.f32 %v2971_v57, %v2185_v21 }
 0x20e   :  { %v2244_v63 = vmul.f32 0.2, %v2228_v55  ;;  %v2227_v1 = vmul.f32 %v2971_v57, %v2187_v22  ;;  %v2229_v2 = vmul.f32 %v2971_v57, %v2189_v23  ;;  %v2231_v3 = vmul.f32 %v2971_v57, %v2191_v24 }
 0x20f   :  { %vm2234_vm1 = vcmp.gt.f32.partialorder %v2226_v54, 0.0  ;;  %vm2236_vm2 = vcmp.gt.f32.partialorder %v2228_v55, 0.0  ;;  %vm2238_vm3 = vcmp.gt.f32.partialorder %v2230_v45, 0.0  ;;  %v2246_v56 = vmul.f32 0.2, %v2230_v45 }
 0x210   :  { %vm2233_vm4 = vcmp.gt.f32.partialorder %v2225_v47, 0.0  ;;  %vm2235_vm5 = vcmp.gt.f32.partialorder %v2227_v1, 0.0  ;;  %vm2237_vm6 = vcmp.gt.f32.partialorder %v2229_v2, 0.0  ;;  %vm2239_vm7 = vcmp.gt.f32.partialorder %v2231_v3, 0.0 }
 0x211   :  { %v2241_v4 = vmul.f32 0.2, %v2225_v47  ;;  %v2243_v0 = vmul.f32 0.2, %v2227_v1  ;;  %v2245_v5 = vmul.f32 0.2, %v2229_v2  ;;  %v2248_v59 = vsel %vm2232_vm0, %v2224_v53, %v2240_v58 }
 0x212   :  { %v2250_v8 = vsel %vm2234_vm1, %v2226_v54, %v2242_v62  ;;  %v2252_v61 = vsel %vm2236_vm2, %v2228_v55, %v2244_v63  ;;  %v2247_v6 = vmul.f32 0.2, %v2231_v3  ;;  %v2254_v7 = vsel %vm2238_vm3, %v2230_v45, %v2246_v56 }
 0x213   :  { %v2249_v60 = vsel %vm2233_vm4, %v2225_v47, %v2241_v4  ;;  %v2251_v9 = vsel %vm2235_vm5, %v2227_v1, %v2243_v0  ;;  %v2253_v10 = vsel %vm2237_vm6, %v2229_v2, %v2245_v5 }
 0x214   :  { %v2255_v11 = vsel %vm2239_vm7, %v2231_v3, %v2247_v6  ;;  %v2580_v15 = vpack.c.bf16 %v2249_v60, %v2248_v59  ;;  %v2581_v18 = vpack.c.bf16 %v2251_v9, %v2250_v8  ;;  %v2582_v12 = vpack.c.bf16 %v2253_v10, %v2252_v61 }
 0x215   :  { %v2583_v13 = vpack.c.bf16 %v2255_v11, %v2254_v7 }
 0x216   :  { %2280 = vst [vmem:[%s3914_s2] sm:$0xff] %v2580_v15  ;;  %2281 = vst [vmem:[%s3914_s2 + $0x8] sm:$0xff] %v2581_v18 }
 0x217   :  { %2282 = vst [vmem:[%s3914_s2 + $0x10] sm:$0xff] %v2582_v12  ;;  %2283 = vst [vmem:[%s3914_s2 + $0x18] sm:$0xff] %v2583_v13 }

// kernel: discriminator_forward.9
= control target key start
LH: loop header
LB: loop body
LE: loop exit
PB: predicated region body
PF: predicated region fallthrough
CT: control target
= control target key end

     0   :  { %v55_v0 = vlaneseq  ;;  %v1118_v50 = vmov 1983009808   ;;  %vm967_vm0 = vcmask 1041408   ;;  %vm1106_vm1 = vcmask 1024   ;;  %s1879_s1 = inlined_call_operand.vmem [shape: f32[1,8192], index: 1, kind: input, shape index: {}]   ;;  %s1880_s0 = inlined_call_operand.vmem [shape: bf16[2,8192], index: 0, kind: input, shape index: {}]   ;;  %s1881_s2 = inlined_call_operand.<no memory space> [shape: f32[1], index: 2, kind: input, shape index: {}]   ;;  %s1882_s3 = inlined_call_operand.vmem [shape: f32[2,1], index: 3, kind: output, shape index: {}]  }
   0x1   :  { %v1144_v2 = vld [vmem:[%s1879_s1 + $0x20] sm:$0xff]  ;;  %v1161_v7 = vld [vmem:[%s1879_s1 + $0x28] sm:$0xff]  ;;  %v1186_v16 = vld [vmem:[%s1879_s1 + $0x30] sm:$0xff]  ;;  %v314_v51 = vunpack.c.l.s4 %v1118_v50 }
   0x2   :  { %v1139_v1 = vshrl.u32 %v55_v0, 7  ;;  %v1207_v25 = vld [vmem:[%s1879_s1 + $0x38] sm:$0xff]  ;;  %v1244_v42 = vld [vmem:[%s1880_s0 + $0x20] sm:$0xff]  ;;  %v1249_v43 = vld [vmem:[%s1880_s0 + $0x28] sm:$0xff] }
   0x3   :  { %v1262_v48 = vld [vmem:[%s1880_s0 + $0x30] sm:$0xff]  ;;  %v1267_v49 = vld [vmem:[%s1880_s0 + $0x38] sm:$0xff]  ;;  %v1272_v52 = vld [vmem:[%s1879_s1] sm:$0xff]  ;;  %v315_v0 = vunpack.c.0.s8 %v314_v51 }
   0x4   :  { %v1147_v3 = vsub.s32 0, %v1139_v1  ;;  %v1150_v4 = vsub.s32 1, %v1139_v1  ;;  %v1153_v5 = vsub.s32 2, %v1139_v1  ;;  %v1156_v6 = vsub.s32 3, %v1139_v1  ;;  %v1284_v60 = vld [vmem:[%s1879_s1 + $0x8] sm:$0xff]  ;;  %v1302_v61 = vld [vmem:[%s1879_s1 + $0x10] sm:$0xff] }
   0x5   :  { %v1164_v8 = vsub.s32 4, %v1139_v1  ;;  %v1167_v9 = vsub.s32 5, %v1139_v1  ;;  %v1170_v10 = vsub.s32 6, %v1139_v1  ;;  %v1173_v11 = vsub.s32 7, %v1139_v1 }
   0x6   :  { %v186_v12 = vrot.slane %v1144_v2, %v1147_v3  ;;  %v190_v13 = vrot.slane %v1144_v2, %v1150_v4  ;;  %v194_v14 = vrot.slane %v1144_v2, %v1153_v5  ;;  %v198_v15 = vrot.slane %v1144_v2, %v1156_v6 }
   0x7   :  { %v202_v17 = vrot.slane %v1144_v2, %v1164_v8  ;;  %v206_v18 = vrot.slane %v1144_v2, %v1167_v9  ;;  %v210_v19 = vrot.slane %v1144_v2, %v1170_v10  ;;  %v214_v20 = vrot.slane %v1144_v2, %v1173_v11 }
   0x8   :  { %v218_v21 = vrot.slane %v1161_v7, %v1147_v3  ;;  %v222_v22 = vrot.slane %v1161_v7, %v1150_v4  ;;  %v226_v23 = vrot.slane %v1161_v7, %v1153_v5  ;;  %v230_v24 = vrot.slane %v1161_v7, %v1156_v6 }
   0x9   :  { %v234_v26 = vrot.slane %v1161_v7, %v1164_v8  ;;  %v238_v27 = vrot.slane %v1161_v7, %v1167_v9  ;;  %v242_v28 = vrot.slane %v1161_v7, %v1170_v10  ;;  %v246_v29 = vrot.slane %v1161_v7, %v1173_v11 }
   0xa   :  { %v250_v30 = vrot.slane %v1186_v16, %v1147_v3  ;;  %v254_v31 = vrot.slane %v1186_v16, %v1150_v4  ;;  %v258_v32 = vrot.slane %v1186_v16, %v1153_v5  ;;  %v262_v33 = vrot.slane %v1186_v16, %v1156_v6 }
   0xb   :  { %v266_v34 = vrot.slane %v1186_v16, %v1164_v8  ;;  %v270_v35 = vrot.slane %v1186_v16, %v1167_v9  ;;  %v278_v37 = vrot.slane %v1186_v16, %v1173_v11  ;;  %v58_v62 = vrot.slane %v1272_v52, %v1147_v3 }
   0xc   :  { %v62_v63 = vrot.slane %v1272_v52, %v1150_v4  ;;  %v66_v50 = vrot.slane %v1272_v52, %v1153_v5  ;;  %v70_v59 = vrot.slane %v1272_v52, %v1156_v6  ;;  %v74_v58 = vrot.slane %v1272_v52, %v1164_v8 }
   0xd   :  { %v78_v57 = vrot.slane %v1272_v52, %v1167_v9  ;;  %v82_v51 = vrot.slane %v1272_v52, %v1170_v10  ;;  %v86_v56 = vrot.slane %v1272_v52, %v1173_v11  ;;  %v90_v55 = vrot.slane %v1284_v60, %v1147_v3 }
   0xe   :  { %v94_v54 = vrot.slane %v1284_v60, %v1150_v4  ;;  %v98_v53 = vrot.slane %v1284_v60, %v1153_v5  ;;  %v102_v46 = vrot.slane %v1284_v60, %v1156_v6  ;;  %v106_v47 = vrot.slane %v1284_v60, %v1164_v8 }
   0xf   :  { %v110_v44 = vrot.slane %v1284_v60, %v1167_v9  ;;  %v114_v52 = vrot.slane %v1284_v60, %v1170_v10  ;;  %v118_v45 = vrot.slane %v1284_v60, %v1173_v11  ;;  %v1325_v40 = vsub.s32 %v315_v0, %v1139_v1 }
  0x10   :  { %v447_v41 = vcombine.low %v186_v12, %v190_v13  ;;  %v122_v38 = vrot.slane %v1302_v61, %v1147_v3  ;;  %v126_v39 = vrot.slane %v1302_v61, %v1150_v4  ;;  %v130_v36 = vrot.slane %v1302_v61, %v1153_v5 }
  0x11   :  { %v448_v1 = vcombine.low %v194_v14, %v198_v15  ;;  %v134_v60 = vrot.slane %v1302_v61, %v1156_v6  ;;  %v464_v13 = vcombine.low %v202_v17, %v206_v18  ;;  %v465_v0 = vcombine.low %v210_v19, %v214_v20 }
  0x12   :  { %v455_v12 = vrot.slane %v447_v41, %v1325_v40  ;;  %v1360_v14 = vcombine.low %v58_v62, %v62_v63  ;;  %v481_v41 = vcombine.low %v218_v21, %v222_v22  ;;  %v482_v17 = vcombine.low %v226_v23, %v230_v24 }
  0x13   :  { %v462_v15 = vrot.slane %v448_v1, %v1325_v40  ;;  %v1375_v2 = vcombine.low %v66_v50, %v70_v59  ;;  %v472_v18 = vrot.slane %v464_v13, %v1325_v40  ;;  %v479_v19 = vrot.slane %v465_v0, %v1325_v40 }
  0x14   :  { %v498_v20 = vcombine.low %v234_v26, %v238_v27  ;;  %v489_v22 = vrot.slane %v481_v41, %v1325_v40  ;;  %v496_v62 = vrot.slane %v482_v17, %v1325_v40  ;;  %v499_v23 = vcombine.low %v242_v28, %v246_v29 }
  0x15   :  { %v463_v21 = vcombine.low %v455_v12, %v462_v15  ;;  %v480_v24 = vcombine.low %v472_v18, %v479_v19  ;;  %v515_v26 = vcombine.low %v250_v30, %v254_v31  ;;  %v516_v27 = vcombine.low %v258_v32, %v262_v33 }
  0x16   :  { %v506_v59 = vrot.slane %v498_v20, %v1325_v40  ;;  %v497_v63 = vcombine.low %v489_v22, %v496_v62  ;;  %v513_v7 = vrot.slane %v499_v23, %v1325_v40  ;;  %v532_v28 = vcombine.low %v266_v34, %v270_v35 }
  0x17   :  { %v1884_v29 = vrot.slane %v1186_v16, %v1170_v10  ;;  %v523_v31 = vrot.slane %v515_v26, %v1325_v40  ;;  %v530_v32 = vrot.slane %v516_v27, %v1325_v40  ;;  %v1885_v33 = vrot.slane %v1207_v25, %v1150_v4 }
  0x18   :  { %v1886_v50 = vrot.slane %v1207_v25, %v1147_v3  ;;  %v1887_v34 = vrot.slane %v1207_v25, %v1156_v6  ;;  %v1888_v35 = vrot.slane %v1207_v25, %v1153_v5  ;;  %v514_v16 = vcombine.low %v506_v59, %v513_v7 }
  0x19   :  { %v533_v30 = vcombine.low %v1884_v29, %v278_v37  ;;  %v540_v37 = vrot.slane %v532_v28, %v1325_v40  ;;  %v1889_v0 = vrot.slane %v1207_v25, %v1167_v9  ;;  %v1890_v15 = vrot.slane %v1207_v25, %v1164_v8 }
  0x1a   :  { %v549_v1 = vcombine.low %v1886_v50, %v1885_v33  ;;  %v550_v12 = vcombine.low %v1888_v35, %v1887_v34  ;;  %v531_v17 = vcombine.low %v523_v31, %v530_v32  ;;  %v1891_v20 = vrot.slane %v1207_v25, %v1173_v11  ;;  %v16_v35 = vld [vmem:[%s1880_s0 + $0x8] sm:$0xff] }
  0x1b   :  { %v547_v13 = vrot.slane %v533_v30, %v1325_v40  ;;  %v566_v41 = vcombine.low %v1890_v15, %v1889_v0  ;;  %v1892_v22 = vrot.slane %v1207_v25, %v1170_v10  ;;  %v328_v23 = vcombine.low %v74_v58, %v78_v57  ;;  %v1508_v0 = vld [vmem:[%s1880_s0 + $0x10] sm:$0xff] }
  0x1c   :  { %v557_v18 = vrot.slane %v549_v1, %v1325_v40  ;;  %v564_v19 = vrot.slane %v550_v12, %v1325_v40  ;;  %v329_v59 = vcombine.low %v82_v51, %v86_v56  ;;  %v345_v7 = vcombine.low %v90_v55, %v94_v54 }
  0x1d   :  { %v567_v62 = vcombine.low %v1892_v22, %v1891_v20  ;;  %v548_v26 = vcombine.low %v540_v37, %v547_v13  ;;  %v574_v27 = vrot.slane %v566_v41, %v1325_v40  ;;  %v346_v28 = vcombine.low %v98_v53, %v102_v46 }
  0x1e   :  { %v565_v29 = vcombine.low %v557_v18, %v564_v19  ;;  %v319_v31 = vrot.slane %v1360_v14, %v1325_v40  ;;  %v326_v32 = vrot.slane %v1375_v2, %v1325_v40  ;;  %v362_v33 = vcombine.low %v106_v47, %v110_v44 }
  0x1f   :  { %v581_v30 = vrot.slane %v567_v62, %v1325_v40  ;;  %v363_v50 = vcombine.low %v114_v52, %v118_v45  ;;  %v1893_v57 = vunpack.c.l.bf16 %v1244_v42  ;;  %v1894_v58 = vunpack.c.h.bf16 %v1244_v42  ;;  %v15_v42 = vld [vmem:[%s1880_s0] sm:$0xff] }
  0x20   :  { %v1895_v46 = vunpack.c.l.bf16 %v1249_v43  ;;  %v1896_v54 = vunpack.c.h.bf16 %v1249_v43  ;;  %v1897_v14 = vunpack.c.l.bf16 %v1262_v48  ;;  %v1898_v44 = vunpack.c.h.bf16 %v1262_v48 }
  0x21   :  { %v582_v25 = vcombine.low %v574_v27, %v581_v30  ;;  %v607_v56 = vmul.f32 %v463_v21, %v1893_v57  ;;  %v608_v51 = vmul.f32 %v480_v24, %v1894_v58  ;;  %v1899_v47 = vunpack.c.l.bf16 %v1267_v49 }
  0x22   :  { %v609_v53 = vmul.f32 %v497_v63, %v1895_v46  ;;  %v610_v55 = vmul.f32 %v514_v16, %v1896_v54  ;;  %v1465_v1 = vmul.f32 %v531_v17, %v1897_v14  ;;  %v1469_v45 = vmul.f32 %v548_v26, %v1898_v44 }
  0x23   :  { %v1473_v52 = vmul.f32 %v565_v29, %v1899_v47  ;;  %v336_v2 = vrot.slane %v328_v23, %v1325_v40  ;;  %v343_v43 = vrot.slane %v329_v59, %v1325_v40  ;;  %v1900_v21 = vunpack.c.h.bf16 %v1267_v49 }
  0x24   :  { %v353_v48 = vrot.slane %v345_v7, %v1325_v40  ;;  %v360_v63 = vrot.slane %v346_v28, %v1325_v40  ;;  %v379_v34 = vcombine.low %v122_v38, %v126_v39  ;;  %v380_v49 = vcombine.low %v130_v36, %v134_v60  ;;  %v1513_v36 = vld [vmem:[%s1879_s1 + $0x18] sm:$0xff] }
  0x25   :  { %v1482_v24 = vmul.f32 %v582_v25, %v1900_v21  ;;  %v370_v12 = vrot.slane %v362_v33, %v1325_v40  ;;  %v377_v16 = vrot.slane %v363_v50, %v1325_v40  ;;  %v23_v37 = vunpack.c.l.bf16 %v15_v42 }
  0x26   :  { %v24_v13 = vunpack.c.h.bf16 %v15_v42  ;;  %v138_v38 = vrot.slane %v1302_v61, %v1164_v8  ;;  %v327_v39 = vcombine.low %v319_v31, %v326_v32  ;;  %v142_v60 = vrot.slane %v1302_v61, %v1167_v9 }
  0x27   :  { %v146_v15 = vrot.slane %v1302_v61, %v1170_v10  ;;  %v150_v41 = vrot.slane %v1302_v61, %v1173_v11  ;;  %v344_v17 = vcombine.low %v336_v2, %v343_v43  ;;  %v25_v18 = vunpack.c.l.bf16 %v16_v35 }
  0x28   :  { %v361_v19 = vcombine.low %v353_v48, %v360_v63  ;;  %v387_v20 = vrot.slane %v379_v34, %v1325_v40  ;;  %v394_v22 = vrot.slane %v380_v49, %v1325_v40  ;;  %v26_v62 = vunpack.c.h.bf16 %v16_v35 }
  0x29   :  { %v378_v23 = vcombine.low %v370_v12, %v377_v16  ;;  %v27_v59 = vunpack.c.l.bf16 %v1508_v0  ;;  %v599_v7 = vmul.f32 %v327_v39, %v23_v37  ;;  %v1530_v28 = vcombine.low %v138_v38, %v142_v60 }
  0x2a   :  { %v1532_v29 = vcombine.low %v146_v15, %v150_v41  ;;  %v600_v30 = vmul.f32 %v344_v17, %v24_v13  ;;  %v395_v31 = vcombine.low %v387_v20, %v394_v22  ;;  %v601_v32 = vmul.f32 %v361_v19, %v25_v18 }
  0x2b   :  { %v631_v33 = vcombine.high %v599_v7, %v599_v7  ;;  %v767_v50 = vcombine.high %v607_v56, %v607_v56  ;;  %v602_v25 = vmul.f32 %v378_v23, %v26_v62  ;;  %v1535_v57 = vrot.slane %v607_v56, %v1325_v40 }
  0x2c   :  { %v784_v58 = vcombine.high %v608_v51, %v608_v51  ;;  %v1538_v46 = vrot.slane %v608_v51, %v1325_v40  ;;  %v638_v54 = vrot.slane %v599_v7, %v1325_v40  ;;  %v801_v44 = vcombine.high %v609_v53, %v609_v53 }
  0x2d   :  { %1901 = vst [vmem:[#allocation3_spill] sm:$0xff] %v1535_v57  ;;  %v1542_v14 = vrot.slane %v767_v50, %v1325_v40  ;;  %v1545_v47 = vrot.slane %v609_v53, %v1325_v40  ;;  %v648_v42 = vcombine.high %v600_v30, %v600_v30  ;;  %v655_v2 = vrot.slane %v600_v30, %v1325_v40 }
  0x2e   :  { %v1549_v43 = vrot.slane %v784_v58, %v1325_v40  ;;  %v818_v56 = vcombine.high %v610_v55, %v610_v55  ;;  %v645_v21 = vrot.slane %v631_v33, %v1325_v40  ;;  %v665_v51 = vcombine.high %v601_v32, %v601_v32 }
  0x2f   :  { %v1553_v48 = vrot.slane %v801_v44, %v1325_v40  ;;  %v1556_v63 = vrot.slane %v610_v55, %v1325_v40  ;;  %v672_v34 = vrot.slane %v601_v32, %v1325_v40  ;;  %v835_v49 = vcombine.high %v1465_v1, %v1465_v1 }
  0x30   :  { %v1560_v53 = vrot.slane %v818_v56, %v1325_v40  ;;  %v1566_v35 = vrot.slane %v1465_v1, %v1325_v40  ;;  %v646_v12 = vcombine.high %v638_v54, %v638_v54  ;;  %v682_v16 = vcombine.high %v602_v25, %v602_v25 }
  0x31   :  { %v852_v37 = vcombine.high %v1469_v45, %v1469_v45  ;;  %v1572_v55 = vrot.slane %v1469_v45, %v1325_v40  ;;  %v662_v13 = vrot.slane %v648_v42, %v1325_v40  ;;  %v1576_v38 = vrot.slane %v602_v25, %v1325_v40 }
  0x32   :  { %v1579_v39 = vrot.slane %v835_v49, %v1325_v40  ;;  %v869_v1 = vcombine.high %v1473_v52, %v1473_v52  ;;  %v647_v60 = vcombine.high %v645_v21, %v645_v21  ;;  %v1588_v41 = vrot.slane %v1473_v52, %v1325_v40 }
  0x33   :  { %v1584_v15 = vrot.slane %v852_v37, %v1325_v40  ;;  %v886_v45 = vcombine.high %v1482_v24, %v1482_v24  ;;  %v679_v17 = vrot.slane %v665_v51, %v1325_v40  ;;  %v1598_v19 = vrot.slane %v1482_v24, %v1325_v40 }
  0x34   :  { %v1594_v18 = vrot.slane %v869_v1, %v1325_v40  ;;  %v968_v20 = vsel %vm967_vm0, %v638_v54, 0.0  ;;  %v969_v23 = vsel %vm967_vm0, %v646_v12, 0.0  ;;  %v1611_v30 = vmul.f32 %v395_v31, %v27_v59 }
  0x35   :  { %v1606_v62 = vrot.slane %v886_v45, %v1325_v40  ;;  %v970_v24 = vadd.f32 %v969_v23, %v968_v20  ;;  %v971_v32 = vsel %vm967_vm0, %v645_v21, 0.0  ;;  %v663_v33 = vcombine.high %v655_v2, %v655_v2 }
  0x36   :  { %v680_v50 = vcombine.high %v672_v34, %v672_v34  ;;  %v1615_v25 = vrot.slane %v682_v16, %v1325_v40  ;;  %v973_v58 = vsel %vm967_vm0, %v647_v60, 0.0  ;;  %v664_v54 = vcombine.high %v662_v13, %v662_v13 }
  0x37   :  { %v681_v44 = vcombine.high %v679_v17, %v679_v17  ;;  %v972_v56 = vadd.f32 %v971_v32, %v970_v24  ;;  %v782_v59 = vcombine.high %v1535_v57, %v1535_v57  ;;  %v783_v31 = vcombine.high %v1542_v14, %v1542_v14 }
  0x38   :  { %v799_v21 = vcombine.high %v1538_v46, %v1538_v46  ;;  %v975_v51 = vsel %vm967_vm0, %v655_v2, 0.0  ;;  %v800_v49 = vcombine.high %v1549_v43, %v1549_v43  ;;  %v816_v12 = vcombine.high %v1545_v47, %v1545_v47 }
  0x39   :  { %v817_v16 = vcombine.high %v1553_v48, %v1553_v48  ;;  %v974_v37 = vadd.f32 %v973_v58, %v972_v56  ;;  %v833_v1 = vcombine.high %v1556_v63, %v1556_v63  ;;  %v834_v60 = vcombine.high %v1560_v53, %v1560_v53 }
  0x3a   :  { %v850_v45 = vcombine.high %v1566_v35, %v1566_v35  ;;  %v977_v2 = vsel %vm967_vm0, %v663_v33, 0.0  ;;  %v851_v20 = vcombine.high %v1579_v39, %v1579_v39  ;;  %v867_v23 = vcombine.high %v1572_v55, %v1572_v55 }
  0x3b   :  { %v868_v24 = vcombine.high %v1584_v15, %v1584_v15  ;;  %v976_v32 = vadd.f32 %v975_v51, %v974_v37  ;;  %v884_v58 = vcombine.high %v1588_v41, %v1588_v41  ;;  %v885_v56 = vcombine.high %v1594_v18, %v1594_v18 }
  0x3c   :  { %v901_v42 = vcombine.high %v1598_v19, %v1598_v19  ;;  %v979_v33 = vsel %vm967_vm0, %v662_v13, 0.0  ;;  %v902_v61 = vcombine.high %v1606_v62, %v1606_v62  ;;  %v981_v26 = vsel %vm967_vm0, %v664_v54, 0.0 }
  0x3d   :  { %v978_v22 = vadd.f32 %v977_v2, %v976_v32  ;;  %v983_v27 = vsel %vm967_vm0, %v672_v34, 0.0  ;;  %v985_v51 = vsel %vm967_vm0, %v680_v50, 0.0  ;;  %v987_v37 = vsel %vm967_vm0, %v679_v17, 0.0 }
  0x3e   :  { %v989_v52 = vsel %vm967_vm0, %v681_v44, 0.0  ;;  %v1661_v7 = vsel %vm967_vm0, %v782_v59, 0.0  ;;  %v1665_v13 = vsel %vm967_vm0, %v1542_v14, 0.0  ;;  %v1668_v2 = vsel %vm967_vm0, %v783_v31, 0.0 }
  0x3f   :  { %v980_v57 = vadd.f32 %v979_v33, %v978_v22  ;;  %v1672_v34 = vsel %vm967_vm0, %v1538_v46, 0.0  ;;  %v1675_v50 = vsel %vm967_vm0, %v799_v21, 0.0  ;;  %v1679_v17 = vsel %vm967_vm0, %v1549_v43, 0.0 }
  0x40   :  { %v1682_v22 = vsel %vm967_vm0, %v800_v49, 0.0  ;;  %v1686_v14 = vsel %vm967_vm0, %v1545_v47, 0.0  ;;  %v1689_v44 = vsel %vm967_vm0, %v816_v12, 0.0  ;;  %v1693_v46 = vsel %vm967_vm0, %v1553_v48, 0.0 }
  0x41   :  { %v982_v54 = vadd.f32 %v981_v26, %v980_v57  ;;  %v1696_v59 = vsel %vm967_vm0, %v817_v16, 0.0  ;;  %v1700_v43 = vsel %vm967_vm0, %v1556_v63, 0.0  ;;  %v1703_v31 = vsel %vm967_vm0, %v833_v1, 0.0 }
  0x42   :  { %v1707_v26 = vsel %vm967_vm0, %v1560_v53, 0.0  ;;  %v1710_v57 = vsel %vm967_vm0, %v834_v60, 0.0  ;;  %v1714_v48 = vsel %vm967_vm0, %v1566_v35, 0.0  ;;  %v1717_v21 = vsel %vm967_vm0, %v850_v45, 0.0 }
  0x43   :  { %v984_v47 = vadd.f32 %v983_v27, %v982_v54  ;;  %v1721_v63 = vsel %vm967_vm0, %v1579_v39, 0.0  ;;  %v1724_v49 = vsel %vm967_vm0, %v851_v20, 0.0  ;;  %v1728_v53 = vsel %vm967_vm0, %v1572_v55, 0.0 }
  0x44   :  { %v1731_v27 = vsel %vm967_vm0, %v867_v23, 0.0  ;;  %v1735_v35 = vsel %vm967_vm0, %v1584_v15, 0.0  ;;  %v1738_v16 = vsel %vm967_vm0, %v868_v24, 0.0  ;;  %v1742_v39 = vsel %vm967_vm0, %v1588_v41, 0.0 }
  0x45   :  { %v986_v12 = vadd.f32 %v985_v51, %v984_v47  ;;  %v1745_v1 = vsel %vm967_vm0, %v884_v58, 0.0  ;;  %v1749_v55 = vsel %vm967_vm0, %v1594_v18, 0.0  ;;  %v1752_v60 = vsel %vm967_vm0, %v885_v56, 0.0 }
  0x46   :  { %v1756_v15 = vsel %vm967_vm0, %v1598_v19, 0.0  ;;  %v1759_v45 = vsel %vm967_vm0, %v901_v42, 0.0  ;;  %v1763_v41 = vsel %vm967_vm0, %v1606_v62, 0.0  ;;  %v1766_v23 = vsel %vm967_vm0, %v902_v61, 0.0 }
  0x47   :  { %v988_v20 = vadd.f32 %v987_v37, %v986_v12  ;;  %v28_v18 = vunpack.c.h.bf16 %v1508_v0  ;;  %v991_v24 = vsel %vm967_vm0, %v1576_v38, 0.0  ;;  %v1902_v19 = vrot.slane %v1532_v29, %v1325_v40 }
  0x48   :  { %v1903_v42 = vrot.slane %v1530_v28, %v1325_v40  ;;  %v1904_v58 = vrot.slane %v1513_v36, %v1150_v4  ;;  %v1905_v62 = vrot.slane %v1513_v36, %v1147_v3  ;;  %v1906_v0 = vrot.slane %v1513_v36, %v1156_v6 }
  0x49   :  { %v1907_v56 = vrot.slane %v1513_v36, %v1153_v5  ;;  %v990_v51 = vadd.f32 %v989_v52, %v988_v20  ;;  %v698_v29 = vcombine.high %v1615_v25, %v1615_v25  ;;  %v699_v28 = vcombine.high %v1611_v30, %v1611_v30 }
  0x4a   :  { %v412_v32 = vcombine.low %v1903_v42, %v1902_v19  ;;  %v413_v61 = vcombine.low %v1905_v62, %v1904_v58  ;;  %v706_v4 = vrot.slane %v1611_v30, %v1325_v40  ;;  %v1908_v3 = vcombine.high %v1576_v38, %v1576_v38  ;;  %v18_v30 = vld [vmem:[%s1880_s0 + $0x18] sm:$0xff] }
  0x4b   :  { %v414_v33 = vcombine.low %v1907_v56, %v1906_v0  ;;  %v992_v6 = vadd.f32 %v991_v24, %v990_v51  ;;  %v170_v5 = vrot.slane %v1513_v36, %v1164_v8  ;;  %v174_v52 = vrot.slane %v1513_v36, %v1167_v9 }
  0x4c   :  { %v993_v37 = vsel %vm967_vm0, %v1908_v3, 0.0  ;;  %v178_v54 = vrot.slane %v1513_v36, %v1170_v10  ;;  %v995_v47 = vsel %vm967_vm0, %v1615_v25, 0.0  ;;  %v182_v38 = vrot.slane %v1513_v36, %v1173_v11 }
  0x4d   :  { %v421_v12 = vrot.slane %v413_v61, %v1325_v40  ;;  %v428_v8 = vrot.slane %v414_v33, %v1325_v40  ;;  %v994_v20 = vadd.f32 %v993_v37, %v992_v6  ;;  %v604_v24 = vmul.f32 %v412_v32, %v28_v18 }
  0x4e   :  { %v713_v9 = vrot.slane %v699_v28, %v1325_v40  ;;  %v714_v19 = vcombine.high %v706_v4, %v706_v4  ;;  %v997_v10 = vsel %vm967_vm0, %v698_v29, 0.0  ;;  %v29_v25 = vunpack.c.l.bf16 %v18_v30 }
  0x4f   :  { %v996_v42 = vadd.f32 %v995_v47, %v994_v20  ;;  %v999_v58 = vsel %vm967_vm0, %v706_v4, 0.0  ;;  %v429_v62 = vcombine.low %v421_v12, %v428_v8  ;;  %v430_v0 = vcombine.low %v170_v5, %v174_v52 }
  0x50   :  { %v431_v56 = vcombine.low %v178_v54, %v182_v38  ;;  %v715_v11 = vcombine.high %v713_v9, %v713_v9  ;;  %v716_v36 = vcombine.high %v604_v24, %v604_v24  ;;  %v723_v61 = vrot.slane %v604_v24, %v1325_v40 }
  0x51   :  { %v998_v51 = vadd.f32 %v997_v10, %v996_v42  ;;  %v1001_v33 = vsel %vm967_vm0, %v714_v19, 0.0  ;;  %v1003_v32 = vsel %vm967_vm0, %v713_v9, 0.0  ;;  %v438_v28 = vrot.slane %v430_v0, %v1325_v40 }
  0x52   :  { %v445_v29 = vrot.slane %v431_v56, %v1325_v40  ;;  %v605_v37 = vmul.f32 %v429_v62, %v29_v25  ;;  %v730_v4 = vrot.slane %v716_v36, %v1325_v40  ;;  %v731_v6 = vcombine.high %v723_v61, %v723_v61 }
  0x53   :  { %v1000_v18 = vadd.f32 %v999_v58, %v998_v51  ;;  %v1005_v5 = vsel %vm967_vm0, %v715_v11, 0.0  ;;  %v1007_v54 = vsel %vm967_vm0, %v723_v61, 0.0  ;;  %v30_v47 = vunpack.c.h.bf16 %v18_v30 }
  0x54   :  { %v446_v38 = vcombine.low %v438_v28, %v445_v29  ;;  %v732_v8 = vcombine.high %v730_v4, %v730_v4  ;;  %v733_v20 = vcombine.high %v605_v37, %v605_v37  ;;  %v740_v24 = vrot.slane %v605_v37, %v1325_v40 }
  0x55   :  { %v1002_v3 = vadd.f32 %v1001_v33, %v1000_v18  ;;  %v1009_v9 = vsel %vm967_vm0, %v731_v6, 0.0  ;;  %v1011_v10 = vsel %vm967_vm0, %v730_v4, 0.0 }
  0x56   :  { %v606_v25 = vmul.f32 %v446_v38, %v30_v47  ;;  %v747_v58 = vrot.slane %v733_v20, %v1325_v40  ;;  %v748_v62 = vcombine.high %v740_v24, %v740_v24  ;;  %v1013_v0 = vsel %vm967_vm0, %v732_v8, 0.0 }
  0x57   :  { %v1004_v52 = vadd.f32 %v1003_v32, %v1002_v3  ;;  %v1015_v30 = vsel %vm967_vm0, %v740_v24, 0.0  ;;  %v1909_v24 = vld [vmem:[#allocation3_spill] sm:$0xff] }
  0x58   :  { %v749_v11 = vcombine.high %v747_v58, %v747_v58  ;;  %v750_v36 = vcombine.high %v606_v25, %v606_v25  ;;  %v757_v61 = vrot.slane %v606_v25, %v1325_v40  ;;  %v1017_v33 = vsel %vm967_vm0, %v748_v62, 0.0 }
  0x59   :  { %v1006_v12 = vadd.f32 %v1005_v5, %v1004_v52  ;;  %v1019_v32 = vsel %vm967_vm0, %v747_v58, 0.0 }
  0x5a   :  { %v764_v29 = vrot.slane %v750_v36, %v1325_v40  ;;  %v765_v3 = vcombine.high %v757_v61, %v757_v61  ;;  %v1021_v37 = vsel %vm967_vm0, %v749_v11, 0.0  ;;  %v1023_v6 = vsel %vm967_vm0, %v757_v61, 0.0 }
  0x5b   :  { %v1008_v19 = vadd.f32 %v1007_v54, %v1006_v12  ;;  %v1031_v40 = vsel %vm967_vm0, %v1909_v24, 0.0 }
  0x5c   :  { %v766_v52 = vcombine.high %v764_v29, %v764_v29  ;;  %v1025_v54 = vsel %vm967_vm0, %v765_v3, 0.0  ;;  %v1027_v38 = vsel %vm967_vm0, %v764_v29, 0.0 }
  0x5d   :  { %v1010_v42 = vadd.f32 %v1009_v9, %v1008_v19 }
  0x5e   :  { %v1029_v8 = vsel %vm967_vm0, %v766_v52, 0.0 }
  0x5f   :  { %v1012_v56 = vadd.f32 %v1011_v10, %v1010_v42 }
  0x61   :  { %v1014_v51 = vadd.f32 %v1013_v0, %v1012_v56 }
  0x63   :  { %v1016_v18 = vadd.f32 %v1015_v30, %v1014_v51 }
  0x65   :  { %v1018_v28 = vadd.f32 %v1017_v33, %v1016_v18 }
  0x67   :  { %v1020_v4 = vadd.f32 %v1019_v32, %v1018_v28 }
  0x69   :  { %v1022_v5 = vadd.f32 %v1021_v37, %v1020_v4 }
  0x6b   :  { %v1024_v47 = vadd.f32 %v1023_v6, %v1022_v5 }
  0x6d   :  { %v1026_v12 = vadd.f32 %v1025_v54, %v1024_v47 }
  0x6f   :  { %v1028_v20 = vadd.f32 %v1027_v38, %v1026_v12 }
  0x71   :  { %v1030_v9 = vadd.f32 %v1029_v8, %v1028_v20 }
  0x73   :  { %v1032_v19 = vadd.f32 %v1031_v40, %v1030_v9 }
  0x75   :  { %v1034_v10 = vadd.f32 %v1661_v7, %v1032_v19 }
  0x77   :  { %v1036_v42 = vadd.f32 %v1665_v13, %v1034_v10 }
  0x79   :  { %v1038_v25 = vadd.f32 %v1668_v2, %v1036_v42 }
  0x7b   :  { %v1040_v58 = vadd.f32 %v1672_v34, %v1038_v25 }
  0x7d   :  { %v1042_v62 = vadd.f32 %v1675_v50, %v1040_v58 }
  0x7f   :  { %v1044_v0 = vadd.f32 %v1679_v17, %v1042_v62 }
  0x81   :  { %v1046_v56 = vadd.f32 %v1682_v22, %v1044_v0 }
  0x83   :  { %v1048_v30 = vadd.f32 %v1686_v14, %v1046_v56 }
  0x85   :  { %v1050_v51 = vadd.f32 %v1689_v44, %v1048_v30 }
  0x87   :  { %v1052_v11 = vadd.f32 %v1693_v46, %v1050_v51 }
  0x89   :  { %v1054_v7 = vadd.f32 %v1696_v59, %v1052_v11 }
  0x8b   :  { %v1056_v13 = vadd.f32 %v1700_v43, %v1054_v7 }
  0x8d   :  { %v1058_v2 = vadd.f32 %v1703_v31, %v1056_v13 }
  0x8f   :  { %v1060_v34 = vadd.f32 %v1707_v26, %v1058_v2 }
  0x91   :  { %v1062_v50 = vadd.f32 %v1710_v57, %v1060_v34 }
  0x93   :  { %v1064_v17 = vadd.f32 %v1714_v48, %v1062_v50 }
  0x95   :  { %v1066_v22 = vadd.f32 %v1717_v21, %v1064_v17 }
  0x97   :  { %v1068_v14 = vadd.f32 %v1721_v63, %v1066_v22 }
  0x99   :  { %v1070_v44 = vadd.f32 %v1724_v49, %v1068_v14 }
  0x9b   :  { %v1072_v46 = vadd.f32 %v1728_v53, %v1070_v44 }
  0x9d   :  { %v1074_v59 = vadd.f32 %v1731_v27, %v1072_v46 }
  0x9f   :  { %v1076_v43 = vadd.f32 %v1735_v35, %v1074_v59  ;;  %v1098_v35 = vstv %s1881_s2 }
  0xa1   :  { %v1078_v31 = vadd.f32 %v1738_v16, %v1076_v43 }
  0xa3   :  { %v1080_v26 = vadd.f32 %v1742_v39, %v1078_v31 }
  0xa5   :  { %v1082_v57 = vadd.f32 %v1745_v1, %v1080_v26 }
  0xa7   :  { %v1084_v48 = vadd.f32 %v1749_v55, %v1082_v57 }
  0xa9   :  { %v1086_v21 = vadd.f32 %v1752_v60, %v1084_v48 }
  0xab   :  { %v1088_v63 = vadd.f32 %v1756_v15, %v1086_v21 }
  0xad   :  { %v1090_v49 = vadd.f32 %v1759_v45, %v1088_v63 }
  0xaf   :  { %v1092_v53 = vadd.f32 %v1763_v41, %v1090_v49 }
  0xb1   :  { %v1094_v27 = vadd.f32 %v1766_v23, %v1092_v53 }
  0xb3   :  { %1095 = vadd.xlane.f32.xlu0 %v1094_v27 }
 0x13c   :  { %v1096_v16 = vpop.xlane.xlu0 %1095 }
 0x13d   :  { %v1099_v39 = vadd.f32 %v1098_v35, %v1096_v16 }
 0x13f   :  { %v1112_v1 = vmul.f32 -1.442695, %v1099_v39 }
 0x141   :  { %1114 = vpow2.f32 %v1112_v1 }
 0x14e   :  { %v1115_v55 = vpop.eup %1114 }
 0x14f   :  { %v1103_v36 = vadd.f32 1.0, %v1115_v55 }
 0x151   :  { %1116 = vrcp.f32 %v1103_v36 }
 0x15e   :  { %v1117_v60 = vpop.eup %1116 }
 0x15f   :  { %1107 = vst.msk [vmem:[%s1882_s3] sm:$0x3] %vm1106_vm1, %v1117_v60 }

// kernel: discriminator_forward.8
= control target key start
LH: loop header
LB: loop body
LE: loop exit
PB: predicated region body
PF: predicated region fallthrough
CT: control target
= control target key end

     0   :  { %s13774_s1 = inlined_call_operand.vmem [shape: bf16[4096,512], index: 1, kind: input, shape index: {}]   ;;  %s13775_s0 = inlined_call_operand.vmem [shape: bf16[8,4096], index: 0, kind: input, shape index: {}]   ;;  %s13776_s2 = inlined_call_operand.vmem [shape: bf16[8,512], index: 2, kind: output, shape index: {}]  }
   0x1   :  { %v8766_v0 = vld [vmem:[%s13774_s1 + $0xe4] ss:$16 sps:$4 sm:$0xff]   ;;  %v8770_v2 = vld [vmem:[%s13774_s1 + $0xe0] ss:$16 sps:$4 sm:$0xff]   ;;  %v12_v48 = vld [vmem:[%s13775_s0 + $0x8] sm:$0xff] }
   0x2   :  { %v8768_v1 = vld [vmem:[%s13774_s1 + $0x2e4] ss:$16 sps:$4 sm:$0xff]   ;;  %6283 = vmatprep.subr.bf16.mxu0 %v8766_v0  ;;  %v8771_v3 = vld [vmem:[%s13774_s1 + $0x2e0] ss:$16 sps:$4 sm:$0xff]   ;;  %v10509_v51 = vcombine.high %v12_v48, %v12_v48 }
   0x3   :  { %6324 = vmatprep.subr.bf16.mxu1 %v8768_v1  ;;  %v8772_v4 = vld [vmem:[%s13774_s1 + $0xc4] ss:$16 sps:$4 sm:$0xff]   ;;  %6284 = vmatpush1.bf16.msra.mxu0 %v8770_v2  ;;  %v8776_v6 = vld [vmem:[%s13774_s1 + $0xc0] ss:$16 sps:$4 sm:$0xff]  }
   0x4   :  { %6325 = vmatpush1.bf16.msra.mxu1 %v8771_v3  ;;  %v8774_v5 = vld [vmem:[%s13774_s1 + $0x2c4] ss:$16 sps:$4 sm:$0xff]   ;;  %6285 = vmatprep.subr.bf16.mxu0 %v8772_v4  ;;  %v8777_v7 = vld [vmem:[%s13774_s1 + $0x2c0] ss:$16 sps:$4 sm:$0xff]  }
   0x5   :  { %6326 = vmatprep.subr.bf16.mxu1 %v8774_v5  ;;  %v8778_v8 = vld [vmem:[%s13774_s1 + $0xa4] ss:$16 sps:$4 sm:$0xff]   ;;  %v8782_v10 = vld [vmem:[%s13774_s1 + $0xa0] ss:$16 sps:$4 sm:$0xff]   ;;  %6356 = vmatprep.mubr.bf16.mxu1 %v10509_v51 }
   0x6   :  { %v8780_v9 = vld [vmem:[%s13774_s1 + $0x2a4] ss:$16 sps:$4 sm:$0xff]   ;;  %v8783_v11 = vld [vmem:[%s13774_s1 + $0x2a0] ss:$16 sps:$4 sm:$0xff]  }
   0x7   :  { %6286 = vmatpush1.bf16.msra.mxu0 %v8776_v6  ;;  %v8784_v12 = vld [vmem:[%s13774_s1 + $0x84] ss:$16 sps:$4 sm:$0xff]   ;;  %v8788_v14 = vld [vmem:[%s13774_s1 + $0x80] ss:$16 sps:$4 sm:$0xff]  }
   0x8   :  { %6327 = vmatpush1.bf16.msra.mxu1 %v8777_v7  ;;  %6287 = vmatprep.subr.bf16.mxu0 %v8778_v8  ;;  %v8786_v13 = vld [vmem:[%s13774_s1 + $0x284] ss:$16 sps:$4 sm:$0xff]   ;;  %v8789_v15 = vld [vmem:[%s13774_s1 + $0x280] ss:$16 sps:$4 sm:$0xff]   ;;  %v10569_v7 = vcombine.low %v12_v48, %v12_v48 }
   0x9   :  { %6328 = vmatprep.subr.bf16.mxu1 %v8780_v9  ;;  %v8790_v16 = vld [vmem:[%s13774_s1 + $0x64] ss:$16 sps:$4 sm:$0xff]   ;;  %v8794_v18 = vld [vmem:[%s13774_s1 + $0x60] ss:$16 sps:$4 sm:$0xff]  }
   0xa   :  { %v8792_v17 = vld [vmem:[%s13774_s1 + $0x264] ss:$16 sps:$4 sm:$0xff]   ;;  %v8795_v19 = vld [vmem:[%s13774_s1 + $0x260] ss:$16 sps:$4 sm:$0xff]  }
   0xb   :  { %6288 = vmatpush1.bf16.msra.mxu0 %v8782_v10  ;;  %v8796_v20 = vld [vmem:[%s13774_s1 + $0x44] ss:$16 sps:$4 sm:$0xff]   ;;  %v8800_v22 = vld [vmem:[%s13774_s1 + $0x40] ss:$16 sps:$4 sm:$0xff]  }
   0xc   :  { %6329 = vmatpush1.bf16.msra.mxu1 %v8783_v11  ;;  %6289 = vmatprep.subr.bf16.mxu0 %v8784_v12  ;;  %v8798_v21 = vld [vmem:[%s13774_s1 + $0x244] ss:$16 sps:$4 sm:$0xff]   ;;  %v8801_v23 = vld [vmem:[%s13774_s1 + $0x240] ss:$16 sps:$4 sm:$0xff]  }
   0xd   :  { %6330 = vmatprep.subr.bf16.mxu1 %v8786_v13  ;;  %v8802_v24 = vld [vmem:[%s13774_s1 + $0x24] ss:$16 sps:$4 sm:$0xff]   ;;  %v8806_v26 = vld [vmem:[%s13774_s1 + $0x20] ss:$16 sps:$4 sm:$0xff]  }
   0xe   :  { %v8804_v25 = vld [vmem:[%s13774_s1 + $0x224] ss:$16 sps:$4 sm:$0xff]   ;;  %v8807_v27 = vld [vmem:[%s13774_s1 + $0x220] ss:$16 sps:$4 sm:$0xff]  }
   0xf   :  { %6290 = vmatpush1.bf16.msra.mxu0 %v8788_v14  ;;  %v8808_v28 = vld [vmem:[%s13774_s1 + $0x4] ss:$16 sps:$4 sm:$0xff]   ;;  %v8812_v30 = vld [vmem:[%s13774_s1] ss:$16 sps:$4 sm:$0xff]  }
  0x10   :  { %6331 = vmatpush1.bf16.msra.mxu1 %v8789_v15  ;;  %6291 = vmatprep.subr.bf16.mxu0 %v8790_v16  ;;  %v8810_v29 = vld [vmem:[%s13774_s1 + $0x204] ss:$16 sps:$4 sm:$0xff]   ;;  %v8813_v31 = vld [vmem:[%s13774_s1 + $0x200] ss:$16 sps:$4 sm:$0xff]  }
  0x11   :  { %6332 = vmatprep.subr.bf16.mxu1 %v8792_v17  ;;  %v8814_v32 = vld [vmem:[%s13774_s1 + $0x1e4] ss:$16 sps:$4 sm:$0xff]   ;;  %v8818_v34 = vld [vmem:[%s13774_s1 + $0x1e0] ss:$16 sps:$4 sm:$0xff]  }
  0x12   :  { %v8816_v33 = vld [vmem:[%s13774_s1 + $0x3e4] ss:$16 sps:$4 sm:$0xff]   ;;  %v8819_v35 = vld [vmem:[%s13774_s1 + $0x3e0] ss:$16 sps:$4 sm:$0xff]  }
  0x13   :  { %6292 = vmatpush1.bf16.msra.mxu0 %v8794_v18  ;;  %v8820_v36 = vld [vmem:[%s13774_s1 + $0x1c4] ss:$16 sps:$4 sm:$0xff]   ;;  %v8824_v38 = vld [vmem:[%s13774_s1 + $0x1c0] ss:$16 sps:$4 sm:$0xff]  }
  0x14   :  { %6333 = vmatpush1.bf16.msra.mxu1 %v8795_v19  ;;  %6293 = vmatprep.subr.bf16.mxu0 %v8796_v20  ;;  %v8822_v37 = vld [vmem:[%s13774_s1 + $0x3c4] ss:$16 sps:$4 sm:$0xff]   ;;  %v8825_v39 = vld [vmem:[%s13774_s1 + $0x3c0] ss:$16 sps:$4 sm:$0xff]  }
  0x15   :  { %6334 = vmatprep.subr.bf16.mxu1 %v8798_v21  ;;  %v8826_v40 = vld [vmem:[%s13774_s1 + $0x1a4] ss:$16 sps:$4 sm:$0xff]   ;;  %v8830_v42 = vld [vmem:[%s13774_s1 + $0x1a0] ss:$16 sps:$4 sm:$0xff]  }
  0x16   :  { %v8828_v41 = vld [vmem:[%s13774_s1 + $0x3a4] ss:$16 sps:$4 sm:$0xff]   ;;  %v8831_v43 = vld [vmem:[%s13774_s1 + $0x3a0] ss:$16 sps:$4 sm:$0xff]  }
  0x17   :  { %6294 = vmatpush1.bf16.msra.mxu0 %v8800_v22  ;;  %v8832_v44 = vld [vmem:[%s13774_s1 + $0x184] ss:$16 sps:$4 sm:$0xff]   ;;  %v8836_v49 = vld [vmem:[%s13774_s1 + $0x180] ss:$16 sps:$4 sm:$0xff]  }
  0x18   :  { %6335 = vmatpush1.bf16.msra.mxu1 %v8801_v23  ;;  %6295 = vmatprep.subr.bf16.mxu0 %v8802_v24  ;;  %v8834_v45 = vld [vmem:[%s13774_s1 + $0x384] ss:$16 sps:$4 sm:$0xff]   ;;  %v8837_v50 = vld [vmem:[%s13774_s1 + $0x380] ss:$16 sps:$4 sm:$0xff]  }
  0x19   :  { %6336 = vmatprep.subr.bf16.mxu1 %v8804_v25  ;;  %v11_v46 = vld [vmem:[%s13775_s0] sm:$0xff] }
  0x1a   :  { %v10498_v47 = vcombine.high %v11_v46, %v11_v46  ;;  %v8838_v52 = vld [vmem:[%s13774_s1 + $0x164] ss:$16 sps:$4 sm:$0xff]   ;;  %v8842_v54 = vld [vmem:[%s13774_s1 + $0x160] ss:$16 sps:$4 sm:$0xff]   ;;  %v10567_v6 = vcombine.low %v11_v46, %v11_v46 }
  0x1b   :  { %6296 = vmatpush1.bf16.msra.mxu0 %v8806_v26  ;;  %v8840_v53 = vld [vmem:[%s13774_s1 + $0x364] ss:$16 sps:$4 sm:$0xff]   ;;  %v8843_v55 = vld [vmem:[%s13774_s1 + $0x360] ss:$16 sps:$4 sm:$0xff]  }
  0x1c   :  { %6337 = vmatpush1.bf16.msra.mxu1 %v8807_v27  ;;  %6297 = vmatprep.subr.bf16.mxu0 %v8808_v28  ;;  %v8844_v56 = vld [vmem:[%s13774_s1 + $0x144] ss:$16 sps:$4 sm:$0xff]   ;;  %v8848_v58 = vld [vmem:[%s13774_s1 + $0x140] ss:$16 sps:$4 sm:$0xff]  }
  0x1d   :  { %6338 = vmatprep.subr.bf16.mxu1 %v8810_v29  ;;  %6315 = vmatprep.mubr.bf16.mxu0 %v10498_v47  ;;  %v8846_v57 = vld [vmem:[%s13774_s1 + $0x344] ss:$16 sps:$4 sm:$0xff]   ;;  %v8849_v59 = vld [vmem:[%s13774_s1 + $0x340] ss:$16 sps:$4 sm:$0xff]  }
  0x1e   :  { %v8850_v60 = vld [vmem:[%s13774_s1 + $0x124] ss:$16 sps:$4 sm:$0xff]   ;;  %v8854_v62 = vld [vmem:[%s13774_s1 + $0x120] ss:$16 sps:$4 sm:$0xff]  }
  0x1f   :  { %6298 = vmatpush1.bf16.msra.mxu0 %v8812_v30  ;;  %v8852_v61 = vld [vmem:[%s13774_s1 + $0x324] ss:$16 sps:$4 sm:$0xff]   ;;  %v8855_v63 = vld [vmem:[%s13774_s1 + $0x320] ss:$16 sps:$4 sm:$0xff]  }
  0x20   :  { %6339 = vmatpush1.bf16.msra.mxu1 %v8813_v31  ;;  %6299 = vmatprep.subr.bf16.mxu0 %v8814_v32  ;;  %v8856_v0 = vld [vmem:[%s13774_s1 + $0x104] ss:$16 sps:$4 sm:$0xff]   ;;  %v8860_v2 = vld [vmem:[%s13774_s1 + $0x100] ss:$16 sps:$4 sm:$0xff]  }
  0x21   :  { %6340 = vmatprep.subr.bf16.mxu1 %v8816_v33  ;;  %v8858_v1 = vld [vmem:[%s13774_s1 + $0x304] ss:$16 sps:$4 sm:$0xff]   ;;  %v8861_v3 = vld [vmem:[%s13774_s1 + $0x300] ss:$16 sps:$4 sm:$0xff]   ;;  %v10653_v33 = vld [vmem:[%s13775_s0 + $0x18] sm:$0xff] }
  0x22   :  { %v8868_v4 = vld [vmem:[%s13774_s1 + $0x4e4] ss:$16 sps:$4 sm:$0xff]   ;;  %v8866_v8 = vld [vmem:[%s13774_s1 + $0x4e0] ss:$16 sps:$4 sm:$0xff]  }
  0x23   :  { %6300 = vmatpush2.bf16.msra.mxu0 %v8818_v34  ;;  %v8871_v5 = vld [vmem:[%s13774_s1 + $0x6e4] ss:$16 sps:$4 sm:$0xff]   ;;  %v8869_v9 = vld [vmem:[%s13774_s1 + $0x6e0] ss:$16 sps:$4 sm:$0xff]  }
  0x24   :  { %6341 = vmatpush2.bf16.msra.mxu1 %v8819_v35  ;;  %6301 = vmatprep.subr.bf16.mxu0 %v8820_v36  ;;  %v8874_v10 = vld [vmem:[%s13774_s1 + $0x4c4] ss:$16 sps:$4 sm:$0xff]   ;;  %v8872_v12 = vld [vmem:[%s13774_s1 + $0x4c0] ss:$16 sps:$4 sm:$0xff]  }
  0x25   :  { %6342 = vmatprep.subr.bf16.mxu1 %v8822_v37  ;;  %v8877_v11 = vld [vmem:[%s13774_s1 + $0x6c4] ss:$16 sps:$4 sm:$0xff]   ;;  %v8875_v13 = vld [vmem:[%s13774_s1 + $0x6c0] ss:$16 sps:$4 sm:$0xff]   ;;  %v10667_v37 = vcombine.high %v10653_v33, %v10653_v33 }
  0x26   :  { %v8880_v14 = vld [vmem:[%s13774_s1 + $0x4a4] ss:$16 sps:$4 sm:$0xff]   ;;  %v8878_v16 = vld [vmem:[%s13774_s1 + $0x4a0] ss:$16 sps:$4 sm:$0xff]  }
  0x27   :  { %6302 = vmatpush2.bf16.msra.mxu0 %v8824_v38  ;;  %v8883_v15 = vld [vmem:[%s13774_s1 + $0x6a4] ss:$16 sps:$4 sm:$0xff]   ;;  %v8881_v17 = vld [vmem:[%s13774_s1 + $0x6a0] ss:$16 sps:$4 sm:$0xff]  }
  0x28   :  { %6343 = vmatpush2.bf16.msra.mxu1 %v8825_v39  ;;  %6303 = vmatprep.subr.bf16.mxu0 %v8826_v40  ;;  %v8886_v18 = vld [vmem:[%s13774_s1 + $0x484] ss:$16 sps:$4 sm:$0xff]   ;;  %v8884_v20 = vld [vmem:[%s13774_s1 + $0x480] ss:$16 sps:$4 sm:$0xff]  }
  0x29   :  { %6344 = vmatprep.subr.bf16.mxu1 %v8828_v41  ;;  %v8889_v19 = vld [vmem:[%s13774_s1 + $0x684] ss:$16 sps:$4 sm:$0xff]   ;;  %v8887_v21 = vld [vmem:[%s13774_s1 + $0x680] ss:$16 sps:$4 sm:$0xff]  }
  0x2a   :  { %v8892_v22 = vld [vmem:[%s13774_s1 + $0x464] ss:$16 sps:$4 sm:$0xff]   ;;  %v8890_v24 = vld [vmem:[%s13774_s1 + $0x460] ss:$16 sps:$4 sm:$0xff]  }
  0x2b   :  { %6304 = vmatpush2.bf16.msra.mxu0 %v8830_v42  ;;  %v8895_v23 = vld [vmem:[%s13774_s1 + $0x664] ss:$16 sps:$4 sm:$0xff]   ;;  %v8893_v25 = vld [vmem:[%s13774_s1 + $0x660] ss:$16 sps:$4 sm:$0xff]  }
  0x2c   :  { %6345 = vmatpush2.bf16.msra.mxu1 %v8831_v43  ;;  %6305 = vmatprep.subr.bf16.mxu0 %v8832_v44  ;;  %v8898_v26 = vld [vmem:[%s13774_s1 + $0x444] ss:$16 sps:$4 sm:$0xff]   ;;  %v8896_v28 = vld [vmem:[%s13774_s1 + $0x440] ss:$16 sps:$4 sm:$0xff]  }
  0x2d   :  { %6346 = vmatprep.subr.bf16.mxu1 %v8834_v45  ;;  %v8901_v27 = vld [vmem:[%s13774_s1 + $0x644] ss:$16 sps:$4 sm:$0xff]   ;;  %v8899_v29 = vld [vmem:[%s13774_s1 + $0x640] ss:$16 sps:$4 sm:$0xff]  }
  0x2e   :  { %v8904_v30 = vld [vmem:[%s13774_s1 + $0x424] ss:$16 sps:$4 sm:$0xff]   ;;  %v8902_v34 = vld [vmem:[%s13774_s1 + $0x420] ss:$16 sps:$4 sm:$0xff]  }
  0x2f   :  { %6306 = vmatpush2.bf16.msra.mxu0 %v8836_v49  ;;  %v8907_v31 = vld [vmem:[%s13774_s1 + $0x624] ss:$16 sps:$4 sm:$0xff]   ;;  %v8905_v35 = vld [vmem:[%s13774_s1 + $0x620] ss:$16 sps:$4 sm:$0xff]  }
  0x30   :  { %6347 = vmatpush2.bf16.msra.mxu1 %v8837_v50  ;;  %6307 = vmatprep.subr.bf16.mxu0 %v8838_v52  ;;  %v10648_v32 = vld [vmem:[%s13775_s0 + $0x10] sm:$0xff] }
  0x31   :  { %6348 = vmatprep.subr.bf16.mxu1 %v8840_v53  ;;  %v10663_v36 = vcombine.high %v10648_v32, %v10648_v32  ;;  %v8910_v38 = vld [vmem:[%s13774_s1 + $0x404] ss:$16 sps:$4 sm:$0xff]   ;;  %v8908_v40 = vld [vmem:[%s13774_s1 + $0x400] ss:$16 sps:$4 sm:$0xff]  }
  0x32   :  { %v8913_v39 = vld [vmem:[%s13774_s1 + $0x604] ss:$16 sps:$4 sm:$0xff]   ;;  %v8911_v41 = vld [vmem:[%s13774_s1 + $0x600] ss:$16 sps:$4 sm:$0xff]  }
  0x33   :  { %6308 = vmatpush2.bf16.msra.mxu0 %v8842_v54  ;;  %v8916_v42 = vld [vmem:[%s13774_s1 + $0x5e4] ss:$16 sps:$4 sm:$0xff]   ;;  %v8914_v44 = vld [vmem:[%s13774_s1 + $0x5e0] ss:$16 sps:$4 sm:$0xff]  }
  0x34   :  { %6349 = vmatpush2.bf16.msra.mxu1 %v8843_v55  ;;  %6309 = vmatprep.subr.bf16.mxu0 %v8844_v56  ;;  %v8919_v43 = vld [vmem:[%s13774_s1 + $0x7e4] ss:$16 sps:$4 sm:$0xff]   ;;  %v8917_v45 = vld [vmem:[%s13774_s1 + $0x7e0] ss:$16 sps:$4 sm:$0xff]  }
  0x35   :  { %6350 = vmatprep.subr.bf16.mxu1 %v8846_v57  ;;  %v8922_v46 = vld [vmem:[%s13774_s1 + $0x5c4] ss:$16 sps:$4 sm:$0xff]   ;;  %v8920_v49 = vld [vmem:[%s13774_s1 + $0x5c0] ss:$16 sps:$4 sm:$0xff]  }
  0x36   :  { %v8925_v48 = vld [vmem:[%s13774_s1 + $0x7c4] ss:$16 sps:$4 sm:$0xff]   ;;  %v8923_v50 = vld [vmem:[%s13774_s1 + $0x7c0] ss:$16 sps:$4 sm:$0xff]  }
  0x37   :  { %6310 = vmatpush2.bf16.msra.mxu0 %v8848_v58  ;;  %v8928_v52 = vld [vmem:[%s13774_s1 + $0x5a4] ss:$16 sps:$4 sm:$0xff]   ;;  %v8926_v54 = vld [vmem:[%s13774_s1 + $0x5a0] ss:$16 sps:$4 sm:$0xff]  }
  0x38   :  { %6351 = vmatpush2.bf16.msra.mxu1 %v8849_v59  ;;  %6311 = vmatprep.subr.bf16.mxu0 %v8850_v60  ;;  %v8931_v53 = vld [vmem:[%s13774_s1 + $0x7a4] ss:$16 sps:$4 sm:$0xff]   ;;  %v8929_v55 = vld [vmem:[%s13774_s1 + $0x7a0] ss:$16 sps:$4 sm:$0xff]  }
  0x39   :  { %6352 = vmatprep.subr.bf16.mxu1 %v8852_v61  ;;  %v8934_v56 = vld [vmem:[%s13774_s1 + $0x584] ss:$16 sps:$4 sm:$0xff]   ;;  %v8932_v58 = vld [vmem:[%s13774_s1 + $0x580] ss:$16 sps:$4 sm:$0xff]  }
  0x3a   :  { %v8937_v57 = vld [vmem:[%s13774_s1 + $0x784] ss:$16 sps:$4 sm:$0xff]   ;;  %v8935_v59 = vld [vmem:[%s13774_s1 + $0x780] ss:$16 sps:$4 sm:$0xff]  }
  0x3b   :  { %6312 = vmatpush2.bf16.msra.mxu0 %v8854_v62  ;;  %v8940_v60 = vld [vmem:[%s13774_s1 + $0x564] ss:$16 sps:$4 sm:$0xff]   ;;  %v8938_v62 = vld [vmem:[%s13774_s1 + $0x560] ss:$16 sps:$4 sm:$0xff]  }
  0x3c   :  { %6353 = vmatpush2.bf16.msra.mxu1 %v8855_v63  ;;  %6313 = vmatprep.subr.bf16.mxu0 %v8856_v0  ;;  %v8943_v61 = vld [vmem:[%s13774_s1 + $0x764] ss:$16 sps:$4 sm:$0xff]   ;;  %v8941_v63 = vld [vmem:[%s13774_s1 + $0x760] ss:$16 sps:$4 sm:$0xff]  }
  0x3d   :  { %6354 = vmatprep.subr.bf16.mxu1 %v8858_v1  ;;  %v8946_v0 = vld [vmem:[%s13774_s1 + $0x544] ss:$16 sps:$4 sm:$0xff]  }
  0x3e   :  { %v8949_v1 = vld [vmem:[%s13774_s1 + $0x744] ss:$16 sps:$4 sm:$0xff]  }
  0x3f   :  { %6314 = vmatpush2.bf16.msra.mxu0 %v8860_v2  ;;  %v8944_v2 = vld [vmem:[%s13774_s1 + $0x540] ss:$16 sps:$4 sm:$0xff]  }
  0x40   :  { %6355 = vmatpush2.bf16.msra.mxu1 %v8861_v3  ;;  %6365 = vmatprep.subr.bf16.mxu0 %v8868_v4  ;;  %v8947_v3 = vld [vmem:[%s13774_s1 + $0x740] ss:$16 sps:$4 sm:$0xff]   ;;  %v8952_v4 = vld [vmem:[%s13774_s1 + $0x524] ss:$16 sps:$4 sm:$0xff]  }
  0x41   :  { %6406 = vmatprep.subr.bf16.mxu1 %v8871_v5  ;;  %v8955_v5 = vld [vmem:[%s13774_s1 + $0x724] ss:$16 sps:$4 sm:$0xff]  }
  0x42   :  { %6316 = vmatmul.mubr.bf16.vlgmr.msra.gmra.mxu0 %v10567_v6 }
  0x43   :  { %6357 = vmatmul.mubr.bf16.vlgmr.msra.gmra.mxu1 %v10569_v7  ;;  %6366 = vmatpush1.bf16.msra.mxu0 %v8866_v8  ;;  %v8950_v8 = vld [vmem:[%s13774_s1 + $0x520] ss:$16 sps:$4 sm:$0xff]  }
  0x44   :  { %6407 = vmatpush1.bf16.msra.mxu1 %v8869_v9  ;;  %6367 = vmatprep.subr.bf16.mxu0 %v8874_v10  ;;  %v8953_v9 = vld [vmem:[%s13774_s1 + $0x720] ss:$16 sps:$4 sm:$0xff]   ;;  %v8958_v10 = vld [vmem:[%s13774_s1 + $0x504] ss:$16 sps:$4 sm:$0xff]  }
  0x45   :  { %6408 = vmatprep.subr.bf16.mxu1 %v8877_v11  ;;  %6397 = vmatprep.mubr.bf16.mxu0 %v10663_v36  ;;  %v8961_v11 = vld [vmem:[%s13774_s1 + $0x704] ss:$16 sps:$4 sm:$0xff]  }
  0x46   :  { %6438 = vmatprep.mubr.bf16.mxu1 %v10667_v37 }
  0x47   :  { %6368 = vmatpush1.bf16.msra.mxu0 %v8872_v12  ;;  %v8956_v12 = vld [vmem:[%s13774_s1 + $0x500] ss:$16 sps:$4 sm:$0xff]  }
  0x48   :  { %6409 = vmatpush1.bf16.msra.mxu1 %v8875_v13  ;;  %6369 = vmatprep.subr.bf16.mxu0 %v8880_v14  ;;  %v8959_v13 = vld [vmem:[%s13774_s1 + $0x700] ss:$16 sps:$4 sm:$0xff]   ;;  %v8968_v14 = vld [vmem:[%s13774_s1 + $0x8e4] ss:$16 sps:$4 sm:$0xff]  }
  0x49   :  { %6410 = vmatprep.subr.bf16.mxu1 %v8883_v15  ;;  %v8971_v15 = vld [vmem:[%s13774_s1 + $0xae4] ss:$16 sps:$4 sm:$0xff]  }
  0x4b   :  { %6370 = vmatpush1.bf16.msra.mxu0 %v8878_v16  ;;  %v10787_v16 = vcombine.low %v10648_v32, %v10648_v32  ;;  %v8986_v32 = vld [vmem:[%s13774_s1 + $0x884] ss:$16 sps:$4 sm:$0xff]  }
  0x4c   :  { %6411 = vmatpush1.bf16.msra.mxu1 %v8881_v17  ;;  %6371 = vmatprep.subr.bf16.mxu0 %v8886_v18  ;;  %v10791_v17 = vcombine.low %v10653_v33, %v10653_v33  ;;  %v8966_v18 = vld [vmem:[%s13774_s1 + $0x8e0] ss:$16 sps:$4 sm:$0xff]   ;;  %v8989_v33 = vld [vmem:[%s13774_s1 + $0xa84] ss:$16 sps:$4 sm:$0xff]  }
  0x4d   :  { %6412 = vmatprep.subr.bf16.mxu1 %v8889_v19  ;;  %v8969_v19 = vld [vmem:[%s13774_s1 + $0xae0] ss:$16 sps:$4 sm:$0xff]  }
  0x4f   :  { %6372 = vmatpush1.bf16.msra.mxu0 %v8884_v20  ;;  %v8974_v20 = vld [vmem:[%s13774_s1 + $0x8c4] ss:$16 sps:$4 sm:$0xff]  }
  0x50   :  { %6413 = vmatpush1.bf16.msra.mxu1 %v8887_v21  ;;  %6373 = vmatprep.subr.bf16.mxu0 %v8892_v22  ;;  %v8977_v21 = vld [vmem:[%s13774_s1 + $0xac4] ss:$16 sps:$4 sm:$0xff]  }
  0x51   :  { %6414 = vmatprep.subr.bf16.mxu1 %v8895_v23  ;;  %v10808_v22 = vld [vmem:[%s13775_s0 + $0x20] sm:$0xff]  ;;  %v10813_v23 = vld [vmem:[%s13775_s0 + $0x28] sm:$0xff] }
  0x53   :  { %6374 = vmatpush1.bf16.msra.mxu0 %v8890_v24  ;;  %v10817_v24 = vcombine.high %v10808_v22, %v10808_v22 }
  0x54   :  { %6415 = vmatpush1.bf16.msra.mxu1 %v8893_v25  ;;  %6375 = vmatprep.subr.bf16.mxu0 %v8898_v26  ;;  %v10821_v25 = vcombine.high %v10813_v23, %v10813_v23  ;;  %v8972_v26 = vld [vmem:[%s13774_s1 + $0x8c0] ss:$16 sps:$4 sm:$0xff]  }
  0x55   :  { %6416 = vmatprep.subr.bf16.mxu1 %v8901_v27  ;;  %v8975_v27 = vld [vmem:[%s13774_s1 + $0xac0] ss:$16 sps:$4 sm:$0xff]  }
  0x57   :  { %6376 = vmatpush1.bf16.msra.mxu0 %v8896_v28  ;;  %v8980_v28 = vld [vmem:[%s13774_s1 + $0x8a4] ss:$16 sps:$4 sm:$0xff]  }
  0x58   :  { %6417 = vmatpush1.bf16.msra.mxu1 %v8899_v29  ;;  %6377 = vmatprep.subr.bf16.mxu0 %v8904_v30  ;;  %v8983_v29 = vld [vmem:[%s13774_s1 + $0xaa4] ss:$16 sps:$4 sm:$0xff]   ;;  %v8978_v30 = vld [vmem:[%s13774_s1 + $0x8a0] ss:$16 sps:$4 sm:$0xff]  }
  0x59   :  { %6418 = vmatprep.subr.bf16.mxu1 %v8907_v31  ;;  %v8981_v31 = vld [vmem:[%s13774_s1 + $0xaa0] ss:$16 sps:$4 sm:$0xff]  }
  0x5b   :  { %6378 = vmatpush1.bf16.msra.mxu0 %v8902_v34  ;;  %v8984_v34 = vld [vmem:[%s13774_s1 + $0x880] ss:$16 sps:$4 sm:$0xff]  }
  0x5c   :  { %6419 = vmatpush1.bf16.msra.mxu1 %v8905_v35  ;;  %6379 = vmatprep.subr.bf16.mxu0 %v8910_v38  ;;  %v8987_v35 = vld [vmem:[%s13774_s1 + $0xa80] ss:$16 sps:$4 sm:$0xff]   ;;  %v8992_v38 = vld [vmem:[%s13774_s1 + $0x864] ss:$16 sps:$4 sm:$0xff]  }
  0x5d   :  { %6420 = vmatprep.subr.bf16.mxu1 %v8913_v39  ;;  %v8995_v39 = vld [vmem:[%s13774_s1 + $0xa64] ss:$16 sps:$4 sm:$0xff]  }
  0x5f   :  { %6380 = vmatpush1.bf16.msra.mxu0 %v8908_v40  ;;  %v8990_v40 = vld [vmem:[%s13774_s1 + $0x860] ss:$16 sps:$4 sm:$0xff]  }
  0x60   :  { %6421 = vmatpush1.bf16.msra.mxu1 %v8911_v41  ;;  %6381 = vmatprep.subr.bf16.mxu0 %v8916_v42  ;;  %v8993_v41 = vld [vmem:[%s13774_s1 + $0xa60] ss:$16 sps:$4 sm:$0xff]   ;;  %v8998_v42 = vld [vmem:[%s13774_s1 + $0x844] ss:$16 sps:$4 sm:$0xff]  }
  0x61   :  { %6422 = vmatprep.subr.bf16.mxu1 %v8919_v43  ;;  %v9001_v43 = vld [vmem:[%s13774_s1 + $0xa44] ss:$16 sps:$4 sm:$0xff]  }
  0x63   :  { %6382 = vmatpush2.bf16.msra.mxu0 %v8914_v44  ;;  %v8996_v44 = vld [vmem:[%s13774_s1 + $0x840] ss:$16 sps:$4 sm:$0xff]  }
  0x64   :  { %6423 = vmatpush2.bf16.msra.mxu1 %v8917_v45  ;;  %6383 = vmatprep.subr.bf16.mxu0 %v8922_v46  ;;  %v8999_v45 = vld [vmem:[%s13774_s1 + $0xa40] ss:$16 sps:$4 sm:$0xff]   ;;  %v9004_v46 = vld [vmem:[%s13774_s1 + $0x824] ss:$16 sps:$4 sm:$0xff]  }
  0x65   :  { %6424 = vmatprep.subr.bf16.mxu1 %v8925_v48  ;;  %v9007_v48 = vld [vmem:[%s13774_s1 + $0xa24] ss:$16 sps:$4 sm:$0xff]  }
  0x67   :  { %6384 = vmatpush2.bf16.msra.mxu0 %v8920_v49  ;;  %v9002_v49 = vld [vmem:[%s13774_s1 + $0x820] ss:$16 sps:$4 sm:$0xff]  }
  0x68   :  { %6425 = vmatpush2.bf16.msra.mxu1 %v8923_v50  ;;  %6385 = vmatprep.subr.bf16.mxu0 %v8928_v52  ;;  %v9005_v50 = vld [vmem:[%s13774_s1 + $0xa20] ss:$16 sps:$4 sm:$0xff]   ;;  %v9010_v52 = vld [vmem:[%s13774_s1 + $0x804] ss:$16 sps:$4 sm:$0xff]  }
  0x69   :  { %6426 = vmatprep.subr.bf16.mxu1 %v8931_v53  ;;  %v9013_v53 = vld [vmem:[%s13774_s1 + $0xa04] ss:$16 sps:$4 sm:$0xff]  }
  0x6b   :  { %6386 = vmatpush2.bf16.msra.mxu0 %v8926_v54  ;;  %v9008_v54 = vld [vmem:[%s13774_s1 + $0x800] ss:$16 sps:$4 sm:$0xff]  }
  0x6c   :  { %6427 = vmatpush2.bf16.msra.mxu1 %v8929_v55  ;;  %6387 = vmatprep.subr.bf16.mxu0 %v8934_v56  ;;  %v9011_v55 = vld [vmem:[%s13774_s1 + $0xa00] ss:$16 sps:$4 sm:$0xff]   ;;  %v9016_v56 = vld [vmem:[%s13774_s1 + $0x9e4] ss:$16 sps:$4 sm:$0xff]  }
  0x6d   :  { %6428 = vmatprep.subr.bf16.mxu1 %v8937_v57  ;;  %v9019_v57 = vld [vmem:[%s13774_s1 + $0xbe4] ss:$16 sps:$4 sm:$0xff]  }
  0x6f   :  { %6388 = vmatpush2.bf16.msra.mxu0 %v8932_v58  ;;  %v9014_v58 = vld [vmem:[%s13774_s1 + $0x9e0] ss:$16 sps:$4 sm:$0xff]  }
  0x70   :  { %6429 = vmatpush2.bf16.msra.mxu1 %v8935_v59  ;;  %6389 = vmatprep.subr.bf16.mxu0 %v8940_v60  ;;  %v9017_v59 = vld [vmem:[%s13774_s1 + $0xbe0] ss:$16 sps:$4 sm:$0xff]   ;;  %v9022_v60 = vld [vmem:[%s13774_s1 + $0x9c4] ss:$16 sps:$4 sm:$0xff]  }
  0x71   :  { %6430 = vmatprep.subr.bf16.mxu1 %v8943_v61  ;;  %v9025_v61 = vld [vmem:[%s13774_s1 + $0xbc4] ss:$16 sps:$4 sm:$0xff]  }
  0x73   :  { %6390 = vmatpush2.bf16.msra.mxu0 %v8938_v62  ;;  %v9020_v62 = vld [vmem:[%s13774_s1 + $0x9c0] ss:$16 sps:$4 sm:$0xff]  }
  0x74   :  { %6431 = vmatpush2.bf16.msra.mxu1 %v8941_v63  ;;  %6391 = vmatprep.subr.bf16.mxu0 %v8946_v0  ;;  %v9023_v63 = vld [vmem:[%s13774_s1 + $0xbc0] ss:$16 sps:$4 sm:$0xff]   ;;  %v9028_v0 = vld [vmem:[%s13774_s1 + $0x9a4] ss:$16 sps:$4 sm:$0xff]  }
  0x75   :  { %6432 = vmatprep.subr.bf16.mxu1 %v8949_v1  ;;  %v9031_v1 = vld [vmem:[%s13774_s1 + $0xba4] ss:$16 sps:$4 sm:$0xff]  }
  0x77   :  { %6392 = vmatpush2.bf16.msra.mxu0 %v8944_v2  ;;  %v9026_v2 = vld [vmem:[%s13774_s1 + $0x9a0] ss:$16 sps:$4 sm:$0xff]  }
  0x78   :  { %6433 = vmatpush2.bf16.msra.mxu1 %v8947_v3  ;;  %6393 = vmatprep.subr.bf16.mxu0 %v8952_v4  ;;  %v9029_v3 = vld [vmem:[%s13774_s1 + $0xba0] ss:$16 sps:$4 sm:$0xff]   ;;  %v9034_v4 = vld [vmem:[%s13774_s1 + $0x984] ss:$16 sps:$4 sm:$0xff]  }
  0x79   :  { %6434 = vmatprep.subr.bf16.mxu1 %v8955_v5  ;;  %v9037_v5 = vld [vmem:[%s13774_s1 + $0xb84] ss:$16 sps:$4 sm:$0xff]  }
  0x7b   :  { %6394 = vmatpush2.bf16.msra.mxu0 %v8950_v8  ;;  %v9032_v8 = vld [vmem:[%s13774_s1 + $0x980] ss:$16 sps:$4 sm:$0xff]  }
  0x7c   :  { %6435 = vmatpush2.bf16.msra.mxu1 %v8953_v9  ;;  %6395 = vmatprep.subr.bf16.mxu0 %v8958_v10  ;;  %v9035_v9 = vld [vmem:[%s13774_s1 + $0xb80] ss:$16 sps:$4 sm:$0xff]   ;;  %v9040_v10 = vld [vmem:[%s13774_s1 + $0x964] ss:$16 sps:$4 sm:$0xff]  }
  0x7d   :  { %6436 = vmatprep.subr.bf16.mxu1 %v8961_v11  ;;  %v9043_v11 = vld [vmem:[%s13774_s1 + $0xb64] ss:$16 sps:$4 sm:$0xff]  }
  0x7f   :  { %6396 = vmatpush2.bf16.msra.mxu0 %v8956_v12  ;;  %v9038_v12 = vld [vmem:[%s13774_s1 + $0x960] ss:$16 sps:$4 sm:$0xff]  }
  0x80   :  { %6437 = vmatpush2.bf16.msra.mxu1 %v8959_v13  ;;  %6447 = vmatprep.subr.bf16.mxu0 %v8968_v14  ;;  %v9041_v13 = vld [vmem:[%s13774_s1 + $0xb60] ss:$16 sps:$4 sm:$0xff]   ;;  %v9046_v14 = vld [vmem:[%s13774_s1 + $0x944] ss:$16 sps:$4 sm:$0xff]  }
  0x81   :  { %6488 = vmatprep.subr.bf16.mxu1 %v8971_v15  ;;  %v9049_v15 = vld [vmem:[%s13774_s1 + $0xb44] ss:$16 sps:$4 sm:$0xff]  }
  0x82   :  { %6398 = vmatmul.mubr.bf16.vlgmr.msra.gmra.mxu0 %v10787_v16 }
  0x83   :  { %6439 = vmatmul.mubr.bf16.vlgmr.msra.gmra.mxu1 %v10791_v17  ;;  %6448 = vmatpush1.bf16.msra.mxu0 %v8966_v18  ;;  %v9044_v18 = vld [vmem:[%s13774_s1 + $0x940] ss:$16 sps:$4 sm:$0xff]  }
  0x84   :  { %6489 = vmatpush1.bf16.msra.mxu1 %v8969_v19  ;;  %6449 = vmatprep.subr.bf16.mxu0 %v8974_v20  ;;  %v9047_v19 = vld [vmem:[%s13774_s1 + $0xb40] ss:$16 sps:$4 sm:$0xff]   ;;  %v9052_v20 = vld [vmem:[%s13774_s1 + $0x924] ss:$16 sps:$4 sm:$0xff]  }
  0x85   :  { %6490 = vmatprep.subr.bf16.mxu1 %v8977_v21  ;;  %6479 = vmatprep.mubr.bf16.mxu0 %v10817_v24  ;;  %v9055_v21 = vld [vmem:[%s13774_s1 + $0xb24] ss:$16 sps:$4 sm:$0xff]  }
  0x86   :  { %6520 = vmatprep.mubr.bf16.mxu1 %v10821_v25 }
  0x87   :  { %6450 = vmatpush1.bf16.msra.mxu0 %v8972_v26  ;;  %v9050_v26 = vld [vmem:[%s13774_s1 + $0x920] ss:$16 sps:$4 sm:$0xff]  }
  0x88   :  { %6491 = vmatpush1.bf16.msra.mxu1 %v8975_v27  ;;  %6451 = vmatprep.subr.bf16.mxu0 %v8980_v28  ;;  %v9053_v27 = vld [vmem:[%s13774_s1 + $0xb20] ss:$16 sps:$4 sm:$0xff]   ;;  %v9058_v28 = vld [vmem:[%s13774_s1 + $0x904] ss:$16 sps:$4 sm:$0xff]  }
  0x89   :  { %6492 = vmatprep.subr.bf16.mxu1 %v8983_v29  ;;  %v9061_v29 = vld [vmem:[%s13774_s1 + $0xb04] ss:$16 sps:$4 sm:$0xff]  }
  0x8b   :  { %6452 = vmatpush1.bf16.msra.mxu0 %v8978_v30  ;;  %v9056_v30 = vld [vmem:[%s13774_s1 + $0x900] ss:$16 sps:$4 sm:$0xff]  }
  0x8c   :  { %6493 = vmatpush1.bf16.msra.mxu1 %v8981_v31  ;;  %6453 = vmatprep.subr.bf16.mxu0 %v8986_v32  ;;  %v9059_v31 = vld [vmem:[%s13774_s1 + $0xb00] ss:$16 sps:$4 sm:$0xff]   ;;  %v9068_v32 = vld [vmem:[%s13774_s1 + $0xce4] ss:$16 sps:$4 sm:$0xff]  }
  0x8d   :  { %6494 = vmatprep.subr.bf16.mxu1 %v8989_v33  ;;  %v9071_v33 = vld [vmem:[%s13774_s1 + $0xee4] ss:$16 sps:$4 sm:$0xff]  }
  0x8f   :  { %6454 = vmatpush1.bf16.msra.mxu0 %v8984_v34  ;;  %v9066_v34 = vld [vmem:[%s13774_s1 + $0xce0] ss:$16 sps:$4 sm:$0xff]  }
  0x90   :  { %6495 = vmatpush1.bf16.msra.mxu1 %v8987_v35  ;;  %6455 = vmatprep.subr.bf16.mxu0 %v8992_v38  ;;  %v9069_v35 = vld [vmem:[%s13774_s1 + $0xee0] ss:$16 sps:$4 sm:$0xff]   ;;  %v11015_v38 = vcombine.low %v10808_v22, %v10808_v22  ;;  %v9074_v22 = vld [vmem:[%s13774_s1 + $0xcc4] ss:$16 sps:$4 sm:$0xff]  }
  0x91   :  { %6496 = vmatprep.subr.bf16.mxu1 %v8995_v39  ;;  %v11019_v39 = vcombine.low %v10813_v23, %v10813_v23  ;;  %v9077_v23 = vld [vmem:[%s13774_s1 + $0xec4] ss:$16 sps:$4 sm:$0xff]  }
  0x93   :  { %6456 = vmatpush1.bf16.msra.mxu0 %v8990_v40  ;;  %v11024_v40 = vld [vmem:[%s13775_s0 + $0x30] sm:$0xff] }
  0x94   :  { %6497 = vmatpush1.bf16.msra.mxu1 %v8993_v41  ;;  %6457 = vmatprep.subr.bf16.mxu0 %v8998_v42  ;;  %v11029_v41 = vld [vmem:[%s13775_s0 + $0x38] sm:$0xff]  ;;  %v11039_v42 = vcombine.high %v11024_v40, %v11024_v40 }
  0x95   :  { %6498 = vmatprep.subr.bf16.mxu1 %v9001_v43  ;;  %v11043_v43 = vcombine.high %v11029_v41, %v11029_v41 }
  0x97   :  { %6458 = vmatpush1.bf16.msra.mxu0 %v8996_v44  ;;  %v9072_v44 = vld [vmem:[%s13774_s1 + $0xcc0] ss:$16 sps:$4 sm:$0xff]  }
  0x98   :  { %6499 = vmatpush1.bf16.msra.mxu1 %v8999_v45  ;;  %6459 = vmatprep.subr.bf16.mxu0 %v9004_v46  ;;  %v9075_v45 = vld [vmem:[%s13774_s1 + $0xec0] ss:$16 sps:$4 sm:$0xff]   ;;  %v9080_v46 = vld [vmem:[%s13774_s1 + $0xca4] ss:$16 sps:$4 sm:$0xff]  }
  0x99   :  { %6500 = vmatprep.subr.bf16.mxu1 %v9007_v48  ;;  %v9083_v48 = vld [vmem:[%s13774_s1 + $0xea4] ss:$16 sps:$4 sm:$0xff]  }
  0x9b   :  { %6460 = vmatpush1.bf16.msra.mxu0 %v9002_v49  ;;  %v9078_v49 = vld [vmem:[%s13774_s1 + $0xca0] ss:$16 sps:$4 sm:$0xff]  }
  0x9c   :  { %6501 = vmatpush1.bf16.msra.mxu1 %v9005_v50  ;;  %6461 = vmatprep.subr.bf16.mxu0 %v9010_v52  ;;  %v9081_v50 = vld [vmem:[%s13774_s1 + $0xea0] ss:$16 sps:$4 sm:$0xff]   ;;  %v9086_v52 = vld [vmem:[%s13774_s1 + $0xc84] ss:$16 sps:$4 sm:$0xff]  }
  0x9d   :  { %6502 = vmatprep.subr.bf16.mxu1 %v9013_v53  ;;  %v9089_v53 = vld [vmem:[%s13774_s1 + $0xe84] ss:$16 sps:$4 sm:$0xff]  }
  0x9f   :  { %6462 = vmatpush1.bf16.msra.mxu0 %v9008_v54  ;;  %v9084_v54 = vld [vmem:[%s13774_s1 + $0xc80] ss:$16 sps:$4 sm:$0xff]  }
  0xa0   :  { %6503 = vmatpush1.bf16.msra.mxu1 %v9011_v55  ;;  %6463 = vmatprep.subr.bf16.mxu0 %v9016_v56  ;;  %v9087_v55 = vld [vmem:[%s13774_s1 + $0xe80] ss:$16 sps:$4 sm:$0xff]   ;;  %v9092_v56 = vld [vmem:[%s13774_s1 + $0xc64] ss:$16 sps:$4 sm:$0xff]  }
  0xa1   :  { %6504 = vmatprep.subr.bf16.mxu1 %v9019_v57  ;;  %v9095_v57 = vld [vmem:[%s13774_s1 + $0xe64] ss:$16 sps:$4 sm:$0xff]  }
  0xa3   :  { %6464 = vmatpush2.bf16.msra.mxu0 %v9014_v58  ;;  %v9090_v58 = vld [vmem:[%s13774_s1 + $0xc60] ss:$16 sps:$4 sm:$0xff]  }
  0xa4   :  { %6505 = vmatpush2.bf16.msra.mxu1 %v9017_v59  ;;  %6465 = vmatprep.subr.bf16.mxu0 %v9022_v60  ;;  %v9093_v59 = vld [vmem:[%s13774_s1 + $0xe60] ss:$16 sps:$4 sm:$0xff]   ;;  %v9098_v60 = vld [vmem:[%s13774_s1 + $0xc44] ss:$16 sps:$4 sm:$0xff]  }
  0xa5   :  { %6506 = vmatprep.subr.bf16.mxu1 %v9025_v61  ;;  %v9101_v61 = vld [vmem:[%s13774_s1 + $0xe44] ss:$16 sps:$4 sm:$0xff]  }
  0xa7   :  { %6466 = vmatpush2.bf16.msra.mxu0 %v9020_v62  ;;  %v9096_v62 = vld [vmem:[%s13774_s1 + $0xc40] ss:$16 sps:$4 sm:$0xff]  }
  0xa8   :  { %6507 = vmatpush2.bf16.msra.mxu1 %v9023_v63  ;;  %6467 = vmatprep.subr.bf16.mxu0 %v9028_v0  ;;  %v9099_v63 = vld [vmem:[%s13774_s1 + $0xe40] ss:$16 sps:$4 sm:$0xff]   ;;  %v9104_v0 = vld [vmem:[%s13774_s1 + $0xc24] ss:$16 sps:$4 sm:$0xff]  }
  0xa9   :  { %6508 = vmatprep.subr.bf16.mxu1 %v9031_v1  ;;  %v9107_v1 = vld [vmem:[%s13774_s1 + $0xe24] ss:$16 sps:$4 sm:$0xff]  }
  0xab   :  { %6468 = vmatpush2.bf16.msra.mxu0 %v9026_v2  ;;  %v9102_v2 = vld [vmem:[%s13774_s1 + $0xc20] ss:$16 sps:$4 sm:$0xff]  }
  0xac   :  { %6509 = vmatpush2.bf16.msra.mxu1 %v9029_v3  ;;  %6469 = vmatprep.subr.bf16.mxu0 %v9034_v4  ;;  %v9105_v3 = vld [vmem:[%s13774_s1 + $0xe20] ss:$16 sps:$4 sm:$0xff]   ;;  %v9110_v4 = vld [vmem:[%s13774_s1 + $0xc04] ss:$16 sps:$4 sm:$0xff]  }
  0xad   :  { %6510 = vmatprep.subr.bf16.mxu1 %v9037_v5  ;;  %v9113_v5 = vld [vmem:[%s13774_s1 + $0xe04] ss:$16 sps:$4 sm:$0xff]  }
  0xaf   :  { %6470 = vmatpush2.bf16.msra.mxu0 %v9032_v8  ;;  %v9108_v8 = vld [vmem:[%s13774_s1 + $0xc00] ss:$16 sps:$4 sm:$0xff]  }
  0xb0   :  { %6511 = vmatpush2.bf16.msra.mxu1 %v9035_v9  ;;  %6471 = vmatprep.subr.bf16.mxu0 %v9040_v10  ;;  %v9111_v9 = vld [vmem:[%s13774_s1 + $0xe00] ss:$16 sps:$4 sm:$0xff]   ;;  %v9116_v10 = vld [vmem:[%s13774_s1 + $0xde4] ss:$16 sps:$4 sm:$0xff]  }
  0xb1   :  { %6512 = vmatprep.subr.bf16.mxu1 %v9043_v11  ;;  %v9119_v11 = vld [vmem:[%s13774_s1 + $0xfe4] ss:$16 sps:$4 sm:$0xff]  }
  0xb3   :  { %6472 = vmatpush2.bf16.msra.mxu0 %v9038_v12  ;;  %v9114_v12 = vld [vmem:[%s13774_s1 + $0xde0] ss:$16 sps:$4 sm:$0xff]  }
  0xb4   :  { %6513 = vmatpush2.bf16.msra.mxu1 %v9041_v13  ;;  %6473 = vmatprep.subr.bf16.mxu0 %v9046_v14  ;;  %v9117_v13 = vld [vmem:[%s13774_s1 + $0xfe0] ss:$16 sps:$4 sm:$0xff]   ;;  %v9122_v14 = vld [vmem:[%s13774_s1 + $0xdc4] ss:$16 sps:$4 sm:$0xff]  }
  0xb5   :  { %6514 = vmatprep.subr.bf16.mxu1 %v9049_v15  ;;  %v9125_v15 = vld [vmem:[%s13774_s1 + $0xfc4] ss:$16 sps:$4 sm:$0xff]  }
  0xb7   :  { %6474 = vmatpush2.bf16.msra.mxu0 %v9044_v18  ;;  %v9120_v18 = vld [vmem:[%s13774_s1 + $0xdc0] ss:$16 sps:$4 sm:$0xff]  }
  0xb8   :  { %6515 = vmatpush2.bf16.msra.mxu1 %v9047_v19  ;;  %6475 = vmatprep.subr.bf16.mxu0 %v9052_v20  ;;  %v9123_v19 = vld [vmem:[%s13774_s1 + $0xfc0] ss:$16 sps:$4 sm:$0xff]   ;;  %v9128_v20 = vld [vmem:[%s13774_s1 + $0xda4] ss:$16 sps:$4 sm:$0xff]  }
  0xb9   :  { %6516 = vmatprep.subr.bf16.mxu1 %v9055_v21  ;;  %v9131_v21 = vld [vmem:[%s13774_s1 + $0xfa4] ss:$16 sps:$4 sm:$0xff]  }
  0xbb   :  { %6476 = vmatpush2.bf16.msra.mxu0 %v9050_v26  ;;  %v9126_v26 = vld [vmem:[%s13774_s1 + $0xda0] ss:$16 sps:$4 sm:$0xff]  }
  0xbc   :  { %6517 = vmatpush2.bf16.msra.mxu1 %v9053_v27  ;;  %6477 = vmatprep.subr.bf16.mxu0 %v9058_v28  ;;  %v9129_v27 = vld [vmem:[%s13774_s1 + $0xfa0] ss:$16 sps:$4 sm:$0xff]   ;;  %v9134_v28 = vld [vmem:[%s13774_s1 + $0xd84] ss:$16 sps:$4 sm:$0xff]  }
  0xbd   :  { %6518 = vmatprep.subr.bf16.mxu1 %v9061_v29  ;;  %v9137_v29 = vld [vmem:[%s13774_s1 + $0xf84] ss:$16 sps:$4 sm:$0xff]  }
  0xbf   :  { %6478 = vmatpush2.bf16.msra.mxu0 %v9056_v30  ;;  %v9132_v30 = vld [vmem:[%s13774_s1 + $0xd80] ss:$16 sps:$4 sm:$0xff]  }
  0xc0   :  { %6519 = vmatpush2.bf16.msra.mxu1 %v9059_v31  ;;  %6529 = vmatprep.subr.bf16.mxu0 %v9068_v32  ;;  %v9135_v31 = vld [vmem:[%s13774_s1 + $0xf80] ss:$16 sps:$4 sm:$0xff]   ;;  %v9140_v32 = vld [vmem:[%s13774_s1 + $0xd64] ss:$16 sps:$4 sm:$0xff]  }
  0xc1   :  { %6570 = vmatprep.subr.bf16.mxu1 %v9071_v33  ;;  %v9143_v33 = vld [vmem:[%s13774_s1 + $0xf64] ss:$16 sps:$4 sm:$0xff]  }
  0xc2   :  { %6480 = vmatmul.mubr.bf16.vlgmr.msra.gmra.mxu0 %v11015_v38 }
  0xc3   :  { %6521 = vmatmul.mubr.bf16.vlgmr.msra.gmra.mxu1 %v11019_v39  ;;  %6530 = vmatpush1.bf16.msra.mxu0 %v9066_v34  ;;  %v9138_v34 = vld [vmem:[%s13774_s1 + $0xd60] ss:$16 sps:$4 sm:$0xff]  }
  0xc4   :  { %6571 = vmatpush1.bf16.msra.mxu1 %v9069_v35  ;;  %6531 = vmatprep.subr.bf16.mxu0 %v9074_v22  ;;  %v9141_v35 = vld [vmem:[%s13774_s1 + $0xf60] ss:$16 sps:$4 sm:$0xff]   ;;  %v9146_v22 = vld [vmem:[%s13774_s1 + $0xd44] ss:$16 sps:$4 sm:$0xff]  }
  0xc5   :  { %6572 = vmatprep.subr.bf16.mxu1 %v9077_v23  ;;  %6561 = vmatprep.mubr.bf16.mxu0 %v11039_v42  ;;  %v9149_v23 = vld [vmem:[%s13774_s1 + $0xf44] ss:$16 sps:$4 sm:$0xff]  }
  0xc6   :  { %6602 = vmatprep.mubr.bf16.mxu1 %v11043_v43 }
  0xc7   :  { %6532 = vmatpush1.bf16.msra.mxu0 %v9072_v44  ;;  %v9144_v44 = vld [vmem:[%s13774_s1 + $0xd40] ss:$16 sps:$4 sm:$0xff]  }
  0xc8   :  { %6573 = vmatpush1.bf16.msra.mxu1 %v9075_v45  ;;  %6533 = vmatprep.subr.bf16.mxu0 %v9080_v46  ;;  %v9147_v45 = vld [vmem:[%s13774_s1 + $0xf40] ss:$16 sps:$4 sm:$0xff]   ;;  %v9152_v46 = vld [vmem:[%s13774_s1 + $0xd24] ss:$16 sps:$4 sm:$0xff]  }
  0xc9   :  { %6574 = vmatprep.subr.bf16.mxu1 %v9083_v48  ;;  %v9155_v48 = vld [vmem:[%s13774_s1 + $0xf24] ss:$16 sps:$4 sm:$0xff]  }
  0xcb   :  { %6534 = vmatpush1.bf16.msra.mxu0 %v9078_v49  ;;  %v9150_v49 = vld [vmem:[%s13774_s1 + $0xd20] ss:$16 sps:$4 sm:$0xff]  }
  0xcc   :  { %6575 = vmatpush1.bf16.msra.mxu1 %v9081_v50  ;;  %6535 = vmatprep.subr.bf16.mxu0 %v9086_v52  ;;  %v9153_v50 = vld [vmem:[%s13774_s1 + $0xf20] ss:$16 sps:$4 sm:$0xff]   ;;  %v9158_v52 = vld [vmem:[%s13774_s1 + $0xd04] ss:$16 sps:$4 sm:$0xff]  }
  0xcd   :  { %6576 = vmatprep.subr.bf16.mxu1 %v9089_v53  ;;  %v9161_v53 = vld [vmem:[%s13774_s1 + $0xf04] ss:$16 sps:$4 sm:$0xff]  }
  0xcf   :  { %6536 = vmatpush1.bf16.msra.mxu0 %v9084_v54  ;;  %v9156_v54 = vld [vmem:[%s13774_s1 + $0xd00] ss:$16 sps:$4 sm:$0xff]  }
  0xd0   :  { %6577 = vmatpush1.bf16.msra.mxu1 %v9087_v55  ;;  %6537 = vmatprep.subr.bf16.mxu0 %v9092_v56  ;;  %v9159_v55 = vld [vmem:[%s13774_s1 + $0xf00] ss:$16 sps:$4 sm:$0xff]   ;;  %v9168_v56 = vld [vmem:[%s13774_s1 + $0x10e4] ss:$16 sps:$4 sm:$0xff]  }
  0xd1   :  { %6578 = vmatprep.subr.bf16.mxu1 %v9095_v57  ;;  %v9171_v57 = vld [vmem:[%s13774_s1 + $0x12e4] ss:$16 sps:$4 sm:$0xff]  }
  0xd3   :  { %6538 = vmatpush1.bf16.msra.mxu0 %v9090_v58  ;;  %v11232_v58 = vld [vmem:[%s13775_s0 + $0x40] sm:$0xff] }
  0xd4   :  { %6579 = vmatpush1.bf16.msra.mxu1 %v9093_v59  ;;  %6539 = vmatprep.subr.bf16.mxu0 %v9098_v60  ;;  %v11236_v59 = vcombine.low %v11024_v40, %v11024_v40  ;;  %v11240_v60 = vcombine.low %v11029_v41, %v11029_v41  ;;  %v9169_v40 = vld [vmem:[%s13774_s1 + $0x12e0] ss:$16 sps:$4 sm:$0xff]   ;;  %v9174_v41 = vld [vmem:[%s13774_s1 + $0x10c4] ss:$16 sps:$4 sm:$0xff]  }
  0xd5   :  { %6580 = vmatprep.subr.bf16.mxu1 %v9101_v61  ;;  %v11245_v61 = vld [vmem:[%s13775_s0 + $0x48] sm:$0xff] }
  0xd7   :  { %6540 = vmatpush1.bf16.msra.mxu0 %v9096_v62  ;;  %v9166_v62 = vld [vmem:[%s13774_s1 + $0x10e0] ss:$16 sps:$4 sm:$0xff]  }
  0xd8   :  { %6581 = vmatpush1.bf16.msra.mxu1 %v9099_v63  ;;  %6541 = vmatprep.subr.bf16.mxu0 %v9104_v0  ;;  %v9177_v63 = vld [vmem:[%s13774_s1 + $0x12c4] ss:$16 sps:$4 sm:$0xff]   ;;  %v11261_v0 = vcombine.high %v11232_v58, %v11232_v58 }
  0xd9   :  { %6582 = vmatprep.subr.bf16.mxu1 %v9107_v1  ;;  %v11265_v1 = vcombine.high %v11245_v61, %v11245_v61 }
  0xdb   :  { %6542 = vmatpush1.bf16.msra.mxu0 %v9102_v2 }
  0xdc   :  { %6583 = vmatpush1.bf16.msra.mxu1 %v9105_v3  ;;  %6543 = vmatprep.subr.bf16.mxu0 %v9110_v4  ;;  %v9172_v4 = vld [vmem:[%s13774_s1 + $0x10c0] ss:$16 sps:$4 sm:$0xff]  }
  0xdd   :  { %6584 = vmatprep.subr.bf16.mxu1 %v9113_v5  ;;  %v9175_v5 = vld [vmem:[%s13774_s1 + $0x12c0] ss:$16 sps:$4 sm:$0xff]  }
  0xdf   :  { %6544 = vmatpush1.bf16.msra.mxu0 %v9108_v8 }
  0xe0   :  { %6585 = vmatpush1.bf16.msra.mxu1 %v9111_v9  ;;  %6545 = vmatprep.subr.bf16.mxu0 %v9116_v10  ;;  %v9180_v9 = vld [vmem:[%s13774_s1 + $0x10a4] ss:$16 sps:$4 sm:$0xff]  }
  0xe1   :  { %6586 = vmatprep.subr.bf16.mxu1 %v9119_v11 }
  0xe3   :  { %6546 = vmatpush2.bf16.msra.mxu0 %v9114_v12  ;;  %v9183_v12 = vld [vmem:[%s13774_s1 + $0x12a4] ss:$16 sps:$4 sm:$0xff]  }
  0xe4   :  { %6587 = vmatpush2.bf16.msra.mxu1 %v9117_v13  ;;  %6547 = vmatprep.subr.bf16.mxu0 %v9122_v14 }
  0xe5   :  { %6588 = vmatprep.subr.bf16.mxu1 %v9125_v15 }
  0xe7   :  { %6548 = vmatpush2.bf16.msra.mxu0 %v9120_v18  ;;  %v9178_v18 = vld [vmem:[%s13774_s1 + $0x10a0] ss:$16 sps:$4 sm:$0xff]  }
  0xe8   :  { %6589 = vmatpush2.bf16.msra.mxu1 %v9123_v19  ;;  %6549 = vmatprep.subr.bf16.mxu0 %v9128_v20  ;;  %v9181_v19 = vld [vmem:[%s13774_s1 + $0x12a0] ss:$16 sps:$4 sm:$0xff]   ;;  %v9186_v20 = vld [vmem:[%s13774_s1 + $0x1084] ss:$16 sps:$4 sm:$0xff]  }
  0xe9   :  { %6590 = vmatprep.subr.bf16.mxu1 %v9131_v21 }
  0xeb   :  { %6550 = vmatpush2.bf16.msra.mxu0 %v9126_v26 }
  0xec   :  { %6591 = vmatpush2.bf16.msra.mxu1 %v9129_v27  ;;  %6551 = vmatprep.subr.bf16.mxu0 %v9134_v28  ;;  %v9189_v27 = vld [vmem:[%s13774_s1 + $0x1284] ss:$16 sps:$4 sm:$0xff]   ;;  %v9184_v28 = vld [vmem:[%s13774_s1 + $0x1080] ss:$16 sps:$4 sm:$0xff]  }
  0xed   :  { %6592 = vmatprep.subr.bf16.mxu1 %v9137_v29  ;;  %v9187_v29 = vld [vmem:[%s13774_s1 + $0x1280] ss:$16 sps:$4 sm:$0xff]  }
  0xef   :  { %6552 = vmatpush2.bf16.msra.mxu0 %v9132_v30  ;;  %v9192_v30 = vld [vmem:[%s13774_s1 + $0x1064] ss:$16 sps:$4 sm:$0xff]  }
  0xf0   :  { %6593 = vmatpush2.bf16.msra.mxu1 %v9135_v31  ;;  %6553 = vmatprep.subr.bf16.mxu0 %v9140_v32  ;;  %v9195_v31 = vld [vmem:[%s13774_s1 + $0x1264] ss:$16 sps:$4 sm:$0xff]   ;;  %v9190_v32 = vld [vmem:[%s13774_s1 + $0x1060] ss:$16 sps:$4 sm:$0xff]  }
  0xf1   :  { %6594 = vmatprep.subr.bf16.mxu1 %v9143_v33  ;;  %v9193_v33 = vld [vmem:[%s13774_s1 + $0x1260] ss:$16 sps:$4 sm:$0xff]  }
  0xf3   :  { %6554 = vmatpush2.bf16.msra.mxu0 %v9138_v34  ;;  %v9198_v34 = vld [vmem:[%s13774_s1 + $0x1044] ss:$16 sps:$4 sm:$0xff]  }
  0xf4   :  { %6595 = vmatpush2.bf16.msra.mxu1 %v9141_v35  ;;  %6555 = vmatprep.subr.bf16.mxu0 %v9146_v22  ;;  %v9201_v35 = vld [vmem:[%s13774_s1 + $0x1244] ss:$16 sps:$4 sm:$0xff]   ;;  %v9196_v22 = vld [vmem:[%s13774_s1 + $0x1040] ss:$16 sps:$4 sm:$0xff]  }
  0xf5   :  { %6596 = vmatprep.subr.bf16.mxu1 %v9149_v23  ;;  %v9199_v23 = vld [vmem:[%s13774_s1 + $0x1240] ss:$16 sps:$4 sm:$0xff]  }
  0xf7   :  { %6556 = vmatpush2.bf16.msra.mxu0 %v9144_v44  ;;  %v9204_v44 = vld [vmem:[%s13774_s1 + $0x1024] ss:$16 sps:$4 sm:$0xff]  }
  0xf8   :  { %6597 = vmatpush2.bf16.msra.mxu1 %v9147_v45  ;;  %6557 = vmatprep.subr.bf16.mxu0 %v9152_v46  ;;  %v9207_v45 = vld [vmem:[%s13774_s1 + $0x1224] ss:$16 sps:$4 sm:$0xff]   ;;  %v9202_v46 = vld [vmem:[%s13774_s1 + $0x1020] ss:$16 sps:$4 sm:$0xff]  }
  0xf9   :  { %6598 = vmatprep.subr.bf16.mxu1 %v9155_v48  ;;  %v9205_v48 = vld [vmem:[%s13774_s1 + $0x1220] ss:$16 sps:$4 sm:$0xff]  }
  0xfb   :  { %6558 = vmatpush2.bf16.msra.mxu0 %v9150_v49  ;;  %v9210_v49 = vld [vmem:[%s13774_s1 + $0x1004] ss:$16 sps:$4 sm:$0xff]  }
  0xfc   :  { %6599 = vmatpush2.bf16.msra.mxu1 %v9153_v50  ;;  %6559 = vmatprep.subr.bf16.mxu0 %v9158_v52  ;;  %v9213_v50 = vld [vmem:[%s13774_s1 + $0x1204] ss:$16 sps:$4 sm:$0xff]   ;;  %v9208_v52 = vld [vmem:[%s13774_s1 + $0x1000] ss:$16 sps:$4 sm:$0xff]  }
  0xfd   :  { %6600 = vmatprep.subr.bf16.mxu1 %v9161_v53  ;;  %v9211_v53 = vld [vmem:[%s13774_s1 + $0x1200] ss:$16 sps:$4 sm:$0xff]  }
  0xff   :  { %6560 = vmatpush2.bf16.msra.mxu0 %v9156_v54  ;;  %v9216_v54 = vld [vmem:[%s13774_s1 + $0x11e4] ss:$16 sps:$4 sm:$0xff]  }
 0x100   :  { %6601 = vmatpush2.bf16.msra.mxu1 %v9159_v55  ;;  %6611 = vmatprep.subr.bf16.mxu0 %v9168_v56  ;;  %v9219_v55 = vld [vmem:[%s13774_s1 + $0x13e4] ss:$16 sps:$4 sm:$0xff]   ;;  %v9214_v56 = vld [vmem:[%s13774_s1 + $0x11e0] ss:$16 sps:$4 sm:$0xff]  }
 0x101   :  { %6652 = vmatprep.subr.bf16.mxu1 %v9171_v57  ;;  %v9217_v57 = vld [vmem:[%s13774_s1 + $0x13e0] ss:$16 sps:$4 sm:$0xff]  }
 0x102   :  { %v6317_v2 = vpop.f32.mrf.mxu0  ;;  %6562 = vmatmul.mubr.bf16.vlgmr.msra.gmra.mxu0 %v11236_v59 }
 0x103   :  { %v6358_v3 = vpop.f32.mrf.mxu1  ;;  %6603 = vmatmul.mubr.bf16.vlgmr.msra.gmra.mxu1 %v11240_v60  ;;  %6612 = vmatpush1.bf16.msra.mxu0 %v9166_v62  ;;  %v9222_v62 = vld [vmem:[%s13774_s1 + $0x11c4] ss:$16 sps:$4 sm:$0xff]  }
 0x104   :  { %v11275_v8 = vadd.f32 %v6358_v3, %v6317_v2  ;;  %6653 = vmatpush1.bf16.msra.mxu1 %v9169_v40  ;;  %v6319_v10 = vpop.f32.mrf.mxu0  ;;  %6613 = vmatprep.subr.bf16.mxu0 %v9174_v41  ;;  %v9225_v40 = vld [vmem:[%s13774_s1 + $0x13c4] ss:$16 sps:$4 sm:$0xff]   ;;  %v9220_v41 = vld [vmem:[%s13774_s1 + $0x11c0] ss:$16 sps:$4 sm:$0xff]  }
 0x105   :  { %v6360_v11 = vpop.f32.mrf.mxu1  ;;  %6654 = vmatprep.subr.bf16.mxu1 %v9177_v63  ;;  %6643 = vmatprep.mubr.bf16.mxu0 %v11261_v0  ;;  %v9223_v63 = vld [vmem:[%s13774_s1 + $0x13c0] ss:$16 sps:$4 sm:$0xff]   ;;  %v9228_v2 = vld [vmem:[%s13774_s1 + $0x11a4] ss:$16 sps:$4 sm:$0xff]  }
 0x106   :  { %v11283_v13 = vadd.f32 %v6360_v11, %v6319_v10  ;;  %6684 = vmatprep.mubr.bf16.mxu1 %v11265_v1  ;;  %v6321_v14 = vpop.f32.mrf.mxu0  ;;  %v9231_v3 = vld [vmem:[%s13774_s1 + $0x13a4] ss:$16 sps:$4 sm:$0xff]   ;;  %v9232_v11 = vld [vmem:[%s13774_s1 + $0x1180] ss:$16 sps:$4 sm:$0xff]  }
 0x107   :  { %v6362_v15 = vpop.f32.mrf.mxu1  ;;  %6614 = vmatpush1.bf16.msra.mxu0 %v9172_v4  ;;  %v9226_v4 = vld [vmem:[%s13774_s1 + $0x11a0] ss:$16 sps:$4 sm:$0xff]   ;;  %v9237_v10 = vld [vmem:[%s13774_s1 + $0x1384] ss:$16 sps:$4 sm:$0xff]  }
 0x108   :  { %6655 = vmatpush1.bf16.msra.mxu1 %v9175_v5  ;;  %v6322_v21 = vpop.f32.mrf.mxu0  ;;  %6615 = vmatprep.subr.bf16.mxu0 %v9180_v9  ;;  %v9229_v5 = vld [vmem:[%s13774_s1 + $0x13a0] ss:$16 sps:$4 sm:$0xff]   ;;  %v9234_v9 = vld [vmem:[%s13774_s1 + $0x1184] ss:$16 sps:$4 sm:$0xff]  }
 0x109   :  { %v6363_v26 = vpop.f32.mrf.mxu1  ;;  %6656 = vmatprep.subr.bf16.mxu1 %v9183_v12  ;;  %v9235_v12 = vld [vmem:[%s13774_s1 + $0x1380] ss:$16 sps:$4 sm:$0xff]   ;;  %v9240_v14 = vld [vmem:[%s13774_s1 + $0x1164] ss:$16 sps:$4 sm:$0xff]  }
 0x10a   :  { %v9243_v15 = vld [vmem:[%s13774_s1 + $0x1364] ss:$16 sps:$4 sm:$0xff]   ;;  %v9244_v26 = vld [vmem:[%s13774_s1 + $0x1140] ss:$16 sps:$4 sm:$0xff]  }
 0x10b   :  { %6616 = vmatpush1.bf16.msra.mxu0 %v9178_v18  ;;  %v9238_v18 = vld [vmem:[%s13774_s1 + $0x1160] ss:$16 sps:$4 sm:$0xff]   ;;  %v9249_v21 = vld [vmem:[%s13774_s1 + $0x1344] ss:$16 sps:$4 sm:$0xff]  }
 0x10c   :  { %6657 = vmatpush1.bf16.msra.mxu1 %v9181_v19  ;;  %6617 = vmatprep.subr.bf16.mxu0 %v9186_v20  ;;  %v9241_v19 = vld [vmem:[%s13774_s1 + $0x1360] ss:$16 sps:$4 sm:$0xff]   ;;  %v9246_v20 = vld [vmem:[%s13774_s1 + $0x1144] ss:$16 sps:$4 sm:$0xff]  }
 0x10d   :  { %6658 = vmatprep.subr.bf16.mxu1 %v9189_v27  ;;  %v9247_v27 = vld [vmem:[%s13774_s1 + $0x1340] ss:$16 sps:$4 sm:$0xff]  }
 0x10f   :  { %6618 = vmatpush1.bf16.msra.mxu0 %v9184_v28  ;;  %v9252_v28 = vld [vmem:[%s13774_s1 + $0x1124] ss:$16 sps:$4 sm:$0xff]  }
 0x110   :  { %6659 = vmatpush1.bf16.msra.mxu1 %v9187_v29  ;;  %6619 = vmatprep.subr.bf16.mxu0 %v9192_v30  ;;  %v9255_v29 = vld [vmem:[%s13774_s1 + $0x1324] ss:$16 sps:$4 sm:$0xff]   ;;  %v9250_v30 = vld [vmem:[%s13774_s1 + $0x1120] ss:$16 sps:$4 sm:$0xff]  }
 0x111   :  { %6660 = vmatprep.subr.bf16.mxu1 %v9195_v31  ;;  %v9253_v31 = vld [vmem:[%s13774_s1 + $0x1320] ss:$16 sps:$4 sm:$0xff]  }
 0x113   :  { %6620 = vmatpush1.bf16.msra.mxu0 %v9190_v32  ;;  %v9258_v32 = vld [vmem:[%s13774_s1 + $0x1104] ss:$16 sps:$4 sm:$0xff]  }
 0x114   :  { %6661 = vmatpush1.bf16.msra.mxu1 %v9193_v33  ;;  %6621 = vmatprep.subr.bf16.mxu0 %v9198_v34  ;;  %v9261_v33 = vld [vmem:[%s13774_s1 + $0x1304] ss:$16 sps:$4 sm:$0xff]   ;;  %v9256_v34 = vld [vmem:[%s13774_s1 + $0x1100] ss:$16 sps:$4 sm:$0xff]  }
 0x115   :  { %6662 = vmatprep.subr.bf16.mxu1 %v9201_v35  ;;  %v9259_v35 = vld [vmem:[%s13774_s1 + $0x1300] ss:$16 sps:$4 sm:$0xff]  }
 0x117   :  { %6622 = vmatpush1.bf16.msra.mxu0 %v9196_v22  ;;  %v9268_v22 = vld [vmem:[%s13774_s1 + $0x14e4] ss:$16 sps:$4 sm:$0xff]  }
 0x118   :  { %6663 = vmatpush1.bf16.msra.mxu1 %v9199_v23  ;;  %6623 = vmatprep.subr.bf16.mxu0 %v9204_v44  ;;  %v9271_v23 = vld [vmem:[%s13774_s1 + $0x16e4] ss:$16 sps:$4 sm:$0xff]   ;;  %v9266_v44 = vld [vmem:[%s13774_s1 + $0x14e0] ss:$16 sps:$4 sm:$0xff]  }
 0x119   :  { %6664 = vmatprep.subr.bf16.mxu1 %v9207_v45  ;;  %v9269_v45 = vld [vmem:[%s13774_s1 + $0x16e0] ss:$16 sps:$4 sm:$0xff]  }
 0x11b   :  { %6624 = vmatpush1.bf16.msra.mxu0 %v9202_v46  ;;  %v11463_v46 = vcombine.low %v11232_v58, %v11232_v58  ;;  %v9274_v58 = vld [vmem:[%s13774_s1 + $0x14c4] ss:$16 sps:$4 sm:$0xff]  }
 0x11c   :  { %6665 = vmatpush1.bf16.msra.mxu1 %v9205_v48  ;;  %6625 = vmatprep.subr.bf16.mxu0 %v9210_v49  ;;  %v11467_v48 = vcombine.low %v11245_v61, %v11245_v61  ;;  %v11472_v49 = vld [vmem:[%s13775_s0 + $0x50] sm:$0xff] }
 0x11d   :  { %6666 = vmatprep.subr.bf16.mxu1 %v9213_v50  ;;  %v11477_v50 = vld [vmem:[%s13775_s0 + $0x58] sm:$0xff]  ;;  %v9277_v61 = vld [vmem:[%s13774_s1 + $0x16c4] ss:$16 sps:$4 sm:$0xff]  }
 0x11f   :  { %6626 = vmatpush1.bf16.msra.mxu0 %v9208_v52  ;;  %v9272_v52 = vld [vmem:[%s13774_s1 + $0x14c0] ss:$16 sps:$4 sm:$0xff]  }
 0x120   :  { %6667 = vmatpush1.bf16.msra.mxu1 %v9211_v53  ;;  %6627 = vmatprep.subr.bf16.mxu0 %v9216_v54  ;;  %v9275_v53 = vld [vmem:[%s13774_s1 + $0x16c0] ss:$16 sps:$4 sm:$0xff]   ;;  %v11493_v54 = vcombine.high %v11472_v49, %v11472_v49 }
 0x121   :  { %6668 = vmatprep.subr.bf16.mxu1 %v9219_v55  ;;  %v11497_v55 = vcombine.high %v11477_v50, %v11477_v50 }
 0x123   :  { %6628 = vmatpush2.bf16.msra.mxu0 %v9214_v56 }
 0x124   :  { %6669 = vmatpush2.bf16.msra.mxu1 %v9217_v57  ;;  %6629 = vmatprep.subr.bf16.mxu0 %v9222_v62 }
 0x125   :  { %6670 = vmatprep.subr.bf16.mxu1 %v9225_v40 }
 0x127   :  { %6630 = vmatpush2.bf16.msra.mxu0 %v9220_v41 }
 0x128   :  { %6671 = vmatpush2.bf16.msra.mxu1 %v9223_v63  ;;  %6631 = vmatprep.subr.bf16.mxu0 %v9228_v2  ;;  %v9280_v63 = vld [vmem:[%s13774_s1 + $0x14a4] ss:$16 sps:$4 sm:$0xff]  }
 0x129   :  { %6672 = vmatprep.subr.bf16.mxu1 %v9231_v3  ;;  %v9283_v2 = vld [vmem:[%s13774_s1 + $0x16a4] ss:$16 sps:$4 sm:$0xff]  }
 0x12b   :  { %6632 = vmatpush2.bf16.msra.mxu0 %v9226_v4 }
 0x12c   :  { %6673 = vmatpush2.bf16.msra.mxu1 %v9229_v5  ;;  %6633 = vmatprep.subr.bf16.mxu0 %v9234_v9  ;;  %v9281_v5 = vld [vmem:[%s13774_s1 + $0x16a0] ss:$16 sps:$4 sm:$0xff]  }
 0x12d   :  { %6674 = vmatprep.subr.bf16.mxu1 %v9237_v10 }
 0x12f   :  { %6634 = vmatpush2.bf16.msra.mxu0 %v9232_v11 }
 0x130   :  { %6675 = vmatpush2.bf16.msra.mxu1 %v9235_v12  ;;  %6635 = vmatprep.subr.bf16.mxu0 %v9240_v14  ;;  %v9286_v14 = vld [vmem:[%s13774_s1 + $0x1484] ss:$16 sps:$4 sm:$0xff]  }
 0x131   :  { %6676 = vmatprep.subr.bf16.mxu1 %v9243_v15  ;;  %v9289_v15 = vld [vmem:[%s13774_s1 + $0x1684] ss:$16 sps:$4 sm:$0xff]  }
 0x133   :  { %6636 = vmatpush2.bf16.msra.mxu0 %v9238_v18  ;;  %v9284_v18 = vld [vmem:[%s13774_s1 + $0x1480] ss:$16 sps:$4 sm:$0xff]  }
 0x134   :  { %6677 = vmatpush2.bf16.msra.mxu1 %v9241_v19  ;;  %6637 = vmatprep.subr.bf16.mxu0 %v9246_v20  ;;  %v9287_v19 = vld [vmem:[%s13774_s1 + $0x1680] ss:$16 sps:$4 sm:$0xff]   ;;  %v9292_v20 = vld [vmem:[%s13774_s1 + $0x1464] ss:$16 sps:$4 sm:$0xff]  }
 0x135   :  { %6678 = vmatprep.subr.bf16.mxu1 %v9249_v21  ;;  %v9295_v21 = vld [vmem:[%s13774_s1 + $0x1664] ss:$16 sps:$4 sm:$0xff]  }
 0x137   :  { %6638 = vmatpush2.bf16.msra.mxu0 %v9244_v26  ;;  %v9290_v26 = vld [vmem:[%s13774_s1 + $0x1460] ss:$16 sps:$4 sm:$0xff]  }
 0x138   :  { %6679 = vmatpush2.bf16.msra.mxu1 %v9247_v27  ;;  %6639 = vmatprep.subr.bf16.mxu0 %v9252_v28  ;;  %v9293_v27 = vld [vmem:[%s13774_s1 + $0x1660] ss:$16 sps:$4 sm:$0xff]   ;;  %v9298_v28 = vld [vmem:[%s13774_s1 + $0x1444] ss:$16 sps:$4 sm:$0xff]  }
 0x139   :  { %6680 = vmatprep.subr.bf16.mxu1 %v9255_v29  ;;  %v9301_v29 = vld [vmem:[%s13774_s1 + $0x1644] ss:$16 sps:$4 sm:$0xff]  }
 0x13b   :  { %6640 = vmatpush2.bf16.msra.mxu0 %v9250_v30  ;;  %v9296_v30 = vld [vmem:[%s13774_s1 + $0x1440] ss:$16 sps:$4 sm:$0xff]  }
 0x13c   :  { %6681 = vmatpush2.bf16.msra.mxu1 %v9253_v31  ;;  %6641 = vmatprep.subr.bf16.mxu0 %v9258_v32  ;;  %v9299_v31 = vld [vmem:[%s13774_s1 + $0x1640] ss:$16 sps:$4 sm:$0xff]   ;;  %v9304_v32 = vld [vmem:[%s13774_s1 + $0x1424] ss:$16 sps:$4 sm:$0xff]  }
 0x13d   :  { %6682 = vmatprep.subr.bf16.mxu1 %v9261_v33  ;;  %v9307_v33 = vld [vmem:[%s13774_s1 + $0x1624] ss:$16 sps:$4 sm:$0xff]  }
 0x13f   :  { %6642 = vmatpush2.bf16.msra.mxu0 %v9256_v34  ;;  %v9302_v34 = vld [vmem:[%s13774_s1 + $0x1420] ss:$16 sps:$4 sm:$0xff]  }
 0x140   :  { %6683 = vmatpush2.bf16.msra.mxu1 %v9259_v35  ;;  %6693 = vmatprep.subr.bf16.mxu0 %v9268_v22  ;;  %v9305_v35 = vld [vmem:[%s13774_s1 + $0x1620] ss:$16 sps:$4 sm:$0xff]   ;;  %v9310_v22 = vld [vmem:[%s13774_s1 + $0x1404] ss:$16 sps:$4 sm:$0xff]  }
 0x141   :  { %6734 = vmatprep.subr.bf16.mxu1 %v9271_v23  ;;  %v9313_v23 = vld [vmem:[%s13774_s1 + $0x1604] ss:$16 sps:$4 sm:$0xff]  }
 0x142   :  { %v6399_v56 = vpop.f32.mrf.mxu0  ;;  %6644 = vmatmul.mubr.bf16.vlgmr.msra.gmra.mxu0 %v11463_v46 }
 0x143   :  { %v6440_v57 = vpop.f32.mrf.mxu1  ;;  %6685 = vmatmul.mubr.bf16.vlgmr.msra.gmra.mxu1 %v11467_v48  ;;  %v6400_v62 = vadd.f32 %v6399_v56, %v11275_v8  ;;  %6694 = vmatpush1.bf16.msra.mxu0 %v9266_v44  ;;  %v9278_v8 = vld [vmem:[%s13774_s1 + $0x14a0] ss:$16 sps:$4 sm:$0xff]   ;;  %v9322_v56 = vld [vmem:[%s13774_s1 + $0x15c4] ss:$16 sps:$4 sm:$0xff]  }
 0x144   :  { %6735 = vmatpush1.bf16.msra.mxu1 %v9269_v45  ;;  %v6401_v40 = vpop.f32.mrf.mxu0  ;;  %6695 = vmatprep.subr.bf16.mxu0 %v9274_v58  ;;  %v9308_v44 = vld [vmem:[%s13774_s1 + $0x1400] ss:$16 sps:$4 sm:$0xff]   ;;  %v9316_v58 = vld [vmem:[%s13774_s1 + $0x15e4] ss:$16 sps:$4 sm:$0xff]  }
 0x145   :  { %v6442_v41 = vpop.f32.mrf.mxu1  ;;  %6736 = vmatprep.subr.bf16.mxu1 %v9277_v61  ;;  %v11508_v3 = vadd.f32 %v6440_v57, %v6400_v62  ;;  %v6402_v4 = vadd.f32 %v6401_v40, %v11283_v13  ;;  %6725 = vmatprep.mubr.bf16.mxu0 %v11493_v54  ;;  %v9311_v45 = vld [vmem:[%s13774_s1 + $0x1600] ss:$16 sps:$4 sm:$0xff]   ;;  %v9319_v61 = vld [vmem:[%s13774_s1 + $0x17e4] ss:$16 sps:$4 sm:$0xff]  }
 0x146   :  { %6766 = vmatprep.mubr.bf16.mxu1 %v11497_v55  ;;  %v6403_v9 = vpop.f32.mrf.mxu0  ;;  %v9325_v57 = vld [vmem:[%s13774_s1 + $0x17c4] ss:$16 sps:$4 sm:$0xff]   ;;  %v9320_v62 = vld [vmem:[%s13774_s1 + $0x15c0] ss:$16 sps:$4 sm:$0xff]  }
 0x147   :  { %v6444_v10 = vpop.f32.mrf.mxu1  ;;  %v11519_v11 = vadd.f32 %v6442_v41, %v6402_v4  ;;  %6696 = vmatpush1.bf16.msra.mxu0 %v9272_v52  ;;  %v9314_v52 = vld [vmem:[%s13774_s1 + $0x15e0] ss:$16 sps:$4 sm:$0xff]   ;;  %v9328_v41 = vld [vmem:[%s13774_s1 + $0x15a4] ss:$16 sps:$4 sm:$0xff]  }
 0x148   :  { %6737 = vmatpush1.bf16.msra.mxu1 %v9275_v53  ;;  %v6404_v12 = vpop.f32.mrf.mxu0  ;;  %6697 = vmatprep.subr.bf16.mxu0 %v9280_v63  ;;  %v9317_v53 = vld [vmem:[%s13774_s1 + $0x17e0] ss:$16 sps:$4 sm:$0xff]   ;;  %v9331_v63 = vld [vmem:[%s13774_s1 + $0x17a4] ss:$16 sps:$4 sm:$0xff]  }
 0x149   :  { %v6445_v13 = vpop.f32.mrf.mxu1  ;;  %6738 = vmatprep.subr.bf16.mxu1 %v9283_v2  ;;  %v9323_v40 = vld [vmem:[%s13774_s1 + $0x17c0] ss:$16 sps:$4 sm:$0xff]   ;;  %v9340_v12 = vld [vmem:[%s13774_s1 + $0x1564] ss:$16 sps:$4 sm:$0xff]  }
 0x14a   :  { %v9326_v2 = vld [vmem:[%s13774_s1 + $0x15a0] ss:$16 sps:$4 sm:$0xff]   ;;  %v9343_v13 = vld [vmem:[%s13774_s1 + $0x1764] ss:$16 sps:$4 sm:$0xff]  }
 0x14b   :  { %6698 = vmatpush1.bf16.msra.mxu0 %v9278_v8  ;;  %v9329_v4 = vld [vmem:[%s13774_s1 + $0x17a0] ss:$16 sps:$4 sm:$0xff]   ;;  %v9334_v8 = vld [vmem:[%s13774_s1 + $0x1584] ss:$16 sps:$4 sm:$0xff]  }
 0x14c   :  { %6739 = vmatpush1.bf16.msra.mxu1 %v9281_v5  ;;  %6699 = vmatprep.subr.bf16.mxu0 %v9286_v14  ;;  %v9337_v5 = vld [vmem:[%s13774_s1 + $0x1784] ss:$16 sps:$4 sm:$0xff]   ;;  %v9332_v9 = vld [vmem:[%s13774_s1 + $0x1580] ss:$16 sps:$4 sm:$0xff]  }
 0x14d   :  { %6740 = vmatprep.subr.bf16.mxu1 %v9289_v15  ;;  %v9335_v10 = vld [vmem:[%s13774_s1 + $0x1780] ss:$16 sps:$4 sm:$0xff]  }
 0x14e   :  { %v9338_v14 = vld [vmem:[%s13774_s1 + $0x1560] ss:$16 sps:$4 sm:$0xff]  }
 0x14f   :  { %6700 = vmatpush1.bf16.msra.mxu0 %v9284_v18  ;;  %v9341_v15 = vld [vmem:[%s13774_s1 + $0x1760] ss:$16 sps:$4 sm:$0xff]   ;;  %v9346_v18 = vld [vmem:[%s13774_s1 + $0x1544] ss:$16 sps:$4 sm:$0xff]  }
 0x150   :  { %6741 = vmatpush1.bf16.msra.mxu1 %v9287_v19  ;;  %6701 = vmatprep.subr.bf16.mxu0 %v9292_v20  ;;  %v9349_v19 = vld [vmem:[%s13774_s1 + $0x1744] ss:$16 sps:$4 sm:$0xff]   ;;  %v9344_v20 = vld [vmem:[%s13774_s1 + $0x1540] ss:$16 sps:$4 sm:$0xff]  }
 0x151   :  { %6742 = vmatprep.subr.bf16.mxu1 %v9295_v21  ;;  %v9347_v21 = vld [vmem:[%s13774_s1 + $0x1740] ss:$16 sps:$4 sm:$0xff]  }
 0x153   :  { %6702 = vmatpush1.bf16.msra.mxu0 %v9290_v26  ;;  %v9352_v26 = vld [vmem:[%s13774_s1 + $0x1524] ss:$16 sps:$4 sm:$0xff]  }
 0x154   :  { %6743 = vmatpush1.bf16.msra.mxu1 %v9293_v27  ;;  %6703 = vmatprep.subr.bf16.mxu0 %v9298_v28  ;;  %v9355_v27 = vld [vmem:[%s13774_s1 + $0x1724] ss:$16 sps:$4 sm:$0xff]   ;;  %v9350_v28 = vld [vmem:[%s13774_s1 + $0x1520] ss:$16 sps:$4 sm:$0xff]  }
 0x155   :  { %6744 = vmatprep.subr.bf16.mxu1 %v9301_v29  ;;  %v9353_v29 = vld [vmem:[%s13774_s1 + $0x1720] ss:$16 sps:$4 sm:$0xff]  }
 0x157   :  { %6704 = vmatpush1.bf16.msra.mxu0 %v9296_v30  ;;  %v9358_v30 = vld [vmem:[%s13774_s1 + $0x1504] ss:$16 sps:$4 sm:$0xff]  }
 0x158   :  { %6745 = vmatpush1.bf16.msra.mxu1 %v9299_v31  ;;  %6705 = vmatprep.subr.bf16.mxu0 %v9304_v32  ;;  %v9361_v31 = vld [vmem:[%s13774_s1 + $0x1704] ss:$16 sps:$4 sm:$0xff]   ;;  %v9356_v32 = vld [vmem:[%s13774_s1 + $0x1500] ss:$16 sps:$4 sm:$0xff]  }
 0x159   :  { %6746 = vmatprep.subr.bf16.mxu1 %v9307_v33  ;;  %v9359_v33 = vld [vmem:[%s13774_s1 + $0x1700] ss:$16 sps:$4 sm:$0xff]  }
 0x15b   :  { %6706 = vmatpush1.bf16.msra.mxu0 %v9302_v34  ;;  %v9368_v34 = vld [vmem:[%s13774_s1 + $0x18e4] ss:$16 sps:$4 sm:$0xff]  }
 0x15c   :  { %6747 = vmatpush1.bf16.msra.mxu1 %v9305_v35  ;;  %6707 = vmatprep.subr.bf16.mxu0 %v9310_v22  ;;  %v9371_v35 = vld [vmem:[%s13774_s1 + $0x1ae4] ss:$16 sps:$4 sm:$0xff]   ;;  %v9366_v22 = vld [vmem:[%s13774_s1 + $0x18e0] ss:$16 sps:$4 sm:$0xff]  }
 0x15d   :  { %6748 = vmatprep.subr.bf16.mxu1 %v9313_v23  ;;  %v9369_v23 = vld [vmem:[%s13774_s1 + $0x1ae0] ss:$16 sps:$4 sm:$0xff]  }
 0x15f   :  { %6708 = vmatpush1.bf16.msra.mxu0 %v9308_v44  ;;  %v11691_v44 = vcombine.low %v11472_v49, %v11472_v49  ;;  %v9374_v49 = vld [vmem:[%s13774_s1 + $0x18c4] ss:$16 sps:$4 sm:$0xff]  }
 0x160   :  { %6749 = vmatpush1.bf16.msra.mxu1 %v9311_v45  ;;  %6709 = vmatprep.subr.bf16.mxu0 %v9316_v58  ;;  %v11695_v45 = vcombine.low %v11477_v50, %v11477_v50  ;;  %v11700_v58 = vld [vmem:[%s13775_s0 + $0x60] sm:$0xff] }
 0x161   :  { %6750 = vmatprep.subr.bf16.mxu1 %v9319_v61  ;;  %v11705_v61 = vld [vmem:[%s13775_s0 + $0x68] sm:$0xff]  ;;  %v9377_v50 = vld [vmem:[%s13774_s1 + $0x1ac4] ss:$16 sps:$4 sm:$0xff]  }
 0x163   :  { %6710 = vmatpush2.bf16.msra.mxu0 %v9314_v52  ;;  %v9372_v52 = vld [vmem:[%s13774_s1 + $0x18c0] ss:$16 sps:$4 sm:$0xff]  }
 0x164   :  { %6751 = vmatpush2.bf16.msra.mxu1 %v9317_v53  ;;  %6711 = vmatprep.subr.bf16.mxu0 %v9322_v56  ;;  %v9375_v53 = vld [vmem:[%s13774_s1 + $0x1ac0] ss:$16 sps:$4 sm:$0xff]   ;;  %v11721_v56 = vcombine.high %v11700_v58, %v11700_v58 }
 0x165   :  { %6752 = vmatprep.subr.bf16.mxu1 %v9325_v57  ;;  %v11725_v57 = vcombine.high %v11705_v61, %v11705_v61 }
 0x167   :  { %6712 = vmatpush2.bf16.msra.mxu0 %v9320_v62 }
 0x168   :  { %6753 = vmatpush2.bf16.msra.mxu1 %v9323_v40  ;;  %6713 = vmatprep.subr.bf16.mxu0 %v9328_v41 }
 0x169   :  { %6754 = vmatprep.subr.bf16.mxu1 %v9331_v63 }
 0x16b   :  { %6714 = vmatpush2.bf16.msra.mxu0 %v9326_v2 }
 0x16c   :  { %6755 = vmatpush2.bf16.msra.mxu1 %v9329_v4  ;;  %6715 = vmatprep.subr.bf16.mxu0 %v9334_v8  ;;  %v9380_v4 = vld [vmem:[%s13774_s1 + $0x18a4] ss:$16 sps:$4 sm:$0xff]  }
 0x16d   :  { %6756 = vmatprep.subr.bf16.mxu1 %v9337_v5  ;;  %v9383_v8 = vld [vmem:[%s13774_s1 + $0x1aa4] ss:$16 sps:$4 sm:$0xff]  }
 0x16f   :  { %6716 = vmatpush2.bf16.msra.mxu0 %v9332_v9 }
 0x170   :  { %6757 = vmatpush2.bf16.msra.mxu1 %v9335_v10  ;;  %6717 = vmatprep.subr.bf16.mxu0 %v9340_v12  ;;  %v9381_v10 = vld [vmem:[%s13774_s1 + $0x1aa0] ss:$16 sps:$4 sm:$0xff]  }
 0x171   :  { %6758 = vmatprep.subr.bf16.mxu1 %v9343_v13 }
 0x173   :  { %6718 = vmatpush2.bf16.msra.mxu0 %v9338_v14 }
 0x174   :  { %6759 = vmatpush2.bf16.msra.mxu1 %v9341_v15  ;;  %6719 = vmatprep.subr.bf16.mxu0 %v9346_v18  ;;  %v9386_v18 = vld [vmem:[%s13774_s1 + $0x1884] ss:$16 sps:$4 sm:$0xff]  }
 0x175   :  { %6760 = vmatprep.subr.bf16.mxu1 %v9349_v19  ;;  %v9389_v19 = vld [vmem:[%s13774_s1 + $0x1a84] ss:$16 sps:$4 sm:$0xff]  }
 0x177   :  { %6720 = vmatpush2.bf16.msra.mxu0 %v9344_v20  ;;  %v9384_v20 = vld [vmem:[%s13774_s1 + $0x1880] ss:$16 sps:$4 sm:$0xff]  }
 0x178   :  { %6761 = vmatpush2.bf16.msra.mxu1 %v9347_v21  ;;  %6721 = vmatprep.subr.bf16.mxu0 %v9352_v26  ;;  %v9387_v21 = vld [vmem:[%s13774_s1 + $0x1a80] ss:$16 sps:$4 sm:$0xff]   ;;  %v9392_v26 = vld [vmem:[%s13774_s1 + $0x1864] ss:$16 sps:$4 sm:$0xff]  }
 0x179   :  { %6762 = vmatprep.subr.bf16.mxu1 %v9355_v27  ;;  %v9395_v27 = vld [vmem:[%s13774_s1 + $0x1a64] ss:$16 sps:$4 sm:$0xff]  }
 0x17b   :  { %6722 = vmatpush2.bf16.msra.mxu0 %v9350_v28  ;;  %v9390_v28 = vld [vmem:[%s13774_s1 + $0x1860] ss:$16 sps:$4 sm:$0xff]  }
 0x17c   :  { %6763 = vmatpush2.bf16.msra.mxu1 %v9353_v29  ;;  %6723 = vmatprep.subr.bf16.mxu0 %v9358_v30  ;;  %v9393_v29 = vld [vmem:[%s13774_s1 + $0x1a60] ss:$16 sps:$4 sm:$0xff]   ;;  %v9398_v30 = vld [vmem:[%s13774_s1 + $0x1844] ss:$16 sps:$4 sm:$0xff]  }
 0x17d   :  { %6764 = vmatprep.subr.bf16.mxu1 %v9361_v31  ;;  %v9401_v31 = vld [vmem:[%s13774_s1 + $0x1a44] ss:$16 sps:$4 sm:$0xff]  }
 0x17f   :  { %6724 = vmatpush2.bf16.msra.mxu0 %v9356_v32  ;;  %v9396_v32 = vld [vmem:[%s13774_s1 + $0x1840] ss:$16 sps:$4 sm:$0xff]  }
 0x180   :  { %6765 = vmatpush2.bf16.msra.mxu1 %v9359_v33  ;;  %6775 = vmatprep.subr.bf16.mxu0 %v9368_v34  ;;  %v9399_v33 = vld [vmem:[%s13774_s1 + $0x1a40] ss:$16 sps:$4 sm:$0xff]   ;;  %v9404_v34 = vld [vmem:[%s13774_s1 + $0x1824] ss:$16 sps:$4 sm:$0xff]  }
 0x181   :  { %6816 = vmatprep.subr.bf16.mxu1 %v9371_v35  ;;  %v9407_v35 = vld [vmem:[%s13774_s1 + $0x1a24] ss:$16 sps:$4 sm:$0xff]  }
 0x182   :  { %v6481_v62 = vpop.f32.mrf.mxu0  ;;  %6726 = vmatmul.mubr.bf16.vlgmr.msra.gmra.mxu0 %v11691_v44 }
 0x183   :  { %v6522_v40 = vpop.f32.mrf.mxu1  ;;  %6767 = vmatmul.mubr.bf16.vlgmr.msra.gmra.mxu1 %v11695_v45  ;;  %v6482_v41 = vadd.f32 %v6481_v62, %v11508_v3  ;;  %6776 = vmatpush1.bf16.msra.mxu0 %v9366_v22  ;;  %v9378_v3 = vld [vmem:[%s13774_s1 + $0x18a0] ss:$16 sps:$4 sm:$0xff]   ;;  %v9416_v62 = vld [vmem:[%s13774_s1 + $0x19e4] ss:$16 sps:$4 sm:$0xff]  }
 0x184   :  { %6817 = vmatpush1.bf16.msra.mxu1 %v9369_v23  ;;  %v6483_v63 = vpop.f32.mrf.mxu0  ;;  %6777 = vmatprep.subr.bf16.mxu0 %v9374_v49  ;;  %v9402_v22 = vld [vmem:[%s13774_s1 + $0x1820] ss:$16 sps:$4 sm:$0xff]   ;;  %v9410_v49 = vld [vmem:[%s13774_s1 + $0x1804] ss:$16 sps:$4 sm:$0xff]  }
 0x185   :  { %v6524_v2 = vpop.f32.mrf.mxu1  ;;  %6818 = vmatprep.subr.bf16.mxu1 %v9377_v50  ;;  %v11736_v5 = vadd.f32 %v6522_v40, %v6482_v41  ;;  %v6484_v9 = vadd.f32 %v6483_v63, %v11519_v11  ;;  %6807 = vmatprep.mubr.bf16.mxu0 %v11721_v56  ;;  %v9405_v23 = vld [vmem:[%s13774_s1 + $0x1a20] ss:$16 sps:$4 sm:$0xff]   ;;  %v9413_v50 = vld [vmem:[%s13774_s1 + $0x1a04] ss:$16 sps:$4 sm:$0xff]  }
 0x186   :  { %6848 = vmatprep.mubr.bf16.mxu1 %v11725_v57  ;;  %v6485_v12 = vpop.f32.mrf.mxu0  ;;  %v9419_v40 = vld [vmem:[%s13774_s1 + $0x1be4] ss:$16 sps:$4 sm:$0xff]   ;;  %v9414_v41 = vld [vmem:[%s13774_s1 + $0x19e0] ss:$16 sps:$4 sm:$0xff]  }
 0x187   :  { %v6526_v13 = vpop.f32.mrf.mxu1  ;;  %v11747_v14 = vadd.f32 %v6524_v2, %v6484_v9  ;;  %6778 = vmatpush1.bf16.msra.mxu0 %v9372_v52  ;;  %v9408_v52 = vld [vmem:[%s13774_s1 + $0x1800] ss:$16 sps:$4 sm:$0xff]   ;;  %v9422_v2 = vld [vmem:[%s13774_s1 + $0x19c4] ss:$16 sps:$4 sm:$0xff]  }
 0x188   :  { %6819 = vmatpush1.bf16.msra.mxu1 %v9375_v53  ;;  %v6486_v15 = vpop.f32.mrf.mxu0  ;;  %6779 = vmatprep.subr.bf16.mxu0 %v9380_v4  ;;  %v9411_v53 = vld [vmem:[%s13774_s1 + $0x1a00] ss:$16 sps:$4 sm:$0xff]   ;;  %v9425_v4 = vld [vmem:[%s13774_s1 + $0x1bc4] ss:$16 sps:$4 sm:$0xff]  }
 0x189   :  { %v6527_v11 = vpop.f32.mrf.mxu1  ;;  %6820 = vmatprep.subr.bf16.mxu1 %v9383_v8  ;;  %v9417_v63 = vld [vmem:[%s13774_s1 + $0x1be0] ss:$16 sps:$4 sm:$0xff]   ;;  %v9434_v15 = vld [vmem:[%s13774_s1 + $0x1984] ss:$16 sps:$4 sm:$0xff]  }
 0x18a   :  { %v9420_v8 = vld [vmem:[%s13774_s1 + $0x19c0] ss:$16 sps:$4 sm:$0xff]   ;;  %v9437_v11 = vld [vmem:[%s13774_s1 + $0x1b84] ss:$16 sps:$4 sm:$0xff]  }
 0x18b   :  { %6780 = vmatpush1.bf16.msra.mxu0 %v9378_v3  ;;  %v9423_v9 = vld [vmem:[%s13774_s1 + $0x1bc0] ss:$16 sps:$4 sm:$0xff]   ;;  %v9428_v3 = vld [vmem:[%s13774_s1 + $0x19a4] ss:$16 sps:$4 sm:$0xff]  }
 0x18c   :  { %6821 = vmatpush1.bf16.msra.mxu1 %v9381_v10  ;;  %6781 = vmatprep.subr.bf16.mxu0 %v9386_v18  ;;  %v9431_v10 = vld [vmem:[%s13774_s1 + $0x1ba4] ss:$16 sps:$4 sm:$0xff]   ;;  %v9426_v12 = vld [vmem:[%s13774_s1 + $0x19a0] ss:$16 sps:$4 sm:$0xff]  }
 0x18d   :  { %6822 = vmatprep.subr.bf16.mxu1 %v9389_v19  ;;  %v9429_v13 = vld [vmem:[%s13774_s1 + $0x1ba0] ss:$16 sps:$4 sm:$0xff]  }
 0x18e   :  { %v9432_v18 = vld [vmem:[%s13774_s1 + $0x1980] ss:$16 sps:$4 sm:$0xff]  }
 0x18f   :  { %6782 = vmatpush1.bf16.msra.mxu0 %v9384_v20  ;;  %v9435_v19 = vld [vmem:[%s13774_s1 + $0x1b80] ss:$16 sps:$4 sm:$0xff]   ;;  %v9440_v20 = vld [vmem:[%s13774_s1 + $0x1964] ss:$16 sps:$4 sm:$0xff]  }
 0x190   :  { %6823 = vmatpush1.bf16.msra.mxu1 %v9387_v21  ;;  %6783 = vmatprep.subr.bf16.mxu0 %v9392_v26  ;;  %v9443_v21 = vld [vmem:[%s13774_s1 + $0x1b64] ss:$16 sps:$4 sm:$0xff]   ;;  %v9438_v26 = vld [vmem:[%s13774_s1 + $0x1960] ss:$16 sps:$4 sm:$0xff]  }
 0x191   :  { %6824 = vmatprep.subr.bf16.mxu1 %v9395_v27  ;;  %v9441_v27 = vld [vmem:[%s13774_s1 + $0x1b60] ss:$16 sps:$4 sm:$0xff]  }
 0x193   :  { %6784 = vmatpush1.bf16.msra.mxu0 %v9390_v28  ;;  %v9446_v28 = vld [vmem:[%s13774_s1 + $0x1944] ss:$16 sps:$4 sm:$0xff]  }
 0x194   :  { %6825 = vmatpush1.bf16.msra.mxu1 %v9393_v29  ;;  %6785 = vmatprep.subr.bf16.mxu0 %v9398_v30  ;;  %v9449_v29 = vld [vmem:[%s13774_s1 + $0x1b44] ss:$16 sps:$4 sm:$0xff]   ;;  %v9444_v30 = vld [vmem:[%s13774_s1 + $0x1940] ss:$16 sps:$4 sm:$0xff]  }
 0x195   :  { %6826 = vmatprep.subr.bf16.mxu1 %v9401_v31  ;;  %v9447_v31 = vld [vmem:[%s13774_s1 + $0x1b40] ss:$16 sps:$4 sm:$0xff]  }
 0x197   :  { %6786 = vmatpush1.bf16.msra.mxu0 %v9396_v32  ;;  %v9452_v32 = vld [vmem:[%s13774_s1 + $0x1924] ss:$16 sps:$4 sm:$0xff]  }
 0x198   :  { %6827 = vmatpush1.bf16.msra.mxu1 %v9399_v33  ;;  %6787 = vmatprep.subr.bf16.mxu0 %v9404_v34  ;;  %v9455_v33 = vld [vmem:[%s13774_s1 + $0x1b24] ss:$16 sps:$4 sm:$0xff]   ;;  %v9450_v34 = vld [vmem:[%s13774_s1 + $0x1920] ss:$16 sps:$4 sm:$0xff]  }
 0x199   :  { %6828 = vmatprep.subr.bf16.mxu1 %v9407_v35  ;;  %v9453_v35 = vld [vmem:[%s13774_s1 + $0x1b20] ss:$16 sps:$4 sm:$0xff]  }
 0x19b   :  { %6788 = vmatpush1.bf16.msra.mxu0 %v9402_v22  ;;  %v9458_v22 = vld [vmem:[%s13774_s1 + $0x1904] ss:$16 sps:$4 sm:$0xff]  }
 0x19c   :  { %6829 = vmatpush1.bf16.msra.mxu1 %v9405_v23  ;;  %6789 = vmatprep.subr.bf16.mxu0 %v9410_v49  ;;  %v9461_v23 = vld [vmem:[%s13774_s1 + $0x1b04] ss:$16 sps:$4 sm:$0xff]   ;;  %v9456_v49 = vld [vmem:[%s13774_s1 + $0x1900] ss:$16 sps:$4 sm:$0xff]  }
 0x19d   :  { %6830 = vmatprep.subr.bf16.mxu1 %v9413_v50  ;;  %v9459_v50 = vld [vmem:[%s13774_s1 + $0x1b00] ss:$16 sps:$4 sm:$0xff]  }
 0x19f   :  { %6790 = vmatpush1.bf16.msra.mxu0 %v9408_v52  ;;  %v9468_v52 = vld [vmem:[%s13774_s1 + $0x1ce4] ss:$16 sps:$4 sm:$0xff]  }
 0x1a0   :  { %6831 = vmatpush1.bf16.msra.mxu1 %v9411_v53  ;;  %6791 = vmatprep.subr.bf16.mxu0 %v9416_v62  ;;  %v9471_v53 = vld [vmem:[%s13774_s1 + $0x1ee4] ss:$16 sps:$4 sm:$0xff]  }
 0x1a1   :  { %6832 = vmatprep.subr.bf16.mxu1 %v9419_v40  ;;  %v11914_v62 = vld [vmem:[%s13775_s0 + $0x70] sm:$0xff]  ;;  %v11919_v40 = vld [vmem:[%s13775_s0 + $0x78] sm:$0xff] }
 0x1a3   :  { %6792 = vmatpush2.bf16.msra.mxu0 %v9414_v41  ;;  %v9466_v41 = vld [vmem:[%s13774_s1 + $0x1ce0] ss:$16 sps:$4 sm:$0xff]  }
 0x1a4   :  { %6833 = vmatpush2.bf16.msra.mxu1 %v9417_v63  ;;  %6793 = vmatprep.subr.bf16.mxu0 %v9422_v2  ;;  %v9469_v63 = vld [vmem:[%s13774_s1 + $0x1ee0] ss:$16 sps:$4 sm:$0xff]   ;;  %v11929_v2 = vcombine.low %v11700_v58, %v11700_v58 }
 0x1a5   :  { %6834 = vmatprep.subr.bf16.mxu1 %v9425_v4  ;;  %v11933_v4 = vcombine.low %v11705_v61, %v11705_v61  ;;  %v9472_v58 = vld [vmem:[%s13774_s1 + $0x1cc0] ss:$16 sps:$4 sm:$0xff]  }
 0x1a6   :  { %v9475_v61 = vld [vmem:[%s13774_s1 + $0x1ec0] ss:$16 sps:$4 sm:$0xff]  }
 0x1a7   :  { %6794 = vmatpush2.bf16.msra.mxu0 %v9420_v8  ;;  %v9474_v8 = vld [vmem:[%s13774_s1 + $0x1cc4] ss:$16 sps:$4 sm:$0xff]  }
 0x1a8   :  { %6835 = vmatpush2.bf16.msra.mxu1 %v9423_v9  ;;  %6795 = vmatprep.subr.bf16.mxu0 %v9428_v3  ;;  %v9477_v9 = vld [vmem:[%s13774_s1 + $0x1ec4] ss:$16 sps:$4 sm:$0xff]   ;;  %v11949_v3 = vcombine.high %v11914_v62, %v11914_v62 }
 0x1a9   :  { %6836 = vmatprep.subr.bf16.mxu1 %v9431_v10  ;;  %v11953_v10 = vcombine.high %v11919_v40, %v11919_v40 }
 0x1ab   :  { %6796 = vmatpush2.bf16.msra.mxu0 %v9426_v12 }
 0x1ac   :  { %6837 = vmatpush2.bf16.msra.mxu1 %v9429_v13  ;;  %6797 = vmatprep.subr.bf16.mxu0 %v9434_v15 }
 0x1ad   :  { %6838 = vmatprep.subr.bf16.mxu1 %v9437_v11 }
 0x1af   :  { %6798 = vmatpush2.bf16.msra.mxu0 %v9432_v18 }
 0x1b0   :  { %6839 = vmatpush2.bf16.msra.mxu1 %v9435_v19  ;;  %6799 = vmatprep.subr.bf16.mxu0 %v9440_v20  ;;  %v9480_v19 = vld [vmem:[%s13774_s1 + $0x1ca4] ss:$16 sps:$4 sm:$0xff]  }
 0x1b1   :  { %6840 = vmatprep.subr.bf16.mxu1 %v9443_v21  ;;  %v9483_v20 = vld [vmem:[%s13774_s1 + $0x1ea4] ss:$16 sps:$4 sm:$0xff]  }
 0x1b3   :  { %6800 = vmatpush2.bf16.msra.mxu0 %v9438_v26 }
 0x1b4   :  { %6841 = vmatpush2.bf16.msra.mxu1 %v9441_v27  ;;  %6801 = vmatprep.subr.bf16.mxu0 %v9446_v28  ;;  %v9481_v27 = vld [vmem:[%s13774_s1 + $0x1ea0] ss:$16 sps:$4 sm:$0xff]  }
 0x1b5   :  { %6842 = vmatprep.subr.bf16.mxu1 %v9449_v29 }
 0x1b7   :  { %6802 = vmatpush2.bf16.msra.mxu0 %v9444_v30 }
 0x1b8   :  { %6843 = vmatpush2.bf16.msra.mxu1 %v9447_v31  ;;  %6803 = vmatprep.subr.bf16.mxu0 %v9452_v32  ;;  %v9486_v32 = vld [vmem:[%s13774_s1 + $0x1c84] ss:$16 sps:$4 sm:$0xff]  }
 0x1b9   :  { %6844 = vmatprep.subr.bf16.mxu1 %v9455_v33  ;;  %v9489_v33 = vld [vmem:[%s13774_s1 + $0x1e84] ss:$16 sps:$4 sm:$0xff]  }
 0x1bb   :  { %6804 = vmatpush2.bf16.msra.mxu0 %v9450_v34  ;;  %v9484_v34 = vld [vmem:[%s13774_s1 + $0x1c80] ss:$16 sps:$4 sm:$0xff]  }
 0x1bc   :  { %6845 = vmatpush2.bf16.msra.mxu1 %v9453_v35  ;;  %6805 = vmatprep.subr.bf16.mxu0 %v9458_v22  ;;  %v9487_v35 = vld [vmem:[%s13774_s1 + $0x1e80] ss:$16 sps:$4 sm:$0xff]   ;;  %v9492_v22 = vld [vmem:[%s13774_s1 + $0x1c64] ss:$16 sps:$4 sm:$0xff]  }
 0x1bd   :  { %6846 = vmatprep.subr.bf16.mxu1 %v9461_v23  ;;  %v9495_v23 = vld [vmem:[%s13774_s1 + $0x1e64] ss:$16 sps:$4 sm:$0xff]  }
 0x1bf   :  { %6806 = vmatpush2.bf16.msra.mxu0 %v9456_v49  ;;  %v9490_v49 = vld [vmem:[%s13774_s1 + $0x1c60] ss:$16 sps:$4 sm:$0xff]  }
 0x1c0   :  { %6847 = vmatpush2.bf16.msra.mxu1 %v9459_v50  ;;  %6857 = vmatprep.subr.bf16.mxu0 %v9468_v52  ;;  %v9493_v50 = vld [vmem:[%s13774_s1 + $0x1e60] ss:$16 sps:$4 sm:$0xff]   ;;  %v9498_v52 = vld [vmem:[%s13774_s1 + $0x1c44] ss:$16 sps:$4 sm:$0xff]  }
 0x1c1   :  { %6898 = vmatprep.subr.bf16.mxu1 %v9471_v53  ;;  %v9501_v53 = vld [vmem:[%s13774_s1 + $0x1e44] ss:$16 sps:$4 sm:$0xff]  }
 0x1c2   :  { %v6563_v12 = vpop.f32.mrf.mxu0  ;;  %6808 = vmatmul.mubr.bf16.vlgmr.msra.gmra.mxu0 %v11929_v2 }
 0x1c3   :  { %v6604_v13 = vpop.f32.mrf.mxu1  ;;  %6849 = vmatmul.mubr.bf16.vlgmr.msra.gmra.mxu1 %v11933_v4  ;;  %v6564_v15 = vadd.f32 %v6563_v12, %v11736_v5  ;;  %6858 = vmatpush1.bf16.msra.mxu0 %v9466_v41  ;;  %v9478_v5 = vld [vmem:[%s13774_s1 + $0x1ca0] ss:$16 sps:$4 sm:$0xff]   ;;  %v9510_v12 = vld [vmem:[%s13774_s1 + $0x1c04] ss:$16 sps:$4 sm:$0xff]  }
 0x1c4   :  { %6899 = vmatpush1.bf16.msra.mxu1 %v9469_v63  ;;  %v6565_v11 = vpop.f32.mrf.mxu0  ;;  %6859 = vmatprep.subr.bf16.mxu0 %v9474_v8  ;;  %v9496_v41 = vld [vmem:[%s13774_s1 + $0x1c40] ss:$16 sps:$4 sm:$0xff]   ;;  %v9504_v8 = vld [vmem:[%s13774_s1 + $0x1c24] ss:$16 sps:$4 sm:$0xff]  }
 0x1c5   :  { %v6606_v18 = vpop.f32.mrf.mxu1  ;;  %6900 = vmatprep.subr.bf16.mxu1 %v9477_v9  ;;  %v11964_v21 = vadd.f32 %v6604_v13, %v6564_v15  ;;  %v6566_v26 = vadd.f32 %v6565_v11, %v11747_v14  ;;  %6889 = vmatprep.mubr.bf16.mxu0 %v11949_v3  ;;  %v9499_v63 = vld [vmem:[%s13774_s1 + $0x1e40] ss:$16 sps:$4 sm:$0xff]   ;;  %v9507_v9 = vld [vmem:[%s13774_s1 + $0x1e24] ss:$16 sps:$4 sm:$0xff]  }
 0x1c6   :  { %6930 = vmatprep.mubr.bf16.mxu1 %v11953_v10  ;;  %v6567_v28 = vpop.f32.mrf.mxu0  ;;  %v9513_v13 = vld [vmem:[%s13774_s1 + $0x1e04] ss:$16 sps:$4 sm:$0xff]   ;;  %v9508_v15 = vld [vmem:[%s13774_s1 + $0x1c00] ss:$16 sps:$4 sm:$0xff]  }
 0x1c7   :  { %v6608_v29 = vpop.f32.mrf.mxu1  ;;  %v11975_v30 = vadd.f32 %v6606_v18, %v6566_v26  ;;  %6860 = vmatpush1.bf16.msra.mxu0 %v9472_v58  ;;  %v9502_v58 = vld [vmem:[%s13774_s1 + $0x1c20] ss:$16 sps:$4 sm:$0xff]   ;;  %v9516_v18 = vld [vmem:[%s13774_s1 + $0x1de4] ss:$16 sps:$4 sm:$0xff]  }
 0x1c8   :  { %6901 = vmatpush1.bf16.msra.mxu1 %v9475_v61  ;;  %v6568_v31 = vpop.f32.mrf.mxu0  ;;  %6861 = vmatprep.subr.bf16.mxu0 %v9480_v19  ;;  %v9505_v61 = vld [vmem:[%s13774_s1 + $0x1e20] ss:$16 sps:$4 sm:$0xff]   ;;  %v9519_v19 = vld [vmem:[%s13774_s1 + $0x1fe4] ss:$16 sps:$4 sm:$0xff]  }
 0x1c9   :  { %v6609_v14 = vpop.f32.mrf.mxu1  ;;  %6902 = vmatprep.subr.bf16.mxu1 %v9483_v20  ;;  %v9511_v11 = vld [vmem:[%s13774_s1 + $0x1e00] ss:$16 sps:$4 sm:$0xff]   ;;  %v9528_v31 = vld [vmem:[%s13774_s1 + $0x1da4] ss:$16 sps:$4 sm:$0xff]  }
 0x1ca   :  { %v9514_v20 = vld [vmem:[%s13774_s1 + $0x1de0] ss:$16 sps:$4 sm:$0xff]   ;;  %v9531_v14 = vld [vmem:[%s13774_s1 + $0x1fa4] ss:$16 sps:$4 sm:$0xff]  }
 0x1cb   :  { %6862 = vmatpush1.bf16.msra.mxu0 %v9478_v5  ;;  %v9517_v26 = vld [vmem:[%s13774_s1 + $0x1fe0] ss:$16 sps:$4 sm:$0xff]   ;;  %v9522_v5 = vld [vmem:[%s13774_s1 + $0x1dc4] ss:$16 sps:$4 sm:$0xff]  }
 0x1cc   :  { %6903 = vmatpush1.bf16.msra.mxu1 %v9481_v27  ;;  %6863 = vmatprep.subr.bf16.mxu0 %v9486_v32  ;;  %v9525_v27 = vld [vmem:[%s13774_s1 + $0x1fc4] ss:$16 sps:$4 sm:$0xff]   ;;  %v9520_v28 = vld [vmem:[%s13774_s1 + $0x1dc0] ss:$16 sps:$4 sm:$0xff]  }
 0x1cd   :  { %6904 = vmatprep.subr.bf16.mxu1 %v9489_v33  ;;  %v9523_v29 = vld [vmem:[%s13774_s1 + $0x1fc0] ss:$16 sps:$4 sm:$0xff]  }
 0x1ce   :  { %v9526_v32 = vld [vmem:[%s13774_s1 + $0x1da0] ss:$16 sps:$4 sm:$0xff]  }
 0x1cf   :  { %6864 = vmatpush1.bf16.msra.mxu0 %v9484_v34  ;;  %v9529_v33 = vld [vmem:[%s13774_s1 + $0x1fa0] ss:$16 sps:$4 sm:$0xff]   ;;  %v9534_v34 = vld [vmem:[%s13774_s1 + $0x1d84] ss:$16 sps:$4 sm:$0xff]  }
 0x1d0   :  { %6905 = vmatpush1.bf16.msra.mxu1 %v9487_v35  ;;  %6865 = vmatprep.subr.bf16.mxu0 %v9492_v22  ;;  %v9537_v35 = vld [vmem:[%s13774_s1 + $0x1f84] ss:$16 sps:$4 sm:$0xff]   ;;  %v9532_v22 = vld [vmem:[%s13774_s1 + $0x1d80] ss:$16 sps:$4 sm:$0xff]  }
 0x1d1   :  { %6906 = vmatprep.subr.bf16.mxu1 %v9495_v23  ;;  %v9535_v23 = vld [vmem:[%s13774_s1 + $0x1f80] ss:$16 sps:$4 sm:$0xff]  }
 0x1d3   :  { %6866 = vmatpush1.bf16.msra.mxu0 %v9490_v49  ;;  %v9540_v49 = vld [vmem:[%s13774_s1 + $0x1d64] ss:$16 sps:$4 sm:$0xff]  }
 0x1d4   :  { %6907 = vmatpush1.bf16.msra.mxu1 %v9493_v50  ;;  %6867 = vmatprep.subr.bf16.mxu0 %v9498_v52  ;;  %v9543_v50 = vld [vmem:[%s13774_s1 + $0x1f64] ss:$16 sps:$4 sm:$0xff]   ;;  %v9538_v52 = vld [vmem:[%s13774_s1 + $0x1d60] ss:$16 sps:$4 sm:$0xff]  }
 0x1d5   :  { %6908 = vmatprep.subr.bf16.mxu1 %v9501_v53  ;;  %v9541_v53 = vld [vmem:[%s13774_s1 + $0x1f60] ss:$16 sps:$4 sm:$0xff]  }
 0x1d7   :  { %6868 = vmatpush1.bf16.msra.mxu0 %v9496_v41  ;;  %v9546_v41 = vld [vmem:[%s13774_s1 + $0x1d44] ss:$16 sps:$4 sm:$0xff]  }
 0x1d8   :  { %6909 = vmatpush1.bf16.msra.mxu1 %v9499_v63  ;;  %6869 = vmatprep.subr.bf16.mxu0 %v9504_v8  ;;  %v9549_v63 = vld [vmem:[%s13774_s1 + $0x1f44] ss:$16 sps:$4 sm:$0xff]   ;;  %v9544_v8 = vld [vmem:[%s13774_s1 + $0x1d40] ss:$16 sps:$4 sm:$0xff]  }
 0x1d9   :  { %6910 = vmatprep.subr.bf16.mxu1 %v9507_v9  ;;  %v9547_v9 = vld [vmem:[%s13774_s1 + $0x1f40] ss:$16 sps:$4 sm:$0xff]  }
 0x1db   :  { %6870 = vmatpush1.bf16.msra.mxu0 %v9502_v58  ;;  %v9552_v58 = vld [vmem:[%s13774_s1 + $0x1d24] ss:$16 sps:$4 sm:$0xff]  }
 0x1dc   :  { %6911 = vmatpush1.bf16.msra.mxu1 %v9505_v61  ;;  %6871 = vmatprep.subr.bf16.mxu0 %v9510_v12  ;;  %v9555_v61 = vld [vmem:[%s13774_s1 + $0x1f24] ss:$16 sps:$4 sm:$0xff]   ;;  %v9550_v12 = vld [vmem:[%s13774_s1 + $0x1d20] ss:$16 sps:$4 sm:$0xff]  }
 0x1dd   :  { %6912 = vmatprep.subr.bf16.mxu1 %v9513_v13  ;;  %v9553_v13 = vld [vmem:[%s13774_s1 + $0x1f20] ss:$16 sps:$4 sm:$0xff]  }
 0x1df   :  { %6872 = vmatpush1.bf16.msra.mxu0 %v9508_v15  ;;  %v9558_v15 = vld [vmem:[%s13774_s1 + $0x1d04] ss:$16 sps:$4 sm:$0xff]  }
 0x1e0   :  { %6913 = vmatpush1.bf16.msra.mxu1 %v9511_v11  ;;  %6873 = vmatprep.subr.bf16.mxu0 %v9516_v18  ;;  %v9561_v11 = vld [vmem:[%s13774_s1 + $0x1f04] ss:$16 sps:$4 sm:$0xff]   ;;  %v9556_v18 = vld [vmem:[%s13774_s1 + $0x1d00] ss:$16 sps:$4 sm:$0xff]  }
 0x1e1   :  { %6914 = vmatprep.subr.bf16.mxu1 %v9519_v19  ;;  %v9559_v19 = vld [vmem:[%s13774_s1 + $0x1f00] ss:$16 sps:$4 sm:$0xff]  }
 0x1e3   :  { %6874 = vmatpush2.bf16.msra.mxu0 %v9514_v20  ;;  %v9568_v20 = vld [vmem:[%s13774_s1 + $0xec] ss:$16 sps:$4 sm:$0xff]  }
 0x1e4   :  { %6915 = vmatpush2.bf16.msra.mxu1 %v9517_v26  ;;  %6875 = vmatprep.subr.bf16.mxu0 %v9522_v5  ;;  %v9571_v26 = vld [vmem:[%s13774_s1 + $0x2ec] ss:$16 sps:$4 sm:$0xff]   ;;  %v9566_v5 = vld [vmem:[%s13774_s1 + $0xe8] ss:$16 sps:$4 sm:$0xff]  }
 0x1e5   :  { %6916 = vmatprep.subr.bf16.mxu1 %v9525_v27  ;;  %v9569_v27 = vld [vmem:[%s13774_s1 + $0x2e8] ss:$16 sps:$4 sm:$0xff]  }
 0x1e7   :  { %6876 = vmatpush2.bf16.msra.mxu0 %v9520_v28  ;;  %v12147_v28 = vcombine.low %v11914_v62, %v11914_v62  ;;  %v9572_v62 = vld [vmem:[%s13774_s1 + $0xc8] ss:$16 sps:$4 sm:$0xff]  }
 0x1e8   :  { %6917 = vmatpush2.bf16.msra.mxu1 %v9523_v29  ;;  %6877 = vmatprep.subr.bf16.mxu0 %v9528_v31  ;;  %v12151_v29 = vcombine.low %v11919_v40, %v11919_v40  ;;  %v9574_v31 = vld [vmem:[%s13774_s1 + $0xcc] ss:$16 sps:$4 sm:$0xff]   ;;  %v9575_v40 = vld [vmem:[%s13774_s1 + $0x2c8] ss:$16 sps:$4 sm:$0xff]  }
 0x1e9   :  { %6918 = vmatprep.subr.bf16.mxu1 %v9531_v14  ;;  %v9577_v14 = vld [vmem:[%s13774_s1 + $0x2cc] ss:$16 sps:$4 sm:$0xff]  }
 0x1eb   :  { %6878 = vmatpush2.bf16.msra.mxu0 %v9526_v32 }
 0x1ec   :  { %6919 = vmatpush2.bf16.msra.mxu1 %v9529_v33  ;;  %6879 = vmatprep.subr.bf16.mxu0 %v9534_v34 }
 0x1ed   :  { %6920 = vmatprep.subr.bf16.mxu1 %v9537_v35 }
 0x1ef   :  { %6880 = vmatpush2.bf16.msra.mxu0 %v9532_v22 }
 0x1f0   :  { %6921 = vmatpush2.bf16.msra.mxu1 %v9535_v23  ;;  %6881 = vmatprep.subr.bf16.mxu0 %v9540_v49  ;;  %v9580_v23 = vld [vmem:[%s13774_s1 + $0xac] ss:$16 sps:$4 sm:$0xff]  }
 0x1f1   :  { %6922 = vmatprep.subr.bf16.mxu1 %v9543_v50  ;;  %v9583_v49 = vld [vmem:[%s13774_s1 + $0x2ac] ss:$16 sps:$4 sm:$0xff]  }
 0x1f3   :  { %6882 = vmatpush2.bf16.msra.mxu0 %v9538_v52 }
 0x1f4   :  { %6923 = vmatpush2.bf16.msra.mxu1 %v9541_v53  ;;  %6883 = vmatprep.subr.bf16.mxu0 %v9546_v41  ;;  %v9581_v53 = vld [vmem:[%s13774_s1 + $0x2a8] ss:$16 sps:$4 sm:$0xff]  }
 0x1f5   :  { %6924 = vmatprep.subr.bf16.mxu1 %v9549_v63 }
 0x1f7   :  { %6884 = vmatpush2.bf16.msra.mxu0 %v9544_v8 }
 0x1f8   :  { %6925 = vmatpush2.bf16.msra.mxu1 %v9547_v9  ;;  %6885 = vmatprep.subr.bf16.mxu0 %v9552_v58  ;;  %v9586_v58 = vld [vmem:[%s13774_s1 + $0x8c] ss:$16 sps:$4 sm:$0xff]  }
 0x1f9   :  { %6926 = vmatprep.subr.bf16.mxu1 %v9555_v61  ;;  %v9587_v61 = vld [vmem:[%s13774_s1 + $0x288] ss:$16 sps:$4 sm:$0xff]  }
 0x1fb   :  { %6886 = vmatpush2.bf16.msra.mxu0 %v9550_v12  ;;  %v9592_v12 = vld [vmem:[%s13774_s1 + $0x6c] ss:$16 sps:$4 sm:$0xff]  }
 0x1fc   :  { %6927 = vmatpush2.bf16.msra.mxu1 %v9553_v13  ;;  %6887 = vmatprep.subr.bf16.mxu0 %v9558_v15  ;;  %v9595_v13 = vld [vmem:[%s13774_s1 + $0x26c] ss:$16 sps:$4 sm:$0xff]   ;;  %v9590_v15 = vld [vmem:[%s13774_s1 + $0x68] ss:$16 sps:$4 sm:$0xff]  }
 0x1fd   :  { %6928 = vmatprep.subr.bf16.mxu1 %v9561_v11  ;;  %v9593_v11 = vld [vmem:[%s13774_s1 + $0x268] ss:$16 sps:$4 sm:$0xff]  }
 0x1ff   :  { %6888 = vmatpush2.bf16.msra.mxu0 %v9556_v18  ;;  %v9598_v18 = vld [vmem:[%s13774_s1 + $0x4c] ss:$16 sps:$4 sm:$0xff]  }
 0x200   :  { %6929 = vmatpush2.bf16.msra.mxu1 %v9559_v19  ;;  %6939 = vmatprep.subr.bf16.mxu0 %v9568_v20  ;;  %v9601_v19 = vld [vmem:[%s13774_s1 + $0x24c] ss:$16 sps:$4 sm:$0xff]   ;;  %v9596_v20 = vld [vmem:[%s13774_s1 + $0x48] ss:$16 sps:$4 sm:$0xff]  }
 0x201   :  { %6980 = vmatprep.subr.bf16.mxu1 %v9571_v26  ;;  %v9599_v26 = vld [vmem:[%s13774_s1 + $0x248] ss:$16 sps:$4 sm:$0xff]  }
 0x202   :  { %v6645_v32 = vpop.f32.mrf.mxu0  ;;  %6890 = vmatmul.mubr.bf16.vlgmr.msra.gmra.mxu0 %v12147_v28 }
 0x203   :  { %v6686_v33 = vpop.f32.mrf.mxu1  ;;  %6931 = vmatmul.mubr.bf16.vlgmr.msra.gmra.mxu1 %v12151_v29  ;;  %v6646_v34 = vadd.f32 %v6645_v32, %v11964_v21  ;;  %6940 = vmatpush1.bf16.msra.mxu0 %v9566_v5  ;;  %v9578_v21 = vld [vmem:[%s13774_s1 + $0xa8] ss:$16 sps:$4 sm:$0xff]   ;;  %v9604_v5 = vld [vmem:[%s13774_s1 + $0x2c] ss:$16 sps:$4 sm:$0xff]  }
 0x204   :  { %6981 = vmatpush1.bf16.msra.mxu1 %v9569_v27  ;;  %v6647_v35 = vpop.f32.mrf.mxu0  ;;  %6941 = vmatprep.subr.bf16.mxu0 %v9574_v31  ;;  %v9607_v27 = vld [vmem:[%s13774_s1 + $0x22c] ss:$16 sps:$4 sm:$0xff]   ;;  %v9602_v31 = vld [vmem:[%s13774_s1 + $0x28] ss:$16 sps:$4 sm:$0xff]  }
 0x205   :  { %v6688_v22 = vpop.f32.mrf.mxu1  ;;  %6982 = vmatprep.subr.bf16.mxu1 %v9577_v14  ;;  %v12174_v50 = vadd.f32 %v6686_v33, %v6646_v34  ;;  %v6648_v52 = vadd.f32 %v6647_v35, %v11975_v30  ;;  %6971 = vmatprep.mubr.bf16.mxu0 %v10498_v47  ;;  %v9589_v47 = vld [vmem:[%s13774_s1 + $0x28c] ss:$16 sps:$4 sm:$0xff]   ;;  %v9605_v14 = vld [vmem:[%s13774_s1 + $0x228] ss:$16 sps:$4 sm:$0xff]  }
 0x206   :  { %7012 = vmatprep.mubr.bf16.mxu1 %v10509_v51  ;;  %v6649_v41 = vpop.f32.mrf.mxu0  ;;  %v9584_v51 = vld [vmem:[%s13774_s1 + $0x88] ss:$16 sps:$4 sm:$0xff]   ;;  %v9616_v34 = vld [vmem:[%s13774_s1 + $0x1ec] ss:$16 sps:$4 sm:$0xff]  }
 0x207   :  { %v6690_v63 = vpop.f32.mrf.mxu1  ;;  %v12185_v8 = vadd.f32 %v6688_v22, %v6648_v52  ;;  %6942 = vmatpush1.bf16.msra.mxu0 %v9572_v62  ;;  %v9610_v62 = vld [vmem:[%s13774_s1 + $0xc] ss:$16 sps:$4 sm:$0xff]   ;;  %v9608_v32 = vld [vmem:[%s13774_s1 + $0x8] ss:$16 sps:$4 sm:$0xff]  }
 0x208   :  { %6983 = vmatpush1.bf16.msra.mxu1 %v9575_v40  ;;  %v6650_v9 = vpop.f32.mrf.mxu0  ;;  %6943 = vmatprep.subr.bf16.mxu0 %v9580_v23  ;;  %v9613_v40 = vld [vmem:[%s13774_s1 + $0x20c] ss:$16 sps:$4 sm:$0xff]   ;;  %v9611_v33 = vld [vmem:[%s13774_s1 + $0x208] ss:$16 sps:$4 sm:$0xff]  }
 0x209   :  { %v6691_v30 = vpop.f32.mrf.mxu1  ;;  %6984 = vmatprep.subr.bf16.mxu1 %v9583_v49  ;;  %v9619_v35 = vld [vmem:[%s13774_s1 + $0x3ec] ss:$16 sps:$4 sm:$0xff]   ;;  %v9614_v22 = vld [vmem:[%s13774_s1 + $0x1e8] ss:$16 sps:$4 sm:$0xff]  }
 0x20a   :  { %v9617_v23 = vld [vmem:[%s13774_s1 + $0x3e8] ss:$16 sps:$4 sm:$0xff]   ;;  %v9622_v49 = vld [vmem:[%s13774_s1 + $0x1cc] ss:$16 sps:$4 sm:$0xff]  }
 0x20b   :  { %6944 = vmatpush1.bf16.msra.mxu0 %v9578_v21  ;;  %v9625_v52 = vld [vmem:[%s13774_s1 + $0x3cc] ss:$16 sps:$4 sm:$0xff]   ;;  %v9620_v21 = vld [vmem:[%s13774_s1 + $0x1c8] ss:$16 sps:$4 sm:$0xff]  }
 0x20c   :  { %6985 = vmatpush1.bf16.msra.mxu1 %v9581_v53  ;;  %6945 = vmatprep.subr.bf16.mxu0 %v9586_v58  ;;  %v9623_v53 = vld [vmem:[%s13774_s1 + $0x3c8] ss:$16 sps:$4 sm:$0xff]   ;;  %v9628_v41 = vld [vmem:[%s13774_s1 + $0x1ac] ss:$16 sps:$4 sm:$0xff]  }
 0x20d   :  { %6986 = vmatprep.subr.bf16.mxu1 %v9589_v47  ;;  %v9631_v63 = vld [vmem:[%s13774_s1 + $0x3ac] ss:$16 sps:$4 sm:$0xff]   ;;  %v9626_v9 = vld [vmem:[%s13774_s1 + $0x1a8] ss:$16 sps:$4 sm:$0xff]  }
 0x20e   :  { %v9629_v30 = vld [vmem:[%s13774_s1 + $0x3a8] ss:$16 sps:$4 sm:$0xff]   ;;  %v9634_v58 = vld [vmem:[%s13774_s1 + $0x18c] ss:$16 sps:$4 sm:$0xff]  }
 0x20f   :  { %6946 = vmatpush1.bf16.msra.mxu0 %v9584_v51  ;;  %v9637_v47 = vld [vmem:[%s13774_s1 + $0x38c] ss:$16 sps:$4 sm:$0xff]   ;;  %v9632_v51 = vld [vmem:[%s13774_s1 + $0x188] ss:$16 sps:$4 sm:$0xff]  }
 0x210   :  { %6987 = vmatpush1.bf16.msra.mxu1 %v9587_v61  ;;  %6947 = vmatprep.subr.bf16.mxu0 %v9592_v12  ;;  %v9635_v61 = vld [vmem:[%s13774_s1 + $0x388] ss:$16 sps:$4 sm:$0xff]   ;;  %v9640_v12 = vld [vmem:[%s13774_s1 + $0x16c] ss:$16 sps:$4 sm:$0xff]  }
 0x211   :  { %6988 = vmatprep.subr.bf16.mxu1 %v9595_v13  ;;  %v9643_v13 = vld [vmem:[%s13774_s1 + $0x36c] ss:$16 sps:$4 sm:$0xff]  }
 0x213   :  { %6948 = vmatpush1.bf16.msra.mxu0 %v9590_v15  ;;  %v9638_v15 = vld [vmem:[%s13774_s1 + $0x168] ss:$16 sps:$4 sm:$0xff]  }
 0x214   :  { %6989 = vmatpush1.bf16.msra.mxu1 %v9593_v11  ;;  %6949 = vmatprep.subr.bf16.mxu0 %v9598_v18  ;;  %v9641_v11 = vld [vmem:[%s13774_s1 + $0x368] ss:$16 sps:$4 sm:$0xff]   ;;  %v9646_v18 = vld [vmem:[%s13774_s1 + $0x14c] ss:$16 sps:$4 sm:$0xff]  }
 0x215   :  { %6990 = vmatprep.subr.bf16.mxu1 %v9601_v19  ;;  %v9649_v19 = vld [vmem:[%s13774_s1 + $0x34c] ss:$16 sps:$4 sm:$0xff]  }
 0x217   :  { %6950 = vmatpush1.bf16.msra.mxu0 %v9596_v20  ;;  %v9644_v20 = vld [vmem:[%s13774_s1 + $0x148] ss:$16 sps:$4 sm:$0xff]  }
 0x218   :  { %6991 = vmatpush1.bf16.msra.mxu1 %v9599_v26  ;;  %6951 = vmatprep.subr.bf16.mxu0 %v9604_v5  ;;  %v9647_v26 = vld [vmem:[%s13774_s1 + $0x348] ss:$16 sps:$4 sm:$0xff]   ;;  %v9652_v5 = vld [vmem:[%s13774_s1 + $0x12c] ss:$16 sps:$4 sm:$0xff]  }
 0x219   :  { %6992 = vmatprep.subr.bf16.mxu1 %v9607_v27  ;;  %v9655_v27 = vld [vmem:[%s13774_s1 + $0x32c] ss:$16 sps:$4 sm:$0xff]  }
 0x21b   :  { %6952 = vmatpush1.bf16.msra.mxu0 %v9602_v31  ;;  %v9650_v31 = vld [vmem:[%s13774_s1 + $0x128] ss:$16 sps:$4 sm:$0xff]  }
 0x21c   :  { %6993 = vmatpush1.bf16.msra.mxu1 %v9605_v14  ;;  %6953 = vmatprep.subr.bf16.mxu0 %v9610_v62  ;;  %v9653_v14 = vld [vmem:[%s13774_s1 + $0x328] ss:$16 sps:$4 sm:$0xff]   ;;  %v9658_v62 = vld [vmem:[%s13774_s1 + $0x10c] ss:$16 sps:$4 sm:$0xff]  }
 0x21d   :  { %6994 = vmatprep.subr.bf16.mxu1 %v9613_v40  ;;  %v9661_v40 = vld [vmem:[%s13774_s1 + $0x30c] ss:$16 sps:$4 sm:$0xff]  }
 0x21f   :  { %6954 = vmatpush1.bf16.msra.mxu0 %v9608_v32  ;;  %v9656_v32 = vld [vmem:[%s13774_s1 + $0x108] ss:$16 sps:$4 sm:$0xff]  }
 0x220   :  { %6995 = vmatpush1.bf16.msra.mxu1 %v9611_v33  ;;  %6955 = vmatprep.subr.bf16.mxu0 %v9616_v34  ;;  %v9659_v33 = vld [vmem:[%s13774_s1 + $0x308] ss:$16 sps:$4 sm:$0xff]   ;;  %v9664_v34 = vld [vmem:[%s13774_s1 + $0x4ec] ss:$16 sps:$4 sm:$0xff]  }
 0x221   :  { %6996 = vmatprep.subr.bf16.mxu1 %v9619_v35  ;;  %v9667_v35 = vld [vmem:[%s13774_s1 + $0x6ec] ss:$16 sps:$4 sm:$0xff]  }
 0x223   :  { %6956 = vmatpush2.bf16.msra.mxu0 %v9614_v22  ;;  %v9662_v22 = vld [vmem:[%s13774_s1 + $0x4e8] ss:$16 sps:$4 sm:$0xff]  }
 0x224   :  { %6997 = vmatpush2.bf16.msra.mxu1 %v9617_v23  ;;  %6957 = vmatprep.subr.bf16.mxu0 %v9622_v49  ;;  %v9665_v23 = vld [vmem:[%s13774_s1 + $0x6e8] ss:$16 sps:$4 sm:$0xff]   ;;  %v9670_v49 = vld [vmem:[%s13774_s1 + $0x4cc] ss:$16 sps:$4 sm:$0xff]  }
 0x225   :  { %6998 = vmatprep.subr.bf16.mxu1 %v9625_v52  ;;  %v9673_v52 = vld [vmem:[%s13774_s1 + $0x6cc] ss:$16 sps:$4 sm:$0xff]  }
 0x227   :  { %6958 = vmatpush2.bf16.msra.mxu0 %v9620_v21  ;;  %v9668_v21 = vld [vmem:[%s13774_s1 + $0x4c8] ss:$16 sps:$4 sm:$0xff]  }
 0x228   :  { %6999 = vmatpush2.bf16.msra.mxu1 %v9623_v53  ;;  %6959 = vmatprep.subr.bf16.mxu0 %v9628_v41  ;;  %v9671_v53 = vld [vmem:[%s13774_s1 + $0x6c8] ss:$16 sps:$4 sm:$0xff]  }
 0x229   :  { %7000 = vmatprep.subr.bf16.mxu1 %v9631_v63 }
 0x22b   :  { %6960 = vmatpush2.bf16.msra.mxu0 %v9626_v9 }
 0x22c   :  { %7001 = vmatpush2.bf16.msra.mxu1 %v9629_v30  ;;  %6961 = vmatprep.subr.bf16.mxu0 %v9634_v58 }
 0x22d   :  { %7002 = vmatprep.subr.bf16.mxu1 %v9637_v47  ;;  %v9676_v47 = vld [vmem:[%s13774_s1 + $0x4ac] ss:$16 sps:$4 sm:$0xff]  }
 0x22f   :  { %6962 = vmatpush2.bf16.msra.mxu0 %v9632_v51  ;;  %v9679_v51 = vld [vmem:[%s13774_s1 + $0x6ac] ss:$16 sps:$4 sm:$0xff]  }
 0x230   :  { %7003 = vmatpush2.bf16.msra.mxu1 %v9635_v61  ;;  %6963 = vmatprep.subr.bf16.mxu0 %v9640_v12 }
 0x231   :  { %7004 = vmatprep.subr.bf16.mxu1 %v9643_v13  ;;  %v9674_v13 = vld [vmem:[%s13774_s1 + $0x4a8] ss:$16 sps:$4 sm:$0xff]  }
 0x233   :  { %6964 = vmatpush2.bf16.msra.mxu0 %v9638_v15  ;;  %v9677_v15 = vld [vmem:[%s13774_s1 + $0x6a8] ss:$16 sps:$4 sm:$0xff]  }
 0x234   :  { %7005 = vmatpush2.bf16.msra.mxu1 %v9641_v11  ;;  %6965 = vmatprep.subr.bf16.mxu0 %v9646_v18  ;;  %v9680_v18 = vld [vmem:[%s13774_s1 + $0x488] ss:$16 sps:$4 sm:$0xff]  }
 0x235   :  { %7006 = vmatprep.subr.bf16.mxu1 %v9649_v19  ;;  %v9683_v19 = vld [vmem:[%s13774_s1 + $0x688] ss:$16 sps:$4 sm:$0xff]  }
 0x237   :  { %6966 = vmatpush2.bf16.msra.mxu0 %v9644_v20  ;;  %v9688_v20 = vld [vmem:[%s13774_s1 + $0x46c] ss:$16 sps:$4 sm:$0xff]  }
 0x238   :  { %7007 = vmatpush2.bf16.msra.mxu1 %v9647_v26  ;;  %6967 = vmatprep.subr.bf16.mxu0 %v9652_v5  ;;  %v9691_v26 = vld [vmem:[%s13774_s1 + $0x66c] ss:$16 sps:$4 sm:$0xff]   ;;  %v9686_v5 = vld [vmem:[%s13774_s1 + $0x468] ss:$16 sps:$4 sm:$0xff]  }
 0x239   :  { %7008 = vmatprep.subr.bf16.mxu1 %v9655_v27  ;;  %v9689_v27 = vld [vmem:[%s13774_s1 + $0x668] ss:$16 sps:$4 sm:$0xff]  }
 0x23b   :  { %6968 = vmatpush2.bf16.msra.mxu0 %v9650_v31  ;;  %v9694_v31 = vld [vmem:[%s13774_s1 + $0x44c] ss:$16 sps:$4 sm:$0xff]  }
 0x23c   :  { %7009 = vmatpush2.bf16.msra.mxu1 %v9653_v14  ;;  %6969 = vmatprep.subr.bf16.mxu0 %v9658_v62  ;;  %v9697_v14 = vld [vmem:[%s13774_s1 + $0x64c] ss:$16 sps:$4 sm:$0xff]   ;;  %v9692_v62 = vld [vmem:[%s13774_s1 + $0x448] ss:$16 sps:$4 sm:$0xff]  }
 0x23d   :  { %7010 = vmatprep.subr.bf16.mxu1 %v9661_v40  ;;  %v9695_v40 = vld [vmem:[%s13774_s1 + $0x648] ss:$16 sps:$4 sm:$0xff]  }
 0x23f   :  { %6970 = vmatpush2.bf16.msra.mxu0 %v9656_v32  ;;  %v9700_v32 = vld [vmem:[%s13774_s1 + $0x42c] ss:$16 sps:$4 sm:$0xff]  }
 0x240   :  { %7011 = vmatpush2.bf16.msra.mxu1 %v9659_v33  ;;  %7021 = vmatprep.subr.bf16.mxu0 %v9664_v34  ;;  %v9703_v33 = vld [vmem:[%s13774_s1 + $0x62c] ss:$16 sps:$4 sm:$0xff]   ;;  %v9698_v34 = vld [vmem:[%s13774_s1 + $0x428] ss:$16 sps:$4 sm:$0xff]  }
 0x241   :  { %7062 = vmatprep.subr.bf16.mxu1 %v9667_v35  ;;  %v9701_v35 = vld [vmem:[%s13774_s1 + $0x628] ss:$16 sps:$4 sm:$0xff]  }
 0x242   :  { %v6727_v41 = vpop.f32.mrf.mxu0  ;;  %6972 = vmatmul.mubr.bf16.vlgmr.msra.gmra.mxu0 %v10567_v6 }
 0x243   :  { %v6768_v63 = vpop.f32.mrf.mxu1  ;;  %7013 = vmatmul.mubr.bf16.vlgmr.msra.gmra.mxu1 %v10569_v7  ;;  %v6728_v9 = vadd.f32 %v6727_v41, %v12174_v50  ;;  %7022 = vmatpush1.bf16.msra.mxu0 %v9662_v22  ;;  %v9706_v22 = vld [vmem:[%s13774_s1 + $0x40c] ss:$16 sps:$4 sm:$0xff]   ;;  %v9710_v41 = vld [vmem:[%s13774_s1 + $0x5e8] ss:$16 sps:$4 sm:$0xff]  }
 0x244   :  { %7063 = vmatpush1.bf16.msra.mxu1 %v9665_v23  ;;  %v6729_v30 = vpop.f32.mrf.mxu0  ;;  %7023 = vmatprep.subr.bf16.mxu0 %v9670_v49  ;;  %v9709_v23 = vld [vmem:[%s13774_s1 + $0x60c] ss:$16 sps:$4 sm:$0xff]   ;;  %v9704_v49 = vld [vmem:[%s13774_s1 + $0x408] ss:$16 sps:$4 sm:$0xff]  }
 0x245   :  { %v6770_v58 = vpop.f32.mrf.mxu1  ;;  %7064 = vmatprep.subr.bf16.mxu1 %v9673_v52  ;;  %v12376_v61 = vadd.f32 %v6768_v63, %v6728_v9  ;;  %v6730_v6 = vadd.f32 %v6729_v30, %v12185_v8  ;;  %7053 = vmatprep.mubr.bf16.mxu0 %v10663_v36  ;;  %v9682_v36 = vld [vmem:[%s13774_s1 + $0x48c] ss:$16 sps:$4 sm:$0xff]   ;;  %v9707_v52 = vld [vmem:[%s13774_s1 + $0x608] ss:$16 sps:$4 sm:$0xff]  }
 0x246   :  { %7094 = vmatprep.mubr.bf16.mxu1 %v10667_v37  ;;  %v6731_v7 = vpop.f32.mrf.mxu0  ;;  %v9685_v37 = vld [vmem:[%s13774_s1 + $0x68c] ss:$16 sps:$4 sm:$0xff]   ;;  %v9713_v63 = vld [vmem:[%s13774_s1 + $0x7e8] ss:$16 sps:$4 sm:$0xff]  }
 0x247   :  { %v6772_v50 = vpop.f32.mrf.mxu1  ;;  %v12381_v12 = vadd.f32 %v6770_v58, %v6730_v6  ;;  %7024 = vmatpush1.bf16.msra.mxu0 %v9668_v21  ;;  %v9712_v21 = vld [vmem:[%s13774_s1 + $0x5ec] ss:$16 sps:$4 sm:$0xff]   ;;  %v9716_v58 = vld [vmem:[%s13774_s1 + $0x5c8] ss:$16 sps:$4 sm:$0xff]  }
 0x248   :  { %7065 = vmatpush1.bf16.msra.mxu1 %v9671_v53  ;;  %v6732_v11 = vpop.f32.mrf.mxu0  ;;  %7025 = vmatprep.subr.bf16.mxu0 %v9676_v47  ;;  %v9715_v53 = vld [vmem:[%s13774_s1 + $0x7ec] ss:$16 sps:$4 sm:$0xff]   ;;  %v9719_v47 = vld [vmem:[%s13774_s1 + $0x7c8] ss:$16 sps:$4 sm:$0xff]  }
 0x249   :  { %v6773_v8 = vpop.f32.mrf.mxu1  ;;  %7066 = vmatprep.subr.bf16.mxu1 %v9679_v51  ;;  %v9718_v9 = vld [vmem:[%s13774_s1 + $0x5cc] ss:$16 sps:$4 sm:$0xff]   ;;  %v9722_v7 = vld [vmem:[%s13774_s1 + $0x5a8] ss:$16 sps:$4 sm:$0xff]  }
 0x24a   :  { %v9721_v30 = vld [vmem:[%s13774_s1 + $0x7cc] ss:$16 sps:$4 sm:$0xff]   ;;  %v9725_v50 = vld [vmem:[%s13774_s1 + $0x7a8] ss:$16 sps:$4 sm:$0xff]  }
 0x24b   :  { %7026 = vmatpush1.bf16.msra.mxu0 %v9674_v13  ;;  %v9724_v51 = vld [vmem:[%s13774_s1 + $0x5ac] ss:$16 sps:$4 sm:$0xff]   ;;  %v9728_v11 = vld [vmem:[%s13774_s1 + $0x588] ss:$16 sps:$4 sm:$0xff]  }
 0x24c   :  { %7067 = vmatpush1.bf16.msra.mxu1 %v9677_v15  ;;  %7027 = vmatprep.subr.bf16.mxu0 %v9682_v36  ;;  %v9727_v6 = vld [vmem:[%s13774_s1 + $0x7ac] ss:$16 sps:$4 sm:$0xff]   ;;  %v9731_v8 = vld [vmem:[%s13774_s1 + $0x788] ss:$16 sps:$4 sm:$0xff]  }
 0x24d   :  { %7068 = vmatprep.subr.bf16.mxu1 %v9685_v37  ;;  %v9730_v13 = vld [vmem:[%s13774_s1 + $0x58c] ss:$16 sps:$4 sm:$0xff]  }
 0x24e   :  { %v9733_v15 = vld [vmem:[%s13774_s1 + $0x78c] ss:$16 sps:$4 sm:$0xff]  }
 0x24f   :  { %7028 = vmatpush1.bf16.msra.mxu0 %v9680_v18  ;;  %v9736_v36 = vld [vmem:[%s13774_s1 + $0x56c] ss:$16 sps:$4 sm:$0xff]   ;;  %v9734_v18 = vld [vmem:[%s13774_s1 + $0x568] ss:$16 sps:$4 sm:$0xff]  }
 0x250   :  { %7069 = vmatpush1.bf16.msra.mxu1 %v9683_v19  ;;  %7029 = vmatprep.subr.bf16.mxu0 %v9688_v20  ;;  %v9739_v37 = vld [vmem:[%s13774_s1 + $0x76c] ss:$16 sps:$4 sm:$0xff]   ;;  %v9737_v19 = vld [vmem:[%s13774_s1 + $0x768] ss:$16 sps:$4 sm:$0xff]  }
 0x251   :  { %7070 = vmatprep.subr.bf16.mxu1 %v9691_v26  ;;  %v9742_v20 = vld [vmem:[%s13774_s1 + $0x54c] ss:$16 sps:$4 sm:$0xff]  }
 0x252   :  { %v9745_v26 = vld [vmem:[%s13774_s1 + $0x74c] ss:$16 sps:$4 sm:$0xff]  }
 0x253   :  { %7030 = vmatpush1.bf16.msra.mxu0 %v9686_v5  ;;  %v9740_v5 = vld [vmem:[%s13774_s1 + $0x548] ss:$16 sps:$4 sm:$0xff]  }
 0x254   :  { %7071 = vmatpush1.bf16.msra.mxu1 %v9689_v27  ;;  %7031 = vmatprep.subr.bf16.mxu0 %v9694_v31  ;;  %v9743_v27 = vld [vmem:[%s13774_s1 + $0x748] ss:$16 sps:$4 sm:$0xff]   ;;  %v9748_v31 = vld [vmem:[%s13774_s1 + $0x52c] ss:$16 sps:$4 sm:$0xff]  }
 0x255   :  { %7072 = vmatprep.subr.bf16.mxu1 %v9697_v14  ;;  %v9751_v14 = vld [vmem:[%s13774_s1 + $0x72c] ss:$16 sps:$4 sm:$0xff]  }
 0x257   :  { %7032 = vmatpush1.bf16.msra.mxu0 %v9692_v62  ;;  %v9746_v62 = vld [vmem:[%s13774_s1 + $0x528] ss:$16 sps:$4 sm:$0xff]  }
 0x258   :  { %7073 = vmatpush1.bf16.msra.mxu1 %v9695_v40  ;;  %7033 = vmatprep.subr.bf16.mxu0 %v9700_v32  ;;  %v9749_v40 = vld [vmem:[%s13774_s1 + $0x728] ss:$16 sps:$4 sm:$0xff]   ;;  %v9754_v32 = vld [vmem:[%s13774_s1 + $0x50c] ss:$16 sps:$4 sm:$0xff]  }
 0x259   :  { %7074 = vmatprep.subr.bf16.mxu1 %v9703_v33  ;;  %v9757_v33 = vld [vmem:[%s13774_s1 + $0x70c] ss:$16 sps:$4 sm:$0xff]  }
 0x25b   :  { %7034 = vmatpush1.bf16.msra.mxu0 %v9698_v34  ;;  %v9752_v34 = vld [vmem:[%s13774_s1 + $0x508] ss:$16 sps:$4 sm:$0xff]  }
 0x25c   :  { %7075 = vmatpush1.bf16.msra.mxu1 %v9701_v35  ;;  %7035 = vmatprep.subr.bf16.mxu0 %v9706_v22  ;;  %v9755_v35 = vld [vmem:[%s13774_s1 + $0x708] ss:$16 sps:$4 sm:$0xff]   ;;  %v9760_v22 = vld [vmem:[%s13774_s1 + $0x8ec] ss:$16 sps:$4 sm:$0xff]  }
 0x25d   :  { %7076 = vmatprep.subr.bf16.mxu1 %v9709_v23  ;;  %v9763_v23 = vld [vmem:[%s13774_s1 + $0xaec] ss:$16 sps:$4 sm:$0xff]  }
 0x25f   :  { %7036 = vmatpush1.bf16.msra.mxu0 %v9704_v49  ;;  %v9758_v49 = vld [vmem:[%s13774_s1 + $0x8e8] ss:$16 sps:$4 sm:$0xff]  }
 0x260   :  { %7077 = vmatpush1.bf16.msra.mxu1 %v9707_v52  ;;  %7037 = vmatprep.subr.bf16.mxu0 %v9712_v21  ;;  %v9761_v52 = vld [vmem:[%s13774_s1 + $0xae8] ss:$16 sps:$4 sm:$0xff]   ;;  %v9766_v21 = vld [vmem:[%s13774_s1 + $0x8cc] ss:$16 sps:$4 sm:$0xff]  }
 0x261   :  { %7078 = vmatprep.subr.bf16.mxu1 %v9715_v53  ;;  %v9769_v53 = vld [vmem:[%s13774_s1 + $0xacc] ss:$16 sps:$4 sm:$0xff]  }
 0x263   :  { %7038 = vmatpush2.bf16.msra.mxu0 %v9710_v41 }
 0x264   :  { %7079 = vmatpush2.bf16.msra.mxu1 %v9713_v63  ;;  %7039 = vmatprep.subr.bf16.mxu0 %v9718_v9 }
 0x265   :  { %7080 = vmatprep.subr.bf16.mxu1 %v9721_v30  ;;  %v9764_v30 = vld [vmem:[%s13774_s1 + $0x8c8] ss:$16 sps:$4 sm:$0xff]  }
 0x267   :  { %7040 = vmatpush2.bf16.msra.mxu0 %v9716_v58  ;;  %v9767_v58 = vld [vmem:[%s13774_s1 + $0xac8] ss:$16 sps:$4 sm:$0xff]  }
 0x268   :  { %7081 = vmatpush2.bf16.msra.mxu1 %v9719_v47  ;;  %7041 = vmatprep.subr.bf16.mxu0 %v9724_v51 }
 0x269   :  { %7082 = vmatprep.subr.bf16.mxu1 %v9727_v6 }
 0x26b   :  { %7042 = vmatpush2.bf16.msra.mxu0 %v9722_v7 }
 0x26c   :  { %7083 = vmatpush2.bf16.msra.mxu1 %v9725_v50  ;;  %7043 = vmatprep.subr.bf16.mxu0 %v9730_v13  ;;  %v9770_v50 = vld [vmem:[%s13774_s1 + $0x8a8] ss:$16 sps:$4 sm:$0xff]  }
 0x26d   :  { %7084 = vmatprep.subr.bf16.mxu1 %v9733_v15  ;;  %v9773_v13 = vld [vmem:[%s13774_s1 + $0xaa8] ss:$16 sps:$4 sm:$0xff]  }
 0x26f   :  { %7044 = vmatpush2.bf16.msra.mxu0 %v9728_v11 }
 0x270   :  { %7085 = vmatpush2.bf16.msra.mxu1 %v9731_v8  ;;  %7045 = vmatprep.subr.bf16.mxu0 %v9736_v36  ;;  %v9776_v8 = vld [vmem:[%s13774_s1 + $0x888] ss:$16 sps:$4 sm:$0xff]  }
 0x271   :  { %7086 = vmatprep.subr.bf16.mxu1 %v9739_v37  ;;  %v9779_v36 = vld [vmem:[%s13774_s1 + $0xa88] ss:$16 sps:$4 sm:$0xff]   ;;  %v9784_v37 = vld [vmem:[%s13774_s1 + $0x86c] ss:$16 sps:$4 sm:$0xff]  }
 0x273   :  { %7046 = vmatpush2.bf16.msra.mxu0 %v9734_v18  ;;  %v9787_v18 = vld [vmem:[%s13774_s1 + $0xa6c] ss:$16 sps:$4 sm:$0xff]  }
 0x274   :  { %7087 = vmatpush2.bf16.msra.mxu1 %v9737_v19  ;;  %7047 = vmatprep.subr.bf16.mxu0 %v9742_v20  ;;  %v9782_v19 = vld [vmem:[%s13774_s1 + $0x868] ss:$16 sps:$4 sm:$0xff]  }
 0x275   :  { %7088 = vmatprep.subr.bf16.mxu1 %v9745_v26  ;;  %v9785_v20 = vld [vmem:[%s13774_s1 + $0xa68] ss:$16 sps:$4 sm:$0xff]   ;;  %v9790_v26 = vld [vmem:[%s13774_s1 + $0x84c] ss:$16 sps:$4 sm:$0xff]  }
 0x277   :  { %7048 = vmatpush2.bf16.msra.mxu0 %v9740_v5  ;;  %v9793_v5 = vld [vmem:[%s13774_s1 + $0xa4c] ss:$16 sps:$4 sm:$0xff]  }
 0x278   :  { %7089 = vmatpush2.bf16.msra.mxu1 %v9743_v27  ;;  %7049 = vmatprep.subr.bf16.mxu0 %v9748_v31  ;;  %v9788_v27 = vld [vmem:[%s13774_s1 + $0x848] ss:$16 sps:$4 sm:$0xff]  }
 0x279   :  { %7090 = vmatprep.subr.bf16.mxu1 %v9751_v14  ;;  %v9791_v31 = vld [vmem:[%s13774_s1 + $0xa48] ss:$16 sps:$4 sm:$0xff]   ;;  %v9796_v14 = vld [vmem:[%s13774_s1 + $0x82c] ss:$16 sps:$4 sm:$0xff]  }
 0x27b   :  { %7050 = vmatpush2.bf16.msra.mxu0 %v9746_v62  ;;  %v9799_v62 = vld [vmem:[%s13774_s1 + $0xa2c] ss:$16 sps:$4 sm:$0xff]  }
 0x27c   :  { %7091 = vmatpush2.bf16.msra.mxu1 %v9749_v40  ;;  %7051 = vmatprep.subr.bf16.mxu0 %v9754_v32  ;;  %v9794_v40 = vld [vmem:[%s13774_s1 + $0x828] ss:$16 sps:$4 sm:$0xff]  }
 0x27d   :  { %7092 = vmatprep.subr.bf16.mxu1 %v9757_v33  ;;  %v9797_v32 = vld [vmem:[%s13774_s1 + $0xa28] ss:$16 sps:$4 sm:$0xff]   ;;  %v9802_v33 = vld [vmem:[%s13774_s1 + $0x80c] ss:$16 sps:$4 sm:$0xff]  }
 0x27f   :  { %7052 = vmatpush2.bf16.msra.mxu0 %v9752_v34  ;;  %v9805_v34 = vld [vmem:[%s13774_s1 + $0xa0c] ss:$16 sps:$4 sm:$0xff]  }
 0x280   :  { %7093 = vmatpush2.bf16.msra.mxu1 %v9755_v35  ;;  %7103 = vmatprep.subr.bf16.mxu0 %v9760_v22  ;;  %v9800_v35 = vld [vmem:[%s13774_s1 + $0x808] ss:$16 sps:$4 sm:$0xff]  }
 0x281   :  { %7144 = vmatprep.subr.bf16.mxu1 %v9763_v23  ;;  %v9803_v22 = vld [vmem:[%s13774_s1 + $0xa08] ss:$16 sps:$4 sm:$0xff]   ;;  %v9808_v23 = vld [vmem:[%s13774_s1 + $0x9ec] ss:$16 sps:$4 sm:$0xff]  }
 0x282   :  { %v6809_v41 = vpop.f32.mrf.mxu0  ;;  %7054 = vmatmul.mubr.bf16.vlgmr.msra.gmra.mxu0 %v10787_v16  ;;  %v9772_v16 = vld [vmem:[%s13774_s1 + $0x8ac] ss:$16 sps:$4 sm:$0xff]  }
 0x283   :  { %v6850_v63 = vpop.f32.mrf.mxu1  ;;  %7095 = vmatmul.mubr.bf16.vlgmr.msra.gmra.mxu1 %v10791_v17  ;;  %v6810_v9 = vadd.f32 %v6809_v41, %v12376_v61  ;;  %7104 = vmatpush1.bf16.msra.mxu0 %v9758_v49  ;;  %v9775_v17 = vld [vmem:[%s13774_s1 + $0xaac] ss:$16 sps:$4 sm:$0xff]  }
 0x284   :  { %7145 = vmatpush1.bf16.msra.mxu1 %v9761_v52  ;;  %v12572_v47 = vpop.f32.mrf.mxu0  ;;  %7105 = vmatprep.subr.bf16.mxu0 %v9766_v21  ;;  %v9811_v49 = vld [vmem:[%s13774_s1 + $0xbec] ss:$16 sps:$4 sm:$0xff]   ;;  %v9806_v52 = vld [vmem:[%s13774_s1 + $0x9e8] ss:$16 sps:$4 sm:$0xff]  }
 0x285   :  { %v12574_v51 = vpop.f32.mrf.mxu1  ;;  %7146 = vmatprep.subr.bf16.mxu1 %v9769_v53  ;;  %v12582_v61 = vadd.f32 %v6850_v63, %v6810_v9  ;;  %7135 = vmatprep.mubr.bf16.mxu0 %v10817_v24  ;;  %v9778_v24 = vld [vmem:[%s13774_s1 + $0x88c] ss:$16 sps:$4 sm:$0xff]   ;;  %v9809_v21 = vld [vmem:[%s13774_s1 + $0xbe8] ss:$16 sps:$4 sm:$0xff]  }
 0x286   :  { %7176 = vmatprep.mubr.bf16.mxu1 %v10821_v25  ;;  %v6813_v6 = vpop.f32.mrf.mxu0  ;;  %v9781_v25 = vld [vmem:[%s13774_s1 + $0xa8c] ss:$16 sps:$4 sm:$0xff]   ;;  %v9812_v63 = vld [vmem:[%s13774_s1 + $0x9c8] ss:$16 sps:$4 sm:$0xff]  }
 0x287   :  { %v6854_v7 = vpop.f32.mrf.mxu1  ;;  %7106 = vmatpush1.bf16.msra.mxu0 %v9764_v30  ;;  %v9814_v53 = vld [vmem:[%s13774_s1 + $0x9cc] ss:$16 sps:$4 sm:$0xff]   ;;  %v9815_v9 = vld [vmem:[%s13774_s1 + $0xbc8] ss:$16 sps:$4 sm:$0xff]  }
 0x288   :  { %7147 = vmatpush1.bf16.msra.mxu1 %v9767_v58  ;;  %v6814_v15 = vpop.f32.mrf.mxu0  ;;  %7107 = vmatprep.subr.bf16.mxu0 %v9772_v16  ;;  %v9817_v41 = vld [vmem:[%s13774_s1 + $0xbcc] ss:$16 sps:$4 sm:$0xff]   ;;  %v9818_v16 = vld [vmem:[%s13774_s1 + $0x9a8] ss:$16 sps:$4 sm:$0xff]  }
 0x289   :  { %v6855_v11 = vpop.f32.mrf.mxu1  ;;  %7148 = vmatprep.subr.bf16.mxu1 %v9775_v17  ;;  %v9820_v30 = vld [vmem:[%s13774_s1 + $0x9ac] ss:$16 sps:$4 sm:$0xff]   ;;  %v9821_v17 = vld [vmem:[%s13774_s1 + $0xba8] ss:$16 sps:$4 sm:$0xff]  }
 0x28a   :  { %v9823_v58 = vld [vmem:[%s13774_s1 + $0xbac] ss:$16 sps:$4 sm:$0xff]  }
 0x28b   :  { %7108 = vmatpush1.bf16.msra.mxu0 %v9770_v50  ;;  %v9826_v6 = vld [vmem:[%s13774_s1 + $0x98c] ss:$16 sps:$4 sm:$0xff]   ;;  %v9824_v50 = vld [vmem:[%s13774_s1 + $0x988] ss:$16 sps:$4 sm:$0xff]  }
 0x28c   :  { %7149 = vmatpush1.bf16.msra.mxu1 %v9773_v13  ;;  %7109 = vmatprep.subr.bf16.mxu0 %v9778_v24  ;;  %v9829_v7 = vld [vmem:[%s13774_s1 + $0xb8c] ss:$16 sps:$4 sm:$0xff]   ;;  %v9827_v13 = vld [vmem:[%s13774_s1 + $0xb88] ss:$16 sps:$4 sm:$0xff]  }
 0x28d   :  { %7150 = vmatprep.subr.bf16.mxu1 %v9781_v25  ;;  %v9832_v15 = vld [vmem:[%s13774_s1 + $0x96c] ss:$16 sps:$4 sm:$0xff]   ;;  %v9830_v24 = vld [vmem:[%s13774_s1 + $0x968] ss:$16 sps:$4 sm:$0xff]  }
 0x28e   :  { %v9835_v11 = vld [vmem:[%s13774_s1 + $0xb6c] ss:$16 sps:$4 sm:$0xff]   ;;  %v9833_v25 = vld [vmem:[%s13774_s1 + $0xb68] ss:$16 sps:$4 sm:$0xff]  }
 0x28f   :  { %7110 = vmatpush1.bf16.msra.mxu0 %v9776_v8  ;;  %v9838_v8 = vld [vmem:[%s13774_s1 + $0x94c] ss:$16 sps:$4 sm:$0xff]  }
 0x290   :  { %7151 = vmatpush1.bf16.msra.mxu1 %v9779_v36  ;;  %7111 = vmatprep.subr.bf16.mxu0 %v9784_v37  ;;  %v9841_v36 = vld [vmem:[%s13774_s1 + $0xb4c] ss:$16 sps:$4 sm:$0xff]   ;;  %v9836_v37 = vld [vmem:[%s13774_s1 + $0x948] ss:$16 sps:$4 sm:$0xff]  }
 0x291   :  { %7152 = vmatprep.subr.bf16.mxu1 %v9787_v18  ;;  %v9839_v18 = vld [vmem:[%s13774_s1 + $0xb48] ss:$16 sps:$4 sm:$0xff]  }
 0x293   :  { %7112 = vmatpush1.bf16.msra.mxu0 %v9782_v19  ;;  %v9844_v19 = vld [vmem:[%s13774_s1 + $0x92c] ss:$16 sps:$4 sm:$0xff]  }
 0x294   :  { %7153 = vmatpush1.bf16.msra.mxu1 %v9785_v20  ;;  %7113 = vmatprep.subr.bf16.mxu0 %v9790_v26  ;;  %v9847_v20 = vld [vmem:[%s13774_s1 + $0xb2c] ss:$16 sps:$4 sm:$0xff]   ;;  %v9842_v26 = vld [vmem:[%s13774_s1 + $0x928] ss:$16 sps:$4 sm:$0xff]  }
 0x295   :  { %7154 = vmatprep.subr.bf16.mxu1 %v9793_v5  ;;  %v9845_v5 = vld [vmem:[%s13774_s1 + $0xb28] ss:$16 sps:$4 sm:$0xff]  }
 0x297   :  { %7114 = vmatpush1.bf16.msra.mxu0 %v9788_v27  ;;  %v9850_v27 = vld [vmem:[%s13774_s1 + $0x90c] ss:$16 sps:$4 sm:$0xff]  }
 0x298   :  { %7155 = vmatpush1.bf16.msra.mxu1 %v9791_v31  ;;  %7115 = vmatprep.subr.bf16.mxu0 %v9796_v14  ;;  %v9853_v31 = vld [vmem:[%s13774_s1 + $0xb0c] ss:$16 sps:$4 sm:$0xff]   ;;  %v9848_v14 = vld [vmem:[%s13774_s1 + $0x908] ss:$16 sps:$4 sm:$0xff]  }
 0x299   :  { %7156 = vmatprep.subr.bf16.mxu1 %v9799_v62  ;;  %v9851_v62 = vld [vmem:[%s13774_s1 + $0xb08] ss:$16 sps:$4 sm:$0xff]  }
 0x29b   :  { %7116 = vmatpush1.bf16.msra.mxu0 %v9794_v40  ;;  %v9856_v40 = vld [vmem:[%s13774_s1 + $0xcec] ss:$16 sps:$4 sm:$0xff]  }
 0x29c   :  { %7157 = vmatpush1.bf16.msra.mxu1 %v9797_v32  ;;  %7117 = vmatprep.subr.bf16.mxu0 %v9802_v33  ;;  %v9859_v32 = vld [vmem:[%s13774_s1 + $0xeec] ss:$16 sps:$4 sm:$0xff]   ;;  %v6812_v33 = vadd.f32 %v12572_v47, %v12381_v12 }
 0x29d   :  { %7158 = vmatprep.subr.bf16.mxu1 %v9805_v34  ;;  %v9854_v34 = vld [vmem:[%s13774_s1 + $0xce8] ss:$16 sps:$4 sm:$0xff]   ;;  %v9865_v12 = vld [vmem:[%s13774_s1 + $0xecc] ss:$16 sps:$4 sm:$0xff]  }
 0x29f   :  { %7118 = vmatpush1.bf16.msra.mxu0 %v9800_v35  ;;  %v9857_v35 = vld [vmem:[%s13774_s1 + $0xee8] ss:$16 sps:$4 sm:$0xff]  }
 0x2a0   :  { %7159 = vmatpush1.bf16.msra.mxu1 %v9803_v22  ;;  %7119 = vmatprep.subr.bf16.mxu0 %v9808_v23  ;;  %v9862_v22 = vld [vmem:[%s13774_s1 + $0xccc] ss:$16 sps:$4 sm:$0xff]  }
 0x2a1   :  { %7160 = vmatprep.subr.bf16.mxu1 %v9811_v49  ;;  %v6853_v49 = vadd.f32 %v12574_v51, %v6812_v33 }
 0x2a3   :  { %7120 = vmatpush2.bf16.msra.mxu0 %v9806_v52 }
 0x2a4   :  { %7161 = vmatpush2.bf16.msra.mxu1 %v9809_v21  ;;  %7121 = vmatprep.subr.bf16.mxu0 %v9814_v53  ;;  %v9860_v21 = vld [vmem:[%s13774_s1 + $0xcc8] ss:$16 sps:$4 sm:$0xff]  }
 0x2a5   :  { %7162 = vmatprep.subr.bf16.mxu1 %v9817_v41  ;;  %v9863_v53 = vld [vmem:[%s13774_s1 + $0xec8] ss:$16 sps:$4 sm:$0xff]  }
 0x2a7   :  { %7122 = vmatpush2.bf16.msra.mxu0 %v9812_v63 }
 0x2a8   :  { %7163 = vmatpush2.bf16.msra.mxu1 %v9815_v9  ;;  %7123 = vmatprep.subr.bf16.mxu0 %v9820_v30 }
 0x2a9   :  { %7164 = vmatprep.subr.bf16.mxu1 %v9823_v58 }
 0x2ab   :  { %7124 = vmatpush2.bf16.msra.mxu0 %v9818_v16 }
 0x2ac   :  { %7165 = vmatpush2.bf16.msra.mxu1 %v9821_v17  ;;  %7125 = vmatprep.subr.bf16.mxu0 %v9826_v6  ;;  %v9866_v17 = vld [vmem:[%s13774_s1 + $0xca8] ss:$16 sps:$4 sm:$0xff]  }
 0x2ad   :  { %7166 = vmatprep.subr.bf16.mxu1 %v9829_v7  ;;  %v9869_v6 = vld [vmem:[%s13774_s1 + $0xea8] ss:$16 sps:$4 sm:$0xff]  }
 0x2af   :  { %7126 = vmatpush2.bf16.msra.mxu0 %v9824_v50 }
 0x2b0   :  { %7167 = vmatpush2.bf16.msra.mxu1 %v9827_v13  ;;  %7127 = vmatprep.subr.bf16.mxu0 %v9832_v15 }
 0x2b1   :  { %7168 = vmatprep.subr.bf16.mxu1 %v9835_v11 }
 0x2b3   :  { %7128 = vmatpush2.bf16.msra.mxu0 %v9830_v24 }
 0x2b4   :  { %7169 = vmatpush2.bf16.msra.mxu1 %v9833_v25  ;;  %7129 = vmatprep.subr.bf16.mxu0 %v9838_v8  ;;  %v9872_v25 = vld [vmem:[%s13774_s1 + $0xc88] ss:$16 sps:$4 sm:$0xff]  }
 0x2b5   :  { %7170 = vmatprep.subr.bf16.mxu1 %v9841_v36  ;;  %v9875_v8 = vld [vmem:[%s13774_s1 + $0xe88] ss:$16 sps:$4 sm:$0xff]   ;;  %v9880_v36 = vld [vmem:[%s13774_s1 + $0xc6c] ss:$16 sps:$4 sm:$0xff]  }
 0x2b7   :  { %7130 = vmatpush2.bf16.msra.mxu0 %v9836_v37  ;;  %v9883_v37 = vld [vmem:[%s13774_s1 + $0xe6c] ss:$16 sps:$4 sm:$0xff]  }
 0x2b8   :  { %7171 = vmatpush2.bf16.msra.mxu1 %v9839_v18  ;;  %7131 = vmatprep.subr.bf16.mxu0 %v9844_v19 }
 0x2b9   :  { %7172 = vmatprep.subr.bf16.mxu1 %v9847_v20 }
 0x2bb   :  { %7132 = vmatpush2.bf16.msra.mxu0 %v9842_v26 }
 0x2bc   :  { %7173 = vmatpush2.bf16.msra.mxu1 %v9845_v5  ;;  %7133 = vmatprep.subr.bf16.mxu0 %v9850_v27  ;;  %v9878_v5 = vld [vmem:[%s13774_s1 + $0xc68] ss:$16 sps:$4 sm:$0xff]  }
 0x2bd   :  { %7174 = vmatprep.subr.bf16.mxu1 %v9853_v31  ;;  %v9881_v27 = vld [vmem:[%s13774_s1 + $0xe68] ss:$16 sps:$4 sm:$0xff]   ;;  %v9886_v31 = vld [vmem:[%s13774_s1 + $0xc4c] ss:$16 sps:$4 sm:$0xff]  }
 0x2bf   :  { %7134 = vmatpush2.bf16.msra.mxu0 %v9848_v14  ;;  %v9889_v14 = vld [vmem:[%s13774_s1 + $0xe4c] ss:$16 sps:$4 sm:$0xff]  }
 0x2c0   :  { %7175 = vmatpush2.bf16.msra.mxu1 %v9851_v62  ;;  %7185 = vmatprep.subr.bf16.mxu0 %v9856_v40 }
 0x2c1   :  { %7226 = vmatprep.subr.bf16.mxu1 %v9859_v32 }
 0x2c2   :  { %v6891_v47 = vpop.f32.mrf.mxu0  ;;  %7136 = vmatmul.mubr.bf16.vlgmr.msra.gmra.mxu0 %v11015_v38  ;;  %v9868_v38 = vld [vmem:[%s13774_s1 + $0xcac] ss:$16 sps:$4 sm:$0xff]  }
 0x2c3   :  { %v6932_v23 = vpop.f32.mrf.mxu1  ;;  %7177 = vmatmul.mubr.bf16.vlgmr.msra.gmra.mxu1 %v11019_v39  ;;  %v6892_v52 = vadd.f32 %v6891_v47, %v12582_v61  ;;  %7186 = vmatpush1.bf16.msra.mxu0 %v9854_v34  ;;  %v9871_v39 = vld [vmem:[%s13774_s1 + $0xeac] ss:$16 sps:$4 sm:$0xff]   ;;  %v9884_v34 = vld [vmem:[%s13774_s1 + $0xc48] ss:$16 sps:$4 sm:$0xff]  }
 0x2c4   :  { %7227 = vmatpush1.bf16.msra.mxu1 %v9857_v35  ;;  %v6893_v41 = vpop.f32.mrf.mxu0  ;;  %7187 = vmatprep.subr.bf16.mxu0 %v9862_v22  ;;  %v9887_v35 = vld [vmem:[%s13774_s1 + $0xe48] ss:$16 sps:$4 sm:$0xff]   ;;  %v9892_v22 = vld [vmem:[%s13774_s1 + $0xc2c] ss:$16 sps:$4 sm:$0xff]  }
 0x2c5   :  { %v6934_v63 = vpop.f32.mrf.mxu1  ;;  %7228 = vmatprep.subr.bf16.mxu1 %v9865_v12  ;;  %v6933_v51 = vadd.f32 %v6932_v23, %v6892_v52  ;;  %v6894_v61 = vadd.f32 %v6893_v41, %v6853_v49  ;;  %7217 = vmatprep.mubr.bf16.mxu0 %v11039_v42  ;;  %v9874_v42 = vld [vmem:[%s13774_s1 + $0xc8c] ss:$16 sps:$4 sm:$0xff]  }
 0x2c6   :  { %7258 = vmatprep.mubr.bf16.mxu1 %v11043_v43  ;;  %v6895_v9 = vpop.f32.mrf.mxu0  ;;  %v9877_v43 = vld [vmem:[%s13774_s1 + $0xe8c] ss:$16 sps:$4 sm:$0xff]  }
 0x2c7   :  { %v6936_v30 = vpop.f32.mrf.mxu1  ;;  %v7595_v58 = vrot.slane %v6933_v51, 4  ;;  %v6935_v16 = vadd.f32 %v6934_v63, %v6894_v61  ;;  %7188 = vmatpush1.bf16.msra.mxu0 %v9860_v21  ;;  %v9895_v12 = vld [vmem:[%s13774_s1 + $0xe2c] ss:$16 sps:$4 sm:$0xff]   ;;  %v9890_v21 = vld [vmem:[%s13774_s1 + $0xc28] ss:$16 sps:$4 sm:$0xff]  }
 0x2c8   :  { %7229 = vmatpush1.bf16.msra.mxu1 %v9863_v53  ;;  %v6896_v7 = vpop.f32.mrf.mxu0  ;;  %7189 = vmatprep.subr.bf16.mxu0 %v9868_v38  ;;  %v9893_v53 = vld [vmem:[%s13774_s1 + $0xe28] ss:$16 sps:$4 sm:$0xff]   ;;  %v9898_v41 = vld [vmem:[%s13774_s1 + $0xc0c] ss:$16 sps:$4 sm:$0xff]  }
 0x2c9   :  { %v6937_v50 = vpop.f32.mrf.mxu1  ;;  %7230 = vmatprep.subr.bf16.mxu1 %v9871_v39  ;;  %v7596_v13 = vadd.f32 %v7595_v58, %v6933_v51  ;;  %v7601_v15 = vrot.slane %v6935_v16, 4  ;;  %v9901_v63 = vld [vmem:[%s13774_s1 + $0xe0c] ss:$16 sps:$4 sm:$0xff]   ;;  %v9896_v9 = vld [vmem:[%s13774_s1 + $0xc08] ss:$16 sps:$4 sm:$0xff]  }
 0x2ca   :  { %v9899_v30 = vld [vmem:[%s13774_s1 + $0xe08] ss:$16 sps:$4 sm:$0xff]   ;;  %v9904_v58 = vld [vmem:[%s13774_s1 + $0xdec] ss:$16 sps:$4 sm:$0xff]  }
 0x2cb   :  { %v7597_v11 = vrot.slane %v7596_v13, 2  ;;  %v7602_v24 = vadd.f32 %v7601_v15, %v6935_v16  ;;  %7190 = vmatpush1.bf16.msra.mxu0 %v9866_v17  ;;  %v9913_v15 = vld [vmem:[%s13774_s1 + $0xfcc] ss:$16 sps:$4 sm:$0xff]  }
 0x2cc   :  { %7231 = vmatpush1.bf16.msra.mxu1 %v9869_v6  ;;  %7191 = vmatprep.subr.bf16.mxu0 %v9874_v42  ;;  %v9902_v42 = vld [vmem:[%s13774_s1 + $0xde8] ss:$16 sps:$4 sm:$0xff]  }
 0x2cd   :  { %7232 = vmatprep.subr.bf16.mxu1 %v9877_v43  ;;  %v7598_v18 = vadd.f32 %v7597_v11, %v7596_v13  ;;  %v7603_v19 = vrot.slane %v7602_v24, 2  ;;  %v9905_v43 = vld [vmem:[%s13774_s1 + $0xfe8] ss:$16 sps:$4 sm:$0xff]   ;;  %v9910_v13 = vld [vmem:[%s13774_s1 + $0xdcc] ss:$16 sps:$4 sm:$0xff]  }
 0x2cf   :  { %v7599_v20 = vrot.slane %v7598_v18, 1  ;;  %v7604_v26 = vadd.f32 %v7603_v19, %v7602_v24  ;;  %7192 = vmatpush1.bf16.msra.mxu0 %v9872_v25  ;;  %v9919_v19 = vld [vmem:[%s13774_s1 + $0xfac] ss:$16 sps:$4 sm:$0xff]  }
 0x2d0   :  { %7233 = vmatpush1.bf16.msra.mxu1 %v9875_v8  ;;  %7193 = vmatprep.subr.bf16.mxu0 %v9880_v36  ;;  %v9908_v36 = vld [vmem:[%s13774_s1 + $0xdc8] ss:$16 sps:$4 sm:$0xff]  }
 0x2d1   :  { %7234 = vmatprep.subr.bf16.mxu1 %v9883_v37  ;;  %v7600_v62 = vadd.f32 %v7599_v20, %v7598_v18  ;;  %v7605_v40 = vrot.slane %v7604_v26, 1  ;;  %v9911_v37 = vld [vmem:[%s13774_s1 + $0xfc8] ss:$16 sps:$4 sm:$0xff]   ;;  %v9916_v18 = vld [vmem:[%s13774_s1 + $0xdac] ss:$16 sps:$4 sm:$0xff]  }
 0x2d3   :  { %v7620_v32 = vmul.f32 0.125, %v7600_v62  ;;  %v7606_v33 = vadd.f32 %v7605_v40, %v7604_v26  ;;  %7194 = vmatpush1.bf16.msra.mxu0 %v9878_v5  ;;  %v9914_v5 = vld [vmem:[%s13774_s1 + $0xda8] ss:$16 sps:$4 sm:$0xff]   ;;  %v9922_v62 = vld [vmem:[%s13774_s1 + $0xd8c] ss:$16 sps:$4 sm:$0xff]  }
 0x2d4   :  { %7235 = vmatpush1.bf16.msra.mxu1 %v9881_v27  ;;  %7195 = vmatprep.subr.bf16.mxu0 %v9886_v31  ;;  %v9925_v40 = vld [vmem:[%s13774_s1 + $0xf8c] ss:$16 sps:$4 sm:$0xff]  }
 0x2d5   :  { %7236 = vmatprep.subr.bf16.mxu1 %v9889_v14  ;;  %v12834_v47 = vsub.f32 %v6933_v51, %v7620_v32  ;;  %v7621_v23 = vmul.f32 0.125, %v7606_v33  ;;  %v9917_v14 = vld [vmem:[%s13774_s1 + $0xfa8] ss:$16 sps:$4 sm:$0xff]  }
 0x2d6   :  { %v9920_v33 = vld [vmem:[%s13774_s1 + $0xd88] ss:$16 sps:$4 sm:$0xff]  }
 0x2d7   :  { %v7628_v49 = vmul.f32 %v12834_v47, %v12834_v47  ;;  %v12838_v52 = vsub.f32 %v6935_v16, %v7621_v23  ;;  %7196 = vmatpush1.bf16.msra.mxu0 %v9884_v34  ;;  %v9907_v16 = vld [vmem:[%s13774_s1 + $0xfec] ss:$16 sps:$4 sm:$0xff]   ;;  %v9923_v34 = vld [vmem:[%s13774_s1 + $0xf88] ss:$16 sps:$4 sm:$0xff]  }
 0x2d8   :  { %7237 = vmatpush1.bf16.msra.mxu1 %v9887_v35  ;;  %7197 = vmatprep.subr.bf16.mxu0 %v9892_v22  ;;  %v9928_v35 = vld [vmem:[%s13774_s1 + $0xd6c] ss:$16 sps:$4 sm:$0xff]   ;;  %v9929_v23 = vld [vmem:[%s13774_s1 + $0xf68] ss:$16 sps:$4 sm:$0xff]  }
 0x2d9   :  { %7238 = vmatprep.subr.bf16.mxu1 %v9895_v12  ;;  %v7632_v38 = vrot.slane %v7628_v49, 4  ;;  %v7629_v39 = vmul.f32 %v12838_v52, %v12838_v52  ;;  %v9931_v22 = vld [vmem:[%s13774_s1 + $0xf6c] ss:$16 sps:$4 sm:$0xff]   ;;  %v9926_v12 = vld [vmem:[%s13774_s1 + $0xd68] ss:$16 sps:$4 sm:$0xff]  }
 0x2db   :  { %v7633_v51 = vadd.f32 %v7632_v38, %v7628_v49  ;;  %v7638_v61 = vrot.slane %v7629_v39, 4  ;;  %7198 = vmatpush1.bf16.msra.mxu0 %v9890_v21  ;;  %v9934_v49 = vld [vmem:[%s13774_s1 + $0xd4c] ss:$16 sps:$4 sm:$0xff]  }
 0x2dc   :  { %7239 = vmatpush1.bf16.msra.mxu1 %v9893_v53  ;;  %7199 = vmatprep.subr.bf16.mxu0 %v9898_v41  ;;  %v9937_v21 = vld [vmem:[%s13774_s1 + $0xf4c] ss:$16 sps:$4 sm:$0xff]   ;;  %v9932_v53 = vld [vmem:[%s13774_s1 + $0xd48] ss:$16 sps:$4 sm:$0xff]  }
 0x2dd   :  { %7240 = vmatprep.subr.bf16.mxu1 %v9901_v63  ;;  %v7634_v17 = vrot.slane %v7633_v51, 2  ;;  %v7639_v6 = vadd.f32 %v7638_v61, %v7629_v39  ;;  %v9935_v41 = vld [vmem:[%s13774_s1 + $0xf48] ss:$16 sps:$4 sm:$0xff]   ;;  %v9940_v63 = vld [vmem:[%s13774_s1 + $0xd2c] ss:$16 sps:$4 sm:$0xff]  }
 0x2de   :  { %v9943_v38 = vld [vmem:[%s13774_s1 + $0xf2c] ss:$16 sps:$4 sm:$0xff]   ;;  %v9938_v61 = vld [vmem:[%s13774_s1 + $0xd28] ss:$16 sps:$4 sm:$0xff]  }
 0x2df   :  { %v7635_v7 = vadd.f32 %v7634_v17, %v7633_v51  ;;  %v7640_v50 = vrot.slane %v7639_v6, 2  ;;  %7200 = vmatpush1.bf16.msra.mxu0 %v9896_v9  ;;  %v9941_v9 = vld [vmem:[%s13774_s1 + $0xf28] ss:$16 sps:$4 sm:$0xff]  }
 0x2e0   :  { %7241 = vmatpush1.bf16.msra.mxu1 %v9899_v30  ;;  %7201 = vmatprep.subr.bf16.mxu0 %v9904_v58  ;;  %v9946_v58 = vld [vmem:[%s13774_s1 + $0xd0c] ss:$16 sps:$4 sm:$0xff]  }
 0x2e1   :  { %7242 = vmatprep.subr.bf16.mxu1 %v9907_v16  ;;  %v7636_v11 = vrot.slane %v7635_v7, 1  ;;  %v7641_v24 = vadd.f32 %v7640_v50, %v7639_v6  ;;  %v9944_v6 = vld [vmem:[%s13774_s1 + $0xd08] ss:$16 sps:$4 sm:$0xff]  }
 0x2e2   :  { %v9947_v50 = vld [vmem:[%s13774_s1 + $0xf08] ss:$16 sps:$4 sm:$0xff]  }
 0x2e3   :  { %v7637_v25 = vadd.f32 %v7636_v11, %v7635_v7  ;;  %v7642_v8 = vrot.slane %v7641_v24, 1  ;;  %7202 = vmatpush2.bf16.msra.mxu0 %v9902_v42  ;;  %v9952_v42 = vld [vmem:[%s13774_s1 + $0x10ec] ss:$16 sps:$4 sm:$0xff]   ;;  %v9950_v11 = vld [vmem:[%s13774_s1 + $0x10e8] ss:$16 sps:$4 sm:$0xff]  }
 0x2e4   :  { %7243 = vmatpush2.bf16.msra.mxu1 %v9905_v43  ;;  %7203 = vmatprep.subr.bf16.mxu0 %v9910_v13 }
 0x2e5   :  { %7244 = vmatprep.subr.bf16.mxu1 %v9913_v15  ;;  %v7656_v20 = vmul.f32 0.125, %v7637_v25  ;;  %v7643_v26 = vadd.f32 %v7642_v8, %v7641_v24  ;;  %v9953_v24 = vld [vmem:[%s13774_s1 + $0x12e8] ss:$16 sps:$4 sm:$0xff]   ;;  %v9958_v25 = vld [vmem:[%s13774_s1 + $0x10cc] ss:$16 sps:$4 sm:$0xff]  }
 0x2e6   :  { %v9961_v8 = vld [vmem:[%s13774_s1 + $0x12cc] ss:$16 sps:$4 sm:$0xff]  }
 0x2e7   :  { %v7660_v27 = vadd.f32 1e-05, %v7656_v20  ;;  %v7657_v31 = vmul.f32 0.125, %v7643_v26  ;;  %7204 = vmatpush2.bf16.msra.mxu0 %v9908_v36  ;;  %v9959_v20 = vld [vmem:[%s13774_s1 + $0x12c8] ss:$16 sps:$4 sm:$0xff]  }
 0x2e8   :  { %7245 = vmatpush2.bf16.msra.mxu1 %v9911_v37  ;;  %7205 = vmatprep.subr.bf16.mxu0 %v9916_v18 }
 0x2e9   :  { %7246 = vmatprep.subr.bf16.mxu1 %v9919_v19  ;;  %10334 = vrsqrt.f32 %v7660_v27  ;;  %v7661_v32 = vadd.f32 1e-05, %v7657_v31  ;;  %v9956_v19 = vld [vmem:[%s13774_s1 + $0x10c8] ss:$16 sps:$4 sm:$0xff]  }
 0x2eb   :  { %10336 = vrsqrt.f32 %v7661_v32  ;;  %7206 = vmatpush2.bf16.msra.mxu0 %v9914_v5 }
 0x2ec   :  { %7247 = vmatpush2.bf16.msra.mxu1 %v9917_v14  ;;  %7207 = vmatprep.subr.bf16.mxu0 %v9922_v62  ;;  %v9962_v62 = vld [vmem:[%s13774_s1 + $0x10a8] ss:$16 sps:$4 sm:$0xff]  }
 0x2ed   :  { %7248 = vmatprep.subr.bf16.mxu1 %v9925_v40  ;;  %v9965_v40 = vld [vmem:[%s13774_s1 + $0x12a8] ss:$16 sps:$4 sm:$0xff]  }
 0x2ef   :  { %7208 = vmatpush2.bf16.msra.mxu0 %v9920_v33 }
 0x2f0   :  { %7249 = vmatpush2.bf16.msra.mxu1 %v9923_v34  ;;  %7209 = vmatprep.subr.bf16.mxu0 %v9928_v35  ;;  %v9968_v34 = vld [vmem:[%s13774_s1 + $0x1088] ss:$16 sps:$4 sm:$0xff]  }
 0x2f1   :  { %7250 = vmatprep.subr.bf16.mxu1 %v9931_v22  ;;  %v9971_v35 = vld [vmem:[%s13774_s1 + $0x1288] ss:$16 sps:$4 sm:$0xff]   ;;  %v9976_v22 = vld [vmem:[%s13774_s1 + $0x106c] ss:$16 sps:$4 sm:$0xff]  }
 0x2f3   :  { %7210 = vmatpush2.bf16.msra.mxu0 %v9926_v12  ;;  %v9979_v12 = vld [vmem:[%s13774_s1 + $0x126c] ss:$16 sps:$4 sm:$0xff]  }
 0x2f4   :  { %7251 = vmatpush2.bf16.msra.mxu1 %v9929_v23  ;;  %7211 = vmatprep.subr.bf16.mxu0 %v9934_v49  ;;  %v9974_v23 = vld [vmem:[%s13774_s1 + $0x1068] ss:$16 sps:$4 sm:$0xff]  }
 0x2f5   :  { %7252 = vmatprep.subr.bf16.mxu1 %v9937_v21  ;;  %v9977_v49 = vld [vmem:[%s13774_s1 + $0x1268] ss:$16 sps:$4 sm:$0xff]   ;;  %v9982_v21 = vld [vmem:[%s13774_s1 + $0x104c] ss:$16 sps:$4 sm:$0xff]  }
 0x2f6   :  { %v10335_v39 = vpop.eup %10334 }
 0x2f7   :  { %v7668_v51 = vmul.f32 %v10335_v39, %v12834_v47  ;;  %7212 = vmatpush2.bf16.msra.mxu0 %v9932_v53  ;;  %v9949_v47 = vld [vmem:[%s13774_s1 + $0xf0c] ss:$16 sps:$4 sm:$0xff]  }
 0x2f8   :  { %7253 = vmatpush2.bf16.msra.mxu1 %v9935_v41  ;;  %v10337_v30 = vpop.eup %10336  ;;  %7213 = vmatprep.subr.bf16.mxu0 %v9940_v63  ;;  %v9985_v53 = vld [vmem:[%s13774_s1 + $0x124c] ss:$16 sps:$4 sm:$0xff]   ;;  %v9980_v41 = vld [vmem:[%s13774_s1 + $0x1048] ss:$16 sps:$4 sm:$0xff]  }
 0x2f9   :  { %7254 = vmatprep.subr.bf16.mxu1 %v9943_v38  ;;  %v7676_v16 = vmul.f32 0.2, %v7668_v51  ;;  %v7669_v17 = vmul.f32 %v10337_v30, %v12838_v52  ;;  %vm7672_vm0 = vcmp.gt.f32.partialorder %v7668_v51, 0.0  ;;  %v9955_v52 = vld [vmem:[%s13774_s1 + $0x12ec] ss:$16 sps:$4 sm:$0xff]  }
 0x2fa   :  { %v9983_v63 = vld [vmem:[%s13774_s1 + $0x1248] ss:$16 sps:$4 sm:$0xff]   ;;  %v9988_v38 = vld [vmem:[%s13774_s1 + $0x102c] ss:$16 sps:$4 sm:$0xff]  }
 0x2fb   :  { %vm7673_vm1 = vcmp.gt.f32.partialorder %v7669_v17, 0.0  ;;  %v7677_v7 = vmul.f32 0.2, %v7669_v17  ;;  %7214 = vmatpush2.bf16.msra.mxu0 %v9938_v61  ;;  %v7680_v43 = vsel %vm7672_vm0, %v7668_v51, %v7676_v16  ;;  %v9991_v39 = vld [vmem:[%s13774_s1 + $0x122c] ss:$16 sps:$4 sm:$0xff]  }
 0x2fc   :  { %7255 = vmatpush2.bf16.msra.mxu1 %v9941_v9  ;;  %7215 = vmatprep.subr.bf16.mxu0 %v9946_v58  ;;  %v9986_v51 = vld [vmem:[%s13774_s1 + $0x1028] ss:$16 sps:$4 sm:$0xff]   ;;  %v9994_v9 = vld [vmem:[%s13774_s1 + $0x100c] ss:$16 sps:$4 sm:$0xff]  }
 0x2fd   :  { %7256 = vmatprep.subr.bf16.mxu1 %v9949_v47  ;;  %v7681_v13 = vsel %vm7673_vm1, %v7669_v17, %v7677_v7  ;;  %v9989_v61 = vld [vmem:[%s13774_s1 + $0x1228] ss:$16 sps:$4 sm:$0xff]   ;;  %v9997_v30 = vld [vmem:[%s13774_s1 + $0x120c] ss:$16 sps:$4 sm:$0xff]  }
 0x2fe   :  { %v8764_v15 = vpack.c.bf16 %v7681_v13, %v7680_v43  ;;  %v9992_v58 = vld [vmem:[%s13774_s1 + $0x1008] ss:$16 sps:$4 sm:$0xff]   ;;  %v10000_v16 = vld [vmem:[%s13774_s1 + $0x11ec] ss:$16 sps:$4 sm:$0xff]  }
 0x2ff   :  { %7216 = vmatpush2.bf16.msra.mxu0 %v9944_v6  ;;  %v9995_v47 = vld [vmem:[%s13774_s1 + $0x1208] ss:$16 sps:$4 sm:$0xff]   ;;  %v10003_v17 = vld [vmem:[%s13774_s1 + $0x13ec] ss:$16 sps:$4 sm:$0xff]  }
 0x300   :  { %7257 = vmatpush2.bf16.msra.mxu1 %v9947_v50  ;;  %7700 = vst [vmem:[%s13776_s2] sm:$0xff] %v8764_v15  ;;  %7267 = vmatprep.subr.bf16.mxu0 %v9952_v42  ;;  %v9998_v6 = vld [vmem:[%s13774_s1 + $0x11e8] ss:$16 sps:$4 sm:$0xff]   ;;  %v10006_v50 = vld [vmem:[%s13774_s1 + $0x11cc] ss:$16 sps:$4 sm:$0xff]  }
 0x301   :  { %7308 = vmatprep.subr.bf16.mxu1 %v9955_v52  ;;  %v10001_v7 = vld [vmem:[%s13774_s1 + $0x13e8] ss:$16 sps:$4 sm:$0xff]   ;;  %v10009_v42 = vld [vmem:[%s13774_s1 + $0x13cc] ss:$16 sps:$4 sm:$0xff]  }
 0x302   :  { %v6973_v36 = vpop.f32.mrf.mxu0  ;;  %7218 = vmatmul.mubr.bf16.vlgmr.msra.gmra.mxu0 %v11236_v59  ;;  %v9964_v59 = vld [vmem:[%s13774_s1 + $0x10ac] ss:$16 sps:$4 sm:$0xff]   ;;  %v10004_v52 = vld [vmem:[%s13774_s1 + $0x11c8] ss:$16 sps:$4 sm:$0xff]  }
 0x303   :  { %v7014_v37 = vpop.f32.mrf.mxu1  ;;  %7259 = vmatmul.mubr.bf16.vlgmr.msra.gmra.mxu1 %v11240_v60  ;;  %7268 = vmatpush1.bf16.msra.mxu0 %v9950_v11  ;;  %v9967_v60 = vld [vmem:[%s13774_s1 + $0x12ac] ss:$16 sps:$4 sm:$0xff]   ;;  %v10007_v43 = vld [vmem:[%s13774_s1 + $0x13c8] ss:$16 sps:$4 sm:$0xff]  }
 0x304   :  { %v12981_v18 = vadd.f32 %v7014_v37, %v6973_v36  ;;  %7309 = vmatpush1.bf16.msra.mxu1 %v9953_v24  ;;  %v6975_v26 = vpop.f32.mrf.mxu0  ;;  %7269 = vmatprep.subr.bf16.mxu0 %v9958_v25  ;;  %v10012_v13 = vld [vmem:[%s13774_s1 + $0x11ac] ss:$16 sps:$4 sm:$0xff]   ;;  %v10010_v11 = vld [vmem:[%s13774_s1 + $0x11a8] ss:$16 sps:$4 sm:$0xff]  }
 0x305   :  { %v7016_v5 = vpop.f32.mrf.mxu1  ;;  %7310 = vmatprep.subr.bf16.mxu1 %v9961_v8  ;;  %7299 = vmatprep.mubr.bf16.mxu0 %v11261_v0  ;;  %v9970_v0 = vld [vmem:[%s13774_s1 + $0x108c] ss:$16 sps:$4 sm:$0xff]   ;;  %v10013_v24 = vld [vmem:[%s13774_s1 + $0x13a8] ss:$16 sps:$4 sm:$0xff]  }
 0x306   :  { %v12995_v27 = vadd.f32 %v7016_v5, %v6975_v26  ;;  %7340 = vmatprep.mubr.bf16.mxu1 %v11265_v1  ;;  %v6977_v31 = vpop.f32.mrf.mxu0  ;;  %v9973_v1 = vld [vmem:[%s13774_s1 + $0x128c] ss:$16 sps:$4 sm:$0xff]   ;;  %v10016_v36 = vld [vmem:[%s13774_s1 + $0x1188] ss:$16 sps:$4 sm:$0xff]  }
 0x307   :  { %v7018_v14 = vpop.f32.mrf.mxu1  ;;  %7270 = vmatpush1.bf16.msra.mxu0 %v9956_v19  ;;  %v10015_v15 = vld [vmem:[%s13774_s1 + $0x13ac] ss:$16 sps:$4 sm:$0xff]   ;;  %v10019_v37 = vld [vmem:[%s13774_s1 + $0x1388] ss:$16 sps:$4 sm:$0xff]  }
 0x308   :  { %7311 = vmatpush1.bf16.msra.mxu1 %v9959_v20  ;;  %v6978_v32 = vpop.f32.mrf.mxu0  ;;  %7271 = vmatprep.subr.bf16.mxu0 %v9964_v59  ;;  %v10018_v25 = vld [vmem:[%s13774_s1 + $0x118c] ss:$16 sps:$4 sm:$0xff]   ;;  %v10022_v26 = vld [vmem:[%s13774_s1 + $0x1168] ss:$16 sps:$4 sm:$0xff]  }
 0x309   :  { %v7019_v33 = vpop.f32.mrf.mxu1  ;;  %7312 = vmatprep.subr.bf16.mxu1 %v9967_v60  ;;  %v10021_v8 = vld [vmem:[%s13774_s1 + $0x138c] ss:$16 sps:$4 sm:$0xff]   ;;  %v10025_v5 = vld [vmem:[%s13774_s1 + $0x1368] ss:$16 sps:$4 sm:$0xff]  }
 0x30a   :  { %v10024_v19 = vld [vmem:[%s13774_s1 + $0x116c] ss:$16 sps:$4 sm:$0xff]   ;;  %v10028_v31 = vld [vmem:[%s13774_s1 + $0x1148] ss:$16 sps:$4 sm:$0xff]  }
 0x30b   :  { %7272 = vmatpush1.bf16.msra.mxu0 %v9962_v62  ;;  %v10027_v20 = vld [vmem:[%s13774_s1 + $0x136c] ss:$16 sps:$4 sm:$0xff]   ;;  %v10031_v14 = vld [vmem:[%s13774_s1 + $0x1348] ss:$16 sps:$4 sm:$0xff]  }
 0x30c   :  { %7313 = vmatpush1.bf16.msra.mxu1 %v9965_v40  ;;  %7273 = vmatprep.subr.bf16.mxu0 %v9970_v0  ;;  %v10030_v59 = vld [vmem:[%s13774_s1 + $0x114c] ss:$16 sps:$4 sm:$0xff]   ;;  %v10034_v32 = vld [vmem:[%s13774_s1 + $0x1128] ss:$16 sps:$4 sm:$0xff]  }
 0x30d   :  { %7314 = vmatprep.subr.bf16.mxu1 %v9973_v1  ;;  %v10033_v60 = vld [vmem:[%s13774_s1 + $0x134c] ss:$16 sps:$4 sm:$0xff]   ;;  %v10037_v33 = vld [vmem:[%s13774_s1 + $0x1328] ss:$16 sps:$4 sm:$0xff]  }
 0x30e   :  { %v10036_v62 = vld [vmem:[%s13774_s1 + $0x112c] ss:$16 sps:$4 sm:$0xff]  }
 0x30f   :  { %7274 = vmatpush1.bf16.msra.mxu0 %v9968_v34  ;;  %v10039_v40 = vld [vmem:[%s13774_s1 + $0x132c] ss:$16 sps:$4 sm:$0xff]   ;;  %v10040_v34 = vld [vmem:[%s13774_s1 + $0x1108] ss:$16 sps:$4 sm:$0xff]  }
 0x310   :  { %7315 = vmatpush1.bf16.msra.mxu1 %v9971_v35  ;;  %7275 = vmatprep.subr.bf16.mxu0 %v9976_v22  ;;  %v10042_v0 = vld [vmem:[%s13774_s1 + $0x110c] ss:$16 sps:$4 sm:$0xff]   ;;  %v10043_v35 = vld [vmem:[%s13774_s1 + $0x1308] ss:$16 sps:$4 sm:$0xff]  }
 0x311   :  { %7316 = vmatprep.subr.bf16.mxu1 %v9979_v12  ;;  %v10045_v1 = vld [vmem:[%s13774_s1 + $0x130c] ss:$16 sps:$4 sm:$0xff]  }
 0x312   :  { %v10048_v22 = vld [vmem:[%s13774_s1 + $0x14ec] ss:$16 sps:$4 sm:$0xff]  }
 0x313   :  { %7276 = vmatpush1.bf16.msra.mxu0 %v9974_v23  ;;  %v10051_v12 = vld [vmem:[%s13774_s1 + $0x16ec] ss:$16 sps:$4 sm:$0xff]   ;;  %v10046_v23 = vld [vmem:[%s13774_s1 + $0x14e8] ss:$16 sps:$4 sm:$0xff]  }
 0x314   :  { %7317 = vmatpush1.bf16.msra.mxu1 %v9977_v49  ;;  %7277 = vmatprep.subr.bf16.mxu0 %v9982_v21  ;;  %v10049_v49 = vld [vmem:[%s13774_s1 + $0x16e8] ss:$16 sps:$4 sm:$0xff]   ;;  %v10054_v21 = vld [vmem:[%s13774_s1 + $0x14cc] ss:$16 sps:$4 sm:$0xff]  }
 0x315   :  { %7318 = vmatprep.subr.bf16.mxu1 %v9985_v53  ;;  %v10057_v53 = vld [vmem:[%s13774_s1 + $0x16cc] ss:$16 sps:$4 sm:$0xff]  }
 0x317   :  { %7278 = vmatpush1.bf16.msra.mxu0 %v9980_v41 }
 0x318   :  { %7319 = vmatpush1.bf16.msra.mxu1 %v9983_v63  ;;  %7279 = vmatprep.subr.bf16.mxu0 %v9988_v38 }
 0x319   :  { %7320 = vmatprep.subr.bf16.mxu1 %v9991_v39  ;;  %v10052_v39 = vld [vmem:[%s13774_s1 + $0x14c8] ss:$16 sps:$4 sm:$0xff]  }
 0x31b   :  { %7280 = vmatpush1.bf16.msra.mxu0 %v9986_v51  ;;  %v10055_v51 = vld [vmem:[%s13774_s1 + $0x16c8] ss:$16 sps:$4 sm:$0xff]  }
 0x31c   :  { %7321 = vmatpush1.bf16.msra.mxu1 %v9989_v61  ;;  %7281 = vmatprep.subr.bf16.mxu0 %v9994_v9 }
 0x31d   :  { %7322 = vmatprep.subr.bf16.mxu1 %v9997_v30 }
 0x31f   :  { %7282 = vmatpush1.bf16.msra.mxu0 %v9992_v58 }
 0x320   :  { %7323 = vmatpush1.bf16.msra.mxu1 %v9995_v47  ;;  %7283 = vmatprep.subr.bf16.mxu0 %v10000_v16 }
 0x321   :  { %7324 = vmatprep.subr.bf16.mxu1 %v10003_v17  ;;  %v10058_v17 = vld [vmem:[%s13774_s1 + $0x14a8] ss:$16 sps:$4 sm:$0xff]  }
 0x323   :  { %7284 = vmatpush2.bf16.msra.mxu0 %v9998_v6  ;;  %v10061_v6 = vld [vmem:[%s13774_s1 + $0x16a8] ss:$16 sps:$4 sm:$0xff]  }
 0x324   :  { %7325 = vmatpush2.bf16.msra.mxu1 %v10001_v7  ;;  %7285 = vmatprep.subr.bf16.mxu0 %v10006_v50  ;;  %v10064_v50 = vld [vmem:[%s13774_s1 + $0x1488] ss:$16 sps:$4 sm:$0xff]  }
 0x325   :  { %7326 = vmatprep.subr.bf16.mxu1 %v10009_v42  ;;  %v10067_v42 = vld [vmem:[%s13774_s1 + $0x1688] ss:$16 sps:$4 sm:$0xff]  }
 0x327   :  { %7286 = vmatpush2.bf16.msra.mxu0 %v10004_v52  ;;  %v10072_v52 = vld [vmem:[%s13774_s1 + $0x146c] ss:$16 sps:$4 sm:$0xff]  }
 0x328   :  { %7327 = vmatpush2.bf16.msra.mxu1 %v10007_v43  ;;  %7287 = vmatprep.subr.bf16.mxu0 %v10012_v13  ;;  %v10075_v43 = vld [vmem:[%s13774_s1 + $0x166c] ss:$16 sps:$4 sm:$0xff]   ;;  %v10070_v13 = vld [vmem:[%s13774_s1 + $0x1468] ss:$16 sps:$4 sm:$0xff]  }
 0x329   :  { %7328 = vmatprep.subr.bf16.mxu1 %v10015_v15  ;;  %v10073_v15 = vld [vmem:[%s13774_s1 + $0x1668] ss:$16 sps:$4 sm:$0xff]  }
 0x32b   :  { %7288 = vmatpush2.bf16.msra.mxu0 %v10010_v11  ;;  %v10078_v11 = vld [vmem:[%s13774_s1 + $0x144c] ss:$16 sps:$4 sm:$0xff]  }
 0x32c   :  { %7329 = vmatpush2.bf16.msra.mxu1 %v10013_v24  ;;  %7289 = vmatprep.subr.bf16.mxu0 %v10018_v25  ;;  %v10081_v24 = vld [vmem:[%s13774_s1 + $0x164c] ss:$16 sps:$4 sm:$0xff]   ;;  %v10076_v25 = vld [vmem:[%s13774_s1 + $0x1448] ss:$16 sps:$4 sm:$0xff]  }
 0x32d   :  { %7330 = vmatprep.subr.bf16.mxu1 %v10021_v8  ;;  %v10079_v8 = vld [vmem:[%s13774_s1 + $0x1648] ss:$16 sps:$4 sm:$0xff]  }
 0x32f   :  { %7290 = vmatpush2.bf16.msra.mxu0 %v10016_v36  ;;  %v10084_v36 = vld [vmem:[%s13774_s1 + $0x142c] ss:$16 sps:$4 sm:$0xff]  }
 0x330   :  { %7331 = vmatpush2.bf16.msra.mxu1 %v10019_v37  ;;  %7291 = vmatprep.subr.bf16.mxu0 %v10024_v19  ;;  %v10087_v37 = vld [vmem:[%s13774_s1 + $0x162c] ss:$16 sps:$4 sm:$0xff]   ;;  %v10082_v19 = vld [vmem:[%s13774_s1 + $0x1428] ss:$16 sps:$4 sm:$0xff]  }
 0x331   :  { %7332 = vmatprep.subr.bf16.mxu1 %v10027_v20  ;;  %v10085_v20 = vld [vmem:[%s13774_s1 + $0x1628] ss:$16 sps:$4 sm:$0xff]  }
 0x333   :  { %7292 = vmatpush2.bf16.msra.mxu0 %v10022_v26  ;;  %v10090_v26 = vld [vmem:[%s13774_s1 + $0x140c] ss:$16 sps:$4 sm:$0xff]  }
 0x334   :  { %7333 = vmatpush2.bf16.msra.mxu1 %v10025_v5  ;;  %7293 = vmatprep.subr.bf16.mxu0 %v10030_v59  ;;  %v10093_v5 = vld [vmem:[%s13774_s1 + $0x160c] ss:$16 sps:$4 sm:$0xff]   ;;  %v10088_v59 = vld [vmem:[%s13774_s1 + $0x1408] ss:$16 sps:$4 sm:$0xff]  }
 0x335   :  { %7334 = vmatprep.subr.bf16.mxu1 %v10033_v60  ;;  %v10091_v60 = vld [vmem:[%s13774_s1 + $0x1608] ss:$16 sps:$4 sm:$0xff]  }
 0x337   :  { %7294 = vmatpush2.bf16.msra.mxu0 %v10028_v31  ;;  %v10096_v31 = vld [vmem:[%s13774_s1 + $0x15ec] ss:$16 sps:$4 sm:$0xff]  }
 0x338   :  { %7335 = vmatpush2.bf16.msra.mxu1 %v10031_v14  ;;  %7295 = vmatprep.subr.bf16.mxu0 %v10036_v62  ;;  %v10099_v14 = vld [vmem:[%s13774_s1 + $0x17ec] ss:$16 sps:$4 sm:$0xff]   ;;  %v10094_v62 = vld [vmem:[%s13774_s1 + $0x15e8] ss:$16 sps:$4 sm:$0xff]  }
 0x339   :  { %7336 = vmatprep.subr.bf16.mxu1 %v10039_v40  ;;  %v10097_v40 = vld [vmem:[%s13774_s1 + $0x17e8] ss:$16 sps:$4 sm:$0xff]  }
 0x33b   :  { %7296 = vmatpush2.bf16.msra.mxu0 %v10034_v32  ;;  %v10102_v32 = vld [vmem:[%s13774_s1 + $0x15cc] ss:$16 sps:$4 sm:$0xff]  }
 0x33c   :  { %7337 = vmatpush2.bf16.msra.mxu1 %v10037_v33  ;;  %7297 = vmatprep.subr.bf16.mxu0 %v10042_v0  ;;  %v10105_v33 = vld [vmem:[%s13774_s1 + $0x17cc] ss:$16 sps:$4 sm:$0xff]   ;;  %v10100_v0 = vld [vmem:[%s13774_s1 + $0x15c8] ss:$16 sps:$4 sm:$0xff]  }
 0x33d   :  { %7338 = vmatprep.subr.bf16.mxu1 %v10045_v1  ;;  %v10103_v1 = vld [vmem:[%s13774_s1 + $0x17c8] ss:$16 sps:$4 sm:$0xff]  }
 0x33f   :  { %7298 = vmatpush2.bf16.msra.mxu0 %v10040_v34  ;;  %v10108_v34 = vld [vmem:[%s13774_s1 + $0x15ac] ss:$16 sps:$4 sm:$0xff]  }
 0x340   :  { %7339 = vmatpush2.bf16.msra.mxu1 %v10043_v35  ;;  %7349 = vmatprep.subr.bf16.mxu0 %v10048_v22  ;;  %v10111_v35 = vld [vmem:[%s13774_s1 + $0x17ac] ss:$16 sps:$4 sm:$0xff]   ;;  %v10106_v22 = vld [vmem:[%s13774_s1 + $0x15a8] ss:$16 sps:$4 sm:$0xff]  }
 0x341   :  { %7390 = vmatprep.subr.bf16.mxu1 %v10051_v12  ;;  %v10109_v12 = vld [vmem:[%s13774_s1 + $0x17a8] ss:$16 sps:$4 sm:$0xff]  }
 0x342   :  { %v7055_v41 = vpop.f32.mrf.mxu0  ;;  %7300 = vmatmul.mubr.bf16.vlgmr.msra.gmra.mxu0 %v11463_v46  ;;  %v10060_v46 = vld [vmem:[%s13774_s1 + $0x14ac] ss:$16 sps:$4 sm:$0xff]  }
 0x343   :  { %v7096_v63 = vpop.f32.mrf.mxu1  ;;  %7341 = vmatmul.mubr.bf16.vlgmr.msra.gmra.mxu1 %v11467_v48  ;;  %v7056_v38 = vadd.f32 %v7055_v41, %v12981_v18  ;;  %7350 = vmatpush1.bf16.msra.mxu0 %v10046_v23  ;;  %v10063_v48 = vld [vmem:[%s13774_s1 + $0x16ac] ss:$16 sps:$4 sm:$0xff]  }
 0x344   :  { %7391 = vmatpush1.bf16.msra.mxu1 %v10049_v49  ;;  %v7057_v61 = vpop.f32.mrf.mxu0  ;;  %7351 = vmatprep.subr.bf16.mxu0 %v10054_v21  ;;  %v10114_v23 = vld [vmem:[%s13774_s1 + $0x158c] ss:$16 sps:$4 sm:$0xff]   ;;  %v10112_v21 = vld [vmem:[%s13774_s1 + $0x1588] ss:$16 sps:$4 sm:$0xff]  }
 0x345   :  { %v7098_v9 = vpop.f32.mrf.mxu1  ;;  %7392 = vmatprep.subr.bf16.mxu1 %v10057_v53  ;;  %v13194_v18 = vadd.f32 %v7096_v63, %v7056_v38  ;;  %v7058_v30 = vadd.f32 %v7057_v61, %v12995_v27  ;;  %7381 = vmatprep.mubr.bf16.mxu0 %v11493_v54  ;;  %v10066_v54 = vld [vmem:[%s13774_s1 + $0x148c] ss:$16 sps:$4 sm:$0xff]   ;;  %v10115_v53 = vld [vmem:[%s13774_s1 + $0x1788] ss:$16 sps:$4 sm:$0xff]  }
 0x346   :  { %7422 = vmatprep.mubr.bf16.mxu1 %v11497_v55  ;;  %v7059_v58 = vpop.f32.mrf.mxu0  ;;  %v10069_v55 = vld [vmem:[%s13774_s1 + $0x168c] ss:$16 sps:$4 sm:$0xff]   ;;  %v10118_v38 = vld [vmem:[%s13774_s1 + $0x1568] ss:$16 sps:$4 sm:$0xff]  }
 0x347   :  { %v7100_v47 = vpop.f32.mrf.mxu1  ;;  %v13199_v16 = vadd.f32 %v7098_v9, %v7058_v30  ;;  %7352 = vmatpush1.bf16.msra.mxu0 %v10052_v39  ;;  %v10117_v49 = vld [vmem:[%s13774_s1 + $0x178c] ss:$16 sps:$4 sm:$0xff]   ;;  %v10121_v39 = vld [vmem:[%s13774_s1 + $0x1768] ss:$16 sps:$4 sm:$0xff]  }
 0x348   :  { %7393 = vmatpush1.bf16.msra.mxu1 %v10055_v51  ;;  %v7060_v7 = vpop.f32.mrf.mxu0  ;;  %7353 = vmatprep.subr.bf16.mxu0 %v10060_v46  ;;  %v10120_v41 = vld [vmem:[%s13774_s1 + $0x156c] ss:$16 sps:$4 sm:$0xff]   ;;  %v10124_v9 = vld [vmem:[%s13774_s1 + $0x1548] ss:$16 sps:$4 sm:$0xff]  }
 0x349   :  { %v7101_v27 = vpop.f32.mrf.mxu1  ;;  %7394 = vmatprep.subr.bf16.mxu1 %v10063_v48  ;;  %v10123_v63 = vld [vmem:[%s13774_s1 + $0x176c] ss:$16 sps:$4 sm:$0xff]   ;;  %v10127_v46 = vld [vmem:[%s13774_s1 + $0x1748] ss:$16 sps:$4 sm:$0xff]  }
 0x34a   :  { %v10126_v51 = vld [vmem:[%s13774_s1 + $0x154c] ss:$16 sps:$4 sm:$0xff]   ;;  %v10130_v58 = vld [vmem:[%s13774_s1 + $0x1528] ss:$16 sps:$4 sm:$0xff]  }
 0x34b   :  { %7354 = vmatpush1.bf16.msra.mxu0 %v10058_v17  ;;  %v10129_v61 = vld [vmem:[%s13774_s1 + $0x174c] ss:$16 sps:$4 sm:$0xff]   ;;  %v10133_v47 = vld [vmem:[%s13774_s1 + $0x1728] ss:$16 sps:$4 sm:$0xff]  }
 0x34c   :  { %7395 = vmatpush1.bf16.msra.mxu1 %v10061_v6  ;;  %7355 = vmatprep.subr.bf16.mxu0 %v10066_v54  ;;  %v10132_v48 = vld [vmem:[%s13774_s1 + $0x152c] ss:$16 sps:$4 sm:$0xff]   ;;  %v10136_v7 = vld [vmem:[%s13774_s1 + $0x1508] ss:$16 sps:$4 sm:$0xff]  }
 0x34d   :  { %7396 = vmatprep.subr.bf16.mxu1 %v10069_v55  ;;  %v10135_v30 = vld [vmem:[%s13774_s1 + $0x172c] ss:$16 sps:$4 sm:$0xff]   ;;  %v10139_v27 = vld [vmem:[%s13774_s1 + $0x1708] ss:$16 sps:$4 sm:$0xff]  }
 0x34e   :  { %v10138_v17 = vld [vmem:[%s13774_s1 + $0x150c] ss:$16 sps:$4 sm:$0xff]  }
 0x34f   :  { %7356 = vmatpush1.bf16.msra.mxu0 %v10064_v50  ;;  %v10141_v6 = vld [vmem:[%s13774_s1 + $0x170c] ss:$16 sps:$4 sm:$0xff]   ;;  %v10142_v50 = vld [vmem:[%s13774_s1 + $0x18e8] ss:$16 sps:$4 sm:$0xff]  }
 0x350   :  { %7397 = vmatpush1.bf16.msra.mxu1 %v10067_v42  ;;  %7357 = vmatprep.subr.bf16.mxu0 %v10072_v52  ;;  %v10144_v54 = vld [vmem:[%s13774_s1 + $0x18ec] ss:$16 sps:$4 sm:$0xff]   ;;  %v10145_v42 = vld [vmem:[%s13774_s1 + $0x1ae8] ss:$16 sps:$4 sm:$0xff]  }
 0x351   :  { %7398 = vmatprep.subr.bf16.mxu1 %v10075_v43  ;;  %v10147_v55 = vld [vmem:[%s13774_s1 + $0x1aec] ss:$16 sps:$4 sm:$0xff]  }
 0x352   :  { %v10150_v52 = vld [vmem:[%s13774_s1 + $0x18cc] ss:$16 sps:$4 sm:$0xff]  }
 0x353   :  { %7358 = vmatpush1.bf16.msra.mxu0 %v10070_v13  ;;  %v10153_v43 = vld [vmem:[%s13774_s1 + $0x1acc] ss:$16 sps:$4 sm:$0xff]  }
 0x354   :  { %7399 = vmatpush1.bf16.msra.mxu1 %v10073_v15  ;;  %7359 = vmatprep.subr.bf16.mxu0 %v10078_v11 }
 0x355   :  { %7400 = vmatprep.subr.bf16.mxu1 %v10081_v24  ;;  %v10148_v24 = vld [vmem:[%s13774_s1 + $0x18c8] ss:$16 sps:$4 sm:$0xff]  }
 0x357   :  { %7360 = vmatpush1.bf16.msra.mxu0 %v10076_v25  ;;  %v10151_v25 = vld [vmem:[%s13774_s1 + $0x1ac8] ss:$16 sps:$4 sm:$0xff]  }
 0x358   :  { %7401 = vmatpush1.bf16.msra.mxu1 %v10079_v8  ;;  %7361 = vmatprep.subr.bf16.mxu0 %v10084_v36 }
 0x359   :  { %7402 = vmatprep.subr.bf16.mxu1 %v10087_v37 }
 0x35b   :  { %7362 = vmatpush1.bf16.msra.mxu0 %v10082_v19 }
 0x35c   :  { %7403 = vmatpush1.bf16.msra.mxu1 %v10085_v20  ;;  %7363 = vmatprep.subr.bf16.mxu0 %v10090_v26 }
 0x35d   :  { %7404 = vmatprep.subr.bf16.mxu1 %v10093_v5  ;;  %v10154_v5 = vld [vmem:[%s13774_s1 + $0x18a8] ss:$16 sps:$4 sm:$0xff]  }
 0x35f   :  { %7364 = vmatpush1.bf16.msra.mxu0 %v10088_v59  ;;  %v10157_v59 = vld [vmem:[%s13774_s1 + $0x1aa8] ss:$16 sps:$4 sm:$0xff]  }
 0x360   :  { %7405 = vmatpush1.bf16.msra.mxu1 %v10091_v60  ;;  %7365 = vmatprep.subr.bf16.mxu0 %v10096_v31  ;;  %v10160_v31 = vld [vmem:[%s13774_s1 + $0x1888] ss:$16 sps:$4 sm:$0xff]  }
 0x361   :  { %7406 = vmatprep.subr.bf16.mxu1 %v10099_v14  ;;  %v10163_v14 = vld [vmem:[%s13774_s1 + $0x1a88] ss:$16 sps:$4 sm:$0xff]  }
 0x363   :  { %7366 = vmatpush2.bf16.msra.mxu0 %v10094_v62  ;;  %v10168_v62 = vld [vmem:[%s13774_s1 + $0x186c] ss:$16 sps:$4 sm:$0xff]  }
 0x364   :  { %7407 = vmatpush2.bf16.msra.mxu1 %v10097_v40  ;;  %7367 = vmatprep.subr.bf16.mxu0 %v10102_v32  ;;  %v10171_v40 = vld [vmem:[%s13774_s1 + $0x1a6c] ss:$16 sps:$4 sm:$0xff]   ;;  %v10166_v32 = vld [vmem:[%s13774_s1 + $0x1868] ss:$16 sps:$4 sm:$0xff]  }
 0x365   :  { %7408 = vmatprep.subr.bf16.mxu1 %v10105_v33  ;;  %v10169_v33 = vld [vmem:[%s13774_s1 + $0x1a68] ss:$16 sps:$4 sm:$0xff]  }
 0x367   :  { %7368 = vmatpush2.bf16.msra.mxu0 %v10100_v0  ;;  %v10174_v0 = vld [vmem:[%s13774_s1 + $0x184c] ss:$16 sps:$4 sm:$0xff]  }
 0x368   :  { %7409 = vmatpush2.bf16.msra.mxu1 %v10103_v1  ;;  %7369 = vmatprep.subr.bf16.mxu0 %v10108_v34  ;;  %v10177_v1 = vld [vmem:[%s13774_s1 + $0x1a4c] ss:$16 sps:$4 sm:$0xff]   ;;  %v10172_v34 = vld [vmem:[%s13774_s1 + $0x1848] ss:$16 sps:$4 sm:$0xff]  }
 0x369   :  { %7410 = vmatprep.subr.bf16.mxu1 %v10111_v35  ;;  %v10175_v35 = vld [vmem:[%s13774_s1 + $0x1a48] ss:$16 sps:$4 sm:$0xff]  }
 0x36b   :  { %7370 = vmatpush2.bf16.msra.mxu0 %v10106_v22  ;;  %v10180_v22 = vld [vmem:[%s13774_s1 + $0x182c] ss:$16 sps:$4 sm:$0xff]  }
 0x36c   :  { %7411 = vmatpush2.bf16.msra.mxu1 %v10109_v12  ;;  %7371 = vmatprep.subr.bf16.mxu0 %v10114_v23  ;;  %v10183_v12 = vld [vmem:[%s13774_s1 + $0x1a2c] ss:$16 sps:$4 sm:$0xff]   ;;  %v10178_v23 = vld [vmem:[%s13774_s1 + $0x1828] ss:$16 sps:$4 sm:$0xff]  }
 0x36d   :  { %7412 = vmatprep.subr.bf16.mxu1 %v10117_v49  ;;  %v10181_v49 = vld [vmem:[%s13774_s1 + $0x1a28] ss:$16 sps:$4 sm:$0xff]  }
 0x36f   :  { %7372 = vmatpush2.bf16.msra.mxu0 %v10112_v21  ;;  %v10186_v21 = vld [vmem:[%s13774_s1 + $0x180c] ss:$16 sps:$4 sm:$0xff]  }
 0x370   :  { %7413 = vmatpush2.bf16.msra.mxu1 %v10115_v53  ;;  %7373 = vmatprep.subr.bf16.mxu0 %v10120_v41  ;;  %v10189_v53 = vld [vmem:[%s13774_s1 + $0x1a0c] ss:$16 sps:$4 sm:$0xff]   ;;  %v10184_v41 = vld [vmem:[%s13774_s1 + $0x1808] ss:$16 sps:$4 sm:$0xff]  }
 0x371   :  { %7414 = vmatprep.subr.bf16.mxu1 %v10123_v63  ;;  %v10187_v63 = vld [vmem:[%s13774_s1 + $0x1a08] ss:$16 sps:$4 sm:$0xff]  }
 0x373   :  { %7374 = vmatpush2.bf16.msra.mxu0 %v10118_v38  ;;  %v10192_v38 = vld [vmem:[%s13774_s1 + $0x19ec] ss:$16 sps:$4 sm:$0xff]  }
 0x374   :  { %7415 = vmatpush2.bf16.msra.mxu1 %v10121_v39  ;;  %7375 = vmatprep.subr.bf16.mxu0 %v10126_v51  ;;  %v10195_v39 = vld [vmem:[%s13774_s1 + $0x1bec] ss:$16 sps:$4 sm:$0xff]   ;;  %v10190_v51 = vld [vmem:[%s13774_s1 + $0x19e8] ss:$16 sps:$4 sm:$0xff]  }
 0x375   :  { %7416 = vmatprep.subr.bf16.mxu1 %v10129_v61  ;;  %v10193_v61 = vld [vmem:[%s13774_s1 + $0x1be8] ss:$16 sps:$4 sm:$0xff]  }
 0x377   :  { %7376 = vmatpush2.bf16.msra.mxu0 %v10124_v9  ;;  %v10198_v9 = vld [vmem:[%s13774_s1 + $0x19cc] ss:$16 sps:$4 sm:$0xff]  }
 0x378   :  { %7417 = vmatpush2.bf16.msra.mxu1 %v10127_v46  ;;  %7377 = vmatprep.subr.bf16.mxu0 %v10132_v48  ;;  %v10201_v46 = vld [vmem:[%s13774_s1 + $0x1bcc] ss:$16 sps:$4 sm:$0xff]   ;;  %v10196_v48 = vld [vmem:[%s13774_s1 + $0x19c8] ss:$16 sps:$4 sm:$0xff]  }
 0x379   :  { %7418 = vmatprep.subr.bf16.mxu1 %v10135_v30  ;;  %v10199_v30 = vld [vmem:[%s13774_s1 + $0x1bc8] ss:$16 sps:$4 sm:$0xff]  }
 0x37b   :  { %7378 = vmatpush2.bf16.msra.mxu0 %v10130_v58  ;;  %v10204_v58 = vld [vmem:[%s13774_s1 + $0x19ac] ss:$16 sps:$4 sm:$0xff]  }
 0x37c   :  { %7419 = vmatpush2.bf16.msra.mxu1 %v10133_v47  ;;  %7379 = vmatprep.subr.bf16.mxu0 %v10138_v17  ;;  %v10207_v47 = vld [vmem:[%s13774_s1 + $0x1bac] ss:$16 sps:$4 sm:$0xff]   ;;  %v10202_v17 = vld [vmem:[%s13774_s1 + $0x19a8] ss:$16 sps:$4 sm:$0xff]  }
 0x37d   :  { %7420 = vmatprep.subr.bf16.mxu1 %v10141_v6  ;;  %v10205_v6 = vld [vmem:[%s13774_s1 + $0x1ba8] ss:$16 sps:$4 sm:$0xff]  }
 0x37f   :  { %7380 = vmatpush2.bf16.msra.mxu0 %v10136_v7  ;;  %v10210_v7 = vld [vmem:[%s13774_s1 + $0x198c] ss:$16 sps:$4 sm:$0xff]  }
 0x380   :  { %7421 = vmatpush2.bf16.msra.mxu1 %v10139_v27  ;;  %7431 = vmatprep.subr.bf16.mxu0 %v10144_v54  ;;  %v10213_v27 = vld [vmem:[%s13774_s1 + $0x1b8c] ss:$16 sps:$4 sm:$0xff]   ;;  %v10208_v54 = vld [vmem:[%s13774_s1 + $0x1988] ss:$16 sps:$4 sm:$0xff]  }
 0x381   :  { %7472 = vmatprep.subr.bf16.mxu1 %v10147_v55  ;;  %v10211_v55 = vld [vmem:[%s13774_s1 + $0x1b88] ss:$16 sps:$4 sm:$0xff]  }
 0x382   :  { %v7137_v13 = vpop.f32.mrf.mxu0  ;;  %7382 = vmatmul.mubr.bf16.vlgmr.msra.gmra.mxu0 %v11691_v44  ;;  %v10156_v44 = vld [vmem:[%s13774_s1 + $0x18ac] ss:$16 sps:$4 sm:$0xff]  }
 0x383   :  { %v7178_v15 = vpop.f32.mrf.mxu1  ;;  %7423 = vmatmul.mubr.bf16.vlgmr.msra.gmra.mxu1 %v11695_v45  ;;  %v7138_v11 = vadd.f32 %v7137_v13, %v13194_v18  ;;  %7432 = vmatpush1.bf16.msra.mxu0 %v10142_v50  ;;  %v10159_v45 = vld [vmem:[%s13774_s1 + $0x1aac] ss:$16 sps:$4 sm:$0xff]  }
 0x384   :  { %7473 = vmatpush1.bf16.msra.mxu1 %v10145_v42  ;;  %v7139_v8 = vpop.f32.mrf.mxu0  ;;  %7433 = vmatprep.subr.bf16.mxu0 %v10150_v52  ;;  %v10216_v50 = vld [vmem:[%s13774_s1 + $0x196c] ss:$16 sps:$4 sm:$0xff]   ;;  %v10214_v52 = vld [vmem:[%s13774_s1 + $0x1968] ss:$16 sps:$4 sm:$0xff]  }
 0x385   :  { %v7180_v36 = vpop.f32.mrf.mxu1  ;;  %7474 = vmatprep.subr.bf16.mxu1 %v10153_v43  ;;  %v13396_v18 = vadd.f32 %v7178_v15, %v7138_v11  ;;  %v7140_v37 = vadd.f32 %v7139_v8, %v13199_v16  ;;  %7463 = vmatprep.mubr.bf16.mxu0 %v11721_v56  ;;  %v10162_v56 = vld [vmem:[%s13774_s1 + $0x188c] ss:$16 sps:$4 sm:$0xff]   ;;  %v10217_v43 = vld [vmem:[%s13774_s1 + $0x1b68] ss:$16 sps:$4 sm:$0xff]  }
 0x386   :  { %7504 = vmatprep.mubr.bf16.mxu1 %v11725_v57  ;;  %v7141_v19 = vpop.f32.mrf.mxu0  ;;  %v10165_v57 = vld [vmem:[%s13774_s1 + $0x1a8c] ss:$16 sps:$4 sm:$0xff]   ;;  %v10220_v11 = vld [vmem:[%s13774_s1 + $0x1948] ss:$16 sps:$4 sm:$0xff]  }
 0x387   :  { %v7182_v20 = vpop.f32.mrf.mxu1  ;;  %v13401_v26 = vadd.f32 %v7180_v36, %v7140_v37  ;;  %7434 = vmatpush1.bf16.msra.mxu0 %v10148_v24  ;;  %v10219_v42 = vld [vmem:[%s13774_s1 + $0x1b6c] ss:$16 sps:$4 sm:$0xff]   ;;  %v10223_v24 = vld [vmem:[%s13774_s1 + $0x1b48] ss:$16 sps:$4 sm:$0xff]  }
 0x388   :  { %7475 = vmatpush1.bf16.msra.mxu1 %v10151_v25  ;;  %v7142_v60 = vpop.f32.mrf.mxu0  ;;  %7435 = vmatprep.subr.bf16.mxu0 %v10156_v44  ;;  %v10222_v13 = vld [vmem:[%s13774_s1 + $0x194c] ss:$16 sps:$4 sm:$0xff]   ;;  %v10226_v36 = vld [vmem:[%s13774_s1 + $0x1928] ss:$16 sps:$4 sm:$0xff]  }
 0x389   :  { %v7183_v16 = vpop.f32.mrf.mxu1  ;;  %7476 = vmatprep.subr.bf16.mxu1 %v10159_v45  ;;  %v10225_v15 = vld [vmem:[%s13774_s1 + $0x1b4c] ss:$16 sps:$4 sm:$0xff]   ;;  %v10229_v44 = vld [vmem:[%s13774_s1 + $0x1b28] ss:$16 sps:$4 sm:$0xff]  }
 0x38a   :  { %v10228_v25 = vld [vmem:[%s13774_s1 + $0x192c] ss:$16 sps:$4 sm:$0xff]   ;;  %v10232_v19 = vld [vmem:[%s13774_s1 + $0x1908] ss:$16 sps:$4 sm:$0xff]  }
 0x38b   :  { %7436 = vmatpush1.bf16.msra.mxu0 %v10154_v5  ;;  %v10231_v8 = vld [vmem:[%s13774_s1 + $0x1b2c] ss:$16 sps:$4 sm:$0xff]   ;;  %v10235_v20 = vld [vmem:[%s13774_s1 + $0x1b08] ss:$16 sps:$4 sm:$0xff]  }
 0x38c   :  { %7477 = vmatpush1.bf16.msra.mxu1 %v10157_v59  ;;  %7437 = vmatprep.subr.bf16.mxu0 %v10162_v56  ;;  %v10234_v45 = vld [vmem:[%s13774_s1 + $0x190c] ss:$16 sps:$4 sm:$0xff]   ;;  %v10238_v60 = vld [vmem:[%s13774_s1 + $0x1ce8] ss:$16 sps:$4 sm:$0xff]  }
 0x38d   :  { %7478 = vmatprep.subr.bf16.mxu1 %v10165_v57  ;;  %v10237_v37 = vld [vmem:[%s13774_s1 + $0x1b0c] ss:$16 sps:$4 sm:$0xff]   ;;  %v10241_v16 = vld [vmem:[%s13774_s1 + $0x1ee8] ss:$16 sps:$4 sm:$0xff]  }
 0x38e   :  { %v10240_v5 = vld [vmem:[%s13774_s1 + $0x1cec] ss:$16 sps:$4 sm:$0xff]  }
 0x38f   :  { %7438 = vmatpush1.bf16.msra.mxu0 %v10160_v31  ;;  %v10243_v59 = vld [vmem:[%s13774_s1 + $0x1eec] ss:$16 sps:$4 sm:$0xff]  }
 0x390   :  { %7479 = vmatpush1.bf16.msra.mxu1 %v10163_v14  ;;  %7439 = vmatprep.subr.bf16.mxu0 %v10168_v62  ;;  %v10246_v56 = vld [vmem:[%s13774_s1 + $0x1ccc] ss:$16 sps:$4 sm:$0xff]  }
 0x391   :  { %7480 = vmatprep.subr.bf16.mxu1 %v10171_v40  ;;  %v10249_v57 = vld [vmem:[%s13774_s1 + $0x1ecc] ss:$16 sps:$4 sm:$0xff]   ;;  %v10244_v40 = vld [vmem:[%s13774_s1 + $0x1cc8] ss:$16 sps:$4 sm:$0xff]  }
 0x393   :  { %7440 = vmatpush1.bf16.msra.mxu0 %v10166_v32  ;;  %v10247_v32 = vld [vmem:[%s13774_s1 + $0x1ec8] ss:$16 sps:$4 sm:$0xff]  }
 0x394   :  { %7481 = vmatpush1.bf16.msra.mxu1 %v10169_v33  ;;  %7441 = vmatprep.subr.bf16.mxu0 %v10174_v0 }
 0x395   :  { %7482 = vmatprep.subr.bf16.mxu1 %v10177_v1 }
 0x397   :  { %7442 = vmatpush1.bf16.msra.mxu0 %v10172_v34 }
 0x398   :  { %7483 = vmatpush1.bf16.msra.mxu1 %v10175_v35  ;;  %7443 = vmatprep.subr.bf16.mxu0 %v10180_v22 }
 0x399   :  { %7484 = vmatprep.subr.bf16.mxu1 %v10183_v12  ;;  %v10250_v12 = vld [vmem:[%s13774_s1 + $0x1ca8] ss:$16 sps:$4 sm:$0xff]  }
 0x39b   :  { %7444 = vmatpush1.bf16.msra.mxu0 %v10178_v23  ;;  %v10253_v23 = vld [vmem:[%s13774_s1 + $0x1ea8] ss:$16 sps:$4 sm:$0xff]  }
 0x39c   :  { %7485 = vmatpush1.bf16.msra.mxu1 %v10181_v49  ;;  %7445 = vmatprep.subr.bf16.mxu0 %v10186_v21  ;;  %v10256_v21 = vld [vmem:[%s13774_s1 + $0x1c88] ss:$16 sps:$4 sm:$0xff]  }
 0x39d   :  { %7486 = vmatprep.subr.bf16.mxu1 %v10189_v53  ;;  %v10259_v53 = vld [vmem:[%s13774_s1 + $0x1e88] ss:$16 sps:$4 sm:$0xff]  }
 0x39f   :  { %7446 = vmatpush1.bf16.msra.mxu0 %v10184_v41  ;;  %v10264_v41 = vld [vmem:[%s13774_s1 + $0x1c6c] ss:$16 sps:$4 sm:$0xff]  }
 0x3a0   :  { %7487 = vmatpush1.bf16.msra.mxu1 %v10187_v63  ;;  %7447 = vmatprep.subr.bf16.mxu0 %v10192_v38  ;;  %v10267_v63 = vld [vmem:[%s13774_s1 + $0x1e6c] ss:$16 sps:$4 sm:$0xff]   ;;  %v10262_v38 = vld [vmem:[%s13774_s1 + $0x1c68] ss:$16 sps:$4 sm:$0xff]  }
 0x3a1   :  { %7488 = vmatprep.subr.bf16.mxu1 %v10195_v39  ;;  %v10265_v39 = vld [vmem:[%s13774_s1 + $0x1e68] ss:$16 sps:$4 sm:$0xff]  }
 0x3a3   :  { %7448 = vmatpush2.bf16.msra.mxu0 %v10190_v51  ;;  %v10270_v51 = vld [vmem:[%s13774_s1 + $0x1c4c] ss:$16 sps:$4 sm:$0xff]  }
 0x3a4   :  { %7489 = vmatpush2.bf16.msra.mxu1 %v10193_v61  ;;  %7449 = vmatprep.subr.bf16.mxu0 %v10198_v9  ;;  %v10273_v61 = vld [vmem:[%s13774_s1 + $0x1e4c] ss:$16 sps:$4 sm:$0xff]   ;;  %v10268_v9 = vld [vmem:[%s13774_s1 + $0x1c48] ss:$16 sps:$4 sm:$0xff]  }
 0x3a5   :  { %7490 = vmatprep.subr.bf16.mxu1 %v10201_v46  ;;  %v10271_v46 = vld [vmem:[%s13774_s1 + $0x1e48] ss:$16 sps:$4 sm:$0xff]  }
 0x3a7   :  { %7450 = vmatpush2.bf16.msra.mxu0 %v10196_v48  ;;  %v10276_v48 = vld [vmem:[%s13774_s1 + $0x1c2c] ss:$16 sps:$4 sm:$0xff]  }
 0x3a8   :  { %7491 = vmatpush2.bf16.msra.mxu1 %v10199_v30  ;;  %7451 = vmatprep.subr.bf16.mxu0 %v10204_v58  ;;  %v10279_v30 = vld [vmem:[%s13774_s1 + $0x1e2c] ss:$16 sps:$4 sm:$0xff]   ;;  %v10274_v58 = vld [vmem:[%s13774_s1 + $0x1c28] ss:$16 sps:$4 sm:$0xff]  }
 0x3a9   :  { %7492 = vmatprep.subr.bf16.mxu1 %v10207_v47  ;;  %v10277_v47 = vld [vmem:[%s13774_s1 + $0x1e28] ss:$16 sps:$4 sm:$0xff]  }
 0x3ab   :  { %7452 = vmatpush2.bf16.msra.mxu0 %v10202_v17  ;;  %v10282_v17 = vld [vmem:[%s13774_s1 + $0x1c0c] ss:$16 sps:$4 sm:$0xff]  }
 0x3ac   :  { %7493 = vmatpush2.bf16.msra.mxu1 %v10205_v6  ;;  %7453 = vmatprep.subr.bf16.mxu0 %v10210_v7  ;;  %v10285_v6 = vld [vmem:[%s13774_s1 + $0x1e0c] ss:$16 sps:$4 sm:$0xff]   ;;  %v10280_v7 = vld [vmem:[%s13774_s1 + $0x1c08] ss:$16 sps:$4 sm:$0xff]  }
 0x3ad   :  { %7494 = vmatprep.subr.bf16.mxu1 %v10213_v27  ;;  %v10283_v27 = vld [vmem:[%s13774_s1 + $0x1e08] ss:$16 sps:$4 sm:$0xff]  }
 0x3af   :  { %7454 = vmatpush2.bf16.msra.mxu0 %v10208_v54  ;;  %v10288_v54 = vld [vmem:[%s13774_s1 + $0x1dec] ss:$16 sps:$4 sm:$0xff]  }
 0x3b0   :  { %7495 = vmatpush2.bf16.msra.mxu1 %v10211_v55  ;;  %7455 = vmatprep.subr.bf16.mxu0 %v10216_v50  ;;  %v10291_v55 = vld [vmem:[%s13774_s1 + $0x1fec] ss:$16 sps:$4 sm:$0xff]   ;;  %v10286_v50 = vld [vmem:[%s13774_s1 + $0x1de8] ss:$16 sps:$4 sm:$0xff]  }
 0x3b1   :  { %7496 = vmatprep.subr.bf16.mxu1 %v10219_v42  ;;  %v10289_v42 = vld [vmem:[%s13774_s1 + $0x1fe8] ss:$16 sps:$4 sm:$0xff]  }
 0x3b3   :  { %7456 = vmatpush2.bf16.msra.mxu0 %v10214_v52  ;;  %v10294_v52 = vld [vmem:[%s13774_s1 + $0x1dcc] ss:$16 sps:$4 sm:$0xff]  }
 0x3b4   :  { %7497 = vmatpush2.bf16.msra.mxu1 %v10217_v43  ;;  %7457 = vmatprep.subr.bf16.mxu0 %v10222_v13  ;;  %v10297_v43 = vld [vmem:[%s13774_s1 + $0x1fcc] ss:$16 sps:$4 sm:$0xff]   ;;  %v10292_v13 = vld [vmem:[%s13774_s1 + $0x1dc8] ss:$16 sps:$4 sm:$0xff]  }
 0x3b5   :  { %7498 = vmatprep.subr.bf16.mxu1 %v10225_v15  ;;  %v10295_v15 = vld [vmem:[%s13774_s1 + $0x1fc8] ss:$16 sps:$4 sm:$0xff]  }
 0x3b7   :  { %7458 = vmatpush2.bf16.msra.mxu0 %v10220_v11  ;;  %v10300_v11 = vld [vmem:[%s13774_s1 + $0x1dac] ss:$16 sps:$4 sm:$0xff]  }
 0x3b8   :  { %7499 = vmatpush2.bf16.msra.mxu1 %v10223_v24  ;;  %7459 = vmatprep.subr.bf16.mxu0 %v10228_v25  ;;  %v10303_v24 = vld [vmem:[%s13774_s1 + $0x1fac] ss:$16 sps:$4 sm:$0xff]   ;;  %v10298_v25 = vld [vmem:[%s13774_s1 + $0x1da8] ss:$16 sps:$4 sm:$0xff]  }
 0x3b9   :  { %7500 = vmatprep.subr.bf16.mxu1 %v10231_v8  ;;  %v10301_v8 = vld [vmem:[%s13774_s1 + $0x1fa8] ss:$16 sps:$4 sm:$0xff]  }
 0x3bb   :  { %7460 = vmatpush2.bf16.msra.mxu0 %v10226_v36  ;;  %v10306_v36 = vld [vmem:[%s13774_s1 + $0x1d8c] ss:$16 sps:$4 sm:$0xff]  }
 0x3bc   :  { %7501 = vmatpush2.bf16.msra.mxu1 %v10229_v44  ;;  %7461 = vmatprep.subr.bf16.mxu0 %v10234_v45  ;;  %v10309_v44 = vld [vmem:[%s13774_s1 + $0x1f8c] ss:$16 sps:$4 sm:$0xff]   ;;  %v10304_v45 = vld [vmem:[%s13774_s1 + $0x1d88] ss:$16 sps:$4 sm:$0xff]  }
 0x3bd   :  { %7502 = vmatprep.subr.bf16.mxu1 %v10237_v37  ;;  %v10307_v37 = vld [vmem:[%s13774_s1 + $0x1f88] ss:$16 sps:$4 sm:$0xff]  }
 0x3bf   :  { %7462 = vmatpush2.bf16.msra.mxu0 %v10232_v19  ;;  %v10312_v19 = vld [vmem:[%s13774_s1 + $0x1d6c] ss:$16 sps:$4 sm:$0xff]  }
 0x3c0   :  { %7503 = vmatpush2.bf16.msra.mxu1 %v10235_v20  ;;  %7513 = vmatprep.subr.bf16.mxu0 %v10240_v5  ;;  %v10315_v20 = vld [vmem:[%s13774_s1 + $0x1f6c] ss:$16 sps:$4 sm:$0xff]   ;;  %v10310_v5 = vld [vmem:[%s13774_s1 + $0x1d68] ss:$16 sps:$4 sm:$0xff]  }
 0x3c1   :  { %7554 = vmatprep.subr.bf16.mxu1 %v10243_v59  ;;  %v10313_v59 = vld [vmem:[%s13774_s1 + $0x1f68] ss:$16 sps:$4 sm:$0xff]  }
 0x3c2   :  { %v7219_v31 = vpop.f32.mrf.mxu0  ;;  %7464 = vmatmul.mubr.bf16.vlgmr.msra.gmra.mxu0 %v11929_v2  ;;  %v10252_v2 = vld [vmem:[%s13774_s1 + $0x1cac] ss:$16 sps:$4 sm:$0xff]  }
 0x3c3   :  { %v7260_v14 = vpop.f32.mrf.mxu1  ;;  %7505 = vmatmul.mubr.bf16.vlgmr.msra.gmra.mxu1 %v11933_v4  ;;  %v7220_v62 = vadd.f32 %v7219_v31, %v13396_v18  ;;  %7514 = vmatpush1.bf16.msra.mxu0 %v10238_v60  ;;  %v10255_v4 = vld [vmem:[%s13774_s1 + $0x1eac] ss:$16 sps:$4 sm:$0xff]  }
 0x3c4   :  { %7555 = vmatpush1.bf16.msra.mxu1 %v10241_v16  ;;  %v7221_v33 = vpop.f32.mrf.mxu0  ;;  %7515 = vmatprep.subr.bf16.mxu0 %v10246_v56  ;;  %v10318_v60 = vld [vmem:[%s13774_s1 + $0x1d4c] ss:$16 sps:$4 sm:$0xff]   ;;  %v10316_v56 = vld [vmem:[%s13774_s1 + $0x1d48] ss:$16 sps:$4 sm:$0xff]  }
 0x3c5   :  { %v7262_v0 = vpop.f32.mrf.mxu1  ;;  %7556 = vmatprep.subr.bf16.mxu1 %v10249_v57  ;;  %v13598_v18 = vadd.f32 %v7260_v14, %v7220_v62  ;;  %v7222_v1 = vadd.f32 %v7221_v33, %v13401_v26  ;;  %7545 = vmatprep.mubr.bf16.mxu0 %v11949_v3  ;;  %v10258_v3 = vld [vmem:[%s13774_s1 + $0x1c8c] ss:$16 sps:$4 sm:$0xff]   ;;  %v10319_v57 = vld [vmem:[%s13774_s1 + $0x1f48] ss:$16 sps:$4 sm:$0xff]  }
 0x3c6   :  { %7586 = vmatprep.mubr.bf16.mxu1 %v11953_v10  ;;  %v7223_v34 = vpop.f32.mrf.mxu0  ;;  %v10261_v10 = vld [vmem:[%s13774_s1 + $0x1e8c] ss:$16 sps:$4 sm:$0xff]   ;;  %v10322_v62 = vld [vmem:[%s13774_s1 + $0x1d28] ss:$16 sps:$4 sm:$0xff]  }
 0x3c7   :  { %v7264_v35 = vpop.f32.mrf.mxu1  ;;  %v13603_v22 = vadd.f32 %v7262_v0, %v7222_v1  ;;  %7516 = vmatpush1.bf16.msra.mxu0 %v10244_v40  ;;  %v10321_v16 = vld [vmem:[%s13774_s1 + $0x1f4c] ss:$16 sps:$4 sm:$0xff]   ;;  %v10325_v40 = vld [vmem:[%s13774_s1 + $0x1f28] ss:$16 sps:$4 sm:$0xff]  }
 0x3c8   :  { %7557 = vmatpush1.bf16.msra.mxu1 %v10247_v32  ;;  %v7224_v49 = vpop.f32.mrf.mxu0  ;;  %7517 = vmatprep.subr.bf16.mxu0 %v10252_v2  ;;  %v10324_v31 = vld [vmem:[%s13774_s1 + $0x1d2c] ss:$16 sps:$4 sm:$0xff]   ;;  %v10328_v0 = vld [vmem:[%s13774_s1 + $0x1d08] ss:$16 sps:$4 sm:$0xff]  }
 0x3c9   :  { %v7265_v26 = vpop.f32.mrf.mxu1  ;;  %7558 = vmatprep.subr.bf16.mxu1 %v10255_v4  ;;  %v10327_v14 = vld [vmem:[%s13774_s1 + $0x1f2c] ss:$16 sps:$4 sm:$0xff]   ;;  %v10331_v2 = vld [vmem:[%s13774_s1 + $0x1f08] ss:$16 sps:$4 sm:$0xff]  }
 0x3ca   :  { %v10330_v32 = vld [vmem:[%s13774_s1 + $0x1d0c] ss:$16 sps:$4 sm:$0xff]  }
 0x3cb   :  { %7518 = vmatpush1.bf16.msra.mxu0 %v10250_v12  ;;  %v10333_v33 = vld [vmem:[%s13774_s1 + $0x1f0c] ss:$16 sps:$4 sm:$0xff]  }
 0x3cc   :  { %7559 = vmatpush1.bf16.msra.mxu1 %v10253_v23  ;;  %7519 = vmatprep.subr.bf16.mxu0 %v10258_v3 }
 0x3cd   :  { %7560 = vmatprep.subr.bf16.mxu1 %v10261_v10 }
 0x3cf   :  { %7520 = vmatpush1.bf16.msra.mxu0 %v10256_v21 }
 0x3d0   :  { %7561 = vmatpush1.bf16.msra.mxu1 %v10259_v53  ;;  %7521 = vmatprep.subr.bf16.mxu0 %v10264_v41 }
 0x3d1   :  { %7562 = vmatprep.subr.bf16.mxu1 %v10267_v63 }
 0x3d3   :  { %7522 = vmatpush1.bf16.msra.mxu0 %v10262_v38 }
 0x3d4   :  { %7563 = vmatpush1.bf16.msra.mxu1 %v10265_v39  ;;  %7523 = vmatprep.subr.bf16.mxu0 %v10270_v51 }
 0x3d5   :  { %7564 = vmatprep.subr.bf16.mxu1 %v10273_v61 }
 0x3d7   :  { %7524 = vmatpush1.bf16.msra.mxu0 %v10268_v9 }
 0x3d8   :  { %7565 = vmatpush1.bf16.msra.mxu1 %v10271_v46  ;;  %7525 = vmatprep.subr.bf16.mxu0 %v10276_v48 }
 0x3d9   :  { %7566 = vmatprep.subr.bf16.mxu1 %v10279_v30 }
 0x3db   :  { %7526 = vmatpush1.bf16.msra.mxu0 %v10274_v58 }
 0x3dc   :  { %7567 = vmatpush1.bf16.msra.mxu1 %v10277_v47  ;;  %7527 = vmatprep.subr.bf16.mxu0 %v10282_v17 }
 0x3dd   :  { %7568 = vmatprep.subr.bf16.mxu1 %v10285_v6 }
 0x3df   :  { %7528 = vmatpush1.bf16.msra.mxu0 %v10280_v7 }
 0x3e0   :  { %7569 = vmatpush1.bf16.msra.mxu1 %v10283_v27  ;;  %7529 = vmatprep.subr.bf16.mxu0 %v10288_v54 }
 0x3e1   :  { %7570 = vmatprep.subr.bf16.mxu1 %v10291_v55 }
 0x3e3   :  { %7530 = vmatpush2.bf16.msra.mxu0 %v10286_v50 }
 0x3e4   :  { %7571 = vmatpush2.bf16.msra.mxu1 %v10289_v42  ;;  %7531 = vmatprep.subr.bf16.mxu0 %v10294_v52 }
 0x3e5   :  { %7572 = vmatprep.subr.bf16.mxu1 %v10297_v43 }
 0x3e7   :  { %7532 = vmatpush2.bf16.msra.mxu0 %v10292_v13 }
 0x3e8   :  { %7573 = vmatpush2.bf16.msra.mxu1 %v10295_v15  ;;  %7533 = vmatprep.subr.bf16.mxu0 %v10300_v11 }
 0x3e9   :  { %7574 = vmatprep.subr.bf16.mxu1 %v10303_v24 }
 0x3eb   :  { %7534 = vmatpush2.bf16.msra.mxu0 %v10298_v25 }
 0x3ec   :  { %7575 = vmatpush2.bf16.msra.mxu1 %v10301_v8  ;;  %7535 = vmatprep.subr.bf16.mxu0 %v10306_v36 }
 0x3ed   :  { %7576 = vmatprep.subr.bf16.mxu1 %v10309_v44 }
 0x3ef   :  { %7536 = vmatpush2.bf16.msra.mxu0 %v10304_v45 }
 0x3f0   :  { %7577 = vmatpush2.bf16.msra.mxu1 %v10307_v37  ;;  %7537 = vmatprep.subr.bf16.mxu0 %v10312_v19 }
 0x3f1   :  { %7578 = vmatprep.subr.bf16.mxu1 %v10315_v20 }
 0x3f3   :  { %7538 = vmatpush2.bf16.msra.mxu0 %v10310_v5 }
 0x3f4   :  { %7579 = vmatpush2.bf16.msra.mxu1 %v10313_v59  ;;  %7539 = vmatprep.subr.bf16.mxu0 %v10318_v60 }
 0x3f5   :  { %7580 = vmatprep.subr.bf16.mxu1 %v10321_v16 }
 0x3f7   :  { %7540 = vmatpush2.bf16.msra.mxu0 %v10316_v56 }
 0x3f8   :  { %7581 = vmatpush2.bf16.msra.mxu1 %v10319_v57  ;;  %7541 = vmatprep.subr.bf16.mxu0 %v10324_v31 }
 0x3f9   :  { %7582 = vmatprep.subr.bf16.mxu1 %v10327_v14 }
 0x3fb   :  { %7542 = vmatpush2.bf16.msra.mxu0 %v10322_v62 }
 0x3fc   :  { %7583 = vmatpush2.bf16.msra.mxu1 %v10325_v40  ;;  %7543 = vmatprep.subr.bf16.mxu0 %v10330_v32 }
 0x3fd   :  { %7584 = vmatprep.subr.bf16.mxu1 %v10333_v33 }
 0x3ff   :  { %7544 = vmatpush2.bf16.msra.mxu0 %v10328_v0 }
 0x400   :  { %7585 = vmatpush2.bf16.msra.mxu1 %v10331_v2 }
 0x402   :  { %v7301_v4 = vpop.f32.mrf.mxu0  ;;  %7546 = vmatmul.mubr.bf16.vlgmr.msra.gmra.mxu0 %v12147_v28 }
 0x403   :  { %v7342_v1 = vpop.f32.mrf.mxu1  ;;  %7587 = vmatmul.mubr.bf16.vlgmr.msra.gmra.mxu1 %v12151_v29  ;;  %v7302_v34 = vadd.f32 %v7301_v4, %v13598_v18 }
 0x404   :  { %v7303_v35 = vpop.f32.mrf.mxu0 }
 0x405   :  { %v7344_v12 = vpop.f32.mrf.mxu1  ;;  %v7343_v23 = vadd.f32 %v7342_v1, %v7302_v34  ;;  %v7304_v49 = vadd.f32 %v7303_v35, %v13603_v22 }
 0x406   :  { %v7305_v26 = vpop.f32.mrf.mxu0 }
 0x407   :  { %v7346_v3 = vpop.f32.mrf.mxu1  ;;  %v7345_v10 = vadd.f32 %v7344_v12, %v7304_v49 }
 0x408   :  { %v7306_v21 = vpop.f32.mrf.mxu0 }
 0x409   :  { %v7347_v53 = vpop.f32.mrf.mxu1 }
 0x442   :  { %v7383_v41 = vpop.f32.mrf.mxu0 }
 0x443   :  { %v7424_v63 = vpop.f32.mrf.mxu1  ;;  %v7384_v38 = vadd.f32 %v7383_v41, %v7343_v23 }
 0x444   :  { %v7385_v39 = vpop.f32.mrf.mxu0 }
 0x445   :  { %v7426_v51 = vpop.f32.mrf.mxu1  ;;  %v7425_v28 = vadd.f32 %v7424_v63, %v7384_v38  ;;  %v7386_v61 = vadd.f32 %v7385_v39, %v7345_v10 }
 0x446   :  { %v7387_v29 = vpop.f32.mrf.mxu0 }
 0x447   :  { %v7428_v9 = vpop.f32.mrf.mxu1  ;;  %v7427_v18 = vadd.f32 %v7426_v51, %v7386_v61 }
 0x448   :  { %v7388_v46 = vpop.f32.mrf.mxu0 }
 0x449   :  { %v7429_v48 = vpop.f32.mrf.mxu1 }
 0x482   :  { %v7465_v30 = vpop.f32.mrf.mxu0 }
 0x483   :  { %v7506_v58 = vpop.f32.mrf.mxu1  ;;  %v7466_v22 = vadd.f32 %v7465_v30, %v7425_v28 }
 0x484   :  { %v7467_v47 = vpop.f32.mrf.mxu0 }
 0x485   :  { %v7508_v17 = vpop.f32.mrf.mxu1  ;;  %v7507_v6 = vadd.f32 %v7506_v58, %v7466_v22  ;;  %v7468_v50 = vadd.f32 %v7467_v47, %v7427_v18 }
 0x486   :  { %v7469_v7 = vpop.f32.mrf.mxu0 }
 0x487   :  { %v7510_v27 = vpop.f32.mrf.mxu1  ;;  %v7509_v43 = vadd.f32 %v7508_v17, %v7468_v50 }
 0x488   :  { %v7470_v54 = vpop.f32.mrf.mxu0 }
 0x489   :  { %v7511_v55 = vpop.f32.mrf.mxu1 }
 0x4c2   :  { %v7547_v42 = vpop.f32.mrf.mxu0 }
 0x4c3   :  { %v7588_v52 = vpop.f32.mrf.mxu1  ;;  %v7548_v13 = vadd.f32 %v7547_v42, %v7507_v6 }
 0x4c4   :  { %v7549_v15 = vpop.f32.mrf.mxu0 }
 0x4c5   :  { %v7590_v11 = vpop.f32.mrf.mxu1  ;;  %v7589_v24 = vadd.f32 %v7588_v52, %v7548_v13  ;;  %v7550_v25 = vadd.f32 %v7549_v15, %v7509_v43 }
 0x4c6   :  { %v7551_v8 = vpop.f32.mrf.mxu0 }
 0x4c7   :  { %v7592_v36 = vpop.f32.mrf.mxu1  ;;  %v7607_v44 = vrot.slane %v7589_v24, 4  ;;  %v7591_v45 = vadd.f32 %v7590_v11, %v7550_v25 }
 0x4c8   :  { %v7552_v37 = vpop.f32.mrf.mxu0 }
 0x4c9   :  { %v7593_v19 = vpop.f32.mrf.mxu1  ;;  %v7608_v20 = vadd.f32 %v7607_v44, %v7589_v24  ;;  %v7613_v5 = vrot.slane %v7591_v45, 4 }
 0x4cb   :  { %v7609_v59 = vrot.slane %v7608_v20, 2  ;;  %v7614_v60 = vadd.f32 %v7613_v5, %v7591_v45 }
 0x4cd   :  { %v7610_v16 = vadd.f32 %v7609_v59, %v7608_v20  ;;  %v7615_v56 = vrot.slane %v7614_v60, 2 }
 0x4cf   :  { %v7611_v57 = vrot.slane %v7610_v16, 1  ;;  %v7616_v31 = vadd.f32 %v7615_v56, %v7614_v60 }
 0x4d1   :  { %v7612_v14 = vadd.f32 %v7611_v57, %v7610_v16  ;;  %v7617_v62 = vrot.slane %v7616_v31, 1 }
 0x4d3   :  { %v7622_v40 = vmul.f32 0.125, %v7612_v14  ;;  %v7618_v32 = vadd.f32 %v7617_v62, %v7616_v31 }
 0x4d5   :  { %v7626_v33 = vsub.f32 %v7589_v24, %v7622_v40  ;;  %v7623_v0 = vmul.f32 0.125, %v7618_v32 }
 0x4d7   :  { %v7630_v2 = vmul.f32 %v7626_v33, %v7626_v33  ;;  %v7627_v4 = vsub.f32 %v7591_v45, %v7623_v0 }
 0x4d9   :  { %v7644_v1 = vrot.slane %v7630_v2, 4  ;;  %v7631_v34 = vmul.f32 %v7627_v4, %v7627_v4 }
 0x4db   :  { %v7645_v35 = vadd.f32 %v7644_v1, %v7630_v2  ;;  %v7650_v12 = vrot.slane %v7631_v34, 4 }
 0x4dd   :  { %v7646_v23 = vrot.slane %v7645_v35, 2  ;;  %v7651_v49 = vadd.f32 %v7650_v12, %v7631_v34 }
 0x4df   :  { %v7647_v26 = vadd.f32 %v7646_v23, %v7645_v35  ;;  %v7652_v3 = vrot.slane %v7651_v49, 2 }
 0x4e1   :  { %v7648_v10 = vrot.slane %v7647_v26, 1  ;;  %v7653_v21 = vadd.f32 %v7652_v3, %v7651_v49 }
 0x4e3   :  { %v7649_v53 = vadd.f32 %v7648_v10, %v7647_v26  ;;  %v7654_v41 = vrot.slane %v7653_v21, 1 }
 0x4e5   :  { %v7658_v63 = vmul.f32 0.125, %v7649_v53  ;;  %v7655_v38 = vadd.f32 %v7654_v41, %v7653_v21 }
 0x4e7   :  { %v7662_v39 = vadd.f32 1e-05, %v7658_v63  ;;  %v7659_v51 = vmul.f32 0.125, %v7655_v38 }
 0x4e9   :  { %10338 = vrsqrt.f32 %v7662_v39  ;;  %v7663_v28 = vadd.f32 1e-05, %v7659_v51 }
 0x4eb   :  { %10340 = vrsqrt.f32 %v7663_v28 }
 0x4f6   :  { %v10339_v61 = vpop.eup %10338 }
 0x4f7   :  { %v7670_v29 = vmul.f32 %v10339_v61, %v7626_v33 }
 0x4f8   :  { %v10341_v9 = vpop.eup %10340 }
 0x4f9   :  { %v7678_v18 = vmul.f32 0.2, %v7670_v29  ;;  %v7671_v46 = vmul.f32 %v10341_v9, %v7627_v4  ;;  %vm7674_vm2 = vcmp.gt.f32.partialorder %v7670_v29, 0.0 }
 0x4fb   :  { %vm7675_vm3 = vcmp.gt.f32.partialorder %v7671_v46, 0.0  ;;  %v7679_v48 = vmul.f32 0.2, %v7671_v46  ;;  %v7682_v30 = vsel %vm7674_vm2, %v7670_v29, %v7678_v18 }
 0x4fd   :  { %v7683_v58 = vsel %vm7675_vm3, %v7671_v46, %v7679_v48 }
 0x4fe   :  { %v8765_v22 = vpack.c.bf16 %v7683_v58, %v7682_v30 }
 0x500   :  { %7701 = vst [vmem:[%s13776_s2 + $0x8] sm:$0xff] %v8765_v22 }

</bundles_post_ra>
